<compile_context>
chip_gen: v5e
topology: v5e:2x2
jax: 0.10.0
libtpu: 0.0.40
codegen_flags: <defaults>
</compile_context>

<pallas_src>
import functools

import jax
import jax.numpy as jnp
from jax.experimental import pallas as pl
from jax.experimental.pallas import tpu as pltpu

K = 5                 # kernel size
PAD = 2               # conv_transpose padding; equivalent-conv padding = K-1-PAD = 2 as well
CIN = 28
COUT = 46
COUT_PAD = 128        # lane-dense output channels (sliced back to 46 in the wrapper)
KWC = K * CIN         # 140 : per-kh contraction width (kw * CIN + c)
ROW_TILE = 32         # image rows per grid step (clamped for small images)


def _round_up(a, b):
    return (a + b - 1) // b * b


def _conv_kernel(x_ref, w_ref, b_ref, o_ref, *, row_tile, w_pad):
    # x_ref: (1, (row_tile + 2*PAD) * w_pad, KWC)  bf16  width-gathered rows (+ halo)
    # w_ref: (K, KWC, COUT_PAD)                    bf16  resident weights
    # b_ref: (1, COUT_PAD)                         f32   resident bias
    # o_ref: (1, row_tile * w_pad, COUT_PAD)       f32   lane-dense output tile
    m = row_tile * w_pad
    acc = jnp.dot(x_ref[0, 0:m, :], w_ref[0],
                  preferred_element_type=jnp.float32)
    for kh in range(1, K):
        acc = acc + jnp.dot(x_ref[0, kh * w_pad: kh * w_pad + m, :], w_ref[kh],
                            preferred_element_type=jnp.float32)
    acc = acc + b_ref[...]
    # sigmoid(acc) = 1 / (1 + exp(-acc)); exp + approx reciprocal both live on the EUP.
    o_ref[0] = pl.reciprocal(1.0 + jnp.exp(-acc), approx=True)


@jax.jit
def conv_transpose_sigmoid(x, w_t, bias):
    """x: (N, 28, H, W); w_t: (28, 46, 5, 5) PyTorch ConvTranspose2d layout; bias: (46,)."""
    N, C, H, W = x.shape
    assert C == CIN
    th = min(ROW_TILE, _round_up(H, 8))        # rows per tile (multiple of 8)
    T = -(-H // th)                            # row tiles per image
    wt = max(_round_up(W, 16), 16)             # padded width (sublane-aligned for bf16)
    hp = T * th + 2 * PAD                      # padded input rows incl. halo coverage

    # NCHW -> NHWC, bf16, pad rows/cols (equivalent-conv padding = 2 each side).
    xh = jnp.transpose(x, (0, 2, 3, 1)).astype(jnp.bfloat16)               # (N,H,W,CIN)
    xh = jnp.pad(xh, ((0, 0), (PAD, hp - H - PAD), (PAD, PAD), (0, 0)))    # (N,hp,W+4,CIN)

    # Width-direction im2col only (5x): last dim index = kw*CIN + c.
    xkw = jnp.stack([xh[:, :, kw:kw + W, :] for kw in range(K)], axis=3)   # (N,hp,W,K,CIN)
    xkw = xkw.reshape(N, hp, W, KWC)
    xkw = jnp.pad(xkw, ((0, 0), (0, 0), (0, wt - W), (0, 0)))              # (N,hp,wt,KWC)

    # Row tiles with a 2*PAD halo so each grid step is self-contained.
    tiles = jnp.stack([xkw[:, t * th: t * th + th + 2 * PAD] for t in range(T)], axis=1)
    rb = (th + 2 * PAD) * wt
    x_tiles = tiles.reshape(N * T, rb, KWC)                                # (N*T, rb, 140)

    # ConvTranspose2d weight (in,out,kh,kw) -> equivalent-conv weight, flipped + swapped,
    # laid out as (kh, kw*CIN + c, cout), channel-padded, bf16.
    w_conv = jnp.transpose(w_t[:, :, ::-1, ::-1], (2, 3, 0, 1))            # (K,K,CIN,COUT)
    w_mat = jnp.pad(w_conv.reshape(K, KWC, COUT),
                    ((0, 0), (0, 0), (0, COUT_PAD - COUT))).astype(jnp.bfloat16)
    b_mat = jnp.pad(bias.astype(jnp.float32).reshape(1, COUT),
                    ((0, 0), (0, COUT_PAD - COUT)))

    m = th * wt
    g = N * T
    kernel = functools.partial(_conv_kernel, row_tile=th, w_pad=wt)
    out = pl.pallas_call(
        kernel,
        out_shape=jax.ShapeDtypeStruct((g, m, COUT_PAD), jnp.float32),
        grid_spec=pltpu.PrefetchScalarGridSpec(
            num_scalar_prefetch=0,
            grid=(g,),
            in_specs=[
                pl.BlockSpec((1, rb, KWC), lambda i: (i, 0, 0)),
                pl.BlockSpec((K, KWC, COUT_PAD), lambda i: (0, 0, 0)),   # resident weights
                pl.BlockSpec((1, COUT_PAD), lambda i: (0, 0)),           # resident bias
            ],
            out_specs=pl.BlockSpec((1, m, COUT_PAD), lambda i: (i, 0, 0)),
        ),
        compiler_params=pltpu.CompilerParams(
            dimension_semantics=("parallel",),
            vmem_limit_bytes=32 * 1024 * 1024),
    )(x_tiles, w_mat, b_mat)

    # Strip width/row/channel padding, back to NCHW f32.
    y = out.reshape(N, T, th, wt, COUT_PAD)[:, :, :, :W, :COUT]
    y = y.reshape(N, T * th, W, COUT)[:, :H]
    return jnp.transpose(y, (0, 3, 1, 2))


def reference(x, w_t, bias):
    """Literal ConvTranspose2d (stride=1, padding=2) scatter definition + sigmoid."""
    N, C, H, W = x.shape
    x32 = x.astype(jnp.float32)
    w32 = w_t.astype(jnp.float32)
    y = jnp.zeros((N, COUT, H + K - 1, W + K - 1), jnp.float32)
    for kh in range(K):
        for kw in range(K):
            y = y.at[:, :, kh:kh + H, kw:kw + W].add(
                jnp.einsum('nchw,co->nohw', x32, w32[:, :, kh, kw]))
    y = y[:, :, PAD:PAD + H, PAD:PAD + W] + bias.astype(jnp.float32)[None, :, None, None]
    return jax.nn.sigmoid(y)


if __name__ == "__main__":
    key = jax.random.PRNGKey(0)
    kx, kw_, kb = jax.random.split(key, 3)

    # Small shapes; H=40 -> 2 row tiles (exercises the halo seam), W=17 exercises width pad.
    N, H, W = 2, 40, 17
    x = jax.random.normal(kx, (N, CIN, H, W), dtype=jnp.float32)
    # PyTorch ConvTranspose2d weight layout: (in_ch, out_ch, kH, kW)
    w_t = jax.random.normal(kw_, (CIN, COUT, K, K), dtype=jnp.float32) * 0.05
    bias = jax.random.normal(kb, (COUT,), dtype=jnp.float32) * 0.05

    out = jax.block_until_ready(conv_transpose_sigmoid(x, w_t, bias))
    ref = jax.block_until_ready(reference(x, w_t, bias))

    assert out.shape == (N, COUT, H, W), out.shape
    err = float(jnp.max(jnp.abs(out - ref)))
    assert err < 2e-2, f"max abs err {err} vs independent ConvTranspose2d reference"

    print("KERNEL_OK")
</pallas_src>

<mosaic_0001>
module attributes {stable_mosaic.version = 11 : i64} {
  func.func @_conv_kernel(%arg0: i32, %arg1: memref<1x1152x140xbf16, #tpu.memory_space<vmem>>, %arg2: memref<5x140x128xbf16, #tpu.memory_space<vmem>>, %arg3: memref<1x128xf32, #tpu.memory_space<vmem>>, %arg4: memref<1x1024x128xf32, #tpu.memory_space<vmem>>) attributes {dimension_semantics = [#tpu.dimension_semantics<parallel>], iteration_bounds = array<i64: 4>, scalar_prefetch = 0 : i64, scratch_operands = 0 : i64, tpu.core_type = #tpu.core_type<tc>, window_params = [{transform_indices = @transform_0, window_bounds = array<i64: 1, 1152, 140>}, {pipeline_mode = #tpu.pipeline_mode<synchronous>, transform_indices = @transform_1, window_bounds = array<i64: 5, 140, 128>}, {pipeline_mode = #tpu.pipeline_mode<synchronous>, transform_indices = @transform_2, window_bounds = array<i64: 1, 128>}, {transform_indices = @transform_3, window_bounds = array<i64: 1, 1024, 128>}]} {
    %c0 = arith.constant 0 : index
    %c0_0 = arith.constant 0 : index
    %c0_1 = arith.constant 0 : index
    %0 = vector.load %arg1[%c0, %c0_0, %c0_1] : memref<1x1152x140xbf16, #tpu.memory_space<vmem>>, vector<1x1024x140xbf16>
    %1 = vector.shape_cast %0 : vector<1x1024x140xbf16> to vector<1024x140xbf16>
    %c0_2 = arith.constant 0 : index
    %c0_3 = arith.constant 0 : index
    %c0_4 = arith.constant 0 : index
    %2 = vector.load %arg2[%c0_2, %c0_3, %c0_4] : memref<5x140x128xbf16, #tpu.memory_space<vmem>>, vector<1x140x128xbf16>
    %3 = vector.shape_cast %2 : vector<1x140x128xbf16> to vector<140x128xbf16>
    %cst = arith.constant dense<0.000000e+00> : vector<1024x128xf32>
    %4 = tpu.matmul %1, %3, %cst {dimension_numbers = #tpu.dot_dimension_numbers<[1], [0], [0], [1], [0, 0, 1, 1], [], []>} : vector<1024x140xbf16>, vector<140x128xbf16>, vector<1024x128xf32> -> vector<1024x128xf32>
    %c0_5 = arith.constant 0 : index
    %c32 = arith.constant 32 : index
    %c0_6 = arith.constant 0 : index
    %5 = vector.load %arg1[%c0_5, %c32, %c0_6] : memref<1x1152x140xbf16, #tpu.memory_space<vmem>>, vector<1x1024x140xbf16>
    %6 = vector.shape_cast %5 : vector<1x1024x140xbf16> to vector<1024x140xbf16>
    %c1 = arith.constant 1 : index
    %c0_7 = arith.constant 0 : index
    %c0_8 = arith.constant 0 : index
    %7 = vector.load %arg2[%c1, %c0_7, %c0_8] : memref<5x140x128xbf16, #tpu.memory_space<vmem>>, vector<1x140x128xbf16>
    %8 = vector.shape_cast %7 : vector<1x140x128xbf16> to vector<140x128xbf16>
    %cst_9 = arith.constant dense<0.000000e+00> : vector<1024x128xf32>
    %9 = tpu.matmul %6, %8, %cst_9 {dimension_numbers = #tpu.dot_dimension_numbers<[1], [0], [0], [1], [0, 0, 1, 1], [], []>} : vector<1024x140xbf16>, vector<140x128xbf16>, vector<1024x128xf32> -> vector<1024x128xf32>
    %10 = arith.addf %4, %9 : vector<1024x128xf32>
    %c0_10 = arith.constant 0 : index
    %c64 = arith.constant 64 : index
    %c0_11 = arith.constant 0 : index
    %11 = vector.load %arg1[%c0_10, %c64, %c0_11] : memref<1x1152x140xbf16, #tpu.memory_space<vmem>>, vector<1x1024x140xbf16>
    %12 = vector.shape_cast %11 : vector<1x1024x140xbf16> to vector<1024x140xbf16>
    %c2 = arith.constant 2 : index
    %c0_12 = arith.constant 0 : index
    %c0_13 = arith.constant 0 : index
    %13 = vector.load %arg2[%c2, %c0_12, %c0_13] : memref<5x140x128xbf16, #tpu.memory_space<vmem>>, vector<1x140x128xbf16>
    %14 = vector.shape_cast %13 : vector<1x140x128xbf16> to vector<140x128xbf16>
    %cst_14 = arith.constant dense<0.000000e+00> : vector<1024x128xf32>
    %15 = tpu.matmul %12, %14, %cst_14 {dimension_numbers = #tpu.dot_dimension_numbers<[1], [0], [0], [1], [0, 0, 1, 1], [], []>} : vector<1024x140xbf16>, vector<140x128xbf16>, vector<1024x128xf32> -> vector<1024x128xf32>
    %16 = arith.addf %10, %15 : vector<1024x128xf32>
    %c0_15 = arith.constant 0 : index
    %c96 = arith.constant 96 : index
    %c0_16 = arith.constant 0 : index
    %17 = vector.load %arg1[%c0_15, %c96, %c0_16] : memref<1x1152x140xbf16, #tpu.memory_space<vmem>>, vector<1x1024x140xbf16>
    %18 = vector.shape_cast %17 : vector<1x1024x140xbf16> to vector<1024x140xbf16>
    %c3 = arith.constant 3 : index
    %c0_17 = arith.constant 0 : index
    %c0_18 = arith.constant 0 : index
    %19 = vector.load %arg2[%c3, %c0_17, %c0_18] : memref<5x140x128xbf16, #tpu.memory_space<vmem>>, vector<1x140x128xbf16>
    %20 = vector.shape_cast %19 : vector<1x140x128xbf16> to vector<140x128xbf16>
    %cst_19 = arith.constant dense<0.000000e+00> : vector<1024x128xf32>
    %21 = tpu.matmul %18, %20, %cst_19 {dimension_numbers = #tpu.dot_dimension_numbers<[1], [0], [0], [1], [0, 0, 1, 1], [], []>} : vector<1024x140xbf16>, vector<140x128xbf16>, vector<1024x128xf32> -> vector<1024x128xf32>
    %22 = arith.addf %16, %21 : vector<1024x128xf32>
    %c0_20 = arith.constant 0 : index
    %c128 = arith.constant 128 : index
    %c0_21 = arith.constant 0 : index
    %23 = vector.load %arg1[%c0_20, %c128, %c0_21] : memref<1x1152x140xbf16, #tpu.memory_space<vmem>>, vector<1x1024x140xbf16>
    %24 = vector.shape_cast %23 : vector<1x1024x140xbf16> to vector<1024x140xbf16>
    %c4 = arith.constant 4 : index
    %c0_22 = arith.constant 0 : index
    %c0_23 = arith.constant 0 : index
    %25 = vector.load %arg2[%c4, %c0_22, %c0_23] : memref<5x140x128xbf16, #tpu.memory_space<vmem>>, vector<1x140x128xbf16>
    %26 = vector.shape_cast %25 : vector<1x140x128xbf16> to vector<140x128xbf16>
    %cst_24 = arith.constant dense<0.000000e+00> : vector<1024x128xf32>
    %27 = tpu.matmul %24, %26, %cst_24 {dimension_numbers = #tpu.dot_dimension_numbers<[1], [0], [0], [1], [0, 0, 1, 1], [], []>} : vector<1024x140xbf16>, vector<140x128xbf16>, vector<1024x128xf32> -> vector<1024x128xf32>
    %28 = arith.addf %22, %27 : vector<1024x128xf32>
    %c0_25 = arith.constant 0 : index
    %c0_26 = arith.constant 0 : index
    %29 = vector.load %arg3[%c0_25, %c0_26] : memref<1x128xf32, #tpu.memory_space<vmem>>, vector<1x128xf32>
    %30 = vector.broadcast %29 : vector<1x128xf32> to vector<1024x128xf32>
    %31 = arith.addf %28, %30 : vector<1024x128xf32>
    %cst_27 = arith.constant 0.000000e+00 : f32
    %32 = vector.broadcast %cst_27 : f32 to vector<1024x128xf32>
    %33 = arith.subf %32, %31 : vector<1024x128xf32>
    %34 = math.exp %33 : vector<1024x128xf32>
    %cst_28 = arith.constant 1.000000e+00 : f32
    %35 = vector.broadcast %cst_28 : f32 to vector<1024x128xf32>
    %36 = arith.addf %35, %34 : vector<1024x128xf32>
    %37 = tpu.reciprocal %36 {approx = true} : vector<1024x128xf32> -> vector<1024x128xf32>
    %c0_29 = arith.constant 0 : index
    %c0_30 = arith.constant 0 : index
    %c0_31 = arith.constant 0 : index
    %38 = vector.load %arg4[%c0_29, %c0_30, %c0_31] : memref<1x1024x128xf32, #tpu.memory_space<vmem>>, vector<1x1024x128xf32>
    %39 = vector.shape_cast %38 : vector<1x1024x128xf32> to vector<1024x128xf32>
    %40 = vector.shape_cast %37 : vector<1024x128xf32> to vector<1x1024x128xf32>
    tpu.vector_store %arg4[%c0_29, %c0_30, %c0_31], %40 {strides = array<i32>} : memref<1x1024x128xf32, #tpu.memory_space<vmem>>, vector<1x1024x128xf32>,
    return
  }
  func.func @transform_0(%arg0: i32) -> (i32, i32, i32) {
    %c0_i32 = arith.constant 0 : i32
    %c0_i32_0 = arith.constant 0 : i32
    %c0_i32_1 = arith.constant 0 : i32
    return %arg0, %c0_i32, %c0_i32_0 : i32, i32, i32
  }
  func.func @transform_1(%arg0: i32) -> (i32, i32, i32) {
    %c0_i32 = arith.constant 0 : i32
    %c0_i32_0 = arith.constant 0 : i32
    %c0_i32_1 = arith.constant 0 : i32
    %c0_i32_2 = arith.constant 0 : i32
    return %c0_i32, %c0_i32_0, %c0_i32_1 : i32, i32, i32
  }
  func.func @transform_2(%arg0: i32) -> (i32, i32) {
    %c0_i32 = arith.constant 0 : i32
    %c0_i32_0 = arith.constant 0 : i32
    %c0_i32_1 = arith.constant 0 : i32
    return %c0_i32, %c0_i32_0 : i32, i32
  }
  func.func @transform_3(%arg0: i32) -> (i32, i32, i32) {
    %c0_i32 = arith.constant 0 : i32
    %c0_i32_0 = arith.constant 0 : i32
    %c0_i32_1 = arith.constant 0 : i32
    return %arg0, %c0_i32, %c0_i32_0 : i32, i32, i32
  }
}

</mosaic_0001>

<bundles_post_ra>
// kernel: conv_transpose_sigmoid.1
= control target key start
LH: loop header
LB: loop body
LE: loop exit
PB: predicated region body
PF: predicated region fallthrough
CT: control target
= control target key end

     0   :  { %s12554_s12 = smov 0   ;;  %s16028_s0 = inlined_call_operand.vmem [shape: bf16[4,1152,140], index: 0, kind: input, shape index: {}]   ;;  %s16029_s1 = inlined_call_operand.vmem [shape: bf16[5,140,128], index: 1, kind: input, shape index: {}]   ;;  %s16030_s2 = inlined_call_operand.vmem [shape: f32[1,128], index: 2, kind: input, shape index: {}]   ;;  %s16031_s3 = inlined_call_operand.vmem [shape: f32[4,1024,128], index: 3, kind: output, shape index: {}]  }
   0x1 LB: > { %s8789_s13 = sadd.s32 4294967295, %s12532_s12   ;;  %p8793_p0 = scmp.ge.s32.totalorder %s12532_s12, 1  ;;  %s12532_s12 = sphi %s12554_s12, %s13_s12  }
   0x2   : > { %p137_p1 = scmp.lt.s32.totalorder %s12532_s12, 5 }
   0x4   : > { %p138_p2 = pnand %p8793_p0, %p137_p1 }
   0x6   : > { %141 = sbr.rel (%p138_p2) target bundleno = 2749 (0xabd), region = 32 }
   0xb   : > { %v11584_v0 = vld [vmem:[%s16029_s1 + $0x80] sm:$0xff]  ;;  %v11571_v1 = vld [vmem:[%s16029_s1 + $0x38] sm:$0xff]  ;;  %p161_p3 = scmp.lt.s32.totalorder %s8789_s13, 3  ;;  %v9361_v3 = vld [vmem:[%s16029_s1 + $0x88] sm:$0xf]  ;;  %vm1163_vm0 = vcmask 1045504  }
   0xc   : > { %v11583_v2 = vld [vmem:[%s16029_s1 + $0x78] sm:$0xff]  ;;  %v11585_v4 = vld [vmem:[%s16029_s1 + $0x88] sm:$0x30]  ;;  %1167 = vmatpush.bf16.msra.mxu0 %v11584_v0  ;;  %1905 = vmatpush.bf16.msra.mxu2 %v11571_v1  ;;  %v11570_v6 = vld [vmem:[%s16029_s1 + $0x30] sm:$0xff]  ;;  %vm970_vm1 = vcmask 97280  }
   0xd   : > { %v9362_v5 = vor.u32 %v11585_v4, %v9361_v3  ;;  %v9477_v7 = vld [vmem:[%s16029_s1 + $0x40] sm:$0xf]  ;;  %v11572_v8 = vld [vmem:[%s16029_s1 + $0x40] sm:$0x30]  ;;  %s16809_s13 = smov (!%p161_p3, %s8789_s13), 3  ;;  %v11721_v14 = vld [vmem:[%s16029_s1 + $0xc8] sm:$0xff] }
   0xe   : > { %v9478_v9 = vor.u32 %v11572_v8, %v9477_v7  ;;  %v10107_v10 = vld [vmem:[%s16029_s1 + $0xd0] sm:$0xf]  ;;  %v11722_v11 = vld [vmem:[%s16029_s1 + $0xd0] sm:$0x30]  ;;  %s11999_s7 = smul.u32 1152, %s16809_s13  ;;  %v11569_v18 = vld [vmem:[%s16029_s1 + $0x28] sm:$0xff] }
   0xf   : > { %v1165_v12 = vsel %vm1163_vm0, %v9362_v5, 0  ;;  %v10108_v13 = vor.u32 %v11722_v11, %v10107_v10  ;;  %v11582_v17 = vld [vmem:[%s16029_s1 + $0x70] sm:$0xff]  ;;  %v11581_v25 = vld [vmem:[%s16029_s1 + $0x68] sm:$0xff]  ;;  %v11568_v26 = vld [vmem:[%s16029_s1 + $0x20] sm:$0xff]  ;;  %s11435_s23 = sshll.u32 %s16809_s13, 10 }
  0x10   : > { %11997 = vmatpush.bf16.msra.mxu1 %v1165_v12  ;;  %v1903_v15 = vsel %vm1163_vm0, %v9478_v9, 0  ;;  %1168 = vmatpush.bf16.msra.mxu0 %v11583_v2  ;;  %s12603_s14 = scalar_lea.vmem %s16028_s0, %s11999_s7  ;;  %v11580_v27 = vld [vmem:[%s16029_s1 + $0x60] sm:$0xff]  ;;  %v11567_v28 = vld [vmem:[%s16029_s1 + $0x18] sm:$0xff]  ;;  %v11566_v30 = vld [vmem:[%s16029_s1 + $0x10] sm:$0xff]  ;;  %s15089_s26 = scalar_lea.vmem %s16031_s3, %s11435_s23 }
  0x11   : > { %1906 = vmatpush.bf16.msra.mxu2 %v11570_v6  ;;  %v3532_v16 = vsel %vm1163_vm0, %v10108_v13, 0  ;;  %11998 = vmatpush.bf16.msra.mxu3 %v1903_v15  ;;  %v11502_v19 = vld [vmem:[%s12603_s14 + $0x214] sm:$0xf]  ;;  %v9067_v20 = vld [vmem:[%s12603_s14 + $0x218] sm:$0xf0]  ;;  %v11565_v38 = vld [vmem:[%s16029_s1 + $0x8] sm:$0xff] }
  0x12   : > { %v11498_v21 = vld [vmem:[%s12603_s14 + $0x1f4] sm:$0xf]  ;;  %v9070_v22 = vor.u32 %v11502_v19, %v9067_v20  ;;  %v9051_v23 = vld [vmem:[%s12603_s14 + $0x1f8] sm:$0xf0]  ;;  %v11504_v31 = vld [vmem:[%s12603_s14 + $0x224] sm:$0xf] }
  0x13   : > { %v12616_v24 = vor.u32 %v11498_v21, %v9051_v23  ;;  %v11579_v29 = vld [vmem:[%s16029_s1 + $0x58] sm:$0xff]  ;;  %v9075_v32 = vld [vmem:[%s12603_s14 + $0x228] sm:$0xf0]  ;;  %v11500_v33 = vld [vmem:[%s12603_s14 + $0x204] sm:$0xf] }
  0x14   : > { %3534 = vmatpush.bf16.msrb.mxu1 %v11721_v14  ;;  %1169 = vmatpush.bf16.msra.mxu0 %v11582_v17  ;;  %v9059_v34 = vld [vmem:[%s12603_s14 + $0x208] sm:$0xf0]  ;;  %v9078_v35 = vor.u32 %v11504_v31, %v9075_v32  ;;  %v11578_v36 = vld [vmem:[%s16029_s1 + $0x50] sm:$0xff]  ;;  %v8817_v40 = vld [vmem:[%s12603_s14 + $0x20] sm:$0xf] }
  0x15   : > { %3870 = vmatpush.bf16.msrb.mxu3 %v3532_v16  ;;  %16034 = vst [vmem:[#allocation2_spill] sm:$0xff] %v12616_v24  ;;  %9394 = vmatmul.msk.bf16.vlgmr.msra.gmra.mxu1 %vm970_vm1, %v9070_v22  ;;  %v12646_v37 = vor.u32 %v11500_v33, %v9059_v34  ;;  %v11577_v39 = vld [vmem:[%s16029_s1 + $0x48] sm:$0xff]  ;;  %v11564_v42 = vld [vmem:[%s16029_s1] sm:$0xff]  ;;  %v11506_v47 = vld [vmem:[%s12603_s14 + $0x234] sm:$0xf] }
  0x16   : > { %9510 = vmatmul.msk.bf16.vlgmr.msra.gmra.mxu3 %vm970_vm1, %v12616_v24  ;;  %1907 = vmatpush.bf16.msra.mxu2 %v11569_v18  ;;  %v11441_v41 = vld [vmem:[%s12603_s14 + $0x24] sm:$0xf0]  ;;  %v9429_v43 = vld [vmem:[%s12603_s14] sm:$0xf]  ;;  %v9083_v48 = vld [vmem:[%s12603_s14 + $0x238] sm:$0xf0] }
  0x17   : > { %16035 = vst [vmem:[#allocation3_spill] sm:$0xff] %v12646_v37  ;;  %v11437_v44 = vld [vmem:[%s12603_s14 + $0x4] sm:$0xf0]  ;;  %v8818_v45 = vor.u32 %v11441_v41, %v8817_v40  ;;  %v9086_v49 = vor.u32 %v11506_v47, %v9083_v48  ;;  %v8825_v50 = vld [vmem:[%s12603_s14 + $0x30] sm:$0xf]  ;;  %v11720_v56 = vld [vmem:[%s16029_s1 + $0xc0] sm:$0xff] }
  0x18   : > { %1170 = vmatpush.bf16.msra.mxu0 %v11581_v25  ;;  %v9430_v46 = vor.u32 %v11437_v44, %v9429_v43  ;;  %v11443_v51 = vld [vmem:[%s12603_s14 + $0x34] sm:$0xf0]  ;;  %v9437_v52 = vld [vmem:[%s12603_s14 + $0x10] sm:$0xf]  ;;  %v11508_v57 = vld [vmem:[%s12603_s14 + $0x244] sm:$0xf]  ;;  %3535 = vmatpush.bf16.msrb.mxu1 %v11720_v56 }
  0x19   : > { %v11439_v53 = vld [vmem:[%s12603_s14 + $0x14] sm:$0xf0]  ;;  %v8826_v54 = vor.u32 %v11443_v51, %v8825_v50  ;;  %v9091_v58 = vld [vmem:[%s12603_s14 + $0x248] sm:$0xf0]  ;;  %v8833_v60 = vld [vmem:[%s12603_s14 + $0x40] sm:$0xf] }
  0x1a   : > { %1908 = vmatpush.bf16.msra.mxu2 %v11568_v26  ;;  %v9438_v55 = vor.u32 %v11439_v53, %v9437_v52  ;;  %v9094_v59 = vor.u32 %v11508_v57, %v9091_v58  ;;  %v11445_v61 = vld [vmem:[%s12603_s14 + $0x44] sm:$0xf0]  ;;  %v11510_v63 = vld [vmem:[%s12603_s14 + $0x254] sm:$0xf]  ;;  %v9099_v0 = vld [vmem:[%s12603_s14 + $0x258] sm:$0xf0] }
  0x1b   : > { %v8834_v62 = vor.u32 %v11445_v61, %v8833_v60  ;;  %v9102_v1 = vor.u32 %v11510_v63, %v9099_v0  ;;  %v8841_v2 = vld [vmem:[%s12603_s14 + $0x50] sm:$0xf]  ;;  %v11447_v3 = vld [vmem:[%s12603_s14 + $0x54] sm:$0xf0]  ;;  %v11512_v5 = vld [vmem:[%s12603_s14 + $0x264] sm:$0xf] }
  0x1c   : > { %1171 = vmatpush.bf16.msra.mxu0 %v11580_v27  ;;  %v8842_v4 = vor.u32 %v11447_v3, %v8841_v2  ;;  %v9107_v6 = vld [vmem:[%s12603_s14 + $0x268] sm:$0xf0]  ;;  %v8849_v8 = vld [vmem:[%s12603_s14 + $0x60] sm:$0xf]  ;;  %v11449_v9 = vld [vmem:[%s12603_s14 + $0x64] sm:$0xf0] }
  0x1d   : > { %v9110_v7 = vor.u32 %v11512_v5, %v9107_v6  ;;  %v8850_v10 = vor.u32 %v11449_v9, %v8849_v8  ;;  %v11514_v11 = vld [vmem:[%s12603_s14 + $0x274] sm:$0xf]  ;;  %v8857_v14 = vld [vmem:[%s12603_s14 + $0x70] sm:$0xf]  ;;  %v11719_v17 = vld [vmem:[%s16029_s1 + $0xb8] sm:$0xff] }
  0x1e   : > { %1909 = vmatpush.bf16.msra.mxu2 %v11567_v28  ;;  %v11516_v18 = vld [vmem:[%s12603_s14 + $0x284] sm:$0xf]  ;;  %v9123_v19 = vld [vmem:[%s12603_s14 + $0x288] sm:$0xf0]  ;;  %3536 = vmatpush.bf16.msrb.mxu1 %v11719_v17  ;;  %v8865_v21 = vld [vmem:[%s12603_s14 + $0x80] sm:$0xf] }
  0x1f   : > { %v9126_v20 = vor.u32 %v11516_v18, %v9123_v19  ;;  %v11518_v25 = vld [vmem:[%s12603_s14 + $0x294] sm:$0xf]  ;;  %v9131_v26 = vld [vmem:[%s12603_s14 + $0x298] sm:$0xf0]  ;;  %v11520_v34 = vld [vmem:[%s12603_s14 + $0x2a4] sm:$0xf] }
  0x20   : > { %1172 = vmatpush.bf16.msra.mxu0 %v11579_v29  ;;  %v9134_v27 = vor.u32 %v11518_v25, %v9131_v26  ;;  %v8873_v29 = vld [vmem:[%s12603_s14 + $0x90] sm:$0xf]  ;;  %v8881_v40 = vld [vmem:[%s12603_s14 + $0xa0] sm:$0xf]  ;;  %v11457_v41 = vld [vmem:[%s12603_s14 + $0xa4] sm:$0xf0] }
  0x21   : > { %v9147_v47 = vld [vmem:[%s12603_s14 + $0x2b8] sm:$0xf0]  ;;  %v8889_v53 = vld [vmem:[%s12603_s14 + $0xb0] sm:$0xf]  ;;  %v11524_v60 = vld [vmem:[%s12603_s14 + $0x2c4] sm:$0xf] }
  0x22   : > { %1910 = vmatpush.bf16.msra.mxu2 %v11566_v30  ;;  %v11455_v30 = vld [vmem:[%s12603_s14 + $0x94] sm:$0xf0]  ;;  %v9155_v61 = vld [vmem:[%s12603_s14 + $0x2c8] sm:$0xf0]  ;;  %v11718_v2 = vld [vmem:[%s16029_s1 + $0xb0] sm:$0xff] }
  0x23   : > { %v8874_v31 = vor.u32 %v11455_v30, %v8873_v29  ;;  %3537 = vmatpush.bf16.msrb.mxu1 %v11718_v2  ;;  %v11461_v5 = vld [vmem:[%s12603_s14 + $0xc4] sm:$0xf0]  ;;  %v8905_v18 = vld [vmem:[%s12603_s14 + $0xd0] sm:$0xf]  ;;  %v11463_v19 = vld [vmem:[%s12603_s14 + $0xd4] sm:$0xf0] }
  0x24   : > { %1173 = vmatpush.bf16.msra.mxu0 %v11578_v36  ;;  %v11528_v26 = vld [vmem:[%s12603_s14 + $0x2e4] sm:$0xf] }
  0x25   : > { %9395 = vmatmul.msk.bf16.gmra.mxu1 %vm970_vm1, %v9078_v35 }
  0x26   : > { %9511 = vmatmul.msk.bf16.gmra.mxu3 %vm970_vm1, %v12646_v37  ;;  %1911 = vmatpush.bf16.msra.mxu2 %v11565_v38 }
  0x28   : > { %1174 = vmatpush.bf16.msra.mxu0 %v11577_v39 }
  0x2a   : > { %1912 = vmatpush.bf16.msra.mxu2 %v11564_v42  ;;  %v8882_v42 = vor.u32 %v11457_v41, %v8881_v40  ;;  %v11465_v40 = vld [vmem:[%s12603_s14 + $0xe4] sm:$0xf0] }
  0x2b   : > { %1175 = vmatmul.bf16.vlgmr.msra.gmra.mxu0 %v8818_v45 }
  0x2c   : > { %1503 = vmatpush.bf16.msrb.mxu0 %v1165_v12  ;;  %v9115_v12 = vld [vmem:[%s12603_s14 + $0x278] sm:$0xf0] }
  0x2d   : > { %1913 = vmatmul.bf16.vlgmr.msra.gmra.mxu2 %v9430_v46  ;;  %v9118_v13 = vor.u32 %v11514_v11, %v9115_v12  ;;  %v11522_v46 = vld [vmem:[%s12603_s14 + $0x2b4] sm:$0xf]  ;;  %v9163_v12 = vld [vmem:[%s12603_s14 + $0x2d8] sm:$0xf0] }
  0x2e   : > { %2241 = vmatpush.bf16.msrb.mxu2 %v1903_v15  ;;  %v11451_v15 = vld [vmem:[%s12603_s14 + $0x74] sm:$0xf0]  ;;  %v9150_v51 = vor.u32 %v11522_v46, %v9147_v47  ;;  %v11526_v11 = vld [vmem:[%s12603_s14 + $0x2d4] sm:$0xf] }
  0x2f   : > { %v8858_v16 = vor.u32 %v11451_v15, %v8857_v14 }
  0x35   : > { %9396 = vmatmul.msk.bf16.gmra.mxu1 %vm970_vm1, %v9086_v49 }
  0x36   : > { %9512 = vmatmul.msk.bf16.gmra.mxu3 %vm970_vm1, %v9070_v22  ;;  %v11453_v22 = vld [vmem:[%s12603_s14 + $0x84] sm:$0xf0] }
  0x37   : > { %v8866_v23 = vor.u32 %v11453_v22, %v8865_v21  ;;  %v8906_v21 = vor.u32 %v11463_v19, %v8905_v18 }
  0x3b   : > { %1180 = vmatmul.bf16.gmra.mxu0 %v8826_v54 }
  0x3d   : > { %1918 = vmatmul.bf16.gmra.mxu2 %v9438_v55 }
  0x45   : > { %9397 = vmatmul.msk.bf16.gmra.mxu1 %vm970_vm1, %v9094_v59 }
  0x46   : > { %9513 = vmatmul.msk.bf16.gmra.mxu3 %vm970_vm1, %v9078_v35  ;;  %v9139_v35 = vld [vmem:[%s12603_s14 + $0x2a8] sm:$0xf0] }
  0x47   : > { %v9142_v38 = vor.u32 %v11520_v34, %v9139_v35 }
  0x4b   : > { %1185 = vmatmul.bf16.gmra.mxu0 %v8834_v62 }
  0x4d   : > { %1923 = vmatmul.bf16.gmra.mxu2 %v8818_v45 }
  0x55   : > { %9398 = vmatmul.msk.bf16.gmra.mxu1 %vm970_vm1, %v9102_v1 }
  0x56   : > { %9514 = vmatmul.msk.bf16.gmra.mxu3 %vm970_vm1, %v9086_v49 }
  0x5b   : > { %1190 = vmatmul.bf16.gmra.mxu0 %v8842_v4 }
  0x5d   : > { %1928 = vmatmul.bf16.gmra.mxu2 %v8826_v54  ;;  %v11459_v54 = vld [vmem:[%s12603_s14 + $0xb4] sm:$0xf0] }
  0x5e   : > { %v8890_v56 = vor.u32 %v11459_v54, %v8889_v53  ;;  %v11530_v53 = vld [vmem:[%s12603_s14 + $0x2f4] sm:$0xf]  ;;  %v9179_v54 = vld [vmem:[%s12603_s14 + $0x2f8] sm:$0xf0] }
  0x65   : > { %9399 = vmatmul.msk.bf16.gmra.mxu1 %vm970_vm1, %v9110_v7 }
  0x66   : > { %9515 = vmatmul.msk.bf16.gmra.mxu3 %vm970_vm1, %v9094_v59 }
  0x6b   : > { %1195 = vmatmul.bf16.gmra.mxu0 %v8850_v10 }
  0x6d   : > { %1933 = vmatmul.bf16.gmra.mxu2 %v8834_v62 }
  0x75   : > { %9400 = vmatmul.msk.bf16.gmra.mxu1 %vm970_vm1, %v9118_v13 }
  0x76   : > { %9516 = vmatmul.msk.bf16.gmra.mxu3 %vm970_vm1, %v9102_v1  ;;  %v9158_v1 = vor.u32 %v11524_v60, %v9155_v61 }
  0x7b   : > { %1200 = vmatmul.bf16.gmra.mxu0 %v8858_v16 }
  0x7d   : > { %1938 = vmatmul.bf16.gmra.mxu2 %v8842_v4  ;;  %v8897_v4 = vld [vmem:[%s12603_s14 + $0xc0] sm:$0xf] }
  0x85   : > { %9401 = vmatmul.msk.bf16.gmra.mxu1 %vm970_vm1, %v9126_v20 }
  0x86   : > { %9517 = vmatmul.msk.bf16.gmra.mxu3 %vm970_vm1, %v9110_v7  ;;  %v8898_v7 = vor.u32 %v11461_v5, %v8897_v4  ;;  %v8921_v4 = vld [vmem:[%s12603_s14 + $0xf0] sm:$0xf]  ;;  %v11467_v5 = vld [vmem:[%s12603_s14 + $0xf4] sm:$0xf0] }
  0x8b   : > { %1205 = vmatmul.bf16.gmra.mxu0 %v8866_v23 }
  0x8d   : > { %1943 = vmatmul.bf16.gmra.mxu2 %v8850_v10 }
  0x92   : > { %v12710_v28 = vpop.f32.mrf.mxu1 }
  0x95   : > { %9402 = vmatmul.msk.bf16.gmra.mxu1 %vm970_vm1, %v9134_v27 }
  0x96   : > { %9518 = vmatmul.msk.bf16.gmra.mxu3 %vm970_vm1, %v9118_v13 }
  0x99   : > { %v12716_v32 = vpop.f32.mrf.mxu3 }
  0x9a   : > { %16036 = vst [vmem:[#allocation4_spill] sm:$0xff] %v12716_v32  ;;  %v12718_v33 = vpop.f32.mrf.mxu1 }
  0x9b   : > { %1210 = vmatmul.bf16.gmra.mxu0 %v8874_v31 }
  0x9d   : > { %1948 = vmatmul.bf16.gmra.mxu2 %v8858_v16  ;;  %v9166_v16 = vor.u32 %v11526_v11, %v9163_v12  ;;  %v8922_v11 = vor.u32 %v11467_v5, %v8921_v4  ;;  %v11717_v4 = vld [vmem:[%s16029_s1 + $0xa8] sm:$0xff] }
  0x9e   : > { %3538 = vmatpush.bf16.msrb.mxu1 %v11717_v4  ;;  %v11469_v5 = vld [vmem:[%s12603_s14 + $0x104] sm:$0xf0]  ;;  %v11534_v4 = vld [vmem:[%s12603_s14 + $0x314] sm:$0xf] }
  0xa1   : > { %v12722_v36 = vpop.f32.mrf.mxu3 }
  0xa2   : > { %16037 = vst [vmem:[#allocation5_spill] sm:$0xff] %v12722_v36  ;;  %v12724_v39 = vpop.f32.mrf.mxu1  ;;  %v9565_v36 = vld [vmem:[%s12603_s14 + $0x48] sm:$0xf0] }
  0xa5   : > { %9403 = vmatmul.msk.bf16.gmra.mxu1 %vm970_vm1, %v9142_v38 }
  0xa6   : > { %9519 = vmatmul.msk.bf16.gmra.mxu3 %vm970_vm1, %v9126_v20 }
  0xa8   : > { %v12732_v44 = vpop.f32.mrf.mxu0 }
  0xa9   : > { %v12730_v43 = vpop.f32.mrf.mxu3  ;;  %16039 = vst [vmem:[#allocation7_spill] sm:$0xff] %v12732_v44 }
  0xaa   : > { %16038 = vst [vmem:[#allocation6_spill] sm:$0xff] %v12730_v43  ;;  %v12734_v45 = vpop.f32.mrf.mxu1 }
  0xab   : > { %1215 = vmatmul.bf16.gmra.mxu0 %v8882_v42 }
  0xad   : > { %1953 = vmatmul.bf16.gmra.mxu2 %v8866_v23 }
  0xb0   : > { %v12738_v48 = vpop.f32.mrf.mxu2  ;;  %v12742_v50 = vpop.f32.mrf.mxu0 }
  0xb1   : > { %16040 = vst [vmem:[#allocation8_spill] sm:$0xff] %v12738_v48  ;;  %v12740_v49 = vpop.f32.mrf.mxu3 }
  0xb2   : > { %16041 = vst [vmem:[#allocation9_spill] sm:$0xff] %v12740_v49  ;;  %v12744_v52 = vpop.f32.mrf.mxu1 }
  0xb3   : > { %16042 = vst [vmem:[#allocation10_spill] sm:$0xff] %v12742_v50 }
  0xb5   : > { %9404 = vmatmul.msk.bf16.gmra.mxu1 %vm970_vm1, %v9150_v51 }
  0xb6   : > { %9520 = vmatmul.msk.bf16.gmra.mxu3 %vm970_vm1, %v9134_v27  ;;  %v9171_v27 = vld [vmem:[%s12603_s14 + $0x2e8] sm:$0xf0] }
  0xb7   : > { %v9174_v34 = vor.u32 %v11528_v26, %v9171_v27  ;;  %v11532_v26 = vld [vmem:[%s12603_s14 + $0x304] sm:$0xf]  ;;  %v9187_v27 = vld [vmem:[%s12603_s14 + $0x308] sm:$0xf0] }
  0xb8   : > { %v12750_v55 = vpop.f32.mrf.mxu2  ;;  %v12754_v58 = vpop.f32.mrf.mxu0 }
  0xb9   : > { %16043 = vst [vmem:[#allocation11_spill] sm:$0xff] %v12750_v55  ;;  %v12752_v57 = vpop.f32.mrf.mxu3 }
  0xba   : > { %16044 = vst [vmem:[#allocation12_spill] sm:$0xff] %v12752_v57  ;;  %v12756_v59 = vpop.f32.mrf.mxu1 }
  0xbb   : > { %16045 = vst [vmem:[#allocation13_spill] sm:$0xff] %v12754_v58  ;;  %1220 = vmatmul.bf16.gmra.mxu0 %v8890_v56  ;;  %v11495_v58 = vld [vmem:[%s12603_s14 + $0x1d4] sm:$0xf0] }
  0xbd   : > { %1958 = vmatmul.bf16.gmra.mxu2 %v8874_v31 }
  0xc0   : > { %v12760_v62 = vpop.f32.mrf.mxu2  ;;  %v12764_v0 = vpop.f32.mrf.mxu0 }
  0xc1   : > { %16046 = vst [vmem:[#allocation14_spill] sm:$0xff] %v12760_v62  ;;  %v12762_v63 = vpop.f32.mrf.mxu3 }
  0xc2   : > { %16047 = vst [vmem:[#allocation15_spill] sm:$0xff] %v12762_v63  ;;  %v12769_v3 = vpop.f32.mrf.mxu1 }
  0xc3   : > { %16048 = vst [vmem:[#allocation16_spill] sm:$0xff] %v12764_v0 }
  0xc5   : > { %9405 = vmatmul.msk.bf16.gmra.mxu1 %vm970_vm1, %v9158_v1 }
  0xc6   : > { %9521 = vmatmul.msk.bf16.gmra.mxu3 %vm970_vm1, %v9142_v38  ;;  %v8913_v38 = vld [vmem:[%s12603_s14 + $0xe0] sm:$0xf] }
  0xc8   : > { %v12775_v6 = vpop.f32.mrf.mxu2  ;;  %v12779_v9 = vpop.f32.mrf.mxu0 }
  0xc9   : > { %16049 = vst [vmem:[#allocation17_spill] sm:$0xff] %v12775_v6  ;;  %v12777_v8 = vpop.f32.mrf.mxu3 }
  0xca   : > { %16050 = vst [vmem:[#allocation18_spill] sm:$0xff] %v12777_v8  ;;  %v12781_v10 = vpop.f32.mrf.mxu1 }
  0xcb   : > { %16051 = vst [vmem:[#allocation19_spill] sm:$0xff] %v12779_v9  ;;  %1225 = vmatmul.bf16.gmra.mxu0 %v8898_v7 }
  0xcd   : > { %1963 = vmatmul.bf16.gmra.mxu2 %v8882_v42  ;;  %v8914_v42 = vor.u32 %v11465_v40, %v8913_v38 }
  0xd0   : > { %v12785_v13 = vpop.f32.mrf.mxu2  ;;  %v12789_v15 = vpop.f32.mrf.mxu0 }
  0xd1   : > { %16052 = vst [vmem:[#allocation20_spill] sm:$0xff] %v12785_v13  ;;  %v12787_v14 = vpop.f32.mrf.mxu3 }
  0xd2   : > { %16053 = vst [vmem:[#allocation21_spill] sm:$0xff] %v12787_v14  ;;  %v12791_v17 = vpop.f32.mrf.mxu1 }
  0xd3   : > { %16054 = vst [vmem:[#allocation22_spill] sm:$0xff] %v12789_v15 }
  0xd5   : > { %9406 = vmatmul.msk.bf16.gmra.mxu1 %vm970_vm1, %v9166_v16 }
  0xd6   : > { %9522 = vmatmul.msk.bf16.gmra.mxu3 %vm970_vm1, %v9150_v51 }
  0xd8   : > { %v12797_v20 = vpop.f32.mrf.mxu2  ;;  %v12801_v23 = vpop.f32.mrf.mxu0 }
  0xd9   : > { %16055 = vst [vmem:[#allocation23_spill] sm:$0xff] %v12797_v20  ;;  %v12799_v22 = vpop.f32.mrf.mxu3 }
  0xda   : > { %16056 = vst [vmem:[#allocation24_spill] sm:$0xff] %v12799_v22  ;;  %v12803_v25 = vpop.f32.mrf.mxu1 }
  0xdb   : > { %16057 = vst [vmem:[#allocation25_spill] sm:$0xff] %v12801_v23  ;;  %1230 = vmatmul.bf16.gmra.mxu0 %v8906_v21 }
  0xdd   : > { %1968 = vmatmul.bf16.gmra.mxu2 %v8890_v56 }
  0xe0   : > { %v12807_v29 = vpop.f32.mrf.mxu2  ;;  %v12811_v31 = vpop.f32.mrf.mxu0 }
  0xe1   : > { %16058 = vst [vmem:[#allocation26_spill] sm:$0xff] %v12807_v29  ;;  %v12809_v30 = vpop.f32.mrf.mxu3 }
  0xe2   : > { %16059 = vst [vmem:[#allocation27_spill] sm:$0xff] %v12809_v30  ;;  %v12813_v35 = vpop.f32.mrf.mxu1 }
  0xe3   : > { %16060 = vst [vmem:[#allocation28_spill] sm:$0xff] %v12811_v31 }
  0xe5   : > { %9407 = vmatmul.msk.bf16.gmra.mxu1 %vm970_vm1, %v9174_v34 }
  0xe6   : > { %9523 = vmatmul.msk.bf16.gmra.mxu3 %vm970_vm1, %v9158_v1  ;;  %v9182_v1 = vor.u32 %v11530_v53, %v9179_v54  ;;  %v9190_v53 = vor.u32 %v11532_v26, %v9187_v27 }
  0xe8   : > { %v12819_v41 = vpop.f32.mrf.mxu2  ;;  %v12823_v47 = vpop.f32.mrf.mxu0 }
  0xe9   : > { %16061 = vst [vmem:[#allocation29_spill] sm:$0xff] %v12819_v41  ;;  %v12821_v46 = vpop.f32.mrf.mxu3 }
  0xea   : > { %16062 = vst [vmem:[#allocation30_spill] sm:$0xff] %v12821_v46  ;;  %v12825_v51 = vpop.f32.mrf.mxu1 }
  0xeb   : > { %16063 = vst [vmem:[#allocation31_spill] sm:$0xff] %v12823_v47  ;;  %1235 = vmatmul.bf16.gmra.mxu0 %v8914_v42 }
  0xed   : > { %1973 = vmatmul.bf16.gmra.mxu2 %v8898_v7 }
  0xf0   : > { %v12829_v56 = vpop.f32.mrf.mxu2  ;;  %v12833_v61 = vpop.f32.mrf.mxu0 }
  0xf1   : > { %16064 = vst [vmem:[#allocation32_spill] sm:$0xff] %v12829_v56  ;;  %v12831_v60 = vpop.f32.mrf.mxu3 }
  0xf2   : > { %16065 = vst [vmem:[#allocation33_spill] sm:$0xff] %v12831_v60  ;;  %v12835_v2 = vpop.f32.mrf.mxu1 }
  0xf3   : > { %16066 = vst [vmem:[#allocation34_spill] sm:$0xff] %v12833_v61 }
  0xf5   : > { %9408 = vmatmul.msk.bf16.gmra.mxu1 %vm970_vm1, %v9182_v1 }
  0xf6   : > { %9524 = vmatmul.msk.bf16.gmra.mxu3 %vm970_vm1, %v9166_v16 }
  0xf8   : > { %v12841_v7 = vpop.f32.mrf.mxu2  ;;  %v12845_v18 = vpop.f32.mrf.mxu0 }
  0xf9   : > { %16067 = vst [vmem:[#allocation35_spill] sm:$0xff] %v12841_v7  ;;  %v12843_v12 = vpop.f32.mrf.mxu3 }
  0xfa   : > { %16068 = vst [vmem:[#allocation36_spill] sm:$0xff] %v12843_v12  ;;  %v12847_v19 = vpop.f32.mrf.mxu1 }
  0xfb   : > { %16069 = vst [vmem:[#allocation37_spill] sm:$0xff] %v12845_v18  ;;  %1240 = vmatmul.bf16.gmra.mxu0 %v8922_v11 }
  0xfd   : > { %1978 = vmatmul.bf16.gmra.mxu2 %v8906_v21  ;;  %v8929_v21 = vld [vmem:[%s12603_s14 + $0x100] sm:$0xf] }
  0xfe   : > { %v8930_v24 = vor.u32 %v11469_v5, %v8929_v21  ;;  %v8937_v5 = vld [vmem:[%s12603_s14 + $0x110] sm:$0xf] }
 0x100   : > { %v12851_v38 = vpop.f32.mrf.mxu2  ;;  %v12855_v16 = vpop.f32.mrf.mxu0 }
 0x101   : > { %16070 = vst [vmem:[#allocation38_spill] sm:$0xff] %v12851_v38  ;;  %v12853_v40 = vpop.f32.mrf.mxu3 }
 0x102   : > { %16071 = vst [vmem:[#allocation39_spill] sm:$0xff] %v12853_v40  ;;  %v12857_v54 = vpop.f32.mrf.mxu1  ;;  %v9195_v40 = vld [vmem:[%s12603_s14 + $0x318] sm:$0xf0] }
 0x103   : > { %16072 = vst [vmem:[#allocation40_spill] sm:$0xff] %v12855_v16 }
 0x105   : > { %9409 = vmatmul.msk.bf16.gmra.mxu1 %vm970_vm1, %v9190_v53 }
 0x106   : > { %9525 = vmatmul.msk.bf16.gmra.mxu3 %vm970_vm1, %v9174_v34 }
 0x108   : > { %v12866_v37 = vpop.f32.mrf.mxu2  ;;  %v12870_v27 = vpop.f32.mrf.mxu0 }
 0x109   : > { %16073 = vst [vmem:[#allocation41_spill] sm:$0xff] %v12866_v37  ;;  %v12868_v26 = vpop.f32.mrf.mxu3  ;;  %v9198_v37 = vor.u32 %v11534_v4, %v9195_v40  ;;  %v11536_v40 = vld [vmem:[%s12603_s14 + $0x324] sm:$0xf]  ;;  %v9203_v4 = vld [vmem:[%s12603_s14 + $0x328] sm:$0xf0] }
 0x10a   : > { %16074 = vst [vmem:[#allocation42_spill] sm:$0xff] %v12868_v26  ;;  %v12872_v16 = vpop.f32.mrf.mxu1 }
 0x10b   : > { %16075 = vst [vmem:[#allocation43_spill] sm:$0xff] %v12870_v27  ;;  %1245 = vmatmul.bf16.gmra.mxu0 %v8930_v24  ;;  %v11471_v27 = vld [vmem:[%s12603_s14 + $0x114] sm:$0xf0] }
 0x10d   : > { %1983 = vmatmul.bf16.gmra.mxu2 %v8914_v42 }
 0x110   : > { %v12876_v38 = vpop.f32.mrf.mxu2  ;;  %v12880_v34 = vpop.f32.mrf.mxu0 }
 0x111   : > { %16076 = vst [vmem:[#allocation44_spill] sm:$0xff] %v12876_v38  ;;  %v12878_v18 = vpop.f32.mrf.mxu3  ;;  %v8938_v38 = vor.u32 %v11471_v27, %v8937_v5  ;;  %v8945_v5 = vld [vmem:[%s12603_s14 + $0x120] sm:$0xf] }
 0x112   : > { %16077 = vst [vmem:[#allocation45_spill] sm:$0xff] %v12878_v18  ;;  %v12882_v21 = vpop.f32.mrf.mxu1 }
 0x113   : > { %16078 = vst [vmem:[#allocation46_spill] sm:$0xff] %v12880_v34 }
 0x115   : > { %9410 = vmatmul.msk.bf16.gmra.mxu1 %vm970_vm1, %v9198_v37 }
 0x116   : > { %9526 = vmatmul.msk.bf16.gmra.mxu3 %vm970_vm1, %v9182_v1 }
 0x118   : > { %v12888_v42 = vpop.f32.mrf.mxu2  ;;  %v12892_v18 = vpop.f32.mrf.mxu0 }
 0x119   : > { %16079 = vst [vmem:[#allocation47_spill] sm:$0xff] %v12888_v42  ;;  %v12890_v26 = vpop.f32.mrf.mxu3  ;;  %v9206_v42 = vor.u32 %v11536_v40, %v9203_v4  ;;  %v11538_v40 = vld [vmem:[%s12603_s14 + $0x334] sm:$0xf]  ;;  %v9211_v4 = vld [vmem:[%s12603_s14 + $0x338] sm:$0xf0] }
 0x11a   : > { %16080 = vst [vmem:[#allocation48_spill] sm:$0xff] %v12890_v26  ;;  %v12894_v12 = vpop.f32.mrf.mxu1 }
 0x11b   : > { %16081 = vst [vmem:[#allocation49_spill] sm:$0xff] %v12892_v18  ;;  %1250 = vmatmul.bf16.gmra.mxu0 %v8938_v38  ;;  %v11473_v18 = vld [vmem:[%s12603_s14 + $0x124] sm:$0xf0] }
 0x11d   : > { %1988 = vmatmul.bf16.gmra.mxu2 %v8922_v11 }
 0x120   : > { %v12898_v34 = vpop.f32.mrf.mxu2  ;;  %v12902_v1 = vpop.f32.mrf.mxu0 }
 0x121   : > { %16082 = vst [vmem:[#allocation50_spill] sm:$0xff] %v12898_v34  ;;  %v12900_v7 = vpop.f32.mrf.mxu3  ;;  %v8946_v34 = vor.u32 %v11473_v18, %v8945_v5  ;;  %v8953_v5 = vld [vmem:[%s12603_s14 + $0x130] sm:$0xf] }
 0x122   : > { %16083 = vst [vmem:[#allocation51_spill] sm:$0xff] %v12900_v7  ;;  %v12904_v27 = vpop.f32.mrf.mxu1 }
 0x123   : > { %16084 = vst [vmem:[#allocation52_spill] sm:$0xff] %v12902_v1 }
 0x125   : > { %9411 = vmatmul.msk.bf16.gmra.mxu1 %vm970_vm1, %v9206_v42 }
 0x126   : > { %9527 = vmatmul.msk.bf16.gmra.mxu3 %vm970_vm1, %v9190_v53 }
 0x128   : > { %v12910_v11 = vpop.f32.mrf.mxu2  ;;  %v12914_v7 = vpop.f32.mrf.mxu0 }
 0x129   : > { %16085 = vst [vmem:[#allocation53_spill] sm:$0xff] %v12910_v11  ;;  %v12912_v26 = vpop.f32.mrf.mxu3  ;;  %v9214_v11 = vor.u32 %v11538_v40, %v9211_v4  ;;  %v11540_v40 = vld [vmem:[%s12603_s14 + $0x344] sm:$0xf]  ;;  %v9219_v4 = vld [vmem:[%s12603_s14 + $0x348] sm:$0xf0] }
 0x12a   : > { %16086 = vst [vmem:[#allocation54_spill] sm:$0xff] %v12912_v26  ;;  %v12916_v61 = vpop.f32.mrf.mxu1 }
 0x12b   : > { %16087 = vst [vmem:[#allocation55_spill] sm:$0xff] %v12914_v7  ;;  %1255 = vmatmul.bf16.gmra.mxu0 %v8946_v34  ;;  %v11475_v7 = vld [vmem:[%s12603_s14 + $0x134] sm:$0xf0] }
 0x12d   : > { %1993 = vmatmul.bf16.gmra.mxu2 %v8930_v24 }
 0x130   : > { %v12920_v1 = vpop.f32.mrf.mxu2  ;;  %v12924_v53 = vpop.f32.mrf.mxu0 }
 0x131   : > { %16088 = vst [vmem:[#allocation56_spill] sm:$0xff] %v12920_v1  ;;  %v12922_v60 = vpop.f32.mrf.mxu3  ;;  %v8954_v1 = vor.u32 %v11475_v7, %v8953_v5  ;;  %v8961_v5 = vld [vmem:[%s12603_s14 + $0x140] sm:$0xf] }
 0x132   : > { %16089 = vst [vmem:[#allocation57_spill] sm:$0xff] %v12922_v60  ;;  %v12926_v18 = vpop.f32.mrf.mxu1 }
 0x133   : > { %16090 = vst [vmem:[#allocation58_spill] sm:$0xff] %v12924_v53 }
 0x135   : > { %9412 = vmatmul.msk.bf16.gmra.mxu1 %vm970_vm1, %v9214_v11 }
 0x136   : > { %9528 = vmatmul.msk.bf16.gmra.mxu3 %vm970_vm1, %v9198_v37 }
 0x138   : > { %v12932_v24 = vpop.f32.mrf.mxu2  ;;  %v12936_v60 = vpop.f32.mrf.mxu0 }
 0x139   : > { %16091 = vst [vmem:[#allocation59_spill] sm:$0xff] %v12932_v24  ;;  %v12934_v26 = vpop.f32.mrf.mxu3  ;;  %v9222_v24 = vor.u32 %v11540_v40, %v9219_v4 }
 0x13a   : > { %16092 = vst [vmem:[#allocation60_spill] sm:$0xff] %v12934_v26  ;;  %v12938_v56 = vpop.f32.mrf.mxu1  ;;  %v11542_v26 = vld [vmem:[%s12603_s14 + $0x354] sm:$0xf] }
 0x13b   : > { %16093 = vst [vmem:[#allocation61_spill] sm:$0xff] %v12936_v60  ;;  %1260 = vmatmul.bf16.gmra.mxu0 %v8954_v1  ;;  %v11477_v60 = vld [vmem:[%s12603_s14 + $0x144] sm:$0xf0] }
 0x13d   : > { %1998 = vmatmul.bf16.gmra.mxu2 %v8938_v38  ;;  %v11716_v38 = vld [vmem:[%s16029_s1 + $0xa0] sm:$0xff] }
 0x13e   : > { %3539 = vmatpush.bf16.msrb.mxu1 %v11716_v38  ;;  %v8969_v38 = vld [vmem:[%s12603_s14 + $0x150] sm:$0xf] }
 0x140   : > { %v12942_v53 = vpop.f32.mrf.mxu2  ;;  %v12946_v37 = vpop.f32.mrf.mxu0 }
 0x141   : > { %16094 = vst [vmem:[#allocation62_spill] sm:$0xff] %v12942_v53  ;;  %v12944_v47 = vpop.f32.mrf.mxu3 }
 0x142   : > { %16095 = vst [vmem:[#allocation63_spill] sm:$0xff] %v12944_v47  ;;  %v12948_v7 = vpop.f32.mrf.mxu1  ;;  %v8962_v47 = vor.u32 %v11477_v60, %v8961_v5 }
 0x143   : > { %16096 = vst [vmem:[#allocation64_spill] sm:$0xff] %v12946_v37 }
 0x145   : > { %9413 = vmatmul.msk.bf16.gmra.mxu1 %vm970_vm1, %v9222_v24 }
 0x146   : > { %9529 = vmatmul.msk.bf16.gmra.mxu3 %vm970_vm1, %v9206_v42  ;;  %v9227_v42 = vld [vmem:[%s12603_s14 + $0x358] sm:$0xf0] }
 0x147   : > { %v9230_v60 = vor.u32 %v11542_v26, %v9227_v42  ;;  %v11544_v26 = vld [vmem:[%s12603_s14 + $0x364] sm:$0xf]  ;;  %v9235_v42 = vld [vmem:[%s12603_s14 + $0x368] sm:$0xf0] }
 0x148   : > { %v12957_v53 = vpop.f32.mrf.mxu2  ;;  %v12961_v4 = vpop.f32.mrf.mxu0 }
 0x149   : > { %16097 = vst [vmem:[#allocation65_spill] sm:$0xff] %v12957_v53  ;;  %v12959_v40 = vpop.f32.mrf.mxu3 }
 0x14a   : > { %16098 = vst [vmem:[#allocation66_spill] sm:$0xff] %v12959_v40  ;;  %v12963_v37 = vpop.f32.mrf.mxu1 }
 0x14b   : > { %16099 = vst [vmem:[#allocation67_spill] sm:$0xff] %v12961_v4  ;;  %1265 = vmatmul.bf16.gmra.mxu0 %v8962_v47  ;;  %v11479_v4 = vld [vmem:[%s12603_s14 + $0x154] sm:$0xf0] }
 0x14d   : > { %2003 = vmatmul.bf16.gmra.mxu2 %v8946_v34 }
 0x150   : > { %v12967_v46 = vpop.f32.mrf.mxu2  ;;  %v12971_v53 = vpop.f32.mrf.mxu0 }
 0x151   : > { %16100 = vst [vmem:[#allocation68_spill] sm:$0xff] %v12967_v46  ;;  %v12969_v41 = vpop.f32.mrf.mxu3  ;;  %v8970_v46 = vor.u32 %v11479_v4, %v8969_v38  ;;  %v8977_v38 = vld [vmem:[%s12603_s14 + $0x160] sm:$0xf] }
 0x152   : > { %16101 = vst [vmem:[#allocation69_spill] sm:$0xff] %v12969_v41  ;;  %v12973_v5 = vpop.f32.mrf.mxu1 }
 0x153   : > { %16102 = vst [vmem:[#allocation70_spill] sm:$0xff] %v12971_v53 }
 0x155   : > { %9414 = vmatmul.msk.bf16.gmra.mxu1 %vm970_vm1, %v9230_v60 }
 0x156   : > { %9530 = vmatmul.msk.bf16.gmra.mxu3 %vm970_vm1, %v9214_v11 }
 0x158   : > { %v12979_v34 = vpop.f32.mrf.mxu2  ;;  %v12983_v41 = vpop.f32.mrf.mxu0 }
 0x159   : > { %16103 = vst [vmem:[#allocation71_spill] sm:$0xff] %v12979_v34  ;;  %v12981_v40 = vpop.f32.mrf.mxu3  ;;  %v9238_v34 = vor.u32 %v11544_v26, %v9235_v42  ;;  %v11546_v26 = vld [vmem:[%s12603_s14 + $0x374] sm:$0xf]  ;;  %v9243_v42 = vld [vmem:[%s12603_s14 + $0x378] sm:$0xf0] }
 0x15a   : > { %16104 = vst [vmem:[#allocation72_spill] sm:$0xff] %v12981_v40  ;;  %v12985_v31 = vpop.f32.mrf.mxu1 }
 0x15b   : > { %16105 = vst [vmem:[#allocation73_spill] sm:$0xff] %v12983_v41  ;;  %1270 = vmatmul.bf16.gmra.mxu0 %v8970_v46  ;;  %v11481_v41 = vld [vmem:[%s12603_s14 + $0x164] sm:$0xf0] }
 0x15d   : > { %2008 = vmatmul.bf16.gmra.mxu2 %v8954_v1 }
 0x160   : > { %v12989_v53 = vpop.f32.mrf.mxu2  ;;  %v12993_v11 = vpop.f32.mrf.mxu0 }
 0x161   : > { %16106 = vst [vmem:[#allocation74_spill] sm:$0xff] %v12989_v53  ;;  %v12991_v30 = vpop.f32.mrf.mxu3  ;;  %v8978_v53 = vor.u32 %v11481_v41, %v8977_v38  ;;  %v8985_v38 = vld [vmem:[%s12603_s14 + $0x170] sm:$0xf] }
 0x162   : > { %16107 = vst [vmem:[#allocation75_spill] sm:$0xff] %v12991_v30  ;;  %v12995_v4 = vpop.f32.mrf.mxu1 }
 0x163   : > { %16108 = vst [vmem:[#allocation76_spill] sm:$0xff] %v12993_v11 }
 0x165   : > { %9415 = vmatmul.msk.bf16.gmra.mxu1 %vm970_vm1, %v9238_v34 }
 0x166   : > { %9531 = vmatmul.msk.bf16.gmra.mxu3 %vm970_vm1, %v9222_v24 }
 0x168   : > { %v13001_v1 = vpop.f32.mrf.mxu2  ;;  %v13005_v30 = vpop.f32.mrf.mxu0 }
 0x169   : > { %16109 = vst [vmem:[#allocation77_spill] sm:$0xff] %v13001_v1  ;;  %v13003_v40 = vpop.f32.mrf.mxu3  ;;  %v9246_v1 = vor.u32 %v11546_v26, %v9243_v42  ;;  %v11548_v26 = vld [vmem:[%s12603_s14 + $0x384] sm:$0xf]  ;;  %v9251_v42 = vld [vmem:[%s12603_s14 + $0x388] sm:$0xf0] }
 0x16a   : > { %16110 = vst [vmem:[#allocation78_spill] sm:$0xff] %v13003_v40  ;;  %v13007_v29 = vpop.f32.mrf.mxu1 }
 0x16b   : > { %16111 = vst [vmem:[#allocation79_spill] sm:$0xff] %v13005_v30  ;;  %1275 = vmatmul.bf16.gmra.mxu0 %v8978_v53  ;;  %v11483_v30 = vld [vmem:[%s12603_s14 + $0x174] sm:$0xf0] }
 0x16d   : > { %2013 = vmatmul.bf16.gmra.mxu2 %v8962_v47 }
 0x170   : > { %v13011_v11 = vpop.f32.mrf.mxu2  ;;  %v13015_v24 = vpop.f32.mrf.mxu0 }
 0x171   : > { %16112 = vst [vmem:[#allocation80_spill] sm:$0xff] %v13011_v11  ;;  %v13013_v23 = vpop.f32.mrf.mxu3  ;;  %v8986_v11 = vor.u32 %v11483_v30, %v8985_v38  ;;  %v8993_v38 = vld [vmem:[%s12603_s14 + $0x180] sm:$0xf] }
 0x172   : > { %16113 = vst [vmem:[#allocation81_spill] sm:$0xff] %v13013_v23  ;;  %v13017_v41 = vpop.f32.mrf.mxu1 }
 0x173   : > { %16114 = vst [vmem:[#allocation82_spill] sm:$0xff] %v13015_v24 }
 0x175   : > { %9416 = vmatmul.msk.bf16.gmra.mxu1 %vm970_vm1, %v9246_v1 }
 0x176   : > { %9532 = vmatmul.msk.bf16.gmra.mxu3 %vm970_vm1, %v9230_v60 }
 0x178   : > { %v13023_v47 = vpop.f32.mrf.mxu2  ;;  %v13027_v23 = vpop.f32.mrf.mxu0 }
 0x179   : > { %16115 = vst [vmem:[#allocation83_spill] sm:$0xff] %v13023_v47  ;;  %v13025_v40 = vpop.f32.mrf.mxu3  ;;  %v9254_v47 = vor.u32 %v11548_v26, %v9251_v42 }
 0x17a   : > { %16116 = vst [vmem:[#allocation84_spill] sm:$0xff] %v13025_v40  ;;  %v13029_v22 = vpop.f32.mrf.mxu1  ;;  %v11550_v40 = vld [vmem:[%s12603_s14 + $0x394] sm:$0xf] }
 0x17b   : > { %16117 = vst [vmem:[#allocation85_spill] sm:$0xff] %v13027_v23  ;;  %1280 = vmatmul.bf16.gmra.mxu0 %v8986_v11  ;;  %v11485_v23 = vld [vmem:[%s12603_s14 + $0x184] sm:$0xf0] }
 0x17d   : > { %2018 = vmatmul.bf16.gmra.mxu2 %v8970_v46  ;;  %v11715_v46 = vld [vmem:[%s16029_s1 + $0x98] sm:$0xff] }
 0x17e   : > { %3540 = vmatpush.bf16.msrb.mxu1 %v11715_v46  ;;  %v9001_v46 = vld [vmem:[%s12603_s14 + $0x190] sm:$0xf] }
 0x180   : > { %v13033_v24 = vpop.f32.mrf.mxu2  ;;  %v13037_v60 = vpop.f32.mrf.mxu0 }
 0x181   : > { %16118 = vst [vmem:[#allocation86_spill] sm:$0xff] %v13033_v24  ;;  %v13035_v20 = vpop.f32.mrf.mxu3 }
 0x182   : > { %16119 = vst [vmem:[#allocation87_spill] sm:$0xff] %v13035_v20  ;;  %v13039_v30 = vpop.f32.mrf.mxu1  ;;  %v8994_v20 = vor.u32 %v11485_v23, %v8993_v38 }
 0x183   : > { %16120 = vst [vmem:[#allocation88_spill] sm:$0xff] %v13037_v60 }
 0x185   : > { %9417 = vmatmul.msk.bf16.gmra.mxu1 %vm970_vm1, %v9254_v47 }
 0x186   : > { %9533 = vmatmul.msk.bf16.gmra.mxu3 %vm970_vm1, %v9238_v34  ;;  %v9259_v34 = vld [vmem:[%s12603_s14 + $0x398] sm:$0xf0] }
 0x187   : > { %v9262_v23 = vor.u32 %v11550_v40, %v9259_v34  ;;  %v11552_v40 = vld [vmem:[%s12603_s14 + $0x3a4] sm:$0xf]  ;;  %v9267_v34 = vld [vmem:[%s12603_s14 + $0x3a8] sm:$0xf0] }
 0x188   : > { %v13048_v24 = vpop.f32.mrf.mxu2  ;;  %v13052_v42 = vpop.f32.mrf.mxu0 }
 0x189   : > { %16121 = vst [vmem:[#allocation89_spill] sm:$0xff] %v13048_v24  ;;  %v13050_v26 = vpop.f32.mrf.mxu3 }
 0x18a   : > { %16122 = vst [vmem:[#allocation90_spill] sm:$0xff] %v13050_v26  ;;  %v13054_v60 = vpop.f32.mrf.mxu1 }
 0x18b   : > { %16123 = vst [vmem:[#allocation91_spill] sm:$0xff] %v13052_v42  ;;  %1285 = vmatmul.bf16.gmra.mxu0 %v8994_v20  ;;  %v11487_v42 = vld [vmem:[%s12603_s14 + $0x194] sm:$0xf0] }
 0x18d   : > { %2023 = vmatmul.bf16.gmra.mxu2 %v8978_v53 }
 0x190   : > { %v13058_v15 = vpop.f32.mrf.mxu2  ;;  %v13062_v24 = vpop.f32.mrf.mxu0 }
 0x191   : > { %16124 = vst [vmem:[#allocation92_spill] sm:$0xff] %v13058_v15  ;;  %v13060_v14 = vpop.f32.mrf.mxu3  ;;  %v9002_v15 = vor.u32 %v11487_v42, %v9001_v46  ;;  %v9009_v46 = vld [vmem:[%s12603_s14 + $0x1a0] sm:$0xf] }
 0x192   : > { %16125 = vst [vmem:[#allocation93_spill] sm:$0xff] %v13060_v14  ;;  %v13064_v38 = vpop.f32.mrf.mxu1 }
 0x193   : > { %16126 = vst [vmem:[#allocation94_spill] sm:$0xff] %v13062_v24 }
 0x195   : > { %9418 = vmatmul.msk.bf16.gmra.mxu1 %vm970_vm1, %v9262_v23 }
 0x196   : > { %9534 = vmatmul.msk.bf16.gmra.mxu3 %vm970_vm1, %v9246_v1 }
 0x198   : > { %v13070_v53 = vpop.f32.mrf.mxu2  ;;  %v13074_v14 = vpop.f32.mrf.mxu0 }
 0x199   : > { %16127 = vst [vmem:[#allocation95_spill] sm:$0xff] %v13070_v53  ;;  %v13072_v26 = vpop.f32.mrf.mxu3  ;;  %v9270_v53 = vor.u32 %v11552_v40, %v9267_v34  ;;  %v11554_v40 = vld [vmem:[%s12603_s14 + $0x3b4] sm:$0xf]  ;;  %v9275_v34 = vld [vmem:[%s12603_s14 + $0x3b8] sm:$0xf0] }
 0x19a   : > { %16128 = vst [vmem:[#allocation96_spill] sm:$0xff] %v13072_v26  ;;  %v13076_v13 = vpop.f32.mrf.mxu1 }
 0x19b   : > { %16129 = vst [vmem:[#allocation97_spill] sm:$0xff] %v13074_v14  ;;  %1290 = vmatmul.bf16.gmra.mxu0 %v9002_v15  ;;  %v11489_v14 = vld [vmem:[%s12603_s14 + $0x1a4] sm:$0xf0] }
 0x19d   : > { %2028 = vmatmul.bf16.gmra.mxu2 %v8986_v11 }
 0x1a0   : > { %v13080_v24 = vpop.f32.mrf.mxu2  ;;  %v13084_v1 = vpop.f32.mrf.mxu0 }
 0x1a1   : > { %16130 = vst [vmem:[#allocation98_spill] sm:$0xff] %v13080_v24  ;;  %v13082_v9 = vpop.f32.mrf.mxu3  ;;  %v9010_v24 = vor.u32 %v11489_v14, %v9009_v46  ;;  %v9017_v46 = vld [vmem:[%s12603_s14 + $0x1b0] sm:$0xf] }
 0x1a2   : > { %16131 = vst [vmem:[#allocation99_spill] sm:$0xff] %v13082_v9  ;;  %v13086_v42 = vpop.f32.mrf.mxu1 }
 0x1a3   : > { %16132 = vst [vmem:[#allocation100_spill] sm:$0xff] %v13084_v1 }
 0x1a5   : > { %9419 = vmatmul.msk.bf16.gmra.mxu1 %vm970_vm1, %v9270_v53 }
 0x1a6   : > { %9535 = vmatmul.msk.bf16.gmra.mxu3 %vm970_vm1, %v9254_v47 }
 0x1a8   : > { %v13092_v11 = vpop.f32.mrf.mxu2  ;;  %v13096_v9 = vpop.f32.mrf.mxu0 }
 0x1a9   : > { %16133 = vst [vmem:[#allocation101_spill] sm:$0xff] %v13092_v11  ;;  %v13094_v26 = vpop.f32.mrf.mxu3  ;;  %v9278_v11 = vor.u32 %v11554_v40, %v9275_v34  ;;  %v11556_v40 = vld [vmem:[%s12603_s14 + $0x3c4] sm:$0xf]  ;;  %v9283_v34 = vld [vmem:[%s12603_s14 + $0x3c8] sm:$0xf0] }
 0x1aa   : > { %16134 = vst [vmem:[#allocation102_spill] sm:$0xff] %v13094_v26  ;;  %v13098_v8 = vpop.f32.mrf.mxu1 }
 0x1ab   : > { %16135 = vst [vmem:[#allocation103_spill] sm:$0xff] %v13096_v9  ;;  %1295 = vmatmul.bf16.gmra.mxu0 %v9010_v24  ;;  %v11491_v9 = vld [vmem:[%s12603_s14 + $0x1b4] sm:$0xf0] }
 0x1ad   : > { %2033 = vmatmul.bf16.gmra.mxu2 %v8994_v20 }
 0x1b0   : > { %v13102_v1 = vpop.f32.mrf.mxu2  ;;  %v13106_v47 = vpop.f32.mrf.mxu0 }
 0x1b1   : > { %16136 = vst [vmem:[#allocation104_spill] sm:$0xff] %v13102_v1  ;;  %v13104_v6 = vpop.f32.mrf.mxu3  ;;  %v9018_v1 = vor.u32 %v11491_v9, %v9017_v46  ;;  %v9025_v46 = vld [vmem:[%s12603_s14 + $0x1c0] sm:$0xf] }
 0x1b2   : > { %16137 = vst [vmem:[#allocation105_spill] sm:$0xff] %v13104_v6  ;;  %v13108_v14 = vpop.f32.mrf.mxu1 }
 0x1b3   : > { %16138 = vst [vmem:[#allocation106_spill] sm:$0xff] %v13106_v47 }
 0x1b5   : > { %9420 = vmatmul.msk.bf16.gmra.mxu1 %vm970_vm1, %v9278_v11 }
 0x1b6   : > { %9536 = vmatmul.msk.bf16.gmra.mxu3 %vm970_vm1, %v9262_v23 }
 0x1b8   : > { %v13114_v20 = vpop.f32.mrf.mxu2  ;;  %v13118_v6 = vpop.f32.mrf.mxu0 }
 0x1b9   : > { %16139 = vst [vmem:[#allocation107_spill] sm:$0xff] %v13114_v20  ;;  %v13116_v26 = vpop.f32.mrf.mxu3  ;;  %v9286_v20 = vor.u32 %v11556_v40, %v9283_v34  ;;  %v11714_v40 = vld [vmem:[%s16029_s1 + $0x90] sm:$0xff] }
 0x1ba   : > { %16140 = vst [vmem:[#allocation108_spill] sm:$0xff] %v13116_v26  ;;  %v13120_v0 = vpop.f32.mrf.mxu1  ;;  %3541 = vmatpush.bf16.msrb.mxu1 %v11714_v40 }
 0x1bb   : > { %16141 = vst [vmem:[#allocation109_spill] sm:$0xff] %v13118_v6  ;;  %1300 = vmatmul.bf16.gmra.mxu0 %v9018_v1  ;;  %v11493_v6 = vld [vmem:[%s12603_s14 + $0x1c4] sm:$0xf0] }
 0x1bc   : > { %v9026_v26 = vor.u32 %v11493_v6, %v9025_v46 }
 0x1bd   : > { %2038 = vmatmul.bf16.gmra.mxu2 %v9002_v15 }
 0x1c0   : > { %v13124_v47 = vpop.f32.mrf.mxu2  ;;  %v13128_v23 = vpop.f32.mrf.mxu0 }
 0x1c1   : > { %16142 = vst [vmem:[#allocation110_spill] sm:$0xff] %v13124_v47  ;;  %v13126_v63 = vpop.f32.mrf.mxu3 }
 0x1c2   : > { %16143 = vst [vmem:[#allocation111_spill] sm:$0xff] %v13126_v63  ;;  %v13130_v9 = vpop.f32.mrf.mxu1 }
 0x1c3   : > { %16144 = vst [vmem:[#allocation112_spill] sm:$0xff] %v13128_v23  ;;  %v11558_v23 = vld [vmem:[%s12603_s14 + $0x3d4] sm:$0xf] }
 0x1c5   : > { %9421 = vmatmul.msk.bf16.gmra.mxu1 %vm970_vm1, %v9286_v20 }
 0x1c6   : > { %9537 = vmatmul.msk.bf16.gmra.mxu3 %vm970_vm1, %v9270_v53  ;;  %v9291_v53 = vld [vmem:[%s12603_s14 + $0x3d8] sm:$0xf0] }
 0x1c8   : > { %v13136_v15 = vpop.f32.mrf.mxu2  ;;  %v13140_v63 = vpop.f32.mrf.mxu0 }
 0x1c9   : > { %16145 = vst [vmem:[#allocation113_spill] sm:$0xff] %v13136_v15  ;;  %v13138_v47 = vpop.f32.mrf.mxu3  ;;  %v9033_v15 = vld [vmem:[%s12603_s14 + $0x1d0] sm:$0xf] }
 0x1ca   : > { %16146 = vst [vmem:[#allocation114_spill] sm:$0xff] %v13138_v47  ;;  %v13145_v34 = vpop.f32.mrf.mxu1  ;;  %v9034_v40 = vor.u32 %v11495_v58, %v9033_v15  ;;  %v9041_v15 = vld [vmem:[%s12603_s14 + $0x1e0] sm:$0xf] }
 0x1cb   : > { %16147 = vst [vmem:[#allocation115_spill] sm:$0xff] %v13140_v63  ;;  %1305 = vmatmul.bf16.gmra.mxu0 %v9026_v26  ;;  %v9294_v63 = vor.u32 %v11558_v23, %v9291_v53  ;;  %v11560_v23 = vld [vmem:[%s12603_s14 + $0x3e4] sm:$0xf]  ;;  %v9299_v53 = vld [vmem:[%s12603_s14 + $0x3e8] sm:$0xf0] }
 0x1cd   : > { %2043 = vmatmul.bf16.gmra.mxu2 %v9010_v24 }
 0x1d0   : > { %v13149_v62 = vpop.f32.mrf.mxu2  ;;  %v13153_v46 = vpop.f32.mrf.mxu0 }
 0x1d1   : > { %16148 = vst [vmem:[#allocation116_spill] sm:$0xff] %v13149_v62  ;;  %v13151_v6 = vpop.f32.mrf.mxu3 }
 0x1d2   : > { %16149 = vst [vmem:[#allocation117_spill] sm:$0xff] %v13151_v6  ;;  %v13155_v47 = vpop.f32.mrf.mxu1 }
 0x1d3   : > { %16150 = vst [vmem:[#allocation118_spill] sm:$0xff] %v13153_v46 }
 0x1d5   : > { %9422 = vmatmul.msk.bf16.gmra.mxu1 %vm970_vm1, %v9294_v63 }
 0x1d6   : > { %9538 = vmatmul.msk.bf16.gmra.mxu3 %vm970_vm1, %v9278_v11 }
 0x1d8   : > { %v13161_v24 = vpop.f32.mrf.mxu2  ;;  %v13165_v6 = vpop.f32.mrf.mxu0 }
 0x1d9   : > { %16151 = vst [vmem:[#allocation119_spill] sm:$0xff] %v13161_v24  ;;  %v13163_v62 = vpop.f32.mrf.mxu3  ;;  %v9302_v24 = vor.u32 %v11560_v23, %v9299_v53  ;;  %v11562_v23 = vld [vmem:[%s12603_s14 + $0x3f4] sm:$0xf]  ;;  %v9307_v53 = vld [vmem:[%s12603_s14 + $0x3f8] sm:$0xf0] }
 0x1da   : > { %16152 = vst [vmem:[#allocation120_spill] sm:$0xff] %v13163_v62  ;;  %v13167_v57 = vpop.f32.mrf.mxu1 }
 0x1db   : > { %16153 = vst [vmem:[#allocation121_spill] sm:$0xff] %v13165_v6  ;;  %1310 = vmatmul.bf16.gmra.mxu0 %v9034_v40  ;;  %v11497_v6 = vld [vmem:[%s12603_s14 + $0x1e4] sm:$0xf0] }
 0x1dd   : > { %2048 = vmatmul.bf16.gmra.mxu2 %v9018_v1 }
 0x1e0   : > { %v13171_v46 = vpop.f32.mrf.mxu2  ;;  %v13175_v11 = vpop.f32.mrf.mxu0 }
 0x1e1   : > { %16154 = vst [vmem:[#allocation122_spill] sm:$0xff] %v13171_v46  ;;  %v13173_v55 = vpop.f32.mrf.mxu3  ;;  %v9042_v46 = vor.u32 %v11497_v6, %v9041_v15  ;;  %v9049_v15 = vld [vmem:[%s12603_s14 + $0x1f0] sm:$0xf] }
 0x1e2   : > { %16155 = vst [vmem:[#allocation123_spill] sm:$0xff] %v13173_v55  ;;  %v13177_v58 = vpop.f32.mrf.mxu1 }
 0x1e3   : > { %16156 = vst [vmem:[#allocation124_spill] sm:$0xff] %v13175_v11 }
 0x1e5   : > { %9423 = vmatmul.msk.bf16.gmra.mxu1 %vm970_vm1, %v9302_v24 }
 0x1e6   : > { %9539 = vmatmul.msk.bf16.gmra.mxu3 %vm970_vm1, %v9286_v20 }
 0x1e8   : > { %v13183_v1 = vpop.f32.mrf.mxu2  ;;  %v13187_v55 = vpop.f32.mrf.mxu0 }
 0x1e9   : > { %16157 = vst [vmem:[#allocation125_spill] sm:$0xff] %v13183_v1  ;;  %v13185_v62 = vpop.f32.mrf.mxu3  ;;  %v9310_v1 = vor.u32 %v11562_v23, %v9307_v53  ;;  %v11573_v23 = vld [vmem:[%s12603_s14 + $0x404] sm:$0xf]  ;;  %v9315_v53 = vld [vmem:[%s12603_s14 + $0x408] sm:$0xf0] }
 0x1ea   : > { %16158 = vst [vmem:[#allocation126_spill] sm:$0xff] %v13185_v62  ;;  %v13189_v50 = vpop.f32.mrf.mxu1  ;;  %v9318_v43 = vor.u32 %v11573_v23, %v9315_v53 }
 0x1eb   : > { %16159 = vst [vmem:[#allocation127_spill] sm:$0xff] %v13187_v55  ;;  %1315 = vmatmul.bf16.gmra.mxu0 %v9042_v46  ;;  %v11499_v55 = vld [vmem:[%s12603_s14 + $0x1f4] sm:$0xf0] }
 0x1ed   : > { %2053 = vmatmul.bf16.gmra.mxu2 %v9026_v26 }
 0x1f0   : > { %v13193_v11 = vpop.f32.mrf.mxu2  ;;  %v13197_v20 = vpop.f32.mrf.mxu0 }
 0x1f1   : > { %16160 = vst [vmem:[#allocation128_spill] sm:$0xff] %v13193_v11  ;;  %v13195_v49 = vpop.f32.mrf.mxu3  ;;  %v9050_v11 = vor.u32 %v11499_v55, %v9049_v15  ;;  %v9057_v55 = vld [vmem:[%s12603_s14 + $0x200] sm:$0xf]  ;;  %v11501_v15 = vld [vmem:[%s12603_s14 + $0x204] sm:$0xf0] }
 0x1f2   : > { %16161 = vst [vmem:[#allocation129_spill] sm:$0xff] %v13195_v49  ;;  %v13199_v6 = vpop.f32.mrf.mxu1  ;;  %v9058_v53 = vor.u32 %v11501_v15, %v9057_v55  ;;  %v9323_v55 = vld [vmem:[%s12603_s14 + $0x418] sm:$0xf0] }
 0x1f3   : > { %16162 = vst [vmem:[#allocation130_spill] sm:$0xff] %v13197_v20 }
 0x1f5   : > { %9424 = vmatmul.msk.bf16.gmra.mxu1 %vm970_vm1, %v9310_v1 }
 0x1f6   : > { %9540 = vmatmul.msk.bf16.gmra.mxu3 %vm970_vm1, %v9294_v63 }
 0x1f8   : > { %v13205_v26 = vpop.f32.mrf.mxu2  ;;  %v13209_v49 = vpop.f32.mrf.mxu0 }
 0x1f9   : > { %16163 = vst [vmem:[#allocation131_spill] sm:$0xff] %v13205_v26  ;;  %v13207_v62 = vpop.f32.mrf.mxu3 }
 0x1fa   : > { %16164 = vst [vmem:[#allocation132_spill] sm:$0xff] %v13207_v62  ;;  %v13211_v48 = vpop.f32.mrf.mxu1  ;;  %v11995_v62 = vld [vmem:[%s16029_s1 + $0x158] sm:$0xff] }
 0x1fb   : > { %16165 = vst [vmem:[#allocation133_spill] sm:$0xff] %v13209_v49  ;;  %1320 = vmatmul.bf16.gmra.mxu0 %v9050_v11  ;;  %7048 = vmatpush.bf16.msra.mxu1 %v11995_v62  ;;  %v11503_v62 = vld [vmem:[%s12603_s14 + $0x214] sm:$0xf0] }
 0x1fd   : > { %2058 = vmatmul.bf16.gmra.mxu2 %v9034_v40  ;;  %v11367_v40 = vld [vmem:[%s16029_s1 + $0x160] sm:$0xf] }
 0x200   : > { %v13215_v20 = vpop.f32.mrf.mxu2  ;;  %v13219_v63 = vpop.f32.mrf.mxu0 }
 0x201   : > { %16166 = vst [vmem:[#allocation134_spill] sm:$0xff] %v13215_v20  ;;  %v13217_v44 = vpop.f32.mrf.mxu3 }
 0x202   : > { %16167 = vst [vmem:[#allocation135_spill] sm:$0xff] %v13217_v44  ;;  %v13221_v26 = vpop.f32.mrf.mxu1  ;;  %v11996_v44 = vld [vmem:[%s16029_s1 + $0x160] sm:$0x30] }
 0x203   : > { %16168 = vst [vmem:[#allocation136_spill] sm:$0xff] %v13219_v63  ;;  %v11368_v63 = vor.u32 %v11996_v44, %v11367_v40  ;;  %v11575_v44 = vld [vmem:[%s12603_s14 + $0x414] sm:$0xf] }
 0x204   : > { %16169 = vst [vmem:[#allocation137_spill] sm:$0xff] %v13221_v26  ;;  %v9637_v26 = vld [vmem:[%s12603_s14 + $0xd8] sm:$0xf0] }
 0x205   : > { %9425 = vmatmul.msk.bf16.gmra.mxu1 %vm970_vm1, %v9318_v43 }
 0x206   : > { %9541 = vmatmul.msk.bf16.gmra.mxu3 %vm970_vm1, %v9302_v24  ;;  %v7046_v24 = vsel %vm1163_vm0, %v11368_v63, 0 }
 0x207   : > { %7384 = vmatpush.bf16.msra.mxu3 %v7046_v24 }
 0x208   : > { %v13233_v23 = vpop.f32.mrf.mxu2  ;;  %v13237_v43 = vpop.f32.mrf.mxu0 }
 0x209   : > { %16170 = vst [vmem:[#allocation138_spill] sm:$0xff] %v13233_v23  ;;  %v13235_v20 = vpop.f32.mrf.mxu3 }
 0x20a   : > { %16171 = vst [vmem:[#allocation139_spill] sm:$0xff] %v13235_v20  ;;  %v13240_v49 = vpop.f32.mrf.mxu1  ;;  %v9065_v20 = vld [vmem:[%s12603_s14 + $0x210] sm:$0xf] }
 0x20b   : > { %16172 = vst [vmem:[#allocation140_spill] sm:$0xff] %v13237_v43  ;;  %1325 = vmatmul.bf16.gmra.mxu0 %v9058_v53  ;;  %v9326_v43 = vor.u32 %v11575_v44, %v9323_v55  ;;  %v9563_v44 = vld [vmem:[%s12603_s14 + $0x40] sm:$0xf]  ;;  %v11587_v55 = vld [vmem:[%s12603_s14 + $0x44] sm:$0xf0] }
 0x20c   : > { %16173 = vst [vmem:[#allocation141_spill] sm:$0xff] %v13240_v49 }
 0x20d   : > { %2063 = vmatmul.bf16.gmra.mxu2 %v9042_v46 }
 0x210   : > { %v13247_v15 = vpop.f32.mrf.mxu2  ;;  %v13251_v63 = vpop.f32.mrf.mxu0 }
 0x211   : > { %16174 = vst [vmem:[#allocation142_spill] sm:$0xff] %v13247_v15  ;;  %v13249_v40 = vpop.f32.mrf.mxu3  ;;  %v9066_v15 = vor.u32 %v11503_v62, %v9065_v20  ;;  %v9564_v62 = vor.u32 %v11587_v55, %v9563_v44  ;;  %v9571_v55 = vld [vmem:[%s12603_s14 + $0x50] sm:$0xf] }
 0x212   : > { %16175 = vst [vmem:[#allocation143_spill] sm:$0xff] %v13249_v40  ;;  %v13253_v24 = vpop.f32.mrf.mxu1 }
 0x213   : > { %16176 = vst [vmem:[#allocation144_spill] sm:$0xff] %v13251_v63 }
 0x214   : > { %16177 = vst [vmem:[#allocation145_spill] sm:$0xff] %v13253_v24 }
 0x215   : > { %9426 = vmatmul.msk.bf16.gmra.mxu1 %vm970_vm1, %v9326_v43  ;;  %v11586_v43 = vld [vmem:[%s12603_s14 + $0x44] sm:$0xf] }
 0x216   : > { %9542 = vmatmul.msk.bf16.gmra.mxu3 %vm970_vm1, %v9310_v1 }
 0x218   : > { %v13259_v46 = vpop.f32.mrf.mxu2  ;;  %v13263_v40 = vpop.f32.mrf.mxu0 }
 0x219   : > { %16178 = vst [vmem:[#allocation146_spill] sm:$0xff] %v13259_v46  ;;  %v13261_v23 = vpop.f32.mrf.mxu3  ;;  %v11505_v46 = vld [vmem:[%s12603_s14 + $0x224] sm:$0xf0] }
 0x21a   : > { %16179 = vst [vmem:[#allocation147_spill] sm:$0xff] %v13261_v23  ;;  %v13265_v63 = vpop.f32.mrf.mxu1  ;;  %v9568_v23 = vor.u32 %v11586_v43, %v9565_v36  ;;  %v11589_v36 = vld [vmem:[%s12603_s14 + $0x54] sm:$0xf0]  ;;  %v11588_v43 = vld [vmem:[%s12603_s14 + $0x54] sm:$0xf] }
 0x21b   : > { %16180 = vst [vmem:[#allocation148_spill] sm:$0xff] %v13263_v40  ;;  %1330 = vmatmul.bf16.gmra.mxu0 %v9066_v15 }
 0x21c   : > { %16181 = vst [vmem:[#allocation149_spill] sm:$0xff] %v13265_v63 }
 0x21d   : > { %2068 = vmatmul.bf16.gmra.mxu2 %v9050_v11  ;;  %v9073_v11 = vld [vmem:[%s12603_s14 + $0x220] sm:$0xf] }
 0x220   : > { %v13271_v32 = vpop.f32.mrf.mxu2  ;;  %v13275_v20 = vpop.f32.mrf.mxu0 }
 0x221   : > { %16182 = vst [vmem:[#allocation150_spill] sm:$0xff] %v13271_v32  ;;  %v13273_v1 = vpop.f32.mrf.mxu3  ;;  %v9074_v32 = vor.u32 %v11505_v46, %v9073_v11  ;;  %v9572_v11 = vor.u32 %v11589_v36, %v9571_v55  ;;  %v9579_v36 = vld [vmem:[%s12603_s14 + $0x60] sm:$0xf] }
 0x222   : > { %16183 = vst [vmem:[#allocation151_spill] sm:$0xff] %v13273_v1  ;;  %v13277_v40 = vpop.f32.mrf.mxu1 }
 0x223   : > { %16184 = vst [vmem:[#allocation152_spill] sm:$0xff] %v13275_v20 }
 0x224   : > { %16185 = vst [vmem:[#allocation153_spill] sm:$0xff] %v13277_v40 }
 0x225   : > { %3542 = vmatmul.bf16.vlgmr.msrb.gmra.mxu1 %v9564_v62  ;;  %v9573_v62 = vld [vmem:[%s12603_s14 + $0x58] sm:$0xf0] }
 0x226   : > { %10109 = vmatmul.msk.bf16.vlgmr.msrb.gmra.mxu3 %vm970_vm1, %v9568_v23 }
 0x228   : > { %v13282_v63 = vpop.f32.mrf.mxu2  ;;  %v13286_v1 = vpop.f32.mrf.mxu0 }
 0x229   : > { %16186 = vst [vmem:[#allocation154_spill] sm:$0xff] %v13282_v63  ;;  %v13284_v24 = vpop.f32.mrf.mxu3  ;;  %v11507_v63 = vld [vmem:[%s12603_s14 + $0x234] sm:$0xf0] }
 0x22a   : > { %16187 = vst [vmem:[#allocation155_spill] sm:$0xff] %v13284_v24  ;;  %v13288_v44 = vpop.f32.mrf.mxu1  ;;  %v9576_v24 = vor.u32 %v11588_v43, %v9573_v62  ;;  %v11591_v43 = vld [vmem:[%s12603_s14 + $0x64] sm:$0xf0]  ;;  %v11590_v62 = vld [vmem:[%s12603_s14 + $0x64] sm:$0xf] }
 0x22b   : > { %16188 = vst [vmem:[#allocation156_spill] sm:$0xff] %v13286_v1  ;;  %1335 = vmatmul.bf16.gmra.mxu0 %v9074_v32 }
 0x22c   : > { %16189 = vst [vmem:[#allocation157_spill] sm:$0xff] %v13288_v44 }
 0x22d   : > { %2073 = vmatmul.bf16.gmra.mxu2 %v9058_v53  ;;  %v9081_v53 = vld [vmem:[%s12603_s14 + $0x230] sm:$0xf] }
 0x230   : > { %v13294_v20 = vpop.f32.mrf.mxu2  ;;  %v13298_v46 = vpop.f32.mrf.mxu0 }
 0x231   : > { %16190 = vst [vmem:[#allocation158_spill] sm:$0xff] %v13294_v20  ;;  %v13296_v23 = vpop.f32.mrf.mxu3  ;;  %v9082_v20 = vor.u32 %v11507_v63, %v9081_v53  ;;  %v9580_v53 = vor.u32 %v11591_v43, %v9579_v36  ;;  %v9587_v43 = vld [vmem:[%s12603_s14 + $0x70] sm:$0xf] }
 0x232   : > { %16191 = vst [vmem:[#allocation159_spill] sm:$0xff] %v13296_v23  ;;  %v13300_v1 = vpop.f32.mrf.mxu1 }
 0x233   : > { %16192 = vst [vmem:[#allocation160_spill] sm:$0xff] %v13298_v46 }
 0x234   : > { %16193 = vst [vmem:[#allocation161_spill] sm:$0xff] %v13300_v1 }
 0x235   : > { %3547 = vmatmul.bf16.gmra.mxu1 %v9572_v11  ;;  %v9581_v11 = vld [vmem:[%s12603_s14 + $0x68] sm:$0xf0] }
 0x236   : > { %10110 = vmatmul.msk.bf16.gmra.mxu3 %vm970_vm1, %v9576_v24 }
 0x238   : > { %v13305_v44 = vpop.f32.mrf.mxu2  ;;  %v13309_v23 = vpop.f32.mrf.mxu0 }
 0x239   : > { %16194 = vst [vmem:[#allocation162_spill] sm:$0xff] %v13305_v44  ;;  %v13307_v40 = vpop.f32.mrf.mxu3  ;;  %v11509_v44 = vld [vmem:[%s12603_s14 + $0x244] sm:$0xf0] }
 0x23a   : > { %16195 = vst [vmem:[#allocation163_spill] sm:$0xff] %v13307_v40  ;;  %v13311_v55 = vpop.f32.mrf.mxu1  ;;  %v9584_v40 = vor.u32 %v11590_v62, %v9581_v11  ;;  %v11593_v62 = vld [vmem:[%s12603_s14 + $0x74] sm:$0xf0]  ;;  %v11592_v11 = vld [vmem:[%s12603_s14 + $0x74] sm:$0xf] }
 0x23b   : > { %16196 = vst [vmem:[#allocation164_spill] sm:$0xff] %v13309_v23  ;;  %1340 = vmatmul.bf16.gmra.mxu0 %v9082_v20 }
 0x23c   : > { %16197 = vst [vmem:[#allocation165_spill] sm:$0xff] %v13311_v55 }
 0x23d   : > { %2078 = vmatmul.bf16.gmra.mxu2 %v9066_v15  ;;  %v9089_v15 = vld [vmem:[%s12603_s14 + $0x240] sm:$0xf] }
 0x240   : > { %v13317_v46 = vpop.f32.mrf.mxu2  ;;  %v13321_v63 = vpop.f32.mrf.mxu0 }
 0x241   : > { %16198 = vst [vmem:[#allocation166_spill] sm:$0xff] %v13317_v46  ;;  %v13319_v24 = vpop.f32.mrf.mxu3  ;;  %v9090_v46 = vor.u32 %v11509_v44, %v9089_v15  ;;  %v9588_v15 = vor.u32 %v11593_v62, %v9587_v43  ;;  %v9595_v62 = vld [vmem:[%s12603_s14 + $0x80] sm:$0xf] }
 0x242   : > { %16199 = vst [vmem:[#allocation167_spill] sm:$0xff] %v13319_v24  ;;  %v13323_v23 = vpop.f32.mrf.mxu1 }
 0x243   : > { %16200 = vst [vmem:[#allocation168_spill] sm:$0xff] %v13321_v63 }
 0x244   : > { %16201 = vst [vmem:[#allocation169_spill] sm:$0xff] %v13323_v23 }
 0x245   : > { %3552 = vmatmul.bf16.gmra.mxu1 %v9580_v53  ;;  %v9589_v53 = vld [vmem:[%s12603_s14 + $0x78] sm:$0xf0] }
 0x246   : > { %10111 = vmatmul.msk.bf16.gmra.mxu3 %vm970_vm1, %v9584_v40 }
 0x248   : > { %v13328_v55 = vpop.f32.mrf.mxu2  ;;  %v13332_v24 = vpop.f32.mrf.mxu0 }
 0x249   : > { %16202 = vst [vmem:[#allocation170_spill] sm:$0xff] %v13328_v55  ;;  %v13330_v1 = vpop.f32.mrf.mxu3  ;;  %v11511_v55 = vld [vmem:[%s12603_s14 + $0x254] sm:$0xf0] }
 0x24a   : > { %16203 = vst [vmem:[#allocation171_spill] sm:$0xff] %v13330_v1  ;;  %v13334_v36 = vpop.f32.mrf.mxu1  ;;  %v9592_v1 = vor.u32 %v11592_v11, %v9589_v53  ;;  %v11595_v11 = vld [vmem:[%s12603_s14 + $0x84] sm:$0xf0]  ;;  %v11594_v53 = vld [vmem:[%s12603_s14 + $0x84] sm:$0xf] }
 0x24b   : > { %16204 = vst [vmem:[#allocation172_spill] sm:$0xff] %v13332_v24  ;;  %1345 = vmatmul.bf16.gmra.mxu0 %v9090_v46 }
 0x24c   : > { %16205 = vst [vmem:[#allocation173_spill] sm:$0xff] %v13334_v36 }
 0x24d   : > { %2083 = vmatmul.bf16.gmra.mxu2 %v9074_v32  ;;  %v9097_v32 = vld [vmem:[%s12603_s14 + $0x250] sm:$0xf] }
 0x250   : > { %v13340_v63 = vpop.f32.mrf.mxu2  ;;  %v13344_v44 = vpop.f32.mrf.mxu0 }
 0x251   : > { %16206 = vst [vmem:[#allocation174_spill] sm:$0xff] %v13340_v63  ;;  %v13342_v40 = vpop.f32.mrf.mxu3  ;;  %v9098_v63 = vor.u32 %v11511_v55, %v9097_v32  ;;  %v9596_v32 = vor.u32 %v11595_v11, %v9595_v62  ;;  %v9603_v11 = vld [vmem:[%s12603_s14 + $0x90] sm:$0xf] }
 0x252   : > { %16207 = vst [vmem:[#allocation175_spill] sm:$0xff] %v13342_v40  ;;  %v13346_v24 = vpop.f32.mrf.mxu1 }
 0x253   : > { %16208 = vst [vmem:[#allocation176_spill] sm:$0xff] %v13344_v44 }
 0x254   : > { %16209 = vst [vmem:[#allocation177_spill] sm:$0xff] %v13346_v24 }
 0x255   : > { %3557 = vmatmul.bf16.gmra.mxu1 %v9588_v15  ;;  %v9597_v15 = vld [vmem:[%s12603_s14 + $0x88] sm:$0xf0] }
 0x256   : > { %10112 = vmatmul.msk.bf16.gmra.mxu3 %vm970_vm1, %v9592_v1 }
 0x258   : > { %v13351_v36 = vpop.f32.mrf.mxu2  ;;  %v13355_v40 = vpop.f32.mrf.mxu0 }
 0x259   : > { %16210 = vst [vmem:[#allocation178_spill] sm:$0xff] %v13351_v36  ;;  %v13353_v23 = vpop.f32.mrf.mxu3  ;;  %v11513_v36 = vld [vmem:[%s12603_s14 + $0x264] sm:$0xf0] }
 0x25a   : > { %16211 = vst [vmem:[#allocation179_spill] sm:$0xff] %v13353_v23  ;;  %v13357_v43 = vpop.f32.mrf.mxu1  ;;  %v9600_v23 = vor.u32 %v11594_v53, %v9597_v15  ;;  %v11597_v53 = vld [vmem:[%s12603_s14 + $0x94] sm:$0xf0]  ;;  %v11596_v15 = vld [vmem:[%s12603_s14 + $0x94] sm:$0xf] }
 0x25b   : > { %16212 = vst [vmem:[#allocation180_spill] sm:$0xff] %v13355_v40  ;;  %1350 = vmatmul.bf16.gmra.mxu0 %v9098_v63 }
 0x25c   : > { %16213 = vst [vmem:[#allocation181_spill] sm:$0xff] %v13357_v43 }
 0x25d   : > { %2088 = vmatmul.bf16.gmra.mxu2 %v9082_v20  ;;  %v9105_v20 = vld [vmem:[%s12603_s14 + $0x260] sm:$0xf] }
 0x260   : > { %v13363_v44 = vpop.f32.mrf.mxu2  ;;  %v13367_v55 = vpop.f32.mrf.mxu0 }
 0x261   : > { %16214 = vst [vmem:[#allocation182_spill] sm:$0xff] %v13363_v44  ;;  %v13365_v1 = vpop.f32.mrf.mxu3  ;;  %v9106_v44 = vor.u32 %v11513_v36, %v9105_v20  ;;  %v9604_v20 = vor.u32 %v11597_v53, %v9603_v11  ;;  %v9611_v53 = vld [vmem:[%s12603_s14 + $0xa0] sm:$0xf] }
 0x262   : > { %16215 = vst [vmem:[#allocation183_spill] sm:$0xff] %v13365_v1  ;;  %v13369_v40 = vpop.f32.mrf.mxu1 }
 0x263   : > { %16216 = vst [vmem:[#allocation184_spill] sm:$0xff] %v13367_v55 }
 0x264   : > { %16217 = vst [vmem:[#allocation185_spill] sm:$0xff] %v13369_v40 }
 0x265   : > { %3562 = vmatmul.bf16.gmra.mxu1 %v9596_v32  ;;  %v9605_v32 = vld [vmem:[%s12603_s14 + $0x98] sm:$0xf0] }
 0x266   : > { %10113 = vmatmul.msk.bf16.gmra.mxu3 %vm970_vm1, %v9600_v23 }
 0x268   : > { %v13374_v43 = vpop.f32.mrf.mxu2  ;;  %v13378_v1 = vpop.f32.mrf.mxu0 }
 0x269   : > { %16218 = vst [vmem:[#allocation186_spill] sm:$0xff] %v13374_v43  ;;  %v13376_v24 = vpop.f32.mrf.mxu3  ;;  %v11515_v43 = vld [vmem:[%s12603_s14 + $0x274] sm:$0xf0] }
 0x26a   : > { %16219 = vst [vmem:[#allocation187_spill] sm:$0xff] %v13376_v24  ;;  %v13380_v62 = vpop.f32.mrf.mxu1  ;;  %v9608_v24 = vor.u32 %v11596_v15, %v9605_v32  ;;  %v11599_v15 = vld [vmem:[%s12603_s14 + $0xa4] sm:$0xf0]  ;;  %v11598_v32 = vld [vmem:[%s12603_s14 + $0xa4] sm:$0xf] }
 0x26b   : > { %16220 = vst [vmem:[#allocation188_spill] sm:$0xff] %v13378_v1  ;;  %1355 = vmatmul.bf16.gmra.mxu0 %v9106_v44 }
 0x26c   : > { %16221 = vst [vmem:[#allocation189_spill] sm:$0xff] %v13380_v62 }
 0x26d   : > { %2093 = vmatmul.bf16.gmra.mxu2 %v9090_v46  ;;  %v9113_v46 = vld [vmem:[%s12603_s14 + $0x270] sm:$0xf] }
 0x270   : > { %v13386_v55 = vpop.f32.mrf.mxu2  ;;  %v13390_v36 = vpop.f32.mrf.mxu0 }
 0x271   : > { %16222 = vst [vmem:[#allocation190_spill] sm:$0xff] %v13386_v55  ;;  %v13388_v23 = vpop.f32.mrf.mxu3  ;;  %v9114_v55 = vor.u32 %v11515_v43, %v9113_v46  ;;  %v9612_v43 = vor.u32 %v11599_v15, %v9611_v53  ;;  %v11994_v15 = vld [vmem:[%s16029_s1 + $0x150] sm:$0xff] }
 0x272   : > { %16223 = vst [vmem:[#allocation191_spill] sm:$0xff] %v13388_v23  ;;  %v13392_v1 = vpop.f32.mrf.mxu1  ;;  %7049 = vmatpush.bf16.msra.mxu1 %v11994_v15  ;;  %v11519_v15 = vld [vmem:[%s12603_s14 + $0x294] sm:$0xf0] }
 0x273   : > { %16224 = vst [vmem:[#allocation192_spill] sm:$0xff] %v13390_v36 }
 0x274   : > { %16225 = vst [vmem:[#allocation193_spill] sm:$0xff] %v13392_v1 }
 0x275   : > { %3567 = vmatmul.bf16.gmra.mxu1 %v9604_v20  ;;  %v9613_v20 = vld [vmem:[%s12603_s14 + $0xa8] sm:$0xf0] }
 0x276   : > { %10114 = vmatmul.msk.bf16.gmra.mxu3 %vm970_vm1, %v9608_v24 }
 0x278   : > { %v13397_v62 = vpop.f32.mrf.mxu2  ;;  %v13401_v23 = vpop.f32.mrf.mxu0 }
 0x279   : > { %16226 = vst [vmem:[#allocation194_spill] sm:$0xff] %v13397_v62  ;;  %v13399_v40 = vpop.f32.mrf.mxu3 }
 0x27a   : > { %16227 = vst [vmem:[#allocation195_spill] sm:$0xff] %v13399_v40  ;;  %v13403_v11 = vpop.f32.mrf.mxu1  ;;  %v11517_v40 = vld [vmem:[%s12603_s14 + $0x284] sm:$0xf0] }
 0x27b   : > { %16228 = vst [vmem:[#allocation196_spill] sm:$0xff] %v13401_v23  ;;  %1360 = vmatmul.bf16.gmra.mxu0 %v9114_v55  ;;  %v9616_v23 = vor.u32 %v11598_v32, %v9613_v20  ;;  %v9619_v32 = vld [vmem:[%s12603_s14 + $0xb0] sm:$0xf]  ;;  %v11600_v20 = vld [vmem:[%s12603_s14 + $0xb4] sm:$0xf] }
 0x27c   : > { %16229 = vst [vmem:[#allocation197_spill] sm:$0xff] %v13403_v11 }
 0x27d   : > { %2098 = vmatmul.bf16.gmra.mxu2 %v9098_v63  ;;  %v9121_v63 = vld [vmem:[%s12603_s14 + $0x280] sm:$0xf] }
 0x280   : > { %v13409_v36 = vpop.f32.mrf.mxu2  ;;  %v13413_v62 = vpop.f32.mrf.mxu0 }
 0x281   : > { %16230 = vst [vmem:[#allocation198_spill] sm:$0xff] %v13409_v36  ;;  %v13411_v24 = vpop.f32.mrf.mxu3  ;;  %v9122_v36 = vor.u32 %v11517_v40, %v9121_v63 }
 0x282   : > { %16231 = vst [vmem:[#allocation199_spill] sm:$0xff] %v13411_v24  ;;  %v13415_v46 = vpop.f32.mrf.mxu1 }
 0x283   : > { %16232 = vst [vmem:[#allocation200_spill] sm:$0xff] %v13413_v62 }
 0x284   : > { %16233 = vst [vmem:[#allocation201_spill] sm:$0xff] %v13415_v46 }
 0x285   : > { %3572 = vmatmul.bf16.gmra.mxu1 %v9612_v43  ;;  %v9621_v43 = vld [vmem:[%s12603_s14 + $0xb8] sm:$0xf0] }
 0x286   : > { %10115 = vmatmul.msk.bf16.gmra.mxu3 %vm970_vm1, %v9616_v23  ;;  %v11601_v23 = vld [vmem:[%s12603_s14 + $0xb4] sm:$0xf0]  ;;  %v9624_v62 = vor.u32 %v11600_v20, %v9621_v43  ;;  %v11602_v20 = vld [vmem:[%s12603_s14 + $0xc4] sm:$0xf]  ;;  %v9629_v43 = vld [vmem:[%s12603_s14 + $0xc8] sm:$0xf0] }
 0x288   : > { %v13420_v11 = vpop.f32.mrf.mxu2  ;;  %v13424_v24 = vpop.f32.mrf.mxu0 }
 0x289   : > { %16234 = vst [vmem:[#allocation202_spill] sm:$0xff] %v13420_v11  ;;  %v13422_v1 = vpop.f32.mrf.mxu3 }
 0x28a   : > { %16235 = vst [vmem:[#allocation203_spill] sm:$0xff] %v13422_v1  ;;  %v13426_v53 = vpop.f32.mrf.mxu1  ;;  %v9620_v1 = vor.u32 %v11601_v23, %v9619_v32  ;;  %v9627_v32 = vld [vmem:[%s12603_s14 + $0xc0] sm:$0xf]  ;;  %v11603_v23 = vld [vmem:[%s12603_s14 + $0xc4] sm:$0xf0] }
 0x28b   : > { %16236 = vst [vmem:[#allocation204_spill] sm:$0xff] %v13424_v24  ;;  %1365 = vmatmul.bf16.gmra.mxu0 %v9122_v36 }
 0x28c   : > { %16237 = vst [vmem:[#allocation205_spill] sm:$0xff] %v13426_v53 }
 0x28d   : > { %2103 = vmatmul.bf16.gmra.mxu2 %v9106_v44  ;;  %v9129_v44 = vld [vmem:[%s12603_s14 + $0x290] sm:$0xf] }
 0x290   : > { %v13435_v40 = vpop.f32.mrf.mxu2  ;;  %v13439_v24 = vpop.f32.mrf.mxu0 }
 0x291   : > { %16238 = vst [vmem:[#allocation206_spill] sm:$0xff] %v13435_v40  ;;  %v13437_v63 = vpop.f32.mrf.mxu3  ;;  %v9130_v40 = vor.u32 %v11519_v15, %v9129_v44  ;;  %v9628_v15 = vor.u32 %v11603_v23, %v9627_v32 }
 0x292   : > { %16239 = vst [vmem:[#allocation207_spill] sm:$0xff] %v13437_v63  ;;  %v13441_v11 = vpop.f32.mrf.mxu1 }
 0x293   : > { %16240 = vst [vmem:[#allocation208_spill] sm:$0xff] %v13439_v24 }
 0x294   : > { %16241 = vst [vmem:[#allocation209_spill] sm:$0xff] %v13441_v11  ;;  %v9137_v11 = vld [vmem:[%s12603_s14 + $0x2a0] sm:$0xf] }
 0x295   : > { %3577 = vmatmul.bf16.gmra.mxu1 %v9620_v1 }
 0x296   : > { %10116 = vmatmul.msk.bf16.gmra.mxu3 %vm970_vm1, %v9624_v62 }
 0x298   : > { %v13446_v53 = vpop.f32.mrf.mxu2  ;;  %v1331_v63 = vpop.f32.mrf.mxu0 }
 0x299   : > { %16242 = vst [vmem:[#allocation210_spill] sm:$0xff] %v13446_v53  ;;  %v13448_v46 = vpop.f32.mrf.mxu3  ;;  %v1661_v1 = vadd.f32 %v12710_v28, %v1331_v63 }
 0x29a   : > { %16243 = vst [vmem:[#allocation211_spill] sm:$0xff] %v13448_v46  ;;  %v13450_v49 = vpop.f32.mrf.mxu1 }
 0x29b   : > { %16244 = vst [vmem:[#allocation212_spill] sm:$0xff] %v13450_v49  ;;  %1370 = vmatmul.bf16.gmra.mxu0 %v9130_v40  ;;  %v9632_v49 = vor.u32 %v11602_v20, %v9629_v43  ;;  %v9635_v20 = vld [vmem:[%s12603_s14 + $0xd0] sm:$0xf]  ;;  %v11605_v43 = vld [vmem:[%s12603_s14 + $0xd4] sm:$0xf0] }
 0x29d   : > { %2108 = vmatmul.bf16.gmra.mxu2 %v9114_v55  ;;  %v11521_v55 = vld [vmem:[%s12603_s14 + $0x2a4] sm:$0xf0] }
 0x2a0   : > { %v2069_v24 = vpop.f32.mrf.mxu2  ;;  %v1333_v44 = vpop.f32.mrf.mxu0 }
 0x2a1   : > { %v13457_v62 = vadd.f32 %v2069_v24, %v1661_v1  ;;  %v13459_v53 = vpop.f32.mrf.mxu3  ;;  %v1663_v28 = vadd.f32 %v12718_v33, %v1333_v44  ;;  %v9138_v24 = vor.u32 %v11521_v55, %v9137_v11 }
 0x2a2   : > { %16246 = vst [vmem:[#allocation214_spill] sm:$0xff] %v13459_v53  ;;  %v3543_v46 = vpop.f32.mrf.mxu1 }
 0x2a3   : > { %16245 = vst [vmem:[#allocation213_spill] sm:$0xff] %v13457_v62 }
 0x2a5   : > { %3582 = vmatmul.bf16.gmra.mxu1 %v9628_v15 }
 0x2a6   : > { %10117 = vmatmul.msk.bf16.gmra.mxu3 %vm970_vm1, %v9632_v49  ;;  %v11604_v49 = vld [vmem:[%s12603_s14 + $0xd4] sm:$0xf] }
 0x2a8   : > { %v2071_v63 = vpop.f32.mrf.mxu2  ;;  %v1336_v62 = vpop.f32.mrf.mxu0 }
 0x2a9   : > { %v13465_v1 = vadd.f32 %v2071_v63, %v1663_v28  ;;  %v3872_v53 = vpop.f32.mrf.mxu3  ;;  %v1666_v15 = vadd.f32 %v12724_v39, %v1336_v62  ;;  %v9636_v28 = vor.u32 %v11605_v43, %v9635_v20 }
 0x2aa   : > { %v13467_v32 = vadd.f32 %v3872_v53, %v3543_v46  ;;  %v3545_v23 = vpop.f32.mrf.mxu1  ;;  %v9640_v53 = vor.u32 %v11604_v49, %v9637_v26  ;;  %v9643_v26 = vld [vmem:[%s12603_s14 + $0xe0] sm:$0xf]  ;;  %v11607_v49 = vld [vmem:[%s12603_s14 + $0xe4] sm:$0xf0] }
 0x2ab   : > { %1375 = vmatmul.bf16.gmra.mxu0 %v9138_v24 }
 0x2ac   : > { %16247 = vst [vmem:[#allocation215_spill] sm:$0xff] %v13467_v32  ;;  %v11523_v32 = vld [vmem:[%s12603_s14 + $0x2b4] sm:$0xf0] }
 0x2ad   : > { %2113 = vmatmul.bf16.gmra.mxu2 %v9122_v36  ;;  %v9145_v36 = vld [vmem:[%s12603_s14 + $0x2b0] sm:$0xf] }
 0x2b0   : > { %v2074_v33 = vpop.f32.mrf.mxu2  ;;  %v1338_v55 = vpop.f32.mrf.mxu0 }
 0x2b1   : > { %v13474_v44 = vadd.f32 %v2074_v33, %v1666_v15  ;;  %v3874_v11 = vpop.f32.mrf.mxu3  ;;  %v1668_v39 = vadd.f32 %v12734_v45, %v1338_v55  ;;  %v9146_v15 = vor.u32 %v11523_v32, %v9145_v36 }
 0x2b2   : > { %v13476_v63 = vadd.f32 %v3874_v11, %v3545_v23  ;;  %v3548_v46 = vpop.f32.mrf.mxu1 }
 0x2b4   : > { %16248 = vst [vmem:[#allocation216_spill] sm:$0xff] %v13476_v63  ;;  %v9645_v63 = vld [vmem:[%s12603_s14 + $0xe8] sm:$0xf0] }
 0x2b5   : > { %3587 = vmatmul.bf16.gmra.mxu1 %v9636_v28 }
 0x2b6   : > { %10118 = vmatmul.msk.bf16.gmra.mxu3 %vm970_vm1, %v9640_v53  ;;  %v11606_v53 = vld [vmem:[%s12603_s14 + $0xe4] sm:$0xf] }
 0x2b8   : > { %v2076_v62 = vpop.f32.mrf.mxu2  ;;  %v1341_v23 = vpop.f32.mrf.mxu0 }
 0x2b9   : > { %v13482_v33 = vadd.f32 %v2076_v62, %v1668_v39  ;;  %v3877_v20 = vpop.f32.mrf.mxu3  ;;  %v1671_v28 = vadd.f32 %v12744_v52, %v1341_v23  ;;  %v9644_v39 = vor.u32 %v11607_v49, %v9643_v26 }
 0x2ba   : > { %v13484_v43 = vadd.f32 %v3877_v20, %v3548_v46  ;;  %v3550_v11 = vpop.f32.mrf.mxu1  ;;  %v9648_v20 = vor.u32 %v11606_v53, %v9645_v63  ;;  %v9651_v63 = vld [vmem:[%s12603_s14 + $0xf0] sm:$0xf]  ;;  %v11609_v53 = vld [vmem:[%s12603_s14 + $0xf4] sm:$0xf0] }
 0x2bb   : > { %1380 = vmatmul.bf16.gmra.mxu0 %v9146_v15 }
 0x2bc   : > { %16249 = vst [vmem:[#allocation217_spill] sm:$0xff] %v13484_v43  ;;  %v11525_v43 = vld [vmem:[%s12603_s14 + $0x2c4] sm:$0xf0] }
 0x2bd   : > { %2118 = vmatmul.bf16.gmra.mxu2 %v9130_v40  ;;  %v9153_v40 = vld [vmem:[%s12603_s14 + $0x2c0] sm:$0xf] }
 0x2c0   : > { %v2079_v45 = vpop.f32.mrf.mxu2  ;;  %v1343_v36 = vpop.f32.mrf.mxu0 }
 0x2c1   : > { %v13491_v55 = vadd.f32 %v2079_v45, %v1671_v28  ;;  %v3879_v32 = vpop.f32.mrf.mxu3  ;;  %v1673_v52 = vadd.f32 %v12756_v59, %v1343_v36  ;;  %v9154_v28 = vor.u32 %v11525_v43, %v9153_v40 }
 0x2c2   : > { %v13493_v62 = vadd.f32 %v3879_v32, %v3550_v11  ;;  %v3553_v46 = vpop.f32.mrf.mxu1 }
 0x2c4   : > { %16250 = vst [vmem:[#allocation218_spill] sm:$0xff] %v13493_v62  ;;  %v9653_v62 = vld [vmem:[%s12603_s14 + $0xf8] sm:$0xf0] }
 0x2c5   : > { %3592 = vmatmul.bf16.gmra.mxu1 %v9644_v39 }
 0x2c6   : > { %10119 = vmatmul.msk.bf16.gmra.mxu3 %vm970_vm1, %v9648_v20  ;;  %v11608_v20 = vld [vmem:[%s12603_s14 + $0xf4] sm:$0xf] }
 0x2c8   : > { %v2081_v23 = vpop.f32.mrf.mxu2  ;;  %v1346_v11 = vpop.f32.mrf.mxu0 }
 0x2c9   : > { %v13499_v45 = vadd.f32 %v2081_v23, %v1673_v52  ;;  %v3882_v26 = vpop.f32.mrf.mxu3  ;;  %v1676_v39 = vadd.f32 %v12769_v3, %v1346_v11  ;;  %v9652_v52 = vor.u32 %v11609_v53, %v9651_v63 }
 0x2ca   : > { %v13501_v49 = vadd.f32 %v3882_v26, %v3553_v46  ;;  %v3555_v32 = vpop.f32.mrf.mxu1  ;;  %v9656_v26 = vor.u32 %v11608_v20, %v9653_v62  ;;  %v9659_v62 = vld [vmem:[%s12603_s14 + $0x100] sm:$0xf]  ;;  %v11611_v20 = vld [vmem:[%s12603_s14 + $0x104] sm:$0xf0] }
 0x2cb   : > { %1385 = vmatmul.bf16.gmra.mxu0 %v9154_v28 }
 0x2cc   : > { %16251 = vst [vmem:[#allocation219_spill] sm:$0xff] %v13501_v49  ;;  %v11527_v49 = vld [vmem:[%s12603_s14 + $0x2d4] sm:$0xf0] }
 0x2cd   : > { %2123 = vmatmul.bf16.gmra.mxu2 %v9138_v24  ;;  %v9161_v24 = vld [vmem:[%s12603_s14 + $0x2d0] sm:$0xf] }
 0x2d0   : > { %v2084_v59 = vpop.f32.mrf.mxu2  ;;  %v1348_v40 = vpop.f32.mrf.mxu0 }
 0x2d1   : > { %v13508_v36 = vadd.f32 %v2084_v59, %v1676_v39  ;;  %v3884_v43 = vpop.f32.mrf.mxu3  ;;  %v1678_v3 = vadd.f32 %v12781_v10, %v1348_v40  ;;  %v9162_v39 = vor.u32 %v11527_v49, %v9161_v24 }
 0x2d2   : > { %v13510_v23 = vadd.f32 %v3884_v43, %v3555_v32  ;;  %v3558_v46 = vpop.f32.mrf.mxu1 }
 0x2d4   : > { %16252 = vst [vmem:[#allocation220_spill] sm:$0xff] %v13510_v23  ;;  %v9661_v23 = vld [vmem:[%s12603_s14 + $0x108] sm:$0xf0] }
 0x2d5   : > { %3597 = vmatmul.bf16.gmra.mxu1 %v9652_v52 }
 0x2d6   : > { %10120 = vmatmul.msk.bf16.gmra.mxu3 %vm970_vm1, %v9656_v26  ;;  %v11610_v26 = vld [vmem:[%s12603_s14 + $0x104] sm:$0xf] }
 0x2d8   : > { %v2086_v11 = vpop.f32.mrf.mxu2  ;;  %v1351_v32 = vpop.f32.mrf.mxu0 }
 0x2d9   : > { %v13516_v59 = vadd.f32 %v2086_v11, %v1678_v3  ;;  %v3887_v63 = vpop.f32.mrf.mxu3  ;;  %v1681_v52 = vadd.f32 %v12791_v17, %v1351_v32  ;;  %v9660_v3 = vor.u32 %v11611_v20, %v9659_v62 }
 0x2da   : > { %v13518_v53 = vadd.f32 %v3887_v63, %v3558_v46  ;;  %v3560_v43 = vpop.f32.mrf.mxu1  ;;  %v9664_v63 = vor.u32 %v11610_v26, %v9661_v23  ;;  %v9667_v23 = vld [vmem:[%s12603_s14 + $0x110] sm:$0xf]  ;;  %v11613_v26 = vld [vmem:[%s12603_s14 + $0x114] sm:$0xf0] }
 0x2db   : > { %1390 = vmatmul.bf16.gmra.mxu0 %v9162_v39 }
 0x2dc   : > { %16253 = vst [vmem:[#allocation221_spill] sm:$0xff] %v13518_v53  ;;  %v11529_v53 = vld [vmem:[%s12603_s14 + $0x2e4] sm:$0xf0] }
 0x2dd   : > { %2128 = vmatmul.bf16.gmra.mxu2 %v9146_v15  ;;  %v9169_v15 = vld [vmem:[%s12603_s14 + $0x2e0] sm:$0xf] }
 0x2e0   : > { %v2089_v10 = vpop.f32.mrf.mxu2  ;;  %v1353_v24 = vpop.f32.mrf.mxu0 }
 0x2e1   : > { %v13525_v40 = vadd.f32 %v2089_v10, %v1681_v52  ;;  %v3889_v49 = vpop.f32.mrf.mxu3  ;;  %v1683_v17 = vadd.f32 %v12803_v25, %v1353_v24  ;;  %v9170_v52 = vor.u32 %v11529_v53, %v9169_v15 }
 0x2e2   : > { %v13527_v11 = vadd.f32 %v3889_v49, %v3560_v43  ;;  %v3563_v46 = vpop.f32.mrf.mxu1 }
 0x2e4   : > { %16254 = vst [vmem:[#allocation222_spill] sm:$0xff] %v13527_v11  ;;  %v9669_v11 = vld [vmem:[%s12603_s14 + $0x118] sm:$0xf0] }
 0x2e5   : > { %3602 = vmatmul.bf16.gmra.mxu1 %v9660_v3 }
 0x2e6   : > { %10121 = vmatmul.msk.bf16.gmra.mxu3 %vm970_vm1, %v9664_v63  ;;  %v11612_v63 = vld [vmem:[%s12603_s14 + $0x114] sm:$0xf] }
 0x2e8   : > { %v2091_v32 = vpop.f32.mrf.mxu2  ;;  %v1356_v43 = vpop.f32.mrf.mxu0 }
 0x2e9   : > { %v13533_v10 = vadd.f32 %v2091_v32, %v1683_v17  ;;  %v3892_v62 = vpop.f32.mrf.mxu3  ;;  %v1686_v3 = vadd.f32 %v12813_v35, %v1356_v43  ;;  %v9668_v17 = vor.u32 %v11613_v26, %v9667_v23 }
 0x2ea   : > { %v13535_v20 = vadd.f32 %v3892_v62, %v3563_v46  ;;  %v3565_v49 = vpop.f32.mrf.mxu1  ;;  %v9672_v62 = vor.u32 %v11612_v63, %v9669_v11  ;;  %v9675_v11 = vld [vmem:[%s12603_s14 + $0x120] sm:$0xf]  ;;  %v11615_v63 = vld [vmem:[%s12603_s14 + $0x124] sm:$0xf0] }
 0x2eb   : > { %1395 = vmatmul.bf16.gmra.mxu0 %v9170_v52 }
 0x2ec   : > { %16255 = vst [vmem:[#allocation223_spill] sm:$0xff] %v13535_v20  ;;  %v11531_v20 = vld [vmem:[%s12603_s14 + $0x2f4] sm:$0xf0] }
 0x2ed   : > { %2133 = vmatmul.bf16.gmra.mxu2 %v9154_v28  ;;  %v9177_v28 = vld [vmem:[%s12603_s14 + $0x2f0] sm:$0xf] }
 0x2f0   : > { %v2094_v25 = vpop.f32.mrf.mxu2  ;;  %v1358_v15 = vpop.f32.mrf.mxu0 }
 0x2f1   : > { %v13542_v24 = vadd.f32 %v2094_v25, %v1686_v3  ;;  %v3894_v53 = vpop.f32.mrf.mxu3  ;;  %v1688_v35 = vadd.f32 %v12825_v51, %v1358_v15  ;;  %v9178_v3 = vor.u32 %v11531_v20, %v9177_v28 }
 0x2f2   : > { %v13544_v32 = vadd.f32 %v3894_v53, %v3565_v49  ;;  %v3568_v46 = vpop.f32.mrf.mxu1 }
 0x2f4   : > { %16256 = vst [vmem:[#allocation224_spill] sm:$0xff] %v13544_v32  ;;  %v9677_v32 = vld [vmem:[%s12603_s14 + $0x128] sm:$0xf0] }
 0x2f5   : > { %3607 = vmatmul.bf16.gmra.mxu1 %v9668_v17 }
 0x2f6   : > { %10122 = vmatmul.msk.bf16.gmra.mxu3 %vm970_vm1, %v9672_v62  ;;  %v11614_v62 = vld [vmem:[%s12603_s14 + $0x124] sm:$0xf] }
 0x2f8   : > { %v2096_v43 = vpop.f32.mrf.mxu2  ;;  %v1361_v49 = vpop.f32.mrf.mxu0 }
 0x2f9   : > { %v13550_v25 = vadd.f32 %v2096_v43, %v1688_v35  ;;  %v3897_v23 = vpop.f32.mrf.mxu3  ;;  %v1691_v17 = vadd.f32 %v12835_v2, %v1361_v49  ;;  %v9676_v35 = vor.u32 %v11615_v63, %v9675_v11 }
 0x2fa   : > { %v13552_v26 = vadd.f32 %v3897_v23, %v3568_v46  ;;  %v3570_v53 = vpop.f32.mrf.mxu1  ;;  %v9680_v23 = vor.u32 %v11614_v62, %v9677_v32  ;;  %v11993_v62 = vld [vmem:[%s16029_s1 + $0x148] sm:$0xff] }
 0x2fb   : > { %1400 = vmatmul.bf16.gmra.mxu0 %v9178_v3  ;;  %7050 = vmatpush.bf16.msra.mxu1 %v11993_v62  ;;  %v9193_v62 = vld [vmem:[%s12603_s14 + $0x310] sm:$0xf] }
 0x2fc   : > { %16257 = vst [vmem:[#allocation225_spill] sm:$0xff] %v13552_v26  ;;  %v11533_v26 = vld [vmem:[%s12603_s14 + $0x304] sm:$0xf0] }
 0x2fd   : > { %2138 = vmatmul.bf16.gmra.mxu2 %v9162_v39  ;;  %v9185_v39 = vld [vmem:[%s12603_s14 + $0x300] sm:$0xf] }
 0x300   : > { %v2099_v51 = vpop.f32.mrf.mxu2  ;;  %v1363_v28 = vpop.f32.mrf.mxu0 }
 0x301   : > { %v13559_v15 = vadd.f32 %v2099_v51, %v1691_v17  ;;  %v3899_v20 = vpop.f32.mrf.mxu3  ;;  %v1693_v2 = vadd.f32 %v12847_v19, %v1363_v28  ;;  %v9186_v17 = vor.u32 %v11533_v26, %v9185_v39  ;;  %v9683_v19 = vld [vmem:[%s12603_s14 + $0x130] sm:$0xf]  ;;  %v11616_v28 = vld [vmem:[%s12603_s14 + $0x134] sm:$0xf] }
 0x302   : > { %v13561_v43 = vadd.f32 %v3899_v20, %v3570_v53  ;;  %v3573_v46 = vpop.f32.mrf.mxu1  ;;  %v11617_v20 = vld [vmem:[%s12603_s14 + $0x134] sm:$0xf0] }
 0x304   : > { %16258 = vst [vmem:[#allocation226_spill] sm:$0xff] %v13561_v43  ;;  %v11535_v43 = vld [vmem:[%s12603_s14 + $0x314] sm:$0xf0] }
 0x305   : > { %3612 = vmatmul.bf16.gmra.mxu1 %v9676_v35  ;;  %v9685_v35 = vld [vmem:[%s12603_s14 + $0x138] sm:$0xf0] }
 0x306   : > { %10123 = vmatmul.msk.bf16.gmra.mxu3 %vm970_vm1, %v9680_v23 }
 0x308   : > { %v2101_v49 = vpop.f32.mrf.mxu2  ;;  %v1366_v53 = vpop.f32.mrf.mxu0 }
 0x309   : > { %v13567_v51 = vadd.f32 %v2101_v49, %v1693_v2  ;;  %v3902_v11 = vpop.f32.mrf.mxu3  ;;  %v1696_v26 = vadd.f32 %v12857_v54, %v1366_v53  ;;  %v9684_v49 = vor.u32 %v11617_v20, %v9683_v19 }
 0x30a   : > { %v13569_v63 = vadd.f32 %v3902_v11, %v3573_v46  ;;  %v3575_v32 = vpop.f32.mrf.mxu1 }
 0x30b   : > { %1405 = vmatmul.bf16.gmra.mxu0 %v9186_v17 }
 0x30c   : > { %16259 = vst [vmem:[#allocation227_spill] sm:$0xff] %v13569_v63 }
 0x30d   : > { %2143 = vmatmul.bf16.gmra.mxu2 %v9170_v52  ;;  %v9688_v52 = vor.u32 %v11616_v28, %v9685_v35  ;;  %v9691_v28 = vld [vmem:[%s12603_s14 + $0x140] sm:$0xf]  ;;  %v11619_v35 = vld [vmem:[%s12603_s14 + $0x144] sm:$0xf0] }
 0x310   : > { %v2104_v23 = vpop.f32.mrf.mxu2  ;;  %v1368_v2 = vpop.f32.mrf.mxu0 }
 0x311   : > { %v13579_v39 = vadd.f32 %v2104_v23, %v1696_v26  ;;  %v3904_v46 = vpop.f32.mrf.mxu3  ;;  %v1698_v54 = vadd.f32 %v12872_v16, %v1368_v2  ;;  %v9194_v26 = vor.u32 %v11535_v43, %v9193_v62 }
 0x312   : > { %v13581_v11 = vadd.f32 %v3904_v46, %v3575_v32  ;;  %v3578_v63 = vpop.f32.mrf.mxu1 }
 0x314   : > { %16260 = vst [vmem:[#allocation228_spill] sm:$0xff] %v13581_v11  ;;  %v9693_v11 = vld [vmem:[%s12603_s14 + $0x148] sm:$0xf0] }
 0x315   : > { %3617 = vmatmul.bf16.gmra.mxu1 %v9684_v49 }
 0x316   : > { %10124 = vmatmul.msk.bf16.gmra.mxu3 %vm970_vm1, %v9688_v52  ;;  %v11618_v52 = vld [vmem:[%s12603_s14 + $0x144] sm:$0xf] }
 0x318   : > { %v2106_v53 = vpop.f32.mrf.mxu2  ;;  %v1371_v32 = vpop.f32.mrf.mxu0 }
 0x319   : > { %v13587_v23 = vadd.f32 %v2106_v53, %v1698_v54  ;;  %v3907_v19 = vpop.f32.mrf.mxu3  ;;  %v1701_v49 = vadd.f32 %v12882_v21, %v1371_v32  ;;  %v9692_v54 = vor.u32 %v11619_v35, %v9691_v28 }
 0x31a   : > { %v13589_v20 = vadd.f32 %v3907_v19, %v3578_v63  ;;  %v3580_v46 = vpop.f32.mrf.mxu1  ;;  %v9696_v19 = vor.u32 %v11618_v52, %v9693_v11  ;;  %v9699_v11 = vld [vmem:[%s12603_s14 + $0x150] sm:$0xf]  ;;  %v11621_v52 = vld [vmem:[%s12603_s14 + $0x154] sm:$0xf0] }
 0x31b   : > { %1410 = vmatmul.bf16.gmra.mxu0 %v9194_v26 }
 0x31c   : > { %16261 = vst [vmem:[#allocation229_spill] sm:$0xff] %v13589_v20  ;;  %v11537_v20 = vld [vmem:[%s12603_s14 + $0x324] sm:$0xf0] }
 0x31d   : > { %2148 = vmatmul.bf16.gmra.mxu2 %v9178_v3  ;;  %v9201_v3 = vld [vmem:[%s12603_s14 + $0x320] sm:$0xf] }
 0x320   : > { %v2109_v16 = vpop.f32.mrf.mxu2  ;;  %v1373_v62 = vpop.f32.mrf.mxu0 }
 0x321   : > { %v13596_v2 = vadd.f32 %v2109_v16, %v1701_v49  ;;  %v3909_v43 = vpop.f32.mrf.mxu3  ;;  %v1703_v21 = vadd.f32 %v12894_v12, %v1373_v62  ;;  %v9202_v49 = vor.u32 %v11537_v20, %v9201_v3 }
 0x322   : > { %v13598_v53 = vadd.f32 %v3909_v43, %v3580_v46  ;;  %v3583_v63 = vpop.f32.mrf.mxu1 }
 0x324   : > { %16262 = vst [vmem:[#allocation230_spill] sm:$0xff] %v13598_v53  ;;  %v9701_v53 = vld [vmem:[%s12603_s14 + $0x158] sm:$0xf0] }
 0x325   : > { %3622 = vmatmul.bf16.gmra.mxu1 %v9692_v54 }
 0x326   : > { %10125 = vmatmul.msk.bf16.gmra.mxu3 %vm970_vm1, %v9696_v19  ;;  %v11620_v19 = vld [vmem:[%s12603_s14 + $0x154] sm:$0xf] }
 0x328   : > { %v2111_v32 = vpop.f32.mrf.mxu2  ;;  %v1376_v46 = vpop.f32.mrf.mxu0 }
 0x329   : > { %v13604_v16 = vadd.f32 %v2111_v32, %v1703_v21  ;;  %v3912_v28 = vpop.f32.mrf.mxu3  ;;  %v1706_v54 = vadd.f32 %v12904_v27, %v1376_v46  ;;  %v9700_v21 = vor.u32 %v11621_v52, %v9699_v11 }
 0x32a   : > { %v13606_v35 = vadd.f32 %v3912_v28, %v3583_v63  ;;  %v3585_v43 = vpop.f32.mrf.mxu1  ;;  %v9704_v28 = vor.u32 %v11620_v19, %v9701_v53  ;;  %v9707_v53 = vld [vmem:[%s12603_s14 + $0x160] sm:$0xf]  ;;  %v11623_v19 = vld [vmem:[%s12603_s14 + $0x164] sm:$0xf0] }
 0x32b   : > { %1415 = vmatmul.bf16.gmra.mxu0 %v9202_v49 }
 0x32c   : > { %16263 = vst [vmem:[#allocation231_spill] sm:$0xff] %v13606_v35  ;;  %v11539_v35 = vld [vmem:[%s12603_s14 + $0x334] sm:$0xf0] }
 0x32d   : > { %2153 = vmatmul.bf16.gmra.mxu2 %v9186_v17  ;;  %v9209_v17 = vld [vmem:[%s12603_s14 + $0x330] sm:$0xf] }
 0x330   : > { %v2114_v12 = vpop.f32.mrf.mxu2  ;;  %v1378_v3 = vpop.f32.mrf.mxu0 }
 0x331   : > { %v13613_v62 = vadd.f32 %v2114_v12, %v1706_v54  ;;  %v3914_v20 = vpop.f32.mrf.mxu3  ;;  %v1708_v27 = vadd.f32 %v12916_v61, %v1378_v3  ;;  %v9210_v54 = vor.u32 %v11539_v35, %v9209_v17 }
 0x332   : > { %v13615_v32 = vadd.f32 %v3914_v20, %v3585_v43  ;;  %v3588_v63 = vpop.f32.mrf.mxu1 }
 0x334   : > { %16264 = vst [vmem:[#allocation232_spill] sm:$0xff] %v13615_v32  ;;  %v9709_v32 = vld [vmem:[%s12603_s14 + $0x168] sm:$0xf0] }
 0x335   : > { %3627 = vmatmul.bf16.gmra.mxu1 %v9700_v21 }
 0x336   : > { %10126 = vmatmul.msk.bf16.gmra.mxu3 %vm970_vm1, %v9704_v28  ;;  %v11622_v28 = vld [vmem:[%s12603_s14 + $0x164] sm:$0xf] }
 0x338   : > { %v2116_v46 = vpop.f32.mrf.mxu2  ;;  %v1381_v43 = vpop.f32.mrf.mxu0 }
 0x339   : > { %v13621_v12 = vadd.f32 %v2116_v46, %v1708_v27  ;;  %v3917_v11 = vpop.f32.mrf.mxu3  ;;  %v1711_v21 = vadd.f32 %v12926_v18, %v1381_v43  ;;  %v9708_v27 = vor.u32 %v11623_v19, %v9707_v53 }
 0x33a   : > { %v13623_v52 = vadd.f32 %v3917_v11, %v3588_v63  ;;  %v3590_v20 = vpop.f32.mrf.mxu1  ;;  %v9712_v11 = vor.u32 %v11622_v28, %v9709_v32  ;;  %v9715_v32 = vld [vmem:[%s12603_s14 + $0x170] sm:$0xf]  ;;  %v11625_v28 = vld [vmem:[%s12603_s14 + $0x174] sm:$0xf0] }
 0x33b   : > { %1420 = vmatmul.bf16.gmra.mxu0 %v9210_v54 }
 0x33c   : > { %16265 = vst [vmem:[#allocation233_spill] sm:$0xff] %v13623_v52  ;;  %v11541_v52 = vld [vmem:[%s12603_s14 + $0x344] sm:$0xf0] }
 0x33d   : > { %2158 = vmatmul.bf16.gmra.mxu2 %v9194_v26  ;;  %v9217_v26 = vld [vmem:[%s12603_s14 + $0x340] sm:$0xf] }
 0x340   : > { %v2119_v61 = vpop.f32.mrf.mxu2  ;;  %v1383_v17 = vpop.f32.mrf.mxu0 }
 0x341   : > { %v13630_v3 = vadd.f32 %v2119_v61, %v1711_v21  ;;  %v3919_v35 = vpop.f32.mrf.mxu3  ;;  %v1713_v18 = vadd.f32 %v12938_v56, %v1383_v17  ;;  %v9218_v21 = vor.u32 %v11541_v52, %v9217_v26 }
 0x342   : > { %v13632_v46 = vadd.f32 %v3919_v35, %v3590_v20  ;;  %v3593_v63 = vpop.f32.mrf.mxu1 }
 0x344   : > { %16266 = vst [vmem:[#allocation234_spill] sm:$0xff] %v13632_v46  ;;  %v9717_v46 = vld [vmem:[%s12603_s14 + $0x178] sm:$0xf0] }
 0x345   : > { %3632 = vmatmul.bf16.gmra.mxu1 %v9708_v27 }
 0x346   : > { %10127 = vmatmul.msk.bf16.gmra.mxu3 %vm970_vm1, %v9712_v11  ;;  %v11624_v11 = vld [vmem:[%s12603_s14 + $0x174] sm:$0xf] }
 0x348   : > { %v2121_v43 = vpop.f32.mrf.mxu2  ;;  %v1386_v20 = vpop.f32.mrf.mxu0 }
 0x349   : > { %v13638_v61 = vadd.f32 %v2121_v43, %v1713_v18  ;;  %v3922_v53 = vpop.f32.mrf.mxu3  ;;  %v1716_v27 = vadd.f32 %v12948_v7, %v1386_v20  ;;  %v9716_v18 = vor.u32 %v11625_v28, %v9715_v32 }
 0x34a   : > { %v13640_v19 = vadd.f32 %v3922_v53, %v3593_v63  ;;  %v3595_v35 = vpop.f32.mrf.mxu1  ;;  %v9720_v53 = vor.u32 %v11624_v11, %v9717_v46  ;;  %v9723_v46 = vld [vmem:[%s12603_s14 + $0x180] sm:$0xf]  ;;  %v11627_v11 = vld [vmem:[%s12603_s14 + $0x184] sm:$0xf0] }
 0x34b   : > { %1425 = vmatmul.bf16.gmra.mxu0 %v9218_v21 }
 0x34c   : > { %16267 = vst [vmem:[#allocation235_spill] sm:$0xff] %v13640_v19  ;;  %v11543_v19 = vld [vmem:[%s12603_s14 + $0x354] sm:$0xf0] }
 0x34d   : > { %2163 = vmatmul.bf16.gmra.mxu2 %v9202_v49  ;;  %v9225_v49 = vld [vmem:[%s12603_s14 + $0x350] sm:$0xf] }
 0x350   : > { %v2124_v56 = vpop.f32.mrf.mxu2  ;;  %v1388_v26 = vpop.f32.mrf.mxu0 }
 0x351   : > { %v13647_v17 = vadd.f32 %v2124_v56, %v1716_v27  ;;  %v3924_v52 = vpop.f32.mrf.mxu3  ;;  %v1718_v7 = vadd.f32 %v12963_v37, %v1388_v26  ;;  %v9226_v27 = vor.u32 %v11543_v19, %v9225_v49 }
 0x352   : > { %v13649_v43 = vadd.f32 %v3924_v52, %v3595_v35  ;;  %v3598_v63 = vpop.f32.mrf.mxu1 }
 0x354   : > { %16268 = vst [vmem:[#allocation236_spill] sm:$0xff] %v13649_v43  ;;  %v9725_v43 = vld [vmem:[%s12603_s14 + $0x188] sm:$0xf0] }
 0x355   : > { %3637 = vmatmul.bf16.gmra.mxu1 %v9716_v18 }
 0x356   : > { %10128 = vmatmul.msk.bf16.gmra.mxu3 %vm970_vm1, %v9720_v53  ;;  %v11626_v53 = vld [vmem:[%s12603_s14 + $0x184] sm:$0xf] }
 0x358   : > { %v2126_v20 = vpop.f32.mrf.mxu2  ;;  %v1391_v35 = vpop.f32.mrf.mxu0 }
 0x359   : > { %v13655_v56 = vadd.f32 %v2126_v20, %v1718_v7  ;;  %v3927_v32 = vpop.f32.mrf.mxu3  ;;  %v1721_v18 = vadd.f32 %v12973_v5, %v1391_v35  ;;  %v9724_v7 = vor.u32 %v11627_v11, %v9723_v46 }
 0x35a   : > { %v13657_v28 = vadd.f32 %v3927_v32, %v3598_v63  ;;  %v3600_v52 = vpop.f32.mrf.mxu1  ;;  %v9728_v32 = vor.u32 %v11626_v53, %v9725_v43  ;;  %v9731_v43 = vld [vmem:[%s12603_s14 + $0x190] sm:$0xf]  ;;  %v11629_v53 = vld [vmem:[%s12603_s14 + $0x194] sm:$0xf0] }
 0x35b   : > { %1430 = vmatmul.bf16.gmra.mxu0 %v9226_v27 }
 0x35c   : > { %16269 = vst [vmem:[#allocation237_spill] sm:$0xff] %v13657_v28  ;;  %v11545_v28 = vld [vmem:[%s12603_s14 + $0x364] sm:$0xf0] }
 0x35d   : > { %2168 = vmatmul.bf16.gmra.mxu2 %v9210_v54  ;;  %v9233_v54 = vld [vmem:[%s12603_s14 + $0x360] sm:$0xf] }
 0x360   : > { %v2129_v37 = vpop.f32.mrf.mxu2  ;;  %v1393_v49 = vpop.f32.mrf.mxu0 }
 0x361   : > { %v13664_v26 = vadd.f32 %v2129_v37, %v1721_v18  ;;  %v3929_v19 = vpop.f32.mrf.mxu3  ;;  %v1723_v5 = vadd.f32 %v12985_v31, %v1393_v49  ;;  %v9234_v18 = vor.u32 %v11545_v28, %v9233_v54 }
 0x362   : > { %v13666_v20 = vadd.f32 %v3929_v19, %v3600_v52  ;;  %v3603_v63 = vpop.f32.mrf.mxu1 }
 0x364   : > { %16270 = vst [vmem:[#allocation238_spill] sm:$0xff] %v13666_v20  ;;  %v9733_v20 = vld [vmem:[%s12603_s14 + $0x198] sm:$0xf0] }
 0x365   : > { %3642 = vmatmul.bf16.gmra.mxu1 %v9724_v7 }
 0x366   : > { %10129 = vmatmul.msk.bf16.gmra.mxu3 %vm970_vm1, %v9728_v32  ;;  %v11628_v32 = vld [vmem:[%s12603_s14 + $0x194] sm:$0xf] }
 0x368   : > { %v2131_v35 = vpop.f32.mrf.mxu2  ;;  %v1396_v52 = vpop.f32.mrf.mxu0 }
 0x369   : > { %v13672_v37 = vadd.f32 %v2131_v35, %v1723_v5  ;;  %v3932_v46 = vpop.f32.mrf.mxu3  ;;  %v1726_v7 = vadd.f32 %v12995_v4, %v1396_v52  ;;  %v9732_v5 = vor.u32 %v11629_v53, %v9731_v43 }
 0x36a   : > { %v13674_v11 = vadd.f32 %v3932_v46, %v3603_v63  ;;  %v3605_v19 = vpop.f32.mrf.mxu1  ;;  %v9736_v46 = vor.u32 %v11628_v32, %v9733_v20  ;;  %v9739_v20 = vld [vmem:[%s12603_s14 + $0x1a0] sm:$0xf]  ;;  %v11631_v32 = vld [vmem:[%s12603_s14 + $0x1a4] sm:$0xf0] }
 0x36b   : > { %1435 = vmatmul.bf16.gmra.mxu0 %v9234_v18 }
 0x36c   : > { %16271 = vst [vmem:[#allocation239_spill] sm:$0xff] %v13674_v11  ;;  %v11547_v11 = vld [vmem:[%s12603_s14 + $0x374] sm:$0xf0] }
 0x36d   : > { %2173 = vmatmul.bf16.gmra.mxu2 %v9218_v21  ;;  %v9241_v21 = vld [vmem:[%s12603_s14 + $0x370] sm:$0xf] }
 0x370   : > { %v2134_v31 = vpop.f32.mrf.mxu2  ;;  %v1398_v54 = vpop.f32.mrf.mxu0 }
 0x371   : > { %v13681_v49 = vadd.f32 %v2134_v31, %v1726_v7  ;;  %v3934_v28 = vpop.f32.mrf.mxu3  ;;  %v1728_v4 = vadd.f32 %v13007_v29, %v1398_v54  ;;  %v9242_v7 = vor.u32 %v11547_v11, %v9241_v21 }
 0x372   : > { %v13683_v35 = vadd.f32 %v3934_v28, %v3605_v19  ;;  %v3608_v63 = vpop.f32.mrf.mxu1 }
 0x374   : > { %16272 = vst [vmem:[#allocation240_spill] sm:$0xff] %v13683_v35  ;;  %v9741_v35 = vld [vmem:[%s12603_s14 + $0x1a8] sm:$0xf0] }
 0x375   : > { %3647 = vmatmul.bf16.gmra.mxu1 %v9732_v5 }
 0x376   : > { %10130 = vmatmul.msk.bf16.gmra.mxu3 %vm970_vm1, %v9736_v46  ;;  %v11630_v46 = vld [vmem:[%s12603_s14 + $0x1a4] sm:$0xf] }
 0x378   : > { %v2136_v52 = vpop.f32.mrf.mxu2  ;;  %v1401_v19 = vpop.f32.mrf.mxu0 }
 0x379   : > { %v13689_v31 = vadd.f32 %v2136_v52, %v1728_v4  ;;  %v3937_v43 = vpop.f32.mrf.mxu3  ;;  %v1731_v5 = vadd.f32 %v13017_v41, %v1401_v19  ;;  %v9740_v4 = vor.u32 %v11631_v32, %v9739_v20 }
 0x37a   : > { %v13691_v53 = vadd.f32 %v3937_v43, %v3608_v63  ;;  %v3610_v28 = vpop.f32.mrf.mxu1  ;;  %v9744_v43 = vor.u32 %v11630_v46, %v9741_v35  ;;  %v11992_v46 = vld [vmem:[%s16029_s1 + $0x140] sm:$0xff] }
 0x37b   : > { %1440 = vmatmul.bf16.gmra.mxu0 %v9242_v7  ;;  %7051 = vmatpush.bf16.msra.mxu1 %v11992_v46  ;;  %v9257_v46 = vld [vmem:[%s12603_s14 + $0x390] sm:$0xf] }
 0x37c   : > { %16273 = vst [vmem:[#allocation241_spill] sm:$0xff] %v13691_v53  ;;  %v11549_v53 = vld [vmem:[%s12603_s14 + $0x384] sm:$0xf0] }
 0x37d   : > { %2178 = vmatmul.bf16.gmra.mxu2 %v9226_v27  ;;  %v9249_v27 = vld [vmem:[%s12603_s14 + $0x380] sm:$0xf] }
 0x380   : > { %v2139_v29 = vpop.f32.mrf.mxu2  ;;  %v1403_v21 = vpop.f32.mrf.mxu0 }
 0x381   : > { %v13698_v54 = vadd.f32 %v2139_v29, %v1731_v5  ;;  %v3939_v11 = vpop.f32.mrf.mxu3  ;;  %v1733_v41 = vadd.f32 %v13029_v22, %v1403_v21  ;;  %v9250_v5 = vor.u32 %v11549_v53, %v9249_v27  ;;  %v9747_v22 = vld [vmem:[%s12603_s14 + $0x1b0] sm:$0xf]  ;;  %v11632_v21 = vld [vmem:[%s12603_s14 + $0x1b4] sm:$0xf] }
 0x382   : > { %v13700_v52 = vadd.f32 %v3939_v11, %v3610_v28  ;;  %v3613_v63 = vpop.f32.mrf.mxu1  ;;  %v11633_v11 = vld [vmem:[%s12603_s14 + $0x1b4] sm:$0xf0] }
 0x384   : > { %16274 = vst [vmem:[#allocation242_spill] sm:$0xff] %v13700_v52  ;;  %v11551_v52 = vld [vmem:[%s12603_s14 + $0x394] sm:$0xf0] }
 0x385   : > { %3652 = vmatmul.bf16.gmra.mxu1 %v9740_v4  ;;  %v9749_v4 = vld [vmem:[%s12603_s14 + $0x1b8] sm:$0xf0] }
 0x386   : > { %10131 = vmatmul.msk.bf16.gmra.mxu3 %vm970_vm1, %v9744_v43 }
 0x388   : > { %v2141_v19 = vpop.f32.mrf.mxu2  ;;  %v1406_v28 = vpop.f32.mrf.mxu0 }
 0x389   : > { %v13706_v29 = vadd.f32 %v2141_v19, %v1733_v41  ;;  %v3942_v20 = vpop.f32.mrf.mxu3  ;;  %v1736_v53 = vadd.f32 %v13039_v30, %v1406_v28  ;;  %v9748_v19 = vor.u32 %v11633_v11, %v9747_v22 }
 0x38a   : > { %v13708_v32 = vadd.f32 %v3942_v20, %v3613_v63  ;;  %v3615_v35 = vpop.f32.mrf.mxu1 }
 0x38b   : > { %1445 = vmatmul.bf16.gmra.mxu0 %v9250_v5 }
 0x38c   : > { %16275 = vst [vmem:[#allocation243_spill] sm:$0xff] %v13708_v32 }
 0x38d   : > { %2183 = vmatmul.bf16.gmra.mxu2 %v9234_v18  ;;  %v9752_v18 = vor.u32 %v11632_v21, %v9749_v4  ;;  %v9755_v21 = vld [vmem:[%s12603_s14 + $0x1c0] sm:$0xf]  ;;  %v11635_v4 = vld [vmem:[%s12603_s14 + $0x1c4] sm:$0xf0] }
 0x390   : > { %v2144_v43 = vpop.f32.mrf.mxu2  ;;  %v1408_v41 = vpop.f32.mrf.mxu0 }
 0x391   : > { %v13718_v27 = vadd.f32 %v2144_v43, %v1736_v53  ;;  %v3944_v63 = vpop.f32.mrf.mxu3  ;;  %v1738_v30 = vadd.f32 %v13054_v60, %v1408_v41  ;;  %v9258_v53 = vor.u32 %v11551_v52, %v9257_v46 }
 0x392   : > { %v13720_v20 = vadd.f32 %v3944_v63, %v3615_v35  ;;  %v3618_v32 = vpop.f32.mrf.mxu1 }
 0x394   : > { %16276 = vst [vmem:[#allocation244_spill] sm:$0xff] %v13720_v20  ;;  %v9757_v20 = vld [vmem:[%s12603_s14 + $0x1c8] sm:$0xf0] }
 0x395   : > { %3657 = vmatmul.bf16.gmra.mxu1 %v9748_v19 }
 0x396   : > { %10132 = vmatmul.msk.bf16.gmra.mxu3 %vm970_vm1, %v9752_v18  ;;  %v11634_v18 = vld [vmem:[%s12603_s14 + $0x1c4] sm:$0xf] }
 0x398   : > { %v2146_v28 = vpop.f32.mrf.mxu2  ;;  %v1411_v35 = vpop.f32.mrf.mxu0 }
 0x399   : > { %v13726_v43 = vadd.f32 %v2146_v28, %v1738_v30  ;;  %v3947_v22 = vpop.f32.mrf.mxu3  ;;  %v1741_v19 = vadd.f32 %v13064_v38, %v1411_v35  ;;  %v9756_v30 = vor.u32 %v11635_v4, %v9755_v21 }
 0x39a   : > { %v13728_v11 = vadd.f32 %v3947_v22, %v3618_v32  ;;  %v3620_v63 = vpop.f32.mrf.mxu1  ;;  %v9760_v22 = vor.u32 %v11634_v18, %v9757_v20  ;;  %v9763_v20 = vld [vmem:[%s12603_s14 + $0x1d0] sm:$0xf]  ;;  %v11637_v18 = vld [vmem:[%s12603_s14 + $0x1d4] sm:$0xf0] }
 0x39b   : > { %1450 = vmatmul.bf16.gmra.mxu0 %v9258_v53 }
 0x39c   : > { %16277 = vst [vmem:[#allocation245_spill] sm:$0xff] %v13728_v11  ;;  %v11553_v11 = vld [vmem:[%s12603_s14 + $0x3a4] sm:$0xf0] }
 0x39d   : > { %2188 = vmatmul.bf16.gmra.mxu2 %v9242_v7  ;;  %v9265_v7 = vld [vmem:[%s12603_s14 + $0x3a0] sm:$0xf] }
 0x3a0   : > { %v2149_v60 = vpop.f32.mrf.mxu2  ;;  %v1413_v46 = vpop.f32.mrf.mxu0 }
 0x3a1   : > { %v13735_v41 = vadd.f32 %v2149_v60, %v1741_v19  ;;  %v3949_v52 = vpop.f32.mrf.mxu3  ;;  %v1743_v38 = vadd.f32 %v13076_v13, %v1413_v46  ;;  %v9266_v19 = vor.u32 %v11553_v11, %v9265_v7 }
 0x3a2   : > { %v13737_v28 = vadd.f32 %v3949_v52, %v3620_v63  ;;  %v3623_v32 = vpop.f32.mrf.mxu1 }
 0x3a4   : > { %16278 = vst [vmem:[#allocation246_spill] sm:$0xff] %v13737_v28  ;;  %v9765_v28 = vld [vmem:[%s12603_s14 + $0x1d8] sm:$0xf0] }
 0x3a5   : > { %3662 = vmatmul.bf16.gmra.mxu1 %v9756_v30 }
 0x3a6   : > { %10133 = vmatmul.msk.bf16.gmra.mxu3 %vm970_vm1, %v9760_v22  ;;  %v11636_v22 = vld [vmem:[%s12603_s14 + $0x1d4] sm:$0xf] }
 0x3a8   : > { %v2151_v35 = vpop.f32.mrf.mxu2  ;;  %v1416_v63 = vpop.f32.mrf.mxu0 }
 0x3a9   : > { %v13743_v60 = vadd.f32 %v2151_v35, %v1743_v38  ;;  %v3952_v21 = vpop.f32.mrf.mxu3  ;;  %v1746_v30 = vadd.f32 %v13086_v42, %v1416_v63  ;;  %v9764_v38 = vor.u32 %v11637_v18, %v9763_v20 }
 0x3aa   : > { %v13745_v4 = vadd.f32 %v3952_v21, %v3623_v32  ;;  %v3625_v52 = vpop.f32.mrf.mxu1  ;;  %v9768_v21 = vor.u32 %v11636_v22, %v9765_v28  ;;  %v9771_v28 = vld [vmem:[%s12603_s14 + $0x1e0] sm:$0xf]  ;;  %v11639_v22 = vld [vmem:[%s12603_s14 + $0x1e4] sm:$0xf0] }
 0x3ab   : > { %1455 = vmatmul.bf16.gmra.mxu0 %v9266_v19 }
 0x3ac   : > { %16279 = vst [vmem:[#allocation247_spill] sm:$0xff] %v13745_v4  ;;  %v11555_v4 = vld [vmem:[%s12603_s14 + $0x3b4] sm:$0xf0] }
 0x3ad   : > { %2193 = vmatmul.bf16.gmra.mxu2 %v9250_v5  ;;  %v9273_v5 = vld [vmem:[%s12603_s14 + $0x3b0] sm:$0xf] }
 0x3b0   : > { %v2154_v13 = vpop.f32.mrf.mxu2  ;;  %v1418_v7 = vpop.f32.mrf.mxu0 }
 0x3b1   : > { %v13752_v46 = vadd.f32 %v2154_v13, %v1746_v30  ;;  %v3954_v11 = vpop.f32.mrf.mxu3  ;;  %v1748_v42 = vadd.f32 %v13098_v8, %v1418_v7  ;;  %v9274_v30 = vor.u32 %v11555_v4, %v9273_v5 }
 0x3b2   : > { %v13754_v35 = vadd.f32 %v3954_v11, %v3625_v52  ;;  %v3628_v32 = vpop.f32.mrf.mxu1 }
 0x3b4   : > { %16280 = vst [vmem:[#allocation248_spill] sm:$0xff] %v13754_v35  ;;  %v9773_v35 = vld [vmem:[%s12603_s14 + $0x1e8] sm:$0xf0] }
 0x3b5   : > { %3667 = vmatmul.bf16.gmra.mxu1 %v9764_v38 }
 0x3b6   : > { %10134 = vmatmul.msk.bf16.gmra.mxu3 %vm970_vm1, %v9768_v21  ;;  %v11638_v21 = vld [vmem:[%s12603_s14 + $0x1e4] sm:$0xf] }
 0x3b8   : > { %v2156_v63 = vpop.f32.mrf.mxu2  ;;  %v1421_v52 = vpop.f32.mrf.mxu0 }
 0x3b9   : > { %v13760_v13 = vadd.f32 %v2156_v63, %v1748_v42  ;;  %v3957_v20 = vpop.f32.mrf.mxu3  ;;  %v1751_v38 = vadd.f32 %v13108_v14, %v1421_v52  ;;  %v9772_v42 = vor.u32 %v11639_v22, %v9771_v28 }
 0x3ba   : > { %v13762_v18 = vadd.f32 %v3957_v20, %v3628_v32  ;;  %v3630_v11 = vpop.f32.mrf.mxu1  ;;  %v9776_v20 = vor.u32 %v11638_v21, %v9773_v35  ;;  %v9779_v35 = vld [vmem:[%s12603_s14 + $0x1f0] sm:$0xf]  ;;  %v11641_v21 = vld [vmem:[%s12603_s14 + $0x1f4] sm:$0xf0] }
 0x3bb   : > { %1460 = vmatmul.bf16.gmra.mxu0 %v9274_v30 }
 0x3bc   : > { %16281 = vst [vmem:[#allocation249_spill] sm:$0xff] %v13762_v18  ;;  %v11557_v18 = vld [vmem:[%s12603_s14 + $0x3c4] sm:$0xf0] }
 0x3bd   : > { %2198 = vmatmul.bf16.gmra.mxu2 %v9258_v53  ;;  %v9281_v53 = vld [vmem:[%s12603_s14 + $0x3c0] sm:$0xf] }
 0x3c0   : > { %v2159_v8 = vpop.f32.mrf.mxu2  ;;  %v1423_v5 = vpop.f32.mrf.mxu0 }
 0x3c1   : > { %v13769_v7 = vadd.f32 %v2159_v8, %v1751_v38  ;;  %v3959_v4 = vpop.f32.mrf.mxu3  ;;  %v1753_v14 = vadd.f32 %v13120_v0, %v1423_v5  ;;  %v9282_v38 = vor.u32 %v11557_v18, %v9281_v53 }
 0x3c2   : > { %v13771_v63 = vadd.f32 %v3959_v4, %v3630_v11  ;;  %v3633_v32 = vpop.f32.mrf.mxu1 }
 0x3c4   : > { %16282 = vst [vmem:[#allocation250_spill] sm:$0xff] %v13771_v63  ;;  %v9781_v63 = vld [vmem:[%s12603_s14 + $0x1f8] sm:$0xf0] }
 0x3c5   : > { %3672 = vmatmul.bf16.gmra.mxu1 %v9772_v42 }
 0x3c6   : > { %10135 = vmatmul.msk.bf16.gmra.mxu3 %vm970_vm1, %v9776_v20  ;;  %v11640_v20 = vld [vmem:[%s12603_s14 + $0x1f4] sm:$0xf] }
 0x3c8   : > { %v2161_v52 = vpop.f32.mrf.mxu2  ;;  %v1426_v11 = vpop.f32.mrf.mxu0 }
 0x3c9   : > { %v13777_v8 = vadd.f32 %v2161_v52, %v1753_v14  ;;  %v3962_v28 = vpop.f32.mrf.mxu3  ;;  %v1756_v42 = vadd.f32 %v13130_v9, %v1426_v11  ;;  %v9780_v14 = vor.u32 %v11641_v21, %v9779_v35 }
 0x3ca   : > { %v13779_v22 = vadd.f32 %v3962_v28, %v3633_v32  ;;  %v3635_v4 = vpop.f32.mrf.mxu1  ;;  %v9784_v28 = vor.u32 %v11640_v20, %v9781_v63  ;;  %v9787_v63 = vld [vmem:[%s12603_s14 + $0x200] sm:$0xf]  ;;  %v11643_v20 = vld [vmem:[%s12603_s14 + $0x204] sm:$0xf0] }
 0x3cb   : > { %1465 = vmatmul.bf16.gmra.mxu0 %v9282_v38 }
 0x3cc   : > { %16283 = vst [vmem:[#allocation251_spill] sm:$0xff] %v13779_v22  ;;  %v11559_v22 = vld [vmem:[%s12603_s14 + $0x3d4] sm:$0xf0] }
 0x3cd   : > { %2203 = vmatmul.bf16.gmra.mxu2 %v9266_v19  ;;  %v9289_v19 = vld [vmem:[%s12603_s14 + $0x3d0] sm:$0xf] }
 0x3d0   : > { %v2164_v0 = vpop.f32.mrf.mxu2  ;;  %v1428_v53 = vpop.f32.mrf.mxu0 }
 0x3d1   : > { %v13786_v5 = vadd.f32 %v2164_v0, %v1756_v42  ;;  %v3964_v18 = vpop.f32.mrf.mxu3  ;;  %v1758_v9 = vadd.f32 %v13145_v34, %v1428_v53  ;;  %v9290_v42 = vor.u32 %v11559_v22, %v9289_v19 }
 0x3d2   : > { %v13788_v52 = vadd.f32 %v3964_v18, %v3635_v4  ;;  %v3638_v32 = vpop.f32.mrf.mxu1 }
 0x3d4   : > { %16284 = vst [vmem:[#allocation252_spill] sm:$0xff] %v13788_v52  ;;  %v9789_v52 = vld [vmem:[%s12603_s14 + $0x208] sm:$0xf0] }
 0x3d5   : > { %3677 = vmatmul.bf16.gmra.mxu1 %v9780_v14 }
 0x3d6   : > { %10136 = vmatmul.msk.bf16.gmra.mxu3 %vm970_vm1, %v9784_v28  ;;  %v11642_v28 = vld [vmem:[%s12603_s14 + $0x204] sm:$0xf] }
 0x3d8   : > { %v2166_v11 = vpop.f32.mrf.mxu2  ;;  %v1431_v4 = vpop.f32.mrf.mxu0 }
 0x3d9   : > { %v13794_v0 = vadd.f32 %v2166_v11, %v1758_v9  ;;  %v3967_v35 = vpop.f32.mrf.mxu3  ;;  %v1761_v14 = vadd.f32 %v13155_v47, %v1431_v4  ;;  %v9788_v9 = vor.u32 %v11643_v20, %v9787_v63 }
 0x3da   : > { %v13796_v21 = vadd.f32 %v3967_v35, %v3638_v32  ;;  %v3640_v18 = vpop.f32.mrf.mxu1  ;;  %v9792_v35 = vor.u32 %v11642_v28, %v9789_v52  ;;  %v9795_v52 = vld [vmem:[%s12603_s14 + $0x210] sm:$0xf]  ;;  %v11645_v28 = vld [vmem:[%s12603_s14 + $0x214] sm:$0xf0] }
 0x3db   : > { %1470 = vmatmul.bf16.gmra.mxu0 %v9290_v42 }
 0x3dc   : > { %16285 = vst [vmem:[#allocation253_spill] sm:$0xff] %v13796_v21  ;;  %v11561_v21 = vld [vmem:[%s12603_s14 + $0x3e4] sm:$0xf0] }
 0x3dd   : > { %2208 = vmatmul.bf16.gmra.mxu2 %v9274_v30  ;;  %v9297_v30 = vld [vmem:[%s12603_s14 + $0x3e0] sm:$0xf] }
 0x3e0   : > { %v2169_v34 = vpop.f32.mrf.mxu2  ;;  %v1433_v19 = vpop.f32.mrf.mxu0 }
 0x3e1   : > { %v13803_v53 = vadd.f32 %v2169_v34, %v1761_v14  ;;  %v3969_v22 = vpop.f32.mrf.mxu3  ;;  %v1763_v47 = vadd.f32 %v13167_v57, %v1433_v19  ;;  %v9298_v14 = vor.u32 %v11561_v21, %v9297_v30 }
 0x3e2   : > { %v13805_v11 = vadd.f32 %v3969_v22, %v3640_v18  ;;  %v3643_v32 = vpop.f32.mrf.mxu1 }
 0x3e4   : > { %16286 = vst [vmem:[#allocation254_spill] sm:$0xff] %v13805_v11  ;;  %v9797_v11 = vld [vmem:[%s12603_s14 + $0x218] sm:$0xf0] }
 0x3e5   : > { %3682 = vmatmul.bf16.gmra.mxu1 %v9788_v9 }
 0x3e6   : > { %10137 = vmatmul.msk.bf16.gmra.mxu3 %vm970_vm1, %v9792_v35  ;;  %v11644_v35 = vld [vmem:[%s12603_s14 + $0x214] sm:$0xf] }
 0x3e8   : > { %v2171_v4 = vpop.f32.mrf.mxu2  ;;  %v1436_v18 = vpop.f32.mrf.mxu0 }
 0x3e9   : > { %v13811_v34 = vadd.f32 %v2171_v4, %v1763_v47  ;;  %v3972_v63 = vpop.f32.mrf.mxu3  ;;  %v1766_v9 = vadd.f32 %v13177_v58, %v1436_v18  ;;  %v9796_v47 = vor.u32 %v11645_v28, %v9795_v52 }
 0x3ea   : > { %v13813_v20 = vadd.f32 %v3972_v63, %v3643_v32  ;;  %v3645_v22 = vpop.f32.mrf.mxu1  ;;  %v9800_v63 = vor.u32 %v11644_v35, %v9797_v11  ;;  %v9803_v35 = vld [vmem:[%s12603_s14 + $0x220] sm:$0xf] }
 0x3eb   : > { %1475 = vmatmul.bf16.gmra.mxu0 %v9298_v14 }
 0x3ec   : > { %16287 = vst [vmem:[#allocation255_spill] sm:$0xff] %v13813_v20  ;;  %v11563_v20 = vld [vmem:[%s12603_s14 + $0x3f4] sm:$0xf0] }
 0x3ed   : > { %2213 = vmatmul.bf16.gmra.mxu2 %v9282_v38  ;;  %v9305_v38 = vld [vmem:[%s12603_s14 + $0x3f0] sm:$0xf] }
 0x3f0   : > { %v2174_v57 = vpop.f32.mrf.mxu2  ;;  %v1438_v30 = vpop.f32.mrf.mxu0 }
 0x3f1   : > { %v13820_v19 = vadd.f32 %v2174_v57, %v1766_v9  ;;  %v3974_v21 = vpop.f32.mrf.mxu3  ;;  %v1768_v58 = vadd.f32 %v13189_v50, %v1438_v30  ;;  %v13828_v9 = vor.u32 %v11563_v20, %v9305_v38  ;;  %v11646_v50 = vld [vmem:[%s12603_s14 + $0x224] sm:$0xf]  ;;  %v9805_v30 = vld [vmem:[%s12603_s14 + $0x228] sm:$0xf0] }
 0x3f2   : > { %v13822_v4 = vadd.f32 %v3974_v21, %v3645_v22  ;;  %v3648_v32 = vpop.f32.mrf.mxu1  ;;  %v11647_v21 = vld [vmem:[%s12603_s14 + $0x224] sm:$0xf0] }
 0x3f3   : > { %16288 = vst [vmem:[#allocation256_spill] sm:$0xff] %v13820_v19  ;;  %v8891_v19 = vld [vmem:[%s12603_s14 + $0xb8] sm:$0xf0] }
 0x3f4   : > { %16289 = vst [vmem:[#allocation257_spill] sm:$0xff] %v13822_v4  ;;  %v11574_v4 = vld [vmem:[%s12603_s14 + $0x404] sm:$0xf0] }
 0x3f5   : > { %3687 = vmatmul.bf16.gmra.mxu1 %v9796_v47 }
 0x3f6   : > { %10138 = vmatmul.msk.bf16.gmra.mxu3 %vm970_vm1, %v9800_v63 }
 0x3f8   : > { %v2176_v18 = vpop.f32.mrf.mxu2  ;;  %v1441_v52 = vpop.f32.mrf.mxu0 }
 0x3f9   : > { %v13830_v57 = vadd.f32 %v2176_v18, %v1768_v58  ;;  %v3977_v22 = vpop.f32.mrf.mxu3  ;;  %v1771_v47 = vadd.f32 %v13199_v6, %v1441_v52  ;;  %v9804_v18 = vor.u32 %v11647_v21, %v9803_v35 }
 0x3fa   : > { %v13832_v28 = vadd.f32 %v3977_v22, %v3648_v32  ;;  %v3650_v11 = vpop.f32.mrf.mxu1 }
 0x3fb   : > { %16290 = vst [vmem:[#allocation258_spill] sm:$0xff] %v13830_v57  ;;  %1480 = vmatmul.bf16.gmra.mxu0 %v13828_v9  ;;  %v11456_v57 = vld [vmem:[%s12603_s14 + $0xa4] sm:$0xf] }
 0x3fc   : > { %16291 = vst [vmem:[#allocation259_spill] sm:$0xff] %v13832_v28  ;;  %v9808_v28 = vor.u32 %v11646_v50, %v9805_v30  ;;  %v11991_v30 = vld [vmem:[%s16029_s1 + $0x138] sm:$0xff] }
 0x3fd   : > { %2218 = vmatmul.bf16.gmra.mxu2 %v9290_v42  ;;  %v9313_v42 = vld [vmem:[%s12603_s14 + $0x400] sm:$0xf]  ;;  %7052 = vmatpush.bf16.msra.mxu1 %v11991_v30 }
 0x400   : > { %v2179_v20 = vpop.f32.mrf.mxu2  ;;  %v1443_v58 = vpop.f32.mrf.mxu0 }
 0x401   : > { %v13840_v63 = vadd.f32 %v2179_v20, %v1771_v47  ;;  %v3979_v38 = vpop.f32.mrf.mxu3  ;;  %v1773_v6 = vadd.f32 %v13211_v48, %v1443_v58  ;;  %v9314_v47 = vor.u32 %v11574_v4, %v9313_v42  ;;  %v16296_v48 = vld [vmem:[#allocation137_spill] sm:$0xff]  ;;  %v11648_v4 = vld [vmem:[%s12603_s14 + $0x234] sm:$0xf] }
 0x402   : > { %v13842_v32 = vadd.f32 %v3979_v38, %v3650_v11  ;;  %v3653_v22 = vpop.f32.mrf.mxu1  ;;  %v11649_v38 = vld [vmem:[%s12603_s14 + $0x234] sm:$0xf0] }
 0x403   : > { %16292 = vst [vmem:[#allocation260_spill] sm:$0xff] %v13840_v63  ;;  %v8875_v63 = vld [vmem:[%s12603_s14 + $0x98] sm:$0xf0] }
 0x404   : > { %16293 = vst [vmem:[#allocation261_spill] sm:$0xff] %v13842_v32 }
 0x405   : > { %3692 = vmatmul.bf16.gmra.mxu1 %v9804_v18  ;;  %v9813_v18 = vld [vmem:[%s12603_s14 + $0x238] sm:$0xf0] }
 0x406   : > { %10139 = vmatmul.msk.bf16.gmra.mxu3 %vm970_vm1, %v9808_v28  ;;  %v9811_v28 = vld [vmem:[%s12603_s14 + $0x230] sm:$0xf] }
 0x408   : > { %v2181_v52 = vpop.f32.mrf.mxu2  ;;  %v1446_v11 = vpop.f32.mrf.mxu0 }
 0x409   : > { %v13848_v20 = vadd.f32 %v2181_v52, %v1773_v6  ;;  %v3982_v35 = vpop.f32.mrf.mxu3  ;;  %v1776_v58 = vadd.f32 %v16296_v48, %v1446_v11  ;;  %v11859_v11 = vld [vmem:[%s16029_s1 + $0x118] sm:$0x30]  ;;  %v9321_v48 = vld [vmem:[%s12603_s14 + $0x410] sm:$0xf] }
 0x40a   : > { %v13850_v21 = vadd.f32 %v3982_v35, %v3653_v22  ;;  %v3655_v50 = vpop.f32.mrf.mxu1  ;;  %v9812_v35 = vor.u32 %v11649_v38, %v9811_v28  ;;  %v16299_v28 = vld [vmem:[#allocation141_spill] sm:$0xff] }
 0x40b   : > { %16294 = vst [vmem:[#allocation262_spill] sm:$0xff] %v13848_v20  ;;  %1485 = vmatmul.bf16.gmra.mxu0 %v9314_v47  ;;  %v9816_v47 = vor.u32 %v11648_v4, %v9813_v18  ;;  %v16311_v20 = vld [vmem:[#allocation157_spill] sm:$0xff] }
 0x40c   : > { %16295 = vst [vmem:[#allocation263_spill] sm:$0xff] %v13850_v21 }
 0x40d   : > { %2223 = vmatmul.bf16.gmra.mxu2 %v9298_v14  ;;  %v10737_v14 = vld [vmem:[%s16029_s1 + $0x118] sm:$0xf] }
 0x40e   : > { %v10738_v30 = vor.u32 %v11859_v11, %v10737_v14 }
 0x410   : > { %v2184_v42 = vpop.f32.mrf.mxu2  ;;  %v1448_v52 = vpop.f32.mrf.mxu0 }
 0x411   : > { %v13860_v6 = vadd.f32 %v2184_v42, %v1776_v58  ;;  %v3984_v22 = vpop.f32.mrf.mxu3  ;;  %v11576_v58 = vld [vmem:[%s12603_s14 + $0x414] sm:$0xf0]  ;;  %v1778_v38 = vadd.f32 %v16299_v28, %v1448_v52  ;;  %v9819_v52 = vld [vmem:[%s12603_s14 + $0x240] sm:$0xf] }
 0x412   : > { %v13862_v21 = vadd.f32 %v3984_v22, %v3655_v50  ;;  %v3658_v32 = vpop.f32.mrf.mxu1  ;;  %v5289_v50 = vsel %vm1163_vm0, %v10738_v30, 0  ;;  %v9322_v18 = vor.u32 %v11576_v58, %v9321_v48  ;;  %v11651_v30 = vld [vmem:[%s12603_s14 + $0x244] sm:$0xf0]  ;;  %v16302_v48 = vld [vmem:[#allocation145_spill] sm:$0xff] }
 0x413   : > { %16297 = vst [vmem:[#allocation137_spill] sm:$0xff] %v13860_v6  ;;  %5627 = vmatpush.bf16.msra.mxu2 %v5289_v50  ;;  %v11650_v50 = vld [vmem:[%s12603_s14 + $0x244] sm:$0xf]  ;;  %v16305_v6 = vld [vmem:[#allocation149_spill] sm:$0xff] }
 0x414   : > { %16298 = vst [vmem:[#allocation264_spill] sm:$0xff] %v13862_v21 }
 0x415   : > { %3697 = vmatmul.bf16.gmra.mxu1 %v9812_v35 }
 0x416   : > { %10140 = vmatmul.msk.bf16.gmra.mxu3 %vm970_vm1, %v9816_v47  ;;  %v11858_v47 = vld [vmem:[%s16029_s1 + $0x110] sm:$0xff] }
 0x417   : > { %5291 = vmatpush.bf16.msra.mxu0 %v11858_v47  ;;  %v11440_v47 = vld [vmem:[%s12603_s14 + $0x24] sm:$0xf] }
 0x418   : > { %v2186_v4 = vpop.f32.mrf.mxu2  ;;  %v1451_v14 = vpop.f32.mrf.mxu0 }
 0x419   : > { %v13875_v42 = vadd.f32 %v2186_v4, %v1778_v38  ;;  %v3987_v22 = vpop.f32.mrf.mxu3  ;;  %v1781_v58 = vadd.f32 %v16302_v48, %v1451_v14  ;;  %v11436_v14 = vld [vmem:[%s12603_s14 + $0x4] sm:$0xf]  ;;  %v9431_v48 = vld [vmem:[%s12603_s14 + $0x8] sm:$0xf0] }
 0x41a   : > { %v13877_v35 = vadd.f32 %v3987_v22, %v3658_v32  ;;  %v3660_v11 = vpop.f32.mrf.mxu1  ;;  %v9821_v32 = vld [vmem:[%s12603_s14 + $0x248] sm:$0xf0] }
 0x41b   : > { %16300 = vst [vmem:[#allocation141_spill] sm:$0xff] %v13875_v42  ;;  %1490 = vmatmul.bf16.gmra.mxu0 %v9322_v18  ;;  %v9824_v21 = vor.u32 %v11650_v50, %v9821_v32  ;;  %v8819_v42 = vld [vmem:[%s12603_s14 + $0x28] sm:$0xf0] }
 0x41c   : > { %16301 = vst [vmem:[#allocation265_spill] sm:$0xff] %v13877_v35  ;;  %v9820_v35 = vor.u32 %v11651_v30, %v9819_v52 }
 0x41d   : > { %2228 = vmatmul.bf16.gmra.mxu2 %v13828_v9 }
 0x420   : > { %v2189_v28 = vpop.f32.mrf.mxu2  ;;  %v1453_v22 = vpop.f32.mrf.mxu0 }
 0x421   : > { %v13888_v38 = vadd.f32 %v2189_v28, %v1781_v58  ;;  %v3989_v4 = vpop.f32.mrf.mxu3  ;;  %v1783_v58 = vadd.f32 %v16305_v6, %v1453_v22  ;;  %v11653_v6 = vld [vmem:[%s12603_s14 + $0x254] sm:$0xf0]  ;;  %v11652_v22 = vld [vmem:[%s12603_s14 + $0x254] sm:$0xf] }
 0x422   : > { %v13890_v18 = vadd.f32 %v3989_v4, %v3660_v11  ;;  %v3663_v9 = vpop.f32.mrf.mxu1  ;;  %v16308_v4 = vld [vmem:[#allocation153_spill] sm:$0xff] }
 0x423   : > { %16303 = vst [vmem:[#allocation145_spill] sm:$0xff] %v13888_v38  ;;  %v13898_v38 = vor.u32 %v11440_v47, %v8819_v42  ;;  %v9829_v47 = vld [vmem:[%s12603_s14 + $0x258] sm:$0xf0] }
 0x424   : > { %16304 = vst [vmem:[#allocation266_spill] sm:$0xff] %v13890_v18  ;;  %v9832_v18 = vor.u32 %v11652_v22, %v9829_v47 }
 0x425   : > { %3702 = vmatmul.bf16.gmra.mxu1 %v9820_v35  ;;  %v9434_v35 = vor.u32 %v11436_v14, %v9431_v48 }
 0x426   : > { %10141 = vmatmul.msk.bf16.gmra.mxu3 %vm970_vm1, %v9824_v21  ;;  %v9827_v21 = vld [vmem:[%s12603_s14 + $0x250] sm:$0xf] }
 0x428   : > { %v2191_v28 = vpop.f32.mrf.mxu2  ;;  %v1456_v30 = vpop.f32.mrf.mxu0 }
 0x429   : > { %v13900_v11 = vadd.f32 %v2191_v28, %v1783_v58  ;;  %v3992_v52 = vpop.f32.mrf.mxu3  ;;  %v1786_v42 = vadd.f32 %v16308_v4, %v1456_v30  ;;  %v9828_v28 = vor.u32 %v11653_v6, %v9827_v21  ;;  %v11438_v30 = vld [vmem:[%s12603_s14 + $0x14] sm:$0xf]  ;;  %v9439_v4 = vld [vmem:[%s12603_s14 + $0x18] sm:$0xf0] }
 0x42a   : > { %v13902_v50 = vadd.f32 %v3992_v52, %v3663_v9  ;;  %v3665_v32 = vpop.f32.mrf.mxu1  ;;  %v9442_v22 = vor.u32 %v11438_v30, %v9439_v4 }
 0x42b   : > { %16306 = vst [vmem:[#allocation149_spill] sm:$0xff] %v13900_v11  ;;  %9363 = vmatmul.msk.bf16.vlgmr.msrb.gmra.mxu0 %vm970_vm1, %v13898_v38  ;;  %v8827_v11 = vld [vmem:[%s12603_s14 + $0x38] sm:$0xf0] }
 0x42c   : > { %16307 = vst [vmem:[#allocation267_spill] sm:$0xff] %v13902_v50 }
 0x42d   : > { %9479 = vmatmul.msk.bf16.vlgmr.msrb.gmra.mxu2 %vm970_vm1, %v9434_v35  ;;  %v11442_v35 = vld [vmem:[%s12603_s14 + $0x34] sm:$0xf] }
 0x430   : > { %v2194_v58 = vpop.f32.mrf.mxu2  ;;  %v1458_v48 = vpop.f32.mrf.mxu0 }
 0x431   : > { %v13912_v14 = vadd.f32 %v2194_v58, %v1786_v42  ;;  %v3994_v9 = vpop.f32.mrf.mxu3  ;;  %v1788_v42 = vadd.f32 %v16311_v20, %v1458_v48  ;;  %v11655_v20 = vld [vmem:[%s12603_s14 + $0x264] sm:$0xf0]  ;;  %v16314_v48 = vld [vmem:[#allocation161_spill] sm:$0xff] }
 0x432   : > { %v13914_v52 = vadd.f32 %v3994_v9, %v3665_v32  ;;  %v3668_v50 = vpop.f32.mrf.mxu1 }
 0x433   : > { %16309 = vst [vmem:[#allocation153_spill] sm:$0xff] %v13912_v14  ;;  %v13922_v14 = vor.u32 %v11442_v35, %v8827_v11  ;;  %v9837_v35 = vld [vmem:[%s12603_s14 + $0x268] sm:$0xf0] }
 0x434   : > { %16310 = vst [vmem:[#allocation268_spill] sm:$0xff] %v13914_v52 }
 0x435   : > { %3707 = vmatmul.bf16.gmra.mxu1 %v9828_v28  ;;  %v11654_v28 = vld [vmem:[%s12603_s14 + $0x264] sm:$0xf] }
 0x436   : > { %10142 = vmatmul.msk.bf16.gmra.mxu3 %vm970_vm1, %v9832_v18  ;;  %v9835_v18 = vld [vmem:[%s12603_s14 + $0x260] sm:$0xf]  ;;  %v9840_v52 = vor.u32 %v11654_v28, %v9837_v35  ;;  %v11657_v35 = vld [vmem:[%s12603_s14 + $0x274] sm:$0xf0] }
 0x437   : > { %v9836_v4 = vor.u32 %v11655_v20, %v9835_v18 }
 0x438   : > { %v2196_v58 = vpop.f32.mrf.mxu2  ;;  %v1461_v6 = vpop.f32.mrf.mxu0 }
 0x439   : > { %v13924_v32 = vadd.f32 %v2196_v58, %v1788_v42  ;;  %v3997_v21 = vpop.f32.mrf.mxu3  ;;  %v1791_v11 = vadd.f32 %v16314_v48, %v1461_v6  ;;  %v16317_v6 = vld [vmem:[#allocation165_spill] sm:$0xff] }
 0x43a   : > { %v13926_v47 = vadd.f32 %v3997_v21, %v3668_v50  ;;  %v3670_v9 = vpop.f32.mrf.mxu1 }
 0x43b   : > { %16312 = vst [vmem:[#allocation157_spill] sm:$0xff] %v13924_v32  ;;  %9364 = vmatmul.msk.bf16.gmra.mxu0 %vm970_vm1, %v13922_v14  ;;  %v8835_v32 = vld [vmem:[%s12603_s14 + $0x48] sm:$0xf0] }
 0x43c   : > { %16313 = vst [vmem:[#allocation269_spill] sm:$0xff] %v13926_v47 }
 0x43d   : > { %9480 = vmatmul.msk.bf16.gmra.mxu2 %vm970_vm1, %v9442_v22  ;;  %v11444_v22 = vld [vmem:[%s12603_s14 + $0x44] sm:$0xf] }
 0x440   : > { %v2199_v42 = vpop.f32.mrf.mxu2  ;;  %v1463_v50 = vpop.f32.mrf.mxu0 }
 0x441   : > { %v13936_v58 = vadd.f32 %v2199_v42, %v1791_v11  ;;  %v3999_v30 = vpop.f32.mrf.mxu3  ;;  %v1793_v48 = vadd.f32 %v16317_v6, %v1463_v50  ;;  %v13944_v42 = vor.u32 %v11444_v22, %v8835_v32  ;;  %v11656_v50 = vld [vmem:[%s12603_s14 + $0x274] sm:$0xf] }
 0x442   : > { %v13938_v21 = vadd.f32 %v3999_v30, %v3670_v9  ;;  %v3673_v47 = vpop.f32.mrf.mxu1  ;;  %v16320_v30 = vld [vmem:[#allocation169_spill] sm:$0xff] }
 0x443   : > { %16315 = vst [vmem:[#allocation161_spill] sm:$0xff] %v13936_v58 }
 0x444   : > { %16316 = vst [vmem:[#allocation270_spill] sm:$0xff] %v13938_v21 }
 0x445   : > { %3712 = vmatmul.bf16.gmra.mxu1 %v9836_v4  ;;  %v9845_v4 = vld [vmem:[%s12603_s14 + $0x278] sm:$0xf0] }
 0x446   : > { %10143 = vmatmul.msk.bf16.gmra.mxu3 %vm970_vm1, %v9840_v52  ;;  %v9843_v52 = vld [vmem:[%s12603_s14 + $0x270] sm:$0xf]  ;;  %v9848_v21 = vor.u32 %v11656_v50, %v9845_v4 }
 0x448   : > { %v2201_v11 = vpop.f32.mrf.mxu2  ;;  %v1466_v18 = vpop.f32.mrf.mxu0 }
 0x449   : > { %v13946_v58 = vadd.f32 %v2201_v11, %v1793_v48  ;;  %v4002_v9 = vpop.f32.mrf.mxu3  ;;  %v1796_v32 = vadd.f32 %v16320_v30, %v1466_v18  ;;  %v9844_v11 = vor.u32 %v11657_v35, %v9843_v52  ;;  %v11857_v18 = vld [vmem:[%s16029_s1 + $0x108] sm:$0xff]  ;;  %v16323_v30 = vld [vmem:[#allocation173_spill] sm:$0xff] }
 0x44a   : > { %v13948_v20 = vadd.f32 %v4002_v9, %v3673_v47  ;;  %v3675_v28 = vpop.f32.mrf.mxu1  ;;  %5292 = vmatpush.bf16.msra.mxu0 %v11857_v18 }
 0x44b   : > { %16318 = vst [vmem:[#allocation165_spill] sm:$0xff] %v13946_v58  ;;  %9365 = vmatmul.msk.bf16.gmra.mxu0 %vm970_vm1, %v13944_v42  ;;  %v8843_v58 = vld [vmem:[%s12603_s14 + $0x58] sm:$0xf0] }
 0x44c   : > { %16319 = vst [vmem:[#allocation271_spill] sm:$0xff] %v13948_v20 }
 0x44d   : > { %9481 = vmatmul.msk.bf16.gmra.mxu2 %vm970_vm1, %v13898_v38  ;;  %v11446_v38 = vld [vmem:[%s12603_s14 + $0x54] sm:$0xf] }
 0x450   : > { %v2204_v22 = vpop.f32.mrf.mxu2  ;;  %v1468_v48 = vpop.f32.mrf.mxu0 }
 0x451   : > { %v13959_v6 = vadd.f32 %v2204_v22, %v1796_v32  ;;  %v4004_v47 = vpop.f32.mrf.mxu3  ;;  %v1798_v32 = vadd.f32 %v16323_v30, %v1468_v48  ;;  %v16326_v48 = vld [vmem:[#allocation177_spill] sm:$0xff] }
 0x452   : > { %v13961_v9 = vadd.f32 %v4004_v47, %v3675_v28  ;;  %v3678_v20 = vpop.f32.mrf.mxu1  ;;  %v8846_v28 = vor.u32 %v11446_v38, %v8843_v58  ;;  %v11658_v58 = vld [vmem:[%s12603_s14 + $0x284] sm:$0xf]  ;;  %v9853_v38 = vld [vmem:[%s12603_s14 + $0x288] sm:$0xf0] }
 0x453   : > { %16321 = vst [vmem:[#allocation169_spill] sm:$0xff] %v13959_v6  ;;  %v8851_v6 = vld [vmem:[%s12603_s14 + $0x68] sm:$0xf0] }
 0x454   : > { %16322 = vst [vmem:[#allocation272_spill] sm:$0xff] %v13961_v9 }
 0x455   : > { %3717 = vmatmul.bf16.gmra.mxu1 %v9844_v11  ;;  %v11659_v11 = vld [vmem:[%s12603_s14 + $0x284] sm:$0xf0] }
 0x456   : > { %10144 = vmatmul.msk.bf16.gmra.mxu3 %vm970_vm1, %v9848_v21  ;;  %v9851_v21 = vld [vmem:[%s12603_s14 + $0x280] sm:$0xf] }
 0x458   : > { %v2206_v52 = vpop.f32.mrf.mxu2  ;;  %v1471_v4 = vpop.f32.mrf.mxu0 }
 0x459   : > { %v13970_v35 = vadd.f32 %v2206_v52, %v1798_v32  ;;  %v4007_v50 = vpop.f32.mrf.mxu3  ;;  %v1801_v30 = vadd.f32 %v16326_v48, %v1471_v4  ;;  %v16329_v4 = vld [vmem:[#allocation181_spill] sm:$0xff] }
 0x45a   : > { %v13972_v22 = vadd.f32 %v4007_v50, %v3678_v20  ;;  %v3680_v47 = vpop.f32.mrf.mxu1  ;;  %v9852_v50 = vor.u32 %v11659_v11, %v9851_v21 }
 0x45b   : > { %16324 = vst [vmem:[#allocation173_spill] sm:$0xff] %v13970_v35  ;;  %9366 = vmatmul.msk.bf16.gmra.mxu0 %vm970_vm1, %v8846_v28  ;;  %v9856_v35 = vor.u32 %v11658_v58, %v9853_v38  ;;  %v9859_v58 = vld [vmem:[%s12603_s14 + $0x290] sm:$0xf]  ;;  %v16332_v38 = vld [vmem:[#allocation185_spill] sm:$0xff] }
 0x45c   : > { %16325 = vst [vmem:[#allocation273_spill] sm:$0xff] %v13972_v22 }
 0x45d   : > { %9482 = vmatmul.msk.bf16.gmra.mxu2 %vm970_vm1, %v13922_v14  ;;  %v11448_v14 = vld [vmem:[%s12603_s14 + $0x64] sm:$0xf] }
 0x460   : > { %v2209_v18 = vpop.f32.mrf.mxu2  ;;  %v1473_v20 = vpop.f32.mrf.mxu0 }
 0x461   : > { %v13982_v32 = vadd.f32 %v2209_v18, %v1801_v30  ;;  %v4009_v52 = vpop.f32.mrf.mxu3  ;;  %v1803_v48 = vadd.f32 %v16329_v4, %v1473_v20  ;;  %v8854_v18 = vor.u32 %v11448_v14, %v8851_v6  ;;  %v9861_v6 = vld [vmem:[%s12603_s14 + $0x298] sm:$0xf0] }
 0x462   : > { %v13984_v22 = vadd.f32 %v4009_v52, %v3680_v47  ;;  %v3683_v9 = vpop.f32.mrf.mxu1 }
 0x463   : > { %16327 = vst [vmem:[#allocation177_spill] sm:$0xff] %v13982_v32 }
 0x464   : > { %16328 = vst [vmem:[#allocation274_spill] sm:$0xff] %v13984_v22 }
 0x465   : > { %3722 = vmatmul.bf16.gmra.mxu1 %v9852_v50  ;;  %v11660_v50 = vld [vmem:[%s12603_s14 + $0x294] sm:$0xf] }
 0x466   : > { %10145 = vmatmul.msk.bf16.gmra.mxu3 %vm970_vm1, %v9856_v35  ;;  %v11661_v35 = vld [vmem:[%s12603_s14 + $0x294] sm:$0xf0]  ;;  %v9864_v22 = vor.u32 %v11660_v50, %v9861_v6  ;;  %v11663_v6 = vld [vmem:[%s12603_s14 + $0x2a4] sm:$0xf0] }
 0x468   : > { %v2211_v30 = vpop.f32.mrf.mxu2  ;;  %v1476_v47 = vpop.f32.mrf.mxu0 }
 0x469   : > { %v13990_v32 = vadd.f32 %v2211_v30, %v1803_v48  ;;  %v4012_v21 = vpop.f32.mrf.mxu3  ;;  %v1806_v20 = vadd.f32 %v16332_v38, %v1476_v47  ;;  %v9860_v30 = vor.u32 %v11661_v35, %v9859_v58  ;;  %v16335_v47 = vld [vmem:[#allocation189_spill] sm:$0xff] }
 0x46a   : > { %v13992_v11 = vadd.f32 %v4012_v21, %v3683_v9  ;;  %v3685_v52 = vpop.f32.mrf.mxu1 }
 0x46b   : > { %16330 = vst [vmem:[#allocation181_spill] sm:$0xff] %v13990_v32  ;;  %9367 = vmatmul.msk.bf16.gmra.mxu0 %vm970_vm1, %v8854_v18  ;;  %v8859_v32 = vld [vmem:[%s12603_s14 + $0x78] sm:$0xf0] }
 0x46c   : > { %16331 = vst [vmem:[#allocation275_spill] sm:$0xff] %v13992_v11 }
 0x46d   : > { %9483 = vmatmul.msk.bf16.gmra.mxu2 %vm970_vm1, %v13944_v42  ;;  %v11450_v42 = vld [vmem:[%s12603_s14 + $0x74] sm:$0xf] }
 0x470   : > { %v2214_v14 = vpop.f32.mrf.mxu2  ;;  %v1478_v9 = vpop.f32.mrf.mxu0 }
 0x471   : > { %v14002_v4 = vadd.f32 %v2214_v14, %v1806_v20  ;;  %v4014_v48 = vpop.f32.mrf.mxu3  ;;  %v1808_v38 = vadd.f32 %v16335_v47, %v1478_v9  ;;  %v14010_v14 = vor.u32 %v11450_v42, %v8859_v32  ;;  %v11662_v32 = vld [vmem:[%s12603_s14 + $0x2a4] sm:$0xf] }
 0x472   : > { %v14004_v21 = vadd.f32 %v4014_v48, %v3685_v52  ;;  %v3688_v11 = vpop.f32.mrf.mxu1  ;;  %v16338_v48 = vld [vmem:[#allocation193_spill] sm:$0xff] }
 0x473   : > { %16333 = vst [vmem:[#allocation185_spill] sm:$0xff] %v14002_v4 }
 0x474   : > { %16334 = vst [vmem:[#allocation276_spill] sm:$0xff] %v14004_v21 }
 0x475   : > { %3727 = vmatmul.bf16.gmra.mxu1 %v9860_v30  ;;  %v9869_v30 = vld [vmem:[%s12603_s14 + $0x2a8] sm:$0xf0] }
 0x476   : > { %10146 = vmatmul.msk.bf16.gmra.mxu3 %vm970_vm1, %v9864_v22  ;;  %v9867_v22 = vld [vmem:[%s12603_s14 + $0x2a0] sm:$0xf]  ;;  %v9872_v21 = vor.u32 %v11662_v32, %v9869_v30  ;;  %v9875_v30 = vld [vmem:[%s12603_s14 + $0x2b0] sm:$0xf] }
 0x478   : > { %v2216_v20 = vpop.f32.mrf.mxu2  ;;  %v1481_v58 = vpop.f32.mrf.mxu0 }
 0x479   : > { %v14012_v4 = vadd.f32 %v2216_v20, %v1808_v38  ;;  %v4017_v52 = vpop.f32.mrf.mxu3  ;;  %v1811_v9 = vadd.f32 %v16338_v48, %v1481_v58  ;;  %v9868_v20 = vor.u32 %v11663_v6, %v9867_v22  ;;  %v16341_v58 = vld [vmem:[#allocation197_spill] sm:$0xff] }
 0x47a   : > { %v14014_v35 = vadd.f32 %v4017_v52, %v3688_v11  ;;  %v3690_v50 = vpop.f32.mrf.mxu1 }
 0x47b   : > { %16336 = vst [vmem:[#allocation189_spill] sm:$0xff] %v14012_v4  ;;  %9368 = vmatmul.msk.bf16.gmra.mxu0 %vm970_vm1, %v14010_v14  ;;  %v8867_v4 = vld [vmem:[%s12603_s14 + $0x88] sm:$0xf0] }
 0x47c   : > { %16337 = vst [vmem:[#allocation277_spill] sm:$0xff] %v14014_v35 }
 0x47d   : > { %9484 = vmatmul.msk.bf16.gmra.mxu2 %vm970_vm1, %v8846_v28  ;;  %v11452_v28 = vld [vmem:[%s12603_s14 + $0x84] sm:$0xf] }
 0x480   : > { %v2219_v42 = vpop.f32.mrf.mxu2  ;;  %v1483_v11 = vpop.f32.mrf.mxu0 }
 0x481   : > { %v14024_v47 = vadd.f32 %v2219_v42, %v1811_v9  ;;  %v4019_v38 = vpop.f32.mrf.mxu3  ;;  %v1813_v48 = vadd.f32 %v16341_v58, %v1483_v11  ;;  %v14032_v42 = vor.u32 %v11452_v28, %v8867_v4  ;;  %v11665_v4 = vld [vmem:[%s12603_s14 + $0x2b4] sm:$0xf0] }
 0x482   : > { %v14026_v52 = vadd.f32 %v4019_v38, %v3690_v50  ;;  %v3693_v35 = vpop.f32.mrf.mxu1  ;;  %v16344_v38 = vld [vmem:[#allocation201_spill] sm:$0xff] }
 0x483   : > { %16339 = vst [vmem:[#allocation193_spill] sm:$0xff] %v14024_v47 }
 0x484   : > { %16340 = vst [vmem:[#allocation278_spill] sm:$0xff] %v14026_v52 }
 0x485   : > { %3732 = vmatmul.bf16.gmra.mxu1 %v9868_v20  ;;  %v11664_v20 = vld [vmem:[%s12603_s14 + $0x2b4] sm:$0xf] }
 0x486   : > { %10147 = vmatmul.msk.bf16.gmra.mxu3 %vm970_vm1, %v9872_v21  ;;  %v11990_v21 = vld [vmem:[%s16029_s1 + $0x130] sm:$0xff] }
 0x487   : > { %7053 = vmatpush.bf16.msra.mxu1 %v11990_v21  ;;  %v16347_v21 = vld [vmem:[#allocation205_spill] sm:$0xff] }
 0x488   : > { %v2221_v9 = vpop.f32.mrf.mxu2  ;;  %v1486_v22 = vpop.f32.mrf.mxu0 }
 0x489   : > { %v14034_v47 = vadd.f32 %v2221_v9, %v1813_v48  ;;  %v4022_v50 = vpop.f32.mrf.mxu3  ;;  %v1816_v11 = vadd.f32 %v16344_v38, %v1486_v22  ;;  %v11856_v22 = vld [vmem:[%s16029_s1 + $0x100] sm:$0xff] }
 0x48a   : > { %v14036_v6 = vadd.f32 %v4022_v50, %v3693_v35  ;;  %v3695_v32 = vpop.f32.mrf.mxu1  ;;  %v9877_v35 = vld [vmem:[%s12603_s14 + $0x2b8] sm:$0xf0]  ;;  %v9876_v50 = vor.u32 %v11665_v4, %v9875_v30  ;;  %5293 = vmatpush.bf16.msra.mxu0 %v11856_v22 }
 0x48b   : > { %16342 = vst [vmem:[#allocation197_spill] sm:$0xff] %v14034_v47  ;;  %9369 = vmatmul.msk.bf16.gmra.mxu0 %vm970_vm1, %v14032_v42  ;;  %v9880_v47 = vor.u32 %v11664_v20, %v9877_v35  ;;  %v16349_v35 = vld [vmem:[#allocation213_spill] sm:$0xff] }
 0x48c   : > { %16343 = vst [vmem:[#allocation279_spill] sm:$0xff] %v14036_v6 }
 0x48d   : > { %9485 = vmatmul.msk.bf16.gmra.mxu2 %vm970_vm1, %v8854_v18  ;;  %v11454_v18 = vld [vmem:[%s12603_s14 + $0x94] sm:$0xf] }
 0x490   : > { %v2224_v28 = vpop.f32.mrf.mxu2  ;;  %v1488_v9 = vpop.f32.mrf.mxu0 }
 0x491   : > { %v14049_v58 = vadd.f32 %v2224_v28, %v1816_v11  ;;  %v4024_v48 = vpop.f32.mrf.mxu3  ;;  %v1818_v38 = vadd.f32 %v16347_v21, %v1488_v9  ;;  %v16350_v28 = vld [vmem:[#allocation4_spill] sm:$0xff]  ;;  %v11667_v9 = vld [vmem:[%s12603_s14 + $0x2c4] sm:$0xf0]  ;;  %v11666_v21 = vld [vmem:[%s12603_s14 + $0x2c4] sm:$0xf] }
 0x492   : > { %v14051_v6 = vadd.f32 %v4024_v48, %v3695_v32  ;;  %v3698_v52 = vpop.f32.mrf.mxu1  ;;  %v14060_v32 = vor.u32 %v11454_v18, %v8875_v63  ;;  %v9883_v63 = vld [vmem:[%s12603_s14 + $0x2c0] sm:$0xf]  ;;  %v16352_v18 = vld [vmem:[#allocation209_spill] sm:$0xff] }
 0x493   : > { %16345 = vst [vmem:[#allocation201_spill] sm:$0xff] %v14049_v58 }
 0x494   : > { %16346 = vst [vmem:[#allocation280_spill] sm:$0xff] %v14051_v6 }
 0x495   : > { %3737 = vmatmul.bf16.gmra.mxu1 %v9876_v50 }
 0x496   : > { %10148 = vmatmul.msk.bf16.gmra.mxu3 %vm970_vm1, %v9880_v47  ;;  %v2399_v47 = vadd.f32 %v16350_v28, %v16349_v35  ;;  %v9884_v28 = vor.u32 %v11667_v9, %v9883_v63 }
 0x498   : > { %v2226_v11 = vpop.f32.mrf.mxu2  ;;  %v1491_v20 = vpop.f32.mrf.mxu0 }
 0x499   : > { %v14062_v30 = vadd.f32 %v2226_v11, %v1818_v38  ;;  %v4027_v4 = vpop.f32.mrf.mxu3  ;;  %v1821_v22 = vadd.f32 %v16352_v18, %v1491_v20  ;;  %v9885_v38 = vld [vmem:[%s12603_s14 + $0x2c8] sm:$0xf0]  ;;  %v16356_v18 = vld [vmem:[#allocation212_spill] sm:$0xff] }
 0x49a   : > { %v4028_v48 = vadd.f32 %v4027_v4, %v3698_v52  ;;  %v3700_v50 = vpop.f32.mrf.mxu1  ;;  %v8883_v20 = vld [vmem:[%s12603_s14 + $0xa8] sm:$0xf0] }
 0x49b   : > { %16348 = vst [vmem:[#allocation205_spill] sm:$0xff] %v14062_v30  ;;  %9370 = vmatmul.msk.bf16.gmra.mxu0 %vm970_vm1, %v14060_v32  ;;  %v14087_v63 = vor.u32 %v11456_v57, %v8883_v20  ;;  %v9891_v57 = vld [vmem:[%s12603_s14 + $0x2d0] sm:$0xf] }
 0x49c   : > { %v14066_v6 = vadd.f32 %v4028_v48, %v2399_v47  ;;  %v16354_v47 = vld [vmem:[#allocation5_spill] sm:$0xff] }
 0x49d   : > { %9486 = vmatmul.msk.bf16.gmra.mxu2 %vm970_vm1, %v14010_v14  ;;  %v2401_v48 = vadd.f32 %v16354_v47, %v13465_v1  ;;  %v9888_v14 = vor.u32 %v11666_v21, %v9885_v38 }
 0x49e   : > { %16351 = vst [vmem:[#allocation213_spill] sm:$0xff] %v14066_v6 }
 0x4a0   : > { %v2229_v11 = vpop.f32.mrf.mxu2  ;;  %v1493_v4 = vpop.f32.mrf.mxu0 }
 0x4a1   : > { %v14077_v35 = vadd.f32 %v2229_v11, %v1821_v22  ;;  %v4029_v52 = vpop.f32.mrf.mxu3  ;;  %v1823_v22 = vadd.f32 %v16356_v18, %v1493_v4  ;;  %v11669_v4 = vld [vmem:[%s12603_s14 + $0x2d4] sm:$0xf0]  ;;  %v11668_v18 = vld [vmem:[%s12603_s14 + $0x2d4] sm:$0xf] }
 0x4a2   : > { %v4030_v6 = vadd.f32 %v4029_v52, %v3700_v50  ;;  %v3703_v30 = vpop.f32.mrf.mxu1 }
 0x4a3   : > { %16353 = vst [vmem:[#allocation4_spill] sm:$0xff] %v14077_v35  ;;  %v11458_v35 = vld [vmem:[%s12603_s14 + $0xb4] sm:$0xf] }
 0x4a4   : > { %v14081_v58 = vadd.f32 %v4030_v6, %v2401_v48  ;;  %v16358_v6 = vld [vmem:[#allocation6_spill] sm:$0xff] }
 0x4a5   : > { %3742 = vmatmul.bf16.gmra.mxu1 %v9884_v28  ;;  %v2404_v21 = vadd.f32 %v16358_v6, %v13474_v44  ;;  %v16359_v28 = vld [vmem:[#allocation7_spill] sm:$0xff]  ;;  %v9893_v44 = vld [vmem:[%s12603_s14 + $0x2d8] sm:$0xf0] }
 0x4a6   : > { %16355 = vst [vmem:[#allocation209_spill] sm:$0xff] %v14081_v58  ;;  %10149 = vmatmul.msk.bf16.gmra.mxu3 %vm970_vm1, %v9888_v14  ;;  %v16361_v14 = vld [vmem:[#allocation8_spill] sm:$0xff]  ;;  %v16362_v6 = vld [vmem:[#allocation9_spill] sm:$0xff] }
 0x4a8   : > { %v2231_v11 = vpop.f32.mrf.mxu2  ;;  %v1505_v9 = vpop.f32.mrf.mxu0 }
 0x4a9   : > { %v14089_v1 = vadd.f32 %v2231_v11, %v1823_v22  ;;  %v4032_v50 = vpop.f32.mrf.mxu3  ;;  %v1506_v47 = vadd.f32 %v1505_v9, %v16359_v28  ;;  %v9892_v9 = vor.u32 %v11669_v4, %v9891_v57  ;;  %v16366_v57 = vld [vmem:[#allocation11_spill] sm:$0xff] }
 0x4aa   : > { %v4033_v38 = vadd.f32 %v4032_v50, %v3703_v30  ;;  %v3705_v52 = vpop.f32.mrf.mxu1 }
 0x4ab   : > { %16357 = vst [vmem:[#allocation5_spill] sm:$0xff] %v14089_v1  ;;  %9371 = vmatmul.msk.bf16.gmra.mxu0 %vm970_vm1, %v14087_v63  ;;  %v1915_v20 = vadd.f32 %v16361_v14, %v1506_v47  ;;  %v16364_v1 = vld [vmem:[#allocation10_spill] sm:$0xff] }
 0x4ac   : > { %v14094_v48 = vadd.f32 %v4033_v38, %v2404_v21  ;;  %v2406_v21 = vadd.f32 %v16362_v6, %v13482_v33 }
 0x4ad   : > { %9487 = vmatmul.msk.bf16.gmra.mxu2 %vm970_vm1, %v14032_v42  ;;  %v16363_v42 = vld [vmem:[#allocation215_spill] sm:$0xff] }
 0x4ae   : > { %16360 = vst [vmem:[#allocation212_spill] sm:$0xff] %v14094_v48  ;;  %v9896_v48 = vor.u32 %v11668_v18, %v9893_v44 }
 0x4b0   : > { %v2243_v30 = vpop.f32.mrf.mxu2  ;;  %v1507_v50 = vpop.f32.mrf.mxu0 }
 0x4b1   : > { %v2244_v22 = vadd.f32 %v2243_v30, %v1915_v20  ;;  %v4034_v11 = vpop.f32.mrf.mxu3  ;;  %v1508_v47 = vadd.f32 %v1507_v50, %v16364_v1  ;;  %v16367_v1 = vld [vmem:[#allocation12_spill] sm:$0xff] }
 0x4b2   : > { %v4035_v38 = vadd.f32 %v4034_v11, %v3705_v52  ;;  %v3708_v28 = vpop.f32.mrf.mxu1  ;;  %v14117_v52 = vor.u32 %v11458_v35, %v8891_v19  ;;  %v2409_v30 = vadd.f32 %v16367_v1, %v13491_v55  ;;  %v16368_v50 = vld [vmem:[#allocation216_spill] sm:$0xff]  ;;  %v9899_v19 = vld [vmem:[%s12603_s14 + $0x2e0] sm:$0xf]  ;;  %v11671_v35 = vld [vmem:[%s12603_s14 + $0x2e4] sm:$0xf0] }
 0x4b3   : > { %v14108_v58 = vadd.f32 %v16363_v42, %v2244_v22  ;;  %v1917_v4 = vadd.f32 %v16366_v57, %v1508_v47  ;;  %v11670_v55 = vld [vmem:[%s12603_s14 + $0x2e4] sm:$0xf] }
 0x4b4   : > { %v14111_v14 = vadd.f32 %v4035_v38, %v2406_v21  ;;  %v16371_v38 = vld [vmem:[#allocation14_spill] sm:$0xff] }
 0x4b5   : > { %3747 = vmatmul.bf16.gmra.mxu1 %v9892_v9 }
 0x4b6   : > { %16365 = vst [vmem:[#allocation6_spill] sm:$0xff] %v14111_v14  ;;  %10150 = vmatmul.msk.bf16.gmra.mxu3 %vm970_vm1, %v9896_v48  ;;  %v16369_v48 = vld [vmem:[#allocation13_spill] sm:$0xff]  ;;  %v8899_v14 = vld [vmem:[%s12603_s14 + $0xc8] sm:$0xf0] }
 0x4b8   : > { %v2245_v33 = vpop.f32.mrf.mxu2  ;;  %v1510_v44 = vpop.f32.mrf.mxu0 }
 0x4b9   : > { %v2246_v20 = vadd.f32 %v2245_v33, %v1917_v4  ;;  %v4037_v18 = vpop.f32.mrf.mxu3  ;;  %v1511_v6 = vadd.f32 %v1510_v44, %v16369_v48  ;;  %v16374_v48 = vld [vmem:[#allocation16_spill] sm:$0xff] }
 0x4ba   : > { %v4038_v22 = vadd.f32 %v4037_v18, %v3708_v28  ;;  %v3710_v11 = vpop.f32.mrf.mxu1  ;;  %v9901_v28 = vld [vmem:[%s12603_s14 + $0x2e8] sm:$0xf0] }
 0x4bb   : > { %v14122_v9 = vadd.f32 %v16368_v50, %v2246_v20  ;;  %9372 = vmatmul.msk.bf16.gmra.mxu0 %vm970_vm1, %v14117_v52  ;;  %v1920_v42 = vadd.f32 %v16371_v38, %v1511_v6  ;;  %v9900_v20 = vor.u32 %v11671_v35, %v9899_v19  ;;  %v16372_v18 = vld [vmem:[#allocation15_spill] sm:$0xff]  ;;  %v16376_v19 = vld [vmem:[#allocation17_spill] sm:$0xff] }
 0x4bc   : > { %v14125_v21 = vadd.f32 %v4038_v22, %v2409_v30  ;;  %v2411_v44 = vadd.f32 %v16372_v18, %v13499_v45  ;;  %v9904_v22 = vor.u32 %v11670_v55, %v9901_v28 }
 0x4bd   : > { %9488 = vmatmul.msk.bf16.gmra.mxu2 %vm970_vm1, %v14060_v32  ;;  %v16373_v32 = vld [vmem:[#allocation217_spill] sm:$0xff] }
 0x4be   : > { %16370 = vst [vmem:[#allocation7_spill] sm:$0xff] %v14125_v21  ;;  %v11460_v21 = vld [vmem:[%s12603_s14 + $0xc4] sm:$0xf] }
 0x4c0   : > { %v2248_v47 = vpop.f32.mrf.mxu2  ;;  %v1512_v33 = vpop.f32.mrf.mxu0 }
 0x4c1   : > { %v2249_v57 = vadd.f32 %v2248_v47, %v1920_v42  ;;  %v4039_v4 = vpop.f32.mrf.mxu3  ;;  %v1513_v6 = vadd.f32 %v1512_v33, %v16374_v48  ;;  %v16377_v47 = vld [vmem:[#allocation18_spill] sm:$0xff] }
 0x4c2   : > { %v4040_v1 = vadd.f32 %v4039_v4, %v3710_v11  ;;  %v3713_v30 = vpop.f32.mrf.mxu1  ;;  %v14148_v11 = vor.u32 %v11460_v21, %v8899_v14  ;;  %v9907_v14 = vld [vmem:[%s12603_s14 + $0x2f0] sm:$0xf]  ;;  %v11673_v21 = vld [vmem:[%s12603_s14 + $0x2f4] sm:$0xf0] }
 0x4c3   : > { %v14139_v50 = vadd.f32 %v16373_v32, %v2249_v57  ;;  %v1922_v35 = vadd.f32 %v16376_v19, %v1513_v6  ;;  %v2414_v57 = vadd.f32 %v16377_v47, %v13508_v36  ;;  %v16381_v32 = vld [vmem:[#allocation20_spill] sm:$0xff] }
 0x4c4   : > { %v14142_v38 = vadd.f32 %v4040_v1, %v2411_v44  ;;  %v16379_v44 = vld [vmem:[#allocation19_spill] sm:$0xff]  ;;  %v11672_v36 = vld [vmem:[%s12603_s14 + $0x2f4] sm:$0xf] }
 0x4c5   : > { %3752 = vmatmul.bf16.gmra.mxu1 %v9900_v20  ;;  %v16378_v20 = vld [vmem:[#allocation218_spill] sm:$0xff] }
 0x4c6   : > { %16375 = vst [vmem:[#allocation8_spill] sm:$0xff] %v14142_v38  ;;  %10151 = vmatmul.msk.bf16.gmra.mxu3 %vm970_vm1, %v9904_v22  ;;  %v8915_v38 = vld [vmem:[%s12603_s14 + $0xe8] sm:$0xf0] }
 0x4c8   : > { %v2250_v45 = vpop.f32.mrf.mxu2  ;;  %v1515_v28 = vpop.f32.mrf.mxu0 }
 0x4c9   : > { %v2251_v42 = vadd.f32 %v2250_v45, %v1922_v35  ;;  %v4042_v55 = vpop.f32.mrf.mxu3  ;;  %v1516_v1 = vadd.f32 %v1515_v28, %v16379_v44  ;;  %v16384_v44 = vld [vmem:[#allocation22_spill] sm:$0xff] }
 0x4ca   : > { %v4043_v4 = vadd.f32 %v4042_v55, %v3713_v30  ;;  %v3715_v33 = vpop.f32.mrf.mxu1  ;;  %v9909_v30 = vld [vmem:[%s12603_s14 + $0x2f8] sm:$0xf0] }
 0x4cb   : > { %v14153_v18 = vadd.f32 %v16378_v20, %v2251_v42  ;;  %9373 = vmatmul.msk.bf16.gmra.mxu0 %vm970_vm1, %v14148_v11  ;;  %v1925_v48 = vadd.f32 %v16381_v32, %v1516_v1  ;;  %v9908_v42 = vor.u32 %v11673_v21, %v9907_v14  ;;  %v16382_v55 = vld [vmem:[#allocation21_spill] sm:$0xff] }
 0x4cc   : > { %v14156_v22 = vadd.f32 %v4043_v4, %v2414_v57  ;;  %v2416_v28 = vadd.f32 %v16382_v55, %v13516_v59  ;;  %v9912_v4 = vor.u32 %v11672_v36, %v9909_v30  ;;  %v8907_v14 = vld [vmem:[%s12603_s14 + $0xd8] sm:$0xf0]  ;;  %v16386_v59 = vld [vmem:[#allocation23_spill] sm:$0xff] }
 0x4cd   : > { %9489 = vmatmul.msk.bf16.gmra.mxu2 %vm970_vm1, %v14087_v63  ;;  %v16383_v63 = vld [vmem:[#allocation219_spill] sm:$0xff] }
 0x4ce   : > { %16380 = vst [vmem:[#allocation9_spill] sm:$0xff] %v14156_v22  ;;  %v11464_v22 = vld [vmem:[%s12603_s14 + $0xe4] sm:$0xf] }
 0x4d0   : > { %v2253_v6 = vpop.f32.mrf.mxu2  ;;  %v1517_v45 = vpop.f32.mrf.mxu0 }
 0x4d1   : > { %v2254_v19 = vadd.f32 %v2253_v6, %v1925_v48  ;;  %v4044_v35 = vpop.f32.mrf.mxu3  ;;  %v1518_v1 = vadd.f32 %v1517_v45, %v16384_v44  ;;  %v11855_v48 = vld [vmem:[%s16029_s1 + $0xf8] sm:$0xff]  ;;  %v11462_v6 = vld [vmem:[%s12603_s14 + $0xd4] sm:$0xf] }
 0x4d2   : > { %v4045_v47 = vadd.f32 %v4044_v35, %v3715_v33  ;;  %v3718_v57 = vpop.f32.mrf.mxu1  ;;  %5294 = vmatpush.bf16.msra.mxu0 %v11855_v48  ;;  %v14182_v36 = vor.u32 %v11462_v6, %v8907_v14  ;;  %v16387_v45 = vld [vmem:[#allocation24_spill] sm:$0xff]  ;;  %v11675_v6 = vld [vmem:[%s12603_s14 + $0x304] sm:$0xf0]  ;;  %v16391_v14 = vld [vmem:[#allocation26_spill] sm:$0xff] }
 0x4d3   : > { %v14170_v20 = vadd.f32 %v16383_v63, %v2254_v19  ;;  %v1927_v33 = vadd.f32 %v16386_v59, %v1518_v1  ;;  %v16389_v63 = vld [vmem:[#allocation25_spill] sm:$0xff]  ;;  %v9915_v1 = vld [vmem:[%s12603_s14 + $0x300] sm:$0xf] }
 0x4d4   : > { %v14173_v32 = vadd.f32 %v4045_v47, %v2416_v28  ;;  %v16388_v47 = vld [vmem:[#allocation220_spill] sm:$0xff] }
 0x4d5   : > { %3757 = vmatmul.bf16.gmra.mxu1 %v9908_v42  ;;  %v2419_v42 = vadd.f32 %v16387_v45, %v13525_v40  ;;  %v11674_v40 = vld [vmem:[%s12603_s14 + $0x304] sm:$0xf]  ;;  %v16392_v45 = vld [vmem:[#allocation27_spill] sm:$0xff] }
 0x4d6   : > { %16385 = vst [vmem:[#allocation215_spill] sm:$0xff] %v14173_v32  ;;  %10152 = vmatmul.msk.bf16.gmra.mxu3 %vm970_vm1, %v9912_v4  ;;  %v16394_v32 = vld [vmem:[#allocation28_spill] sm:$0xff] }
 0x4d8   : > { %v2255_v21 = vpop.f32.mrf.mxu2  ;;  %v1520_v35 = vpop.f32.mrf.mxu0 }
 0x4d9   : > { %v2256_v30 = vadd.f32 %v2255_v21, %v1927_v33  ;;  %v4047_v19 = vpop.f32.mrf.mxu3  ;;  %v1521_v44 = vadd.f32 %v1520_v35, %v16389_v63  ;;  %v9916_v35 = vor.u32 %v11675_v6, %v9915_v1  ;;  %v16396_v1 = vld [vmem:[#allocation29_spill] sm:$0xff] }
 0x4da   : > { %v4048_v55 = vadd.f32 %v4047_v19, %v3718_v57  ;;  %v3720_v28 = vpop.f32.mrf.mxu1  ;;  %v9917_v57 = vld [vmem:[%s12603_s14 + $0x308] sm:$0xf0] }
 0x4db   : > { %v14187_v4 = vadd.f32 %v16388_v47, %v2256_v30  ;;  %9374 = vmatmul.msk.bf16.gmra.mxu0 %vm970_vm1, %v14182_v36  ;;  %v1930_v59 = vadd.f32 %v16391_v14, %v1521_v44  ;;  %v9920_v63 = vor.u32 %v11674_v40, %v9917_v57 }
 0x4dc   : > { %v14190_v48 = vadd.f32 %v4048_v55, %v2419_v42  ;;  %v2421_v42 = vadd.f32 %v16392_v45, %v13533_v10  ;;  %v16399_v45 = vld [vmem:[#allocation31_spill] sm:$0xff] }
 0x4dd   : > { %9490 = vmatmul.msk.bf16.gmra.mxu2 %vm970_vm1, %v14117_v52  ;;  %v16393_v52 = vld [vmem:[#allocation221_spill] sm:$0xff] }
 0x4de   : > { %16390 = vst [vmem:[#allocation10_spill] sm:$0xff] %v14190_v48 }
 0x4e0   : > { %v2258_v33 = vpop.f32.mrf.mxu2  ;;  %v1522_v19 = vpop.f32.mrf.mxu0 }
 0x4e1   : > { %v2259_v21 = vadd.f32 %v2258_v33, %v1930_v59  ;;  %v4049_v30 = vpop.f32.mrf.mxu3  ;;  %v1523_v44 = vadd.f32 %v1522_v19, %v16394_v32  ;;  %v16397_v32 = vld [vmem:[#allocation30_spill] sm:$0xff] }
 0x4e2   : > { %v4050_v55 = vadd.f32 %v4049_v30, %v3720_v28  ;;  %v3723_v47 = vpop.f32.mrf.mxu1  ;;  %v14213_v28 = vor.u32 %v11464_v22, %v8915_v38  ;;  %v2424_v33 = vadd.f32 %v16397_v32, %v13542_v24  ;;  %v16398_v19 = vld [vmem:[#allocation222_spill] sm:$0xff]  ;;  %v9923_v38 = vld [vmem:[%s12603_s14 + $0x310] sm:$0xf]  ;;  %v11677_v22 = vld [vmem:[%s12603_s14 + $0x314] sm:$0xf0] }
 0x4e3   : > { %v14204_v48 = vadd.f32 %v16393_v52, %v2259_v21  ;;  %v1932_v6 = vadd.f32 %v16396_v1, %v1523_v44  ;;  %v11676_v24 = vld [vmem:[%s12603_s14 + $0x314] sm:$0xf] }
 0x4e4   : > { %v14207_v14 = vadd.f32 %v4050_v55, %v2421_v42 }
 0x4e5   : > { %3762 = vmatmul.bf16.gmra.mxu1 %v9916_v35 }
 0x4e6   : > { %16395 = vst [vmem:[#allocation11_spill] sm:$0xff] %v14207_v14  ;;  %10153 = vmatmul.msk.bf16.gmra.mxu3 %vm970_vm1, %v9920_v63  ;;  %v16401_v63 = vld [vmem:[#allocation32_spill] sm:$0xff]  ;;  %v8923_v14 = vld [vmem:[%s12603_s14 + $0xf8] sm:$0xf0] }
 0x4e8   : > { %v2260_v10 = vpop.f32.mrf.mxu2  ;;  %v1525_v57 = vpop.f32.mrf.mxu0 }
 0x4e9   : > { %v2261_v59 = vadd.f32 %v2260_v10, %v1932_v6  ;;  %v4052_v40 = vpop.f32.mrf.mxu3  ;;  %v1526_v42 = vadd.f32 %v1525_v57, %v16399_v45  ;;  %v16404_v45 = vld [vmem:[#allocation34_spill] sm:$0xff] }
 0x4ea   : > { %v4053_v21 = vadd.f32 %v4052_v40, %v3723_v47  ;;  %v3725_v30 = vpop.f32.mrf.mxu1  ;;  %v9925_v47 = vld [vmem:[%s12603_s14 + $0x318] sm:$0xf0] }
 0x4eb   : > { %v14218_v35 = vadd.f32 %v16398_v19, %v2261_v59  ;;  %9375 = vmatmul.msk.bf16.gmra.mxu0 %vm970_vm1, %v14213_v28  ;;  %v1935_v52 = vadd.f32 %v16401_v63, %v1526_v42  ;;  %v9924_v59 = vor.u32 %v11677_v22, %v9923_v38  ;;  %v16402_v40 = vld [vmem:[#allocation33_spill] sm:$0xff]  ;;  %v16406_v38 = vld [vmem:[#allocation35_spill] sm:$0xff] }
 0x4ec   : > { %v14221_v55 = vadd.f32 %v4053_v21, %v2424_v33  ;;  %v2426_v57 = vadd.f32 %v16402_v40, %v13550_v25  ;;  %v9928_v21 = vor.u32 %v11676_v24, %v9925_v47 }
 0x4ed   : > { %9491 = vmatmul.msk.bf16.gmra.mxu2 %vm970_vm1, %v14148_v11  ;;  %v16403_v11 = vld [vmem:[#allocation223_spill] sm:$0xff] }
 0x4ee   : > { %16400 = vst [vmem:[#allocation12_spill] sm:$0xff] %v14221_v55  ;;  %v11466_v55 = vld [vmem:[%s12603_s14 + $0xf4] sm:$0xf] }
 0x4f0   : > { %v2263_v44 = vpop.f32.mrf.mxu2  ;;  %v1527_v10 = vpop.f32.mrf.mxu0 }
 0x4f1   : > { %v2264_v1 = vadd.f32 %v2263_v44, %v1935_v52  ;;  %v4054_v6 = vpop.f32.mrf.mxu3  ;;  %v1528_v42 = vadd.f32 %v1527_v10, %v16404_v45  ;;  %v16407_v44 = vld [vmem:[#allocation36_spill] sm:$0xff] }
 0x4f2   : > { %v4055_v32 = vadd.f32 %v4054_v6, %v3725_v30  ;;  %v3728_v33 = vpop.f32.mrf.mxu1  ;;  %v14244_v30 = vor.u32 %v11466_v55, %v8923_v14  ;;  %v9931_v14 = vld [vmem:[%s12603_s14 + $0x320] sm:$0xf]  ;;  %v11679_v55 = vld [vmem:[%s12603_s14 + $0x324] sm:$0xf0] }
 0x4f3   : > { %v14235_v19 = vadd.f32 %v16403_v11, %v2264_v1  ;;  %v1937_v22 = vadd.f32 %v16406_v38, %v1528_v42  ;;  %v2429_v1 = vadd.f32 %v16407_v44, %v13559_v15  ;;  %v16411_v11 = vld [vmem:[#allocation38_spill] sm:$0xff] }
 0x4f4   : > { %v14238_v63 = vadd.f32 %v4055_v32, %v2426_v57  ;;  %v16409_v57 = vld [vmem:[#allocation37_spill] sm:$0xff]  ;;  %v11678_v15 = vld [vmem:[%s12603_s14 + $0x324] sm:$0xf] }
 0x4f5   : > { %3767 = vmatmul.bf16.gmra.mxu1 %v9924_v59  ;;  %v16408_v59 = vld [vmem:[#allocation224_spill] sm:$0xff] }
 0x4f6   : > { %16405 = vst [vmem:[#allocation216_spill] sm:$0xff] %v14238_v63  ;;  %10154 = vmatmul.msk.bf16.gmra.mxu3 %vm970_vm1, %v9928_v21  ;;  %v8931_v63 = vld [vmem:[%s12603_s14 + $0x108] sm:$0xf0] }
 0x4f8   : > { %v2265_v25 = vpop.f32.mrf.mxu2  ;;  %v1530_v47 = vpop.f32.mrf.mxu0 }
 0x4f9   : > { %v2266_v52 = vadd.f32 %v2265_v25, %v1937_v22  ;;  %v4057_v24 = vpop.f32.mrf.mxu3  ;;  %v1531_v32 = vadd.f32 %v1530_v47, %v16409_v57  ;;  %v16414_v57 = vld [vmem:[#allocation40_spill] sm:$0xff] }
 0x4fa   : > { %v4058_v6 = vadd.f32 %v4057_v24, %v3728_v33  ;;  %v3730_v10 = vpop.f32.mrf.mxu1  ;;  %v9933_v33 = vld [vmem:[%s12603_s14 + $0x328] sm:$0xf0] }
 0x4fb   : > { %v14249_v40 = vadd.f32 %v16408_v59, %v2266_v52  ;;  %9376 = vmatmul.msk.bf16.gmra.mxu0 %vm970_vm1, %v14244_v30  ;;  %v1940_v45 = vadd.f32 %v16411_v11, %v1531_v32  ;;  %v9932_v52 = vor.u32 %v11679_v55, %v9931_v14  ;;  %v16412_v24 = vld [vmem:[#allocation39_spill] sm:$0xff] }
 0x4fc   : > { %v14252_v21 = vadd.f32 %v4058_v6, %v2429_v1  ;;  %v2431_v47 = vadd.f32 %v16412_v24, %v13567_v51  ;;  %v9936_v6 = vor.u32 %v11678_v15, %v9933_v33 }
 0x4fd   : > { %9492 = vmatmul.msk.bf16.gmra.mxu2 %vm970_vm1, %v14182_v36  ;;  %v16413_v36 = vld [vmem:[#allocation225_spill] sm:$0xff] }
 0x4fe   : > { %16410 = vst [vmem:[#allocation13_spill] sm:$0xff] %v14252_v21  ;;  %v11468_v21 = vld [vmem:[%s12603_s14 + $0x104] sm:$0xf] }
 0x500   : > { %v2268_v42 = vpop.f32.mrf.mxu2  ;;  %v1532_v25 = vpop.f32.mrf.mxu0 }
 0x501   : > { %v2269_v38 = vadd.f32 %v2268_v42, %v1940_v45  ;;  %v4059_v22 = vpop.f32.mrf.mxu3  ;;  %v1533_v32 = vadd.f32 %v1532_v25, %v16414_v57  ;;  %v16416_v45 = vld [vmem:[#allocation41_spill] sm:$0xff]  ;;  %v16417_v42 = vld [vmem:[#allocation42_spill] sm:$0xff]  ;;  %v11680_v57 = vld [vmem:[%s12603_s14 + $0x334] sm:$0xf] }
 0x502   : > { %v4060_v44 = vadd.f32 %v4059_v22, %v3730_v10  ;;  %v3733_v1 = vpop.f32.mrf.mxu1  ;;  %v14275_v10 = vor.u32 %v11468_v21, %v8931_v63  ;;  %v11989_v63 = vld [vmem:[%s16029_s1 + $0x128] sm:$0xff]  ;;  %v11681_v21 = vld [vmem:[%s12603_s14 + $0x334] sm:$0xf0] }
 0x503   : > { %v14266_v59 = vadd.f32 %v16413_v36, %v2269_v38  ;;  %v1942_v14 = vadd.f32 %v16416_v45, %v1533_v32  ;;  %v2434_v38 = vadd.f32 %v16417_v42, %v13579_v39  ;;  %v9939_v39 = vld [vmem:[%s12603_s14 + $0x330] sm:$0xf]  ;;  %7054 = vmatpush.bf16.msra.mxu1 %v11989_v63  ;;  %v9941_v32 = vld [vmem:[%s12603_s14 + $0x338] sm:$0xf0]  ;;  %v16424_v63 = vld [vmem:[#allocation46_spill] sm:$0xff] }
 0x504   : > { %v14269_v11 = vadd.f32 %v4060_v44, %v2431_v47  ;;  %v16419_v47 = vld [vmem:[#allocation43_spill] sm:$0xff] }
 0x505   : > { %3772 = vmatmul.bf16.gmra.mxu1 %v9932_v52  ;;  %v16418_v52 = vld [vmem:[#allocation226_spill] sm:$0xff] }
 0x506   : > { %16415 = vst [vmem:[#allocation14_spill] sm:$0xff] %v14269_v11  ;;  %10155 = vmatmul.msk.bf16.gmra.mxu3 %vm970_vm1, %v9936_v6  ;;  %v8947_v11 = vld [vmem:[%s12603_s14 + $0x128] sm:$0xf0] }
 0x508   : > { %v2270_v51 = vpop.f32.mrf.mxu2  ;;  %v1535_v33 = vpop.f32.mrf.mxu0 }
 0x509   : > { %v2271_v55 = vadd.f32 %v2270_v51, %v1942_v14  ;;  %v4062_v15 = vpop.f32.mrf.mxu3  ;;  %v1536_v44 = vadd.f32 %v1535_v33, %v16419_v47  ;;  %v16422_v33 = vld [vmem:[#allocation45_spill] sm:$0xff] }
 0x50a   : > { %v4063_v22 = vadd.f32 %v4062_v15, %v3733_v1  ;;  %v3735_v25 = vpop.f32.mrf.mxu1  ;;  %v16421_v1 = vld [vmem:[#allocation44_spill] sm:$0xff]  ;;  %v9940_v15 = vor.u32 %v11681_v21, %v9939_v39  ;;  %v2436_v42 = vadd.f32 %v16422_v33, %v13587_v23  ;;  %v8939_v39 = vld [vmem:[%s12603_s14 + $0x118] sm:$0xf0]  ;;  %v16426_v23 = vld [vmem:[#allocation47_spill] sm:$0xff] }
 0x50b   : > { %v14280_v24 = vadd.f32 %v16418_v52, %v2271_v55  ;;  %9377 = vmatmul.msk.bf16.gmra.mxu0 %vm970_vm1, %v14275_v10  ;;  %v1945_v36 = vadd.f32 %v16421_v1, %v1536_v44  ;;  %v16423_v52 = vld [vmem:[#allocation227_spill] sm:$0xff] }
 0x50c   : > { %v14283_v6 = vadd.f32 %v4063_v22, %v2434_v38 }
 0x50d   : > { %9493 = vmatmul.msk.bf16.gmra.mxu2 %vm970_vm1, %v14213_v28  ;;  %v9944_v28 = vor.u32 %v11680_v57, %v9941_v32 }
 0x50e   : > { %16420 = vst [vmem:[#allocation15_spill] sm:$0xff] %v14283_v6  ;;  %v11472_v6 = vld [vmem:[%s12603_s14 + $0x124] sm:$0xf] }
 0x510   : > { %v2273_v45 = vpop.f32.mrf.mxu2  ;;  %v1537_v55 = vpop.f32.mrf.mxu0 }
 0x511   : > { %v2274_v14 = vadd.f32 %v2273_v45, %v1945_v36  ;;  %v4064_v51 = vpop.f32.mrf.mxu3  ;;  %v1538_v44 = vadd.f32 %v1537_v55, %v16424_v63  ;;  %v11854_v36 = vld [vmem:[%s16029_s1 + $0xf0] sm:$0xff] }
 0x512   : > { %v4065_v38 = vadd.f32 %v4064_v51, %v3735_v25  ;;  %v3738_v22 = vpop.f32.mrf.mxu1  ;;  %v11470_v45 = vld [vmem:[%s12603_s14 + $0x114] sm:$0xf]  ;;  %5295 = vmatpush.bf16.msra.mxu0 %v11854_v36 }
 0x513   : > { %v14300_v47 = vadd.f32 %v16423_v52, %v2274_v14  ;;  %v1947_v25 = vadd.f32 %v16426_v23, %v1538_v44  ;;  %v14312_v57 = vor.u32 %v11470_v45, %v8939_v39  ;;  %v16427_v55 = vld [vmem:[#allocation48_spill] sm:$0xff]  ;;  %v16429_v52 = vld [vmem:[#allocation49_spill] sm:$0xff]  ;;  %v9947_v44 = vld [vmem:[%s12603_s14 + $0x340] sm:$0xf] }
 0x514   : > { %v14303_v1 = vadd.f32 %v4065_v38, %v2436_v42  ;;  %v16428_v38 = vld [vmem:[#allocation228_spill] sm:$0xff]  ;;  %v11683_v45 = vld [vmem:[%s12603_s14 + $0x344] sm:$0xf0]  ;;  %v16431_v39 = vld [vmem:[#allocation50_spill] sm:$0xff] }
 0x515   : > { %3777 = vmatmul.bf16.gmra.mxu1 %v9940_v15  ;;  %v2439_v15 = vadd.f32 %v16427_v55, %v13596_v2  ;;  %v11682_v2 = vld [vmem:[%s12603_s14 + $0x344] sm:$0xf]  ;;  %v16432_v55 = vld [vmem:[#allocation51_spill] sm:$0xff] }
 0x516   : > { %16425 = vst [vmem:[#allocation217_spill] sm:$0xff] %v14303_v1  ;;  %10156 = vmatmul.msk.bf16.gmra.mxu3 %vm970_vm1, %v9944_v28  ;;  %v16434_v1 = vld [vmem:[#allocation52_spill] sm:$0xff] }
 0x518   : > { %v2275_v21 = vpop.f32.mrf.mxu2  ;;  %v1540_v51 = vpop.f32.mrf.mxu0 }
 0x519   : > { %v2276_v32 = vadd.f32 %v2275_v21, %v1947_v25  ;;  %v4067_v14 = vpop.f32.mrf.mxu3  ;;  %v1541_v63 = vadd.f32 %v1540_v51, %v16429_v52  ;;  %v9948_v51 = vor.u32 %v11683_v45, %v9947_v44  ;;  %v16436_v44 = vld [vmem:[#allocation53_spill] sm:$0xff] }
 0x51a   : > { %v4068_v33 = vadd.f32 %v4067_v14, %v3738_v22  ;;  %v3740_v42 = vpop.f32.mrf.mxu1  ;;  %v9949_v22 = vld [vmem:[%s12603_s14 + $0x348] sm:$0xf0] }
 0x51b   : > { %v14317_v28 = vadd.f32 %v16428_v38, %v2276_v32  ;;  %9378 = vmatmul.msk.bf16.gmra.mxu0 %vm970_vm1, %v14312_v57  ;;  %v1950_v23 = vadd.f32 %v16431_v39, %v1541_v63  ;;  %v9952_v52 = vor.u32 %v11682_v2, %v9949_v22 }
 0x51c   : > { %v14320_v36 = vadd.f32 %v4068_v33, %v2439_v15  ;;  %v2441_v15 = vadd.f32 %v16432_v55, %v13604_v16  ;;  %v16439_v55 = vld [vmem:[#allocation55_spill] sm:$0xff] }
 0x51d   : > { %9494 = vmatmul.msk.bf16.gmra.mxu2 %vm970_vm1, %v14244_v30  ;;  %v16433_v30 = vld [vmem:[#allocation229_spill] sm:$0xff] }
 0x51e   : > { %16430 = vst [vmem:[#allocation16_spill] sm:$0xff] %v14320_v36 }
 0x520   : > { %v2278_v25 = vpop.f32.mrf.mxu2  ;;  %v1542_v14 = vpop.f32.mrf.mxu0 }
 0x521   : > { %v2279_v21 = vadd.f32 %v2278_v25, %v1950_v23  ;;  %v4069_v32 = vpop.f32.mrf.mxu3  ;;  %v1543_v63 = vadd.f32 %v1542_v14, %v16434_v1  ;;  %v16437_v1 = vld [vmem:[#allocation54_spill] sm:$0xff] }
 0x522   : > { %v4070_v33 = vadd.f32 %v4069_v32, %v3740_v42  ;;  %v3743_v38 = vpop.f32.mrf.mxu1  ;;  %v14343_v42 = vor.u32 %v11472_v6, %v8947_v11  ;;  %v2444_v25 = vadd.f32 %v16437_v1, %v13613_v62  ;;  %v16438_v14 = vld [vmem:[#allocation230_spill] sm:$0xff]  ;;  %v9955_v11 = vld [vmem:[%s12603_s14 + $0x350] sm:$0xf]  ;;  %v11685_v6 = vld [vmem:[%s12603_s14 + $0x354] sm:$0xf0] }
 0x523   : > { %v14334_v36 = vadd.f32 %v16433_v30, %v2279_v21  ;;  %v1952_v45 = vadd.f32 %v16436_v44, %v1543_v63  ;;  %v11684_v62 = vld [vmem:[%s12603_s14 + $0x354] sm:$0xf] }
 0x524   : > { %v14337_v39 = vadd.f32 %v4070_v33, %v2441_v15 }
 0x525   : > { %3782 = vmatmul.bf16.gmra.mxu1 %v9948_v51 }
 0x526   : > { %16435 = vst [vmem:[#allocation17_spill] sm:$0xff] %v14337_v39  ;;  %10157 = vmatmul.msk.bf16.gmra.mxu3 %vm970_vm1, %v9952_v52  ;;  %v16441_v52 = vld [vmem:[#allocation56_spill] sm:$0xff]  ;;  %v8955_v39 = vld [vmem:[%s12603_s14 + $0x138] sm:$0xf0] }
 0x528   : > { %v2280_v16 = vpop.f32.mrf.mxu2  ;;  %v1545_v22 = vpop.f32.mrf.mxu0 }
 0x529   : > { %v2281_v23 = vadd.f32 %v2280_v16, %v1952_v45  ;;  %v4072_v2 = vpop.f32.mrf.mxu3  ;;  %v1546_v15 = vadd.f32 %v1545_v22, %v16439_v55  ;;  %v16444_v55 = vld [vmem:[#allocation58_spill] sm:$0xff] }
 0x52a   : > { %v4073_v21 = vadd.f32 %v4072_v2, %v3743_v38  ;;  %v3745_v32 = vpop.f32.mrf.mxu1  ;;  %v9957_v38 = vld [vmem:[%s12603_s14 + $0x358] sm:$0xf0] }
 0x52b   : > { %v14348_v51 = vadd.f32 %v16438_v14, %v2281_v23  ;;  %9379 = vmatmul.msk.bf16.gmra.mxu0 %vm970_vm1, %v14343_v42  ;;  %v1955_v30 = vadd.f32 %v16441_v52, %v1546_v15  ;;  %v9956_v23 = vor.u32 %v11685_v6, %v9955_v11  ;;  %v16442_v2 = vld [vmem:[#allocation57_spill] sm:$0xff]  ;;  %v16446_v11 = vld [vmem:[#allocation59_spill] sm:$0xff] }
 0x52c   : > { %v14351_v33 = vadd.f32 %v4073_v21, %v2444_v25  ;;  %v2446_v22 = vadd.f32 %v16442_v2, %v13621_v12  ;;  %v9960_v21 = vor.u32 %v11684_v62, %v9957_v38 }
 0x52d   : > { %9495 = vmatmul.msk.bf16.gmra.mxu2 %vm970_vm1, %v14275_v10  ;;  %v16443_v10 = vld [vmem:[#allocation231_spill] sm:$0xff] }
 0x52e   : > { %16440 = vst [vmem:[#allocation18_spill] sm:$0xff] %v14351_v33  ;;  %v11474_v33 = vld [vmem:[%s12603_s14 + $0x134] sm:$0xf] }
 0x530   : > { %v2283_v63 = vpop.f32.mrf.mxu2  ;;  %v1547_v16 = vpop.f32.mrf.mxu0 }
 0x531   : > { %v2284_v44 = vadd.f32 %v2283_v63, %v1955_v30  ;;  %v4074_v45 = vpop.f32.mrf.mxu3  ;;  %v1548_v15 = vadd.f32 %v1547_v16, %v16444_v55  ;;  %v16447_v63 = vld [vmem:[#allocation60_spill] sm:$0xff] }
 0x532   : > { %v4075_v1 = vadd.f32 %v4074_v45, %v3745_v32  ;;  %v3748_v25 = vpop.f32.mrf.mxu1  ;;  %v14374_v32 = vor.u32 %v11474_v33, %v8955_v39  ;;  %v9963_v39 = vld [vmem:[%s12603_s14 + $0x360] sm:$0xf]  ;;  %v11687_v33 = vld [vmem:[%s12603_s14 + $0x364] sm:$0xf0] }
 0x533   : > { %v14365_v14 = vadd.f32 %v16443_v10, %v2284_v44  ;;  %v1957_v6 = vadd.f32 %v16446_v11, %v1548_v15  ;;  %v2449_v44 = vadd.f32 %v16447_v63, %v13630_v3  ;;  %v16451_v10 = vld [vmem:[#allocation62_spill] sm:$0xff] }
 0x534   : > { %v14368_v52 = vadd.f32 %v4075_v1, %v2446_v22  ;;  %v16449_v22 = vld [vmem:[#allocation61_spill] sm:$0xff]  ;;  %v11686_v3 = vld [vmem:[%s12603_s14 + $0x364] sm:$0xf] }
 0x535   : > { %3787 = vmatmul.bf16.gmra.mxu1 %v9956_v23  ;;  %v16448_v23 = vld [vmem:[#allocation232_spill] sm:$0xff] }
 0x536   : > { %16445 = vst [vmem:[#allocation218_spill] sm:$0xff] %v14368_v52  ;;  %10158 = vmatmul.msk.bf16.gmra.mxu3 %vm970_vm1, %v9960_v21  ;;  %v8963_v52 = vld [vmem:[%s12603_s14 + $0x148] sm:$0xf0] }
 0x538   : > { %v2285_v12 = vpop.f32.mrf.mxu2  ;;  %v1550_v38 = vpop.f32.mrf.mxu0 }
 0x539   : > { %v2286_v30 = vadd.f32 %v2285_v12, %v1957_v6  ;;  %v4077_v62 = vpop.f32.mrf.mxu3  ;;  %v1551_v1 = vadd.f32 %v1550_v38, %v16449_v22  ;;  %v16454_v22 = vld [vmem:[#allocation64_spill] sm:$0xff] }
 0x53a   : > { %v4078_v45 = vadd.f32 %v4077_v62, %v3748_v25  ;;  %v3750_v16 = vpop.f32.mrf.mxu1  ;;  %v9965_v25 = vld [vmem:[%s12603_s14 + $0x368] sm:$0xf0] }
 0x53b   : > { %v14379_v2 = vadd.f32 %v16448_v23, %v2286_v30  ;;  %9380 = vmatmul.msk.bf16.gmra.mxu0 %vm970_vm1, %v14374_v32  ;;  %v1960_v55 = vadd.f32 %v16451_v10, %v1551_v1  ;;  %v9964_v30 = vor.u32 %v11687_v33, %v9963_v39  ;;  %v16452_v62 = vld [vmem:[#allocation63_spill] sm:$0xff] }
 0x53c   : > { %v14382_v21 = vadd.f32 %v4078_v45, %v2449_v44  ;;  %v2451_v38 = vadd.f32 %v16452_v62, %v13638_v61  ;;  %v9968_v45 = vor.u32 %v11686_v3, %v9965_v25 }
 0x53d   : > { %9496 = vmatmul.msk.bf16.gmra.mxu2 %vm970_vm1, %v14312_v57  ;;  %v16453_v57 = vld [vmem:[#allocation233_spill] sm:$0xff] }
 0x53e   : > { %16450 = vst [vmem:[#allocation19_spill] sm:$0xff] %v14382_v21  ;;  %v11476_v21 = vld [vmem:[%s12603_s14 + $0x144] sm:$0xf] }
 0x540   : > { %v2288_v15 = vpop.f32.mrf.mxu2  ;;  %v1552_v12 = vpop.f32.mrf.mxu0 }
 0x541   : > { %v2289_v11 = vadd.f32 %v2288_v15, %v1960_v55  ;;  %v4079_v6 = vpop.f32.mrf.mxu3  ;;  %v1553_v1 = vadd.f32 %v1552_v12, %v16454_v22  ;;  %v16456_v55 = vld [vmem:[#allocation65_spill] sm:$0xff]  ;;  %v16457_v15 = vld [vmem:[#allocation66_spill] sm:$0xff]  ;;  %v11688_v22 = vld [vmem:[%s12603_s14 + $0x374] sm:$0xf] }
 0x542   : > { %v4080_v63 = vadd.f32 %v4079_v6, %v3750_v16  ;;  %v3753_v44 = vpop.f32.mrf.mxu1  ;;  %v14405_v16 = vor.u32 %v11476_v21, %v8963_v52  ;;  %v11853_v52 = vld [vmem:[%s16029_s1 + $0xe8] sm:$0xff]  ;;  %v11689_v21 = vld [vmem:[%s12603_s14 + $0x374] sm:$0xf0] }
 0x543   : > { %v14396_v23 = vadd.f32 %v16453_v57, %v2289_v11  ;;  %v1962_v39 = vadd.f32 %v16456_v55, %v1553_v1  ;;  %v2454_v11 = vadd.f32 %v16457_v15, %v13647_v17  ;;  %v9971_v17 = vld [vmem:[%s12603_s14 + $0x370] sm:$0xf]  ;;  %v9973_v1 = vld [vmem:[%s12603_s14 + $0x378] sm:$0xf0]  ;;  %5296 = vmatpush.bf16.msra.mxu0 %v11853_v52  ;;  %v11478_v52 = vld [vmem:[%s12603_s14 + $0x154] sm:$0xf] }
 0x544   : > { %v14399_v10 = vadd.f32 %v4080_v63, %v2451_v38  ;;  %v16459_v38 = vld [vmem:[#allocation67_spill] sm:$0xff] }
 0x545   : > { %3792 = vmatmul.bf16.gmra.mxu1 %v9964_v30  ;;  %v16458_v30 = vld [vmem:[#allocation234_spill] sm:$0xff] }
 0x546   : > { %16455 = vst [vmem:[#allocation20_spill] sm:$0xff] %v14399_v10  ;;  %10159 = vmatmul.msk.bf16.gmra.mxu3 %vm970_vm1, %v9968_v45  ;;  %v8971_v10 = vld [vmem:[%s12603_s14 + $0x158] sm:$0xf0] }
 0x548   : > { %v2290_v61 = vpop.f32.mrf.mxu2  ;;  %v1555_v25 = vpop.f32.mrf.mxu0 }
 0x549   : > { %v2291_v33 = vadd.f32 %v2290_v61, %v1962_v39  ;;  %v4082_v3 = vpop.f32.mrf.mxu3  ;;  %v1556_v63 = vadd.f32 %v1555_v25, %v16459_v38 }
 0x54a   : > { %v4083_v6 = vadd.f32 %v4082_v3, %v3753_v44  ;;  %v3755_v12 = vpop.f32.mrf.mxu1  ;;  %v16461_v44 = vld [vmem:[#allocation68_spill] sm:$0xff]  ;;  %v9972_v3 = vor.u32 %v11689_v21, %v9971_v17  ;;  %v16466_v17 = vld [vmem:[#allocation71_spill] sm:$0xff] }
 0x54b   : > { %v14410_v62 = vadd.f32 %v16458_v30, %v2291_v33  ;;  %9381 = vmatmul.msk.bf16.gmra.mxu0 %vm970_vm1, %v14405_v16  ;;  %v1965_v57 = vadd.f32 %v16461_v44, %v1556_v63  ;;  %v16463_v30 = vld [vmem:[#allocation235_spill] sm:$0xff]  ;;  %v16464_v63 = vld [vmem:[#allocation70_spill] sm:$0xff] }
 0x54c   : > { %v14413_v45 = vadd.f32 %v4083_v6, %v2454_v11  ;;  %v9976_v6 = vor.u32 %v11688_v22, %v9973_v1 }
 0x54d   : > { %9497 = vmatmul.msk.bf16.gmra.mxu2 %vm970_vm1, %v14343_v42  ;;  %v16462_v42 = vld [vmem:[#allocation69_spill] sm:$0xff] }
 0x54e   : > { %16460 = vst [vmem:[#allocation21_spill] sm:$0xff] %v14413_v45  ;;  %v2456_v25 = vadd.f32 %v16462_v42, %v13655_v56 }
 0x550   : > { %v2293_v55 = vpop.f32.mrf.mxu2  ;;  %v1557_v33 = vpop.f32.mrf.mxu0 }
 0x551   : > { %v2294_v39 = vadd.f32 %v2293_v55, %v1965_v57  ;;  %v4084_v61 = vpop.f32.mrf.mxu3  ;;  %v1558_v44 = vadd.f32 %v1557_v33, %v16464_v63  ;;  %v16467_v55 = vld [vmem:[#allocation72_spill] sm:$0xff]  ;;  %v16471_v63 = vld [vmem:[#allocation74_spill] sm:$0xff] }
 0x552   : > { %v4085_v15 = vadd.f32 %v4084_v61, %v3755_v12  ;;  %v3758_v11 = vpop.f32.mrf.mxu1  ;;  %v14439_v12 = vor.u32 %v11478_v52, %v8971_v10  ;;  %v9979_v10 = vld [vmem:[%s12603_s14 + $0x380] sm:$0xf] }
 0x553   : > { %v14430_v38 = vadd.f32 %v16463_v30, %v2294_v39  ;;  %v1967_v21 = vadd.f32 %v16466_v17, %v1558_v44  ;;  %v2459_v39 = vadd.f32 %v16467_v55, %v13664_v26  ;;  %v11691_v30 = vld [vmem:[%s12603_s14 + $0x384] sm:$0xf0]  ;;  %v11690_v26 = vld [vmem:[%s12603_s14 + $0x384] sm:$0xf] }
 0x554   : > { %v14433_v45 = vadd.f32 %v4085_v15, %v2456_v25  ;;  %v16469_v25 = vld [vmem:[#allocation73_spill] sm:$0xff] }
 0x555   : > { %3797 = vmatmul.bf16.gmra.mxu1 %v9972_v3  ;;  %v16468_v3 = vld [vmem:[#allocation236_spill] sm:$0xff] }
 0x556   : > { %16465 = vst [vmem:[#allocation219_spill] sm:$0xff] %v14433_v45  ;;  %10160 = vmatmul.msk.bf16.gmra.mxu3 %vm970_vm1, %v9976_v6  ;;  %v8979_v45 = vld [vmem:[%s12603_s14 + $0x168] sm:$0xf0] }
 0x558   : > { %v2295_v56 = vpop.f32.mrf.mxu2  ;;  %v1560_v1 = vpop.f32.mrf.mxu0 }
 0x559   : > { %v2296_v57 = vadd.f32 %v2295_v56, %v1967_v21  ;;  %v4087_v22 = vpop.f32.mrf.mxu3  ;;  %v1561_v15 = vadd.f32 %v1560_v1, %v16469_v25  ;;  %v16474_v25 = vld [vmem:[#allocation76_spill] sm:$0xff] }
 0x55a   : > { %v4088_v61 = vadd.f32 %v4087_v22, %v3758_v11  ;;  %v3760_v33 = vpop.f32.mrf.mxu1  ;;  %v9981_v11 = vld [vmem:[%s12603_s14 + $0x388] sm:$0xf0] }
 0x55b   : > { %v14444_v42 = vadd.f32 %v16468_v3, %v2296_v57  ;;  %9382 = vmatmul.msk.bf16.gmra.mxu0 %vm970_vm1, %v14439_v12  ;;  %v1970_v44 = vadd.f32 %v16471_v63, %v1561_v15  ;;  %v9980_v57 = vor.u32 %v11691_v30, %v9979_v10  ;;  %v16472_v22 = vld [vmem:[#allocation75_spill] sm:$0xff]  ;;  %v16476_v10 = vld [vmem:[#allocation77_spill] sm:$0xff] }
 0x55c   : > { %v14447_v6 = vadd.f32 %v4088_v61, %v2459_v39  ;;  %v2461_v1 = vadd.f32 %v16472_v22, %v13672_v37  ;;  %v9984_v61 = vor.u32 %v11690_v26, %v9981_v11 }
 0x55d   : > { %9498 = vmatmul.msk.bf16.gmra.mxu2 %vm970_vm1, %v14374_v32  ;;  %v16473_v32 = vld [vmem:[#allocation237_spill] sm:$0xff] }
 0x55e   : > { %16470 = vst [vmem:[#allocation22_spill] sm:$0xff] %v14447_v6  ;;  %v11480_v6 = vld [vmem:[%s12603_s14 + $0x164] sm:$0xf] }
 0x560   : > { %v2298_v52 = vpop.f32.mrf.mxu2  ;;  %v1562_v56 = vpop.f32.mrf.mxu0 }
 0x561   : > { %v2299_v17 = vadd.f32 %v2298_v52, %v1970_v44  ;;  %v4089_v21 = vpop.f32.mrf.mxu3  ;;  %v1563_v15 = vadd.f32 %v1562_v56, %v16474_v25  ;;  %v16477_v52 = vld [vmem:[#allocation78_spill] sm:$0xff] }
 0x562   : > { %v4090_v55 = vadd.f32 %v4089_v21, %v3760_v33  ;;  %v3763_v39 = vpop.f32.mrf.mxu1  ;;  %v14470_v33 = vor.u32 %v11480_v6, %v8979_v45  ;;  %v9987_v45 = vld [vmem:[%s12603_s14 + $0x390] sm:$0xf]  ;;  %v11693_v6 = vld [vmem:[%s12603_s14 + $0x394] sm:$0xf0] }
 0x563   : > { %v14461_v3 = vadd.f32 %v16473_v32, %v2299_v17  ;;  %v1972_v30 = vadd.f32 %v16476_v10, %v1563_v15  ;;  %v2464_v17 = vadd.f32 %v16477_v52, %v13681_v49  ;;  %v16481_v32 = vld [vmem:[#allocation80_spill] sm:$0xff] }
 0x564   : > { %v14464_v63 = vadd.f32 %v4090_v55, %v2461_v1  ;;  %v16479_v1 = vld [vmem:[#allocation79_spill] sm:$0xff]  ;;  %v11692_v49 = vld [vmem:[%s12603_s14 + $0x394] sm:$0xf] }
 0x565   : > { %3802 = vmatmul.bf16.gmra.mxu1 %v9980_v57  ;;  %v16478_v57 = vld [vmem:[#allocation238_spill] sm:$0xff] }
 0x566   : > { %16475 = vst [vmem:[#allocation23_spill] sm:$0xff] %v14464_v63  ;;  %10161 = vmatmul.msk.bf16.gmra.mxu3 %vm970_vm1, %v9984_v61  ;;  %v8987_v63 = vld [vmem:[%s12603_s14 + $0x178] sm:$0xf0] }
 0x568   : > { %v2300_v37 = vpop.f32.mrf.mxu2  ;;  %v1565_v11 = vpop.f32.mrf.mxu0 }
 0x569   : > { %v2301_v44 = vadd.f32 %v2300_v37, %v1972_v30  ;;  %v4092_v26 = vpop.f32.mrf.mxu3  ;;  %v1566_v55 = vadd.f32 %v1565_v11, %v16479_v1  ;;  %v16484_v1 = vld [vmem:[#allocation82_spill] sm:$0xff] }
 0x56a   : > { %v4093_v21 = vadd.f32 %v4092_v26, %v3763_v39  ;;  %v3765_v56 = vpop.f32.mrf.mxu1  ;;  %v9989_v39 = vld [vmem:[%s12603_s14 + $0x398] sm:$0xf0] }
 0x56b   : > { %v14475_v22 = vadd.f32 %v16478_v57, %v2301_v44  ;;  %9383 = vmatmul.msk.bf16.gmra.mxu0 %vm970_vm1, %v14470_v33  ;;  %v1975_v25 = vadd.f32 %v16481_v32, %v1566_v55  ;;  %v9988_v44 = vor.u32 %v11693_v6, %v9987_v45  ;;  %v16482_v26 = vld [vmem:[#allocation81_spill] sm:$0xff]  ;;  %v16486_v45 = vld [vmem:[#allocation83_spill] sm:$0xff] }
 0x56c   : > { %v14478_v61 = vadd.f32 %v4093_v21, %v2464_v17  ;;  %v2466_v11 = vadd.f32 %v16482_v26, %v13689_v31  ;;  %v9992_v21 = vor.u32 %v11692_v49, %v9989_v39 }
 0x56d   : > { %9499 = vmatmul.msk.bf16.gmra.mxu2 %vm970_vm1, %v14405_v16  ;;  %v16483_v16 = vld [vmem:[#allocation239_spill] sm:$0xff] }
 0x56e   : > { %16480 = vst [vmem:[#allocation24_spill] sm:$0xff] %v14478_v61  ;;  %v11482_v61 = vld [vmem:[%s12603_s14 + $0x174] sm:$0xf] }
 0x570   : > { %v2303_v15 = vpop.f32.mrf.mxu2  ;;  %v1567_v37 = vpop.f32.mrf.mxu0 }
 0x571   : > { %v2304_v10 = vadd.f32 %v2303_v15, %v1975_v25  ;;  %v4094_v30 = vpop.f32.mrf.mxu3  ;;  %v1568_v55 = vadd.f32 %v1567_v37, %v16484_v1  ;;  %v16487_v15 = vld [vmem:[#allocation84_spill] sm:$0xff] }
 0x572   : > { %v4095_v52 = vadd.f32 %v4094_v30, %v3765_v56  ;;  %v3768_v17 = vpop.f32.mrf.mxu1  ;;  %v14501_v56 = vor.u32 %v11482_v61, %v8987_v63  ;;  %v9995_v63 = vld [vmem:[%s12603_s14 + $0x3a0] sm:$0xf]  ;;  %v11695_v61 = vld [vmem:[%s12603_s14 + $0x3a4] sm:$0xf0] }
 0x573   : > { %v14492_v57 = vadd.f32 %v16483_v16, %v2304_v10  ;;  %v1977_v6 = vadd.f32 %v16486_v45, %v1568_v55  ;;  %v2469_v10 = vadd.f32 %v16487_v15, %v13698_v54  ;;  %v16491_v16 = vld [vmem:[#allocation86_spill] sm:$0xff] }
 0x574   : > { %v14495_v32 = vadd.f32 %v4095_v52, %v2466_v11  ;;  %v16489_v11 = vld [vmem:[#allocation85_spill] sm:$0xff]  ;;  %v11694_v54 = vld [vmem:[%s12603_s14 + $0x3a4] sm:$0xf] }
 0x575   : > { %3807 = vmatmul.bf16.gmra.mxu1 %v9988_v44  ;;  %v16488_v44 = vld [vmem:[#allocation240_spill] sm:$0xff] }
 0x576   : > { %16485 = vst [vmem:[#allocation220_spill] sm:$0xff] %v14495_v32  ;;  %10162 = vmatmul.msk.bf16.gmra.mxu3 %vm970_vm1, %v9992_v21  ;;  %v8995_v32 = vld [vmem:[%s12603_s14 + $0x188] sm:$0xf0] }
 0x578   : > { %v2305_v31 = vpop.f32.mrf.mxu2  ;;  %v1570_v39 = vpop.f32.mrf.mxu0 }
 0x579   : > { %v2306_v25 = vadd.f32 %v2305_v31, %v1977_v6  ;;  %v4097_v49 = vpop.f32.mrf.mxu3  ;;  %v1571_v52 = vadd.f32 %v1570_v39, %v16489_v11  ;;  %v16494_v11 = vld [vmem:[#allocation88_spill] sm:$0xff] }
 0x57a   : > { %v4098_v30 = vadd.f32 %v4097_v49, %v3768_v17  ;;  %v3770_v37 = vpop.f32.mrf.mxu1  ;;  %v9997_v17 = vld [vmem:[%s12603_s14 + $0x3a8] sm:$0xf0] }
 0x57b   : > { %v14506_v26 = vadd.f32 %v16488_v44, %v2306_v25  ;;  %9384 = vmatmul.msk.bf16.gmra.mxu0 %vm970_vm1, %v14501_v56  ;;  %v1980_v1 = vadd.f32 %v16491_v16, %v1571_v52  ;;  %v9996_v25 = vor.u32 %v11695_v61, %v9995_v63  ;;  %v16492_v49 = vld [vmem:[#allocation87_spill] sm:$0xff] }
 0x57c   : > { %v14509_v21 = vadd.f32 %v4098_v30, %v2469_v10  ;;  %v2471_v39 = vadd.f32 %v16492_v49, %v13706_v29  ;;  %v10000_v30 = vor.u32 %v11694_v54, %v9997_v17 }
 0x57d   : > { %9500 = vmatmul.msk.bf16.gmra.mxu2 %vm970_vm1, %v14439_v12  ;;  %v16493_v12 = vld [vmem:[#allocation241_spill] sm:$0xff] }
 0x57e   : > { %16490 = vst [vmem:[#allocation25_spill] sm:$0xff] %v14509_v21  ;;  %v11484_v21 = vld [vmem:[%s12603_s14 + $0x184] sm:$0xf] }
 0x57f   : > { %v14532_v29 = vor.u32 %v11484_v21, %v8995_v32  ;;  %v11988_v32 = vld [vmem:[%s16029_s1 + $0x120] sm:$0xff]  ;;  %v10003_v21 = vld [vmem:[%s12603_s14 + $0x3b0] sm:$0xf] }
 0x580   : > { %v2308_v55 = vpop.f32.mrf.mxu2  ;;  %v1572_v31 = vpop.f32.mrf.mxu0  ;;  %7055 = vmatpush.bf16.msra.mxu1 %v11988_v32 }
 0x581   : > { %v2309_v45 = vadd.f32 %v2308_v55, %v1980_v1  ;;  %v4099_v6 = vpop.f32.mrf.mxu3  ;;  %v1573_v52 = vadd.f32 %v1572_v31, %v16494_v11  ;;  %v16496_v1 = vld [vmem:[#allocation89_spill] sm:$0xff]  ;;  %v16497_v55 = vld [vmem:[#allocation90_spill] sm:$0xff] }
 0x582   : > { %v4100_v15 = vadd.f32 %v4099_v6, %v3770_v37  ;;  %v3773_v10 = vpop.f32.mrf.mxu1 }
 0x583   : > { %v14523_v44 = vadd.f32 %v16493_v12, %v2309_v45  ;;  %v1982_v63 = vadd.f32 %v16496_v1, %v1573_v52  ;;  %v2474_v45 = vadd.f32 %v16497_v55, %v13718_v27  ;;  %v11852_v27 = vld [vmem:[%s16029_s1 + $0xe0] sm:$0xff]  ;;  %v16501_v12 = vld [vmem:[#allocation92_spill] sm:$0xff]  ;;  %v10005_v1 = vld [vmem:[%s12603_s14 + $0x3b8] sm:$0xf0] }
 0x584   : > { %v14526_v16 = vadd.f32 %v4100_v15, %v2471_v39  ;;  %v16499_v39 = vld [vmem:[#allocation91_spill] sm:$0xff]  ;;  %v11696_v52 = vld [vmem:[%s12603_s14 + $0x3b4] sm:$0xf]  ;;  %5297 = vmatpush.bf16.msra.mxu0 %v11852_v27 }
 0x585   : > { %3812 = vmatmul.bf16.gmra.mxu1 %v9996_v25  ;;  %v16498_v25 = vld [vmem:[#allocation242_spill] sm:$0xff]  ;;  %v11486_v27 = vld [vmem:[%s12603_s14 + $0x194] sm:$0xf] }
 0x586   : > { %16495 = vst [vmem:[#allocation26_spill] sm:$0xff] %v14526_v16  ;;  %10163 = vmatmul.msk.bf16.gmra.mxu3 %vm970_vm1, %v10000_v30  ;;  %v9003_v16 = vld [vmem:[%s12603_s14 + $0x198] sm:$0xf0] }
 0x588   : > { %v2310_v61 = vpop.f32.mrf.mxu2  ;;  %v1575_v17 = vpop.f32.mrf.mxu0 }
 0x589   : > { %v2311_v37 = vadd.f32 %v2310_v61, %v1982_v63  ;;  %v4102_v54 = vpop.f32.mrf.mxu3  ;;  %v1576_v15 = vadd.f32 %v1575_v17, %v16499_v39  ;;  %v16503_v39 = vld [vmem:[#allocation243_spill] sm:$0xff] }
 0x58a   : > { %v4103_v6 = vadd.f32 %v4102_v54, %v3773_v10  ;;  %v3775_v31 = vpop.f32.mrf.mxu1  ;;  %v11697_v10 = vld [vmem:[%s12603_s14 + $0x3b4] sm:$0xf0] }
 0x58b   : > { %v14537_v49 = vadd.f32 %v16498_v25, %v2311_v37  ;;  %9385 = vmatmul.msk.bf16.gmra.mxu0 %vm970_vm1, %v14532_v29  ;;  %v1985_v11 = vadd.f32 %v16501_v12, %v1576_v15  ;;  %v10004_v17 = vor.u32 %v11697_v10, %v10003_v21  ;;  %v10008_v25 = vor.u32 %v11696_v52, %v10005_v1  ;;  %v16504_v15 = vld [vmem:[#allocation94_spill] sm:$0xff]  ;;  %v16506_v21 = vld [vmem:[#allocation95_spill] sm:$0xff] }
 0x58c   : > { %v14540_v30 = vadd.f32 %v4103_v6, %v2474_v45 }
 0x58d   : > { %9501 = vmatmul.msk.bf16.gmra.mxu2 %vm970_vm1, %v14470_v33  ;;  %v16502_v33 = vld [vmem:[#allocation93_spill] sm:$0xff] }
 0x58e   : > { %16500 = vst [vmem:[#allocation27_spill] sm:$0xff] %v14540_v30  ;;  %v2476_v55 = vadd.f32 %v16502_v33, %v13726_v43 }
 0x590   : > { %v2313_v63 = vpop.f32.mrf.mxu2  ;;  %v1577_v54 = vpop.f32.mrf.mxu0 }
 0x591   : > { %v2314_v61 = vadd.f32 %v2313_v63, %v1985_v11  ;;  %v4104_v37 = vpop.f32.mrf.mxu3  ;;  %v1578_v12 = vadd.f32 %v1577_v54, %v16504_v15  ;;  %v16507_v63 = vld [vmem:[#allocation96_spill] sm:$0xff]  ;;  %v16511_v15 = vld [vmem:[#allocation98_spill] sm:$0xff] }
 0x592   : > { %v4105_v45 = vadd.f32 %v4104_v37, %v3775_v31  ;;  %v3778_v6 = vpop.f32.mrf.mxu1  ;;  %v14569_v31 = vor.u32 %v11486_v27, %v9003_v16  ;;  %v10011_v16 = vld [vmem:[%s12603_s14 + $0x3c0] sm:$0xf] }
 0x593   : > { %v14560_v32 = vadd.f32 %v16503_v39, %v2314_v61  ;;  %v1987_v10 = vadd.f32 %v16506_v21, %v1578_v12  ;;  %v2479_v61 = vadd.f32 %v16507_v63, %v13735_v41  ;;  %v11699_v39 = vld [vmem:[%s12603_s14 + $0x3c4] sm:$0xf0]  ;;  %v11698_v41 = vld [vmem:[%s12603_s14 + $0x3c4] sm:$0xf] }
 0x594   : > { %v14563_v30 = vadd.f32 %v4105_v45, %v2476_v55  ;;  %v16509_v55 = vld [vmem:[#allocation97_spill] sm:$0xff] }
 0x595   : > { %3817 = vmatmul.bf16.gmra.mxu1 %v10004_v17  ;;  %v16508_v17 = vld [vmem:[#allocation244_spill] sm:$0xff] }
 0x596   : > { %16505 = vst [vmem:[#allocation221_spill] sm:$0xff] %v14563_v30  ;;  %10164 = vmatmul.msk.bf16.gmra.mxu3 %vm970_vm1, %v10008_v25  ;;  %v9011_v30 = vld [vmem:[%s12603_s14 + $0x1a8] sm:$0xf0] }
 0x598   : > { %v2315_v43 = vpop.f32.mrf.mxu2  ;;  %v1580_v1 = vpop.f32.mrf.mxu0 }
 0x599   : > { %v2316_v11 = vadd.f32 %v2315_v43, %v1987_v10  ;;  %v4107_v52 = vpop.f32.mrf.mxu3  ;;  %v1581_v45 = vadd.f32 %v1580_v1, %v16509_v55  ;;  %v16514_v55 = vld [vmem:[#allocation100_spill] sm:$0xff] }
 0x59a   : > { %v4108_v37 = vadd.f32 %v4107_v52, %v3778_v6  ;;  %v3780_v54 = vpop.f32.mrf.mxu1  ;;  %v10013_v6 = vld [vmem:[%s12603_s14 + $0x3c8] sm:$0xf0] }
 0x59b   : > { %v14574_v33 = vadd.f32 %v16508_v17, %v2316_v11  ;;  %9386 = vmatmul.msk.bf16.gmra.mxu0 %vm970_vm1, %v14569_v31  ;;  %v1990_v12 = vadd.f32 %v16511_v15, %v1581_v45  ;;  %v10012_v11 = vor.u32 %v11699_v39, %v10011_v16  ;;  %v16512_v52 = vld [vmem:[#allocation99_spill] sm:$0xff]  ;;  %v16516_v16 = vld [vmem:[#allocation101_spill] sm:$0xff] }
 0x59c   : > { %v14577_v25 = vadd.f32 %v4108_v37, %v2479_v61  ;;  %v2481_v1 = vadd.f32 %v16512_v52, %v13743_v60  ;;  %v10016_v37 = vor.u32 %v11698_v41, %v10013_v6 }
 0x59d   : > { %9502 = vmatmul.msk.bf16.gmra.mxu2 %vm970_vm1, %v14501_v56  ;;  %v16513_v56 = vld [vmem:[#allocation245_spill] sm:$0xff] }
 0x59e   : > { %16510 = vst [vmem:[#allocation28_spill] sm:$0xff] %v14577_v25  ;;  %v11488_v25 = vld [vmem:[%s12603_s14 + $0x1a4] sm:$0xf] }
 0x5a0   : > { %v2318_v27 = vpop.f32.mrf.mxu2  ;;  %v1582_v43 = vpop.f32.mrf.mxu0 }
 0x5a1   : > { %v2319_v21 = vadd.f32 %v2318_v27, %v1990_v12  ;;  %v4109_v10 = vpop.f32.mrf.mxu3  ;;  %v1583_v45 = vadd.f32 %v1582_v43, %v16514_v55  ;;  %v16517_v27 = vld [vmem:[#allocation102_spill] sm:$0xff] }
 0x5a2   : > { %v4110_v63 = vadd.f32 %v4109_v10, %v3780_v54  ;;  %v3783_v61 = vpop.f32.mrf.mxu1  ;;  %v14600_v54 = vor.u32 %v11488_v25, %v9011_v30  ;;  %v10019_v30 = vld [vmem:[%s12603_s14 + $0x3d0] sm:$0xf]  ;;  %v11701_v25 = vld [vmem:[%s12603_s14 + $0x3d4] sm:$0xf0] }
 0x5a3   : > { %v14591_v17 = vadd.f32 %v16513_v56, %v2319_v21  ;;  %v1992_v39 = vadd.f32 %v16516_v16, %v1583_v45  ;;  %v2484_v21 = vadd.f32 %v16517_v27, %v13752_v46  ;;  %v16521_v56 = vld [vmem:[#allocation104_spill] sm:$0xff] }
 0x5a4   : > { %v14594_v15 = vadd.f32 %v4110_v63, %v2481_v1  ;;  %v16519_v1 = vld [vmem:[#allocation103_spill] sm:$0xff]  ;;  %v11700_v46 = vld [vmem:[%s12603_s14 + $0x3d4] sm:$0xf] }
 0x5a5   : > { %3822 = vmatmul.bf16.gmra.mxu1 %v10012_v11  ;;  %v16518_v11 = vld [vmem:[#allocation246_spill] sm:$0xff] }
 0x5a6   : > { %16515 = vst [vmem:[#allocation29_spill] sm:$0xff] %v14594_v15  ;;  %10165 = vmatmul.msk.bf16.gmra.mxu3 %vm970_vm1, %v10016_v37  ;;  %v9019_v15 = vld [vmem:[%s12603_s14 + $0x1b8] sm:$0xf0] }
 0x5a8   : > { %v2320_v60 = vpop.f32.mrf.mxu2  ;;  %v1585_v6 = vpop.f32.mrf.mxu0 }
 0x5a9   : > { %v2321_v12 = vadd.f32 %v2320_v60, %v1992_v39  ;;  %v4112_v41 = vpop.f32.mrf.mxu3  ;;  %v1586_v63 = vadd.f32 %v1585_v6, %v16519_v1  ;;  %v16524_v1 = vld [vmem:[#allocation106_spill] sm:$0xff] }
 0x5aa   : > { %v4113_v10 = vadd.f32 %v4112_v41, %v3783_v61  ;;  %v3785_v43 = vpop.f32.mrf.mxu1  ;;  %v10021_v61 = vld [vmem:[%s12603_s14 + $0x3d8] sm:$0xf0] }
 0x5ab   : > { %v14605_v52 = vadd.f32 %v16518_v11, %v2321_v12  ;;  %9387 = vmatmul.msk.bf16.gmra.mxu0 %vm970_vm1, %v14600_v54  ;;  %v1995_v55 = vadd.f32 %v16521_v56, %v1586_v63  ;;  %v10020_v12 = vor.u32 %v11701_v25, %v10019_v30  ;;  %v16522_v41 = vld [vmem:[#allocation105_spill] sm:$0xff]  ;;  %v16526_v30 = vld [vmem:[#allocation107_spill] sm:$0xff] }
 0x5ac   : > { %v14608_v37 = vadd.f32 %v4113_v10, %v2484_v21  ;;  %v2486_v6 = vadd.f32 %v16522_v41, %v13760_v13  ;;  %v10024_v10 = vor.u32 %v11700_v46, %v10021_v61 }
 0x5ad   : > { %9503 = vmatmul.msk.bf16.gmra.mxu2 %vm970_vm1, %v14532_v29  ;;  %v16523_v29 = vld [vmem:[#allocation247_spill] sm:$0xff] }
 0x5ae   : > { %16520 = vst [vmem:[#allocation30_spill] sm:$0xff] %v14608_v37  ;;  %v11490_v37 = vld [vmem:[%s12603_s14 + $0x1b4] sm:$0xf] }
 0x5b0   : > { %v2323_v45 = vpop.f32.mrf.mxu2  ;;  %v1587_v60 = vpop.f32.mrf.mxu0 }
 0x5b1   : > { %v2324_v16 = vadd.f32 %v2323_v45, %v1995_v55  ;;  %v4114_v39 = vpop.f32.mrf.mxu3  ;;  %v1588_v63 = vadd.f32 %v1587_v60, %v16524_v1  ;;  %v16527_v45 = vld [vmem:[#allocation108_spill] sm:$0xff] }
 0x5b2   : > { %v4115_v27 = vadd.f32 %v4114_v39, %v3785_v43  ;;  %v3788_v21 = vpop.f32.mrf.mxu1  ;;  %v14631_v43 = vor.u32 %v11490_v37, %v9019_v15  ;;  %v10027_v15 = vld [vmem:[%s12603_s14 + $0x3e0] sm:$0xf]  ;;  %v11703_v37 = vld [vmem:[%s12603_s14 + $0x3e4] sm:$0xf0] }
 0x5b3   : > { %v14622_v11 = vadd.f32 %v16523_v29, %v2324_v16  ;;  %v1997_v25 = vadd.f32 %v16526_v30, %v1588_v63  ;;  %v2489_v16 = vadd.f32 %v16527_v45, %v13769_v7  ;;  %v16531_v29 = vld [vmem:[#allocation110_spill] sm:$0xff] }
 0x5b4   : > { %v14625_v56 = vadd.f32 %v4115_v27, %v2486_v6  ;;  %v16529_v6 = vld [vmem:[#allocation109_spill] sm:$0xff]  ;;  %v11702_v7 = vld [vmem:[%s12603_s14 + $0x3e4] sm:$0xf] }
 0x5b5   : > { %3827 = vmatmul.bf16.gmra.mxu1 %v10020_v12  ;;  %v16528_v12 = vld [vmem:[#allocation248_spill] sm:$0xff] }
 0x5b6   : > { %16525 = vst [vmem:[#allocation222_spill] sm:$0xff] %v14625_v56  ;;  %10166 = vmatmul.msk.bf16.gmra.mxu3 %vm970_vm1, %v10024_v10  ;;  %v9027_v56 = vld [vmem:[%s12603_s14 + $0x1c8] sm:$0xf0] }
 0x5b8   : > { %v2325_v13 = vpop.f32.mrf.mxu2  ;;  %v1590_v61 = vpop.f32.mrf.mxu0 }
 0x5b9   : > { %v2326_v55 = vadd.f32 %v2325_v13, %v1997_v25  ;;  %v4117_v46 = vpop.f32.mrf.mxu3  ;;  %v1591_v27 = vadd.f32 %v1590_v61, %v16529_v6  ;;  %v16534_v6 = vld [vmem:[#allocation112_spill] sm:$0xff] }
 0x5ba   : > { %v4118_v39 = vadd.f32 %v4117_v46, %v3788_v21  ;;  %v3790_v60 = vpop.f32.mrf.mxu1  ;;  %v10029_v21 = vld [vmem:[%s12603_s14 + $0x3e8] sm:$0xf0] }
 0x5bb   : > { %v14636_v41 = vadd.f32 %v16528_v12, %v2326_v55  ;;  %9388 = vmatmul.msk.bf16.gmra.mxu0 %vm970_vm1, %v14631_v43  ;;  %v2000_v1 = vadd.f32 %v16531_v29, %v1591_v27  ;;  %v10028_v55 = vor.u32 %v11703_v37, %v10027_v15  ;;  %v16532_v46 = vld [vmem:[#allocation111_spill] sm:$0xff] }
 0x5bc   : > { %v14639_v10 = vadd.f32 %v4118_v39, %v2489_v16  ;;  %v2491_v61 = vadd.f32 %v16532_v46, %v13777_v8  ;;  %v10032_v39 = vor.u32 %v11702_v7, %v10029_v21 }
 0x5bd   : > { %9504 = vmatmul.msk.bf16.gmra.mxu2 %vm970_vm1, %v14569_v31  ;;  %v16533_v31 = vld [vmem:[#allocation249_spill] sm:$0xff] }
 0x5be   : > { %16530 = vst [vmem:[#allocation31_spill] sm:$0xff] %v14639_v10  ;;  %v11492_v10 = vld [vmem:[%s12603_s14 + $0x1c4] sm:$0xf] }
 0x5c0   : > { %v2328_v63 = vpop.f32.mrf.mxu2  ;;  %v1592_v13 = vpop.f32.mrf.mxu0 }
 0x5c1   : > { %v2329_v30 = vadd.f32 %v2328_v63, %v2000_v1  ;;  %v4119_v25 = vpop.f32.mrf.mxu3  ;;  %v1593_v27 = vadd.f32 %v1592_v13, %v16534_v6  ;;  %v16536_v1 = vld [vmem:[#allocation113_spill] sm:$0xff]  ;;  %v16537_v63 = vld [vmem:[#allocation114_spill] sm:$0xff]  ;;  %v11704_v6 = vld [vmem:[%s12603_s14 + $0x3f4] sm:$0xf] }
 0x5c2   : > { %v4120_v45 = vadd.f32 %v4119_v25, %v3790_v60  ;;  %v3793_v16 = vpop.f32.mrf.mxu1  ;;  %v14662_v60 = vor.u32 %v11492_v10, %v9027_v56  ;;  %v11851_v56 = vld [vmem:[%s16029_s1 + $0xd8] sm:$0xff] }
 0x5c3   : > { %v14653_v12 = vadd.f32 %v16533_v31, %v2329_v30  ;;  %v2002_v15 = vadd.f32 %v16536_v1, %v1593_v27  ;;  %v2494_v30 = vadd.f32 %v16537_v63, %v13786_v5  ;;  %v10035_v5 = vld [vmem:[%s12603_s14 + $0x3f0] sm:$0xf]  ;;  %v11705_v10 = vld [vmem:[%s12603_s14 + $0x3f4] sm:$0xf0]  ;;  %5298 = vmatpush.bf16.msra.mxu0 %v11851_v56  ;;  %v10037_v27 = vld [vmem:[%s12603_s14 + $0x3f8] sm:$0xf0] }
 0x5c4   : > { %v14656_v29 = vadd.f32 %v4120_v45, %v2491_v61  ;;  %v16539_v61 = vld [vmem:[#allocation115_spill] sm:$0xff]  ;;  %v16544_v56 = vld [vmem:[#allocation118_spill] sm:$0xff] }
 0x5c5   : > { %3832 = vmatmul.bf16.gmra.mxu1 %v10028_v55  ;;  %v16538_v55 = vld [vmem:[#allocation250_spill] sm:$0xff] }
 0x5c6   : > { %16535 = vst [vmem:[#allocation32_spill] sm:$0xff] %v14656_v29  ;;  %10167 = vmatmul.msk.bf16.gmra.mxu3 %vm970_vm1, %v10032_v39  ;;  %v9035_v29 = vld [vmem:[%s12603_s14 + $0x1d8] sm:$0xf0] }
 0x5c8   : > { %v2330_v8 = vpop.f32.mrf.mxu2  ;;  %v1595_v21 = vpop.f32.mrf.mxu0 }
 0x5c9   : > { %v2331_v37 = vadd.f32 %v2330_v8, %v2002_v15  ;;  %v4122_v7 = vpop.f32.mrf.mxu3  ;;  %v1596_v45 = vadd.f32 %v1595_v21, %v16539_v61  ;;  %v16542_v21 = vld [vmem:[#allocation117_spill] sm:$0xff] }
 0x5ca   : > { %v4123_v25 = vadd.f32 %v4122_v7, %v3793_v16  ;;  %v3795_v13 = vpop.f32.mrf.mxu1  ;;  %v16541_v16 = vld [vmem:[#allocation116_spill] sm:$0xff]  ;;  %v10036_v7 = vor.u32 %v11705_v10, %v10035_v5  ;;  %v2496_v63 = vadd.f32 %v16542_v21, %v13794_v0  ;;  %v16546_v5 = vld [vmem:[#allocation119_spill] sm:$0xff] }
 0x5cb   : > { %v14667_v46 = vadd.f32 %v16538_v55, %v2331_v37  ;;  %9389 = vmatmul.msk.bf16.gmra.mxu0 %vm970_vm1, %v14662_v60  ;;  %v2005_v31 = vadd.f32 %v16541_v16, %v1596_v45  ;;  %v16543_v55 = vld [vmem:[#allocation251_spill] sm:$0xff] }
 0x5cc   : > { %v14670_v39 = vadd.f32 %v4123_v25, %v2494_v30 }
 0x5cd   : > { %9505 = vmatmul.msk.bf16.gmra.mxu2 %vm970_vm1, %v14600_v54  ;;  %v10040_v54 = vor.u32 %v11704_v6, %v10037_v27 }
 0x5ce   : > { %16540 = vst [vmem:[#allocation33_spill] sm:$0xff] %v14670_v39  ;;  %v11494_v39 = vld [vmem:[%s12603_s14 + $0x1d4] sm:$0xf] }
 0x5d0   : > { %v2333_v1 = vpop.f32.mrf.mxu2  ;;  %v1597_v37 = vpop.f32.mrf.mxu0 }
 0x5d1   : > { %v2334_v15 = vadd.f32 %v2333_v1, %v2005_v31  ;;  %v4124_v8 = vpop.f32.mrf.mxu3  ;;  %v1598_v45 = vadd.f32 %v1597_v37, %v16544_v56  ;;  %v16547_v1 = vld [vmem:[#allocation120_spill] sm:$0xff] }
 0x5d2   : > { %v4125_v30 = vadd.f32 %v4124_v8, %v3795_v13  ;;  %v3798_v25 = vpop.f32.mrf.mxu1  ;;  %v14696_v13 = vor.u32 %v11494_v39, %v9035_v29  ;;  %v10043_v29 = vld [vmem:[%s12603_s14 + $0x400] sm:$0xf]  ;;  %v11707_v39 = vld [vmem:[%s12603_s14 + $0x404] sm:$0xf0] }
 0x5d3   : > { %v14687_v61 = vadd.f32 %v16543_v55, %v2334_v15  ;;  %v2007_v10 = vadd.f32 %v16546_v5, %v1598_v45  ;;  %v2499_v15 = vadd.f32 %v16547_v1, %v13803_v53  ;;  %v16551_v55 = vld [vmem:[#allocation122_spill] sm:$0xff] }
 0x5d4   : > { %v14690_v16 = vadd.f32 %v4125_v30, %v2496_v63  ;;  %v16549_v63 = vld [vmem:[#allocation121_spill] sm:$0xff]  ;;  %v11706_v53 = vld [vmem:[%s12603_s14 + $0x404] sm:$0xf] }
 0x5d5   : > { %3837 = vmatmul.bf16.gmra.mxu1 %v10036_v7  ;;  %v16548_v7 = vld [vmem:[#allocation252_spill] sm:$0xff] }
 0x5d6   : > { %16545 = vst [vmem:[#allocation223_spill] sm:$0xff] %v14690_v16  ;;  %10168 = vmatmul.msk.bf16.gmra.mxu3 %vm970_vm1, %v10040_v54  ;;  %v9043_v16 = vld [vmem:[%s12603_s14 + $0x1e8] sm:$0xf0] }
 0x5d8   : > { %v2335_v0 = vpop.f32.mrf.mxu2  ;;  %v1600_v27 = vpop.f32.mrf.mxu0 }
 0x5d9   : > { %v2336_v31 = vadd.f32 %v2335_v0, %v2007_v10  ;;  %v4127_v6 = vpop.f32.mrf.mxu3  ;;  %v1601_v30 = vadd.f32 %v1600_v27, %v16549_v63  ;;  %v16555_v63 = vld [vmem:[#allocation124_spill] sm:$0xff] }
 0x5da   : > { %v4128_v8 = vadd.f32 %v4127_v6, %v3798_v25  ;;  %v3800_v37 = vpop.f32.mrf.mxu1  ;;  %v10045_v25 = vld [vmem:[%s12603_s14 + $0x408] sm:$0xf0] }
 0x5db   : > { %v14701_v21 = vadd.f32 %v16548_v7, %v2336_v31  ;;  %9390 = vmatmul.msk.bf16.gmra.mxu0 %vm970_vm1, %v14696_v13  ;;  %v2010_v56 = vadd.f32 %v16551_v55, %v1601_v30  ;;  %v10044_v31 = vor.u32 %v11707_v39, %v10043_v29  ;;  %v16552_v6 = vld [vmem:[#allocation123_spill] sm:$0xff]  ;;  %v16557_v29 = vld [vmem:[#allocation125_spill] sm:$0xff] }
 0x5dc   : > { %v14704_v54 = vadd.f32 %v4128_v8, %v2499_v15  ;;  %v2501_v27 = vadd.f32 %v16552_v6, %v13811_v34  ;;  %v10048_v8 = vor.u32 %v11706_v53, %v10045_v25  ;;  %v16560_v6 = vld [vmem:[#allocation254_spill] sm:$0xff] }
 0x5dd   : > { %9506 = vmatmul.msk.bf16.gmra.mxu2 %vm970_vm1, %v14631_v43  ;;  %v16553_v43 = vld [vmem:[#allocation253_spill] sm:$0xff] }
 0x5de   : > { %16550 = vst [vmem:[#allocation34_spill] sm:$0xff] %v14704_v54  ;;  %v11496_v54 = vld [vmem:[%s12603_s14 + $0x1e4] sm:$0xf] }
 0x5e0   : > { %v2338_v45 = vpop.f32.mrf.mxu2  ;;  %v1602_v0 = vpop.f32.mrf.mxu0 }
 0x5e1   : > { %v2339_v5 = vadd.f32 %v2338_v45, %v2010_v56  ;;  %v4129_v10 = vpop.f32.mrf.mxu3  ;;  %v1603_v30 = vadd.f32 %v1602_v0, %v16555_v63  ;;  %v16558_v45 = vld [vmem:[#allocation256_spill] sm:$0xff] }
 0x5e2   : > { %v4130_v1 = vadd.f32 %v4129_v10, %v3800_v37  ;;  %v3803_v15 = vpop.f32.mrf.mxu1  ;;  %v14727_v37 = vor.u32 %v11496_v54, %v9043_v16  ;;  %v10051_v16 = vld [vmem:[%s12603_s14 + $0x410] sm:$0xf]  ;;  %v11709_v54 = vld [vmem:[%s12603_s14 + $0x414] sm:$0xf0] }
 0x5e3   : > { %v14718_v7 = vadd.f32 %v16553_v43, %v2339_v5  ;;  %v2012_v39 = vadd.f32 %v16557_v29, %v1603_v30  ;;  %v16559_v5 = vld [vmem:[#allocation126_spill] sm:$0xff]  ;;  %v16564_v63 = vld [vmem:[#allocation128_spill] sm:$0xff] }
 0x5e4   : > { %v14721_v55 = vadd.f32 %v4130_v1, %v2501_v27  ;;  %v2504_v10 = vadd.f32 %v16559_v5, %v16558_v45  ;;  %v16562_v1 = vld [vmem:[#allocation127_spill] sm:$0xff]  ;;  %v11708_v29 = vld [vmem:[%s12603_s14 + $0x414] sm:$0xf]  ;;  %v10052_v45 = vor.u32 %v11709_v54, %v10051_v16  ;;  %v16566_v5 = vld [vmem:[#allocation129_spill] sm:$0xff] }
 0x5e5   : > { %16554 = vst [vmem:[#allocation35_spill] sm:$0xff] %v14718_v7  ;;  %3842 = vmatmul.bf16.gmra.mxu1 %v10044_v31 }
 0x5e6   : > { %16556 = vst [vmem:[#allocation36_spill] sm:$0xff] %v14721_v55  ;;  %10169 = vmatmul.msk.bf16.gmra.mxu3 %vm970_vm1, %v10048_v8 }
 0x5e8   : > { %v2340_v34 = vpop.f32.mrf.mxu2  ;;  %v1605_v25 = vpop.f32.mrf.mxu0 }
 0x5e9   : > { %v2341_v56 = vadd.f32 %v2340_v34, %v2012_v39  ;;  %v4132_v53 = vpop.f32.mrf.mxu3  ;;  %v1606_v8 = vadd.f32 %v1605_v25, %v16562_v1  ;;  %v16565_v25 = vld [vmem:[#allocation258_spill] sm:$0xff] }
 0x5ea   : > { %v4133_v0 = vadd.f32 %v4132_v53, %v3803_v15  ;;  %v3805_v31 = vpop.f32.mrf.mxu1  ;;  %v10053_v15 = vld [vmem:[%s12603_s14 + $0x418] sm:$0xf0] }
 0x5eb   : > { %v14732_v27 = vadd.f32 %v16560_v6, %v2341_v56  ;;  %9391 = vmatmul.msk.bf16.gmra.mxu0 %vm970_vm1, %v14727_v37  ;;  %v2015_v30 = vadd.f32 %v16564_v63, %v1606_v8  ;;  %v10056_v1 = vor.u32 %v11708_v29, %v10053_v15  ;;  %v16570_v8 = vld [vmem:[#allocation131_spill] sm:$0xff]  ;;  %v16571_v29 = vld [vmem:[#allocation260_spill] sm:$0xff] }
 0x5ec   : > { %v14735_v43 = vadd.f32 %v4133_v0, %v2504_v10  ;;  %v2506_v10 = vadd.f32 %v16566_v5, %v16565_v25 }
 0x5ed   : > { %16561 = vst [vmem:[#allocation224_spill] sm:$0xff] %v14732_v27  ;;  %9507 = vmatmul.msk.bf16.gmra.mxu2 %vm970_vm1, %v14662_v60  ;;  %v16568_v60 = vld [vmem:[#allocation130_spill] sm:$0xff] }
 0x5ee   : > { %16563 = vst [vmem:[#allocation37_spill] sm:$0xff] %v14735_v43  ;;  %v16567_v43 = vld [vmem:[#allocation255_spill] sm:$0xff] }
 0x5f0   : > { %v2343_v39 = vpop.f32.mrf.mxu2  ;;  %v1607_v53 = vpop.f32.mrf.mxu0 }
 0x5f1   : > { %v2344_v34 = vadd.f32 %v2343_v39, %v2015_v30  ;;  %v4134_v56 = vpop.f32.mrf.mxu3  ;;  %v1608_v27 = vadd.f32 %v1607_v53, %v16568_v60 }
 0x5f2   : > { %v4135_v0 = vadd.f32 %v4134_v56, %v3805_v31  ;;  %v3808_v6 = vpop.f32.mrf.mxu1  ;;  %v16573_v56 = vld [vmem:[#allocation257_spill] sm:$0xff] }
 0x5f3   : > { %v14749_v55 = vadd.f32 %v16567_v43, %v2344_v34  ;;  %v2017_v16 = vadd.f32 %v16570_v8, %v1608_v27  ;;  %v16572_v43 = vld [vmem:[#allocation132_spill] sm:$0xff]  ;;  %v10059_v27 = vld [vmem:[%s12603_s14 + $0x420] sm:$0xf]  ;;  %v11710_v8 = vld [vmem:[%s12603_s14 + $0x424] sm:$0xf] }
 0x5f4   : > { %v14752_v7 = vadd.f32 %v4135_v0, %v2506_v10  ;;  %v2509_v15 = vadd.f32 %v16572_v43, %v16571_v29  ;;  %v16577_v10 = vld [vmem:[#allocation2_spill] sm:$0xff]  ;;  %v11711_v0 = vld [vmem:[%s12603_s14 + $0x424] sm:$0xf0] }
 0x5f5   : > { %3847 = vmatmul.bf16.gmra.mxu1 %v10052_v45  ;;  %v16575_v45 = vld [vmem:[#allocation133_spill] sm:$0xff]  ;;  %v10060_v29 = vor.u32 %v11711_v0, %v10059_v27  ;;  %v16580_v43 = vld [vmem:[#allocation135_spill] sm:$0xff] }
 0x5f6   : > { %16569 = vst [vmem:[#allocation38_spill] sm:$0xff] %v14752_v7  ;;  %10170 = vmatmul.msk.bf16.gmra.mxu3 %vm970_vm1, %v10056_v1  ;;  %v16578_v1 = vld [vmem:[#allocation134_spill] sm:$0xff] }
 0x5f8   : > { %v2345_v54 = vpop.f32.mrf.mxu2  ;;  %v1610_v30 = vpop.f32.mrf.mxu0 }
 0x5f9   : > { %v2346_v31 = vadd.f32 %v2345_v54, %v2017_v16  ;;  %v4137_v63 = vpop.f32.mrf.mxu3  ;;  %v1611_v25 = vadd.f32 %v1610_v30, %v16575_v45  ;;  %v16579_v30 = vld [vmem:[#allocation262_spill] sm:$0xff] }
 0x5fa   : > { %v4138_v39 = vadd.f32 %v4137_v63, %v3808_v6  ;;  %v3810_v34 = vpop.f32.mrf.mxu1  ;;  %v10061_v6 = vld [vmem:[%s12603_s14 + $0x428] sm:$0xf0] }
 0x5fb   : > { %v14759_v53 = vadd.f32 %v16573_v56, %v2346_v31  ;;  %9392 = vmatmul.msk.bf16.gmra.mxu0 %vm970_vm1, %v16577_v10  ;;  %v2020_v60 = vadd.f32 %v16578_v1, %v1611_v25  ;;  %v10064_v45 = vor.u32 %v11710_v8, %v10061_v6  ;;  %v16581_v10 = vld [vmem:[#allocation259_spill] sm:$0xff]  ;;  %v16584_v25 = vld [vmem:[#allocation138_spill] sm:$0xff]  ;;  %v16585_v8 = vld [vmem:[#allocation137_spill] sm:$0xff] }
 0x5fc   : > { %v14762_v5 = vadd.f32 %v4138_v39, %v2509_v15  ;;  %v2511_v15 = vadd.f32 %v16580_v43, %v16579_v30  ;;  %v16586_v6 = vld [vmem:[#allocation139_spill] sm:$0xff] }
 0x5fd   : > { %16574 = vst [vmem:[#allocation39_spill] sm:$0xff] %v14759_v53  ;;  %9508 = vmatmul.msk.bf16.gmra.mxu2 %vm970_vm1, %v14696_v13  ;;  %v16582_v13 = vld [vmem:[#allocation136_spill] sm:$0xff] }
 0x5fe   : > { %16576 = vst [vmem:[#allocation225_spill] sm:$0xff] %v14762_v5 }
 0x600   : > { %v2348_v16 = vpop.f32.mrf.mxu2  ;;  %v1612_v63 = vpop.f32.mrf.mxu0 }
 0x601   : > { %v2349_v54 = vadd.f32 %v2348_v16, %v2020_v60  ;;  %v4139_v31 = vpop.f32.mrf.mxu3  ;;  %v1613_v7 = vadd.f32 %v1612_v63, %v16582_v13  ;;  %v2514_v16 = vadd.f32 %v16586_v6, %v16585_v8  ;;  %v16587_v63 = vld [vmem:[#allocation261_spill] sm:$0xff]  ;;  %v16594_v6 = vld [vmem:[#allocation143_spill] sm:$0xff] }
 0x602   : > { %v4140_v39 = vadd.f32 %v4139_v31, %v3810_v34  ;;  %v3813_v56 = vpop.f32.mrf.mxu1  ;;  %v16593_v8 = vld [vmem:[#allocation141_spill] sm:$0xff] }
 0x603   : > { %v14776_v5 = vadd.f32 %v16581_v10, %v2349_v54  ;;  %v2022_v27 = vadd.f32 %v16584_v25, %v1613_v7  ;;  %v10067_v7 = vld [vmem:[%s12603_s14 + $0x430] sm:$0xf]  ;;  %v16592_v10 = vld [vmem:[#allocation142_spill] sm:$0xff]  ;;  %v10069_v25 = vld [vmem:[%s12603_s14 + $0x438] sm:$0xf0] }
 0x604   : > { %v14779_v53 = vadd.f32 %v4140_v39, %v2511_v15  ;;  %v16591_v39 = vld [vmem:[#allocation3_spill] sm:$0xff] }
 0x605   : > { %3852 = vmatmul.bf16.gmra.mxu1 %v10060_v29  ;;  %v16589_v29 = vld [vmem:[#allocation140_spill] sm:$0xff] }
 0x606   : > { %16583 = vst [vmem:[#allocation40_spill] sm:$0xff] %v14779_v53  ;;  %10171 = vmatmul.msk.bf16.gmra.mxu3 %vm970_vm1, %v10064_v45  ;;  %v11713_v45 = vld [vmem:[%s12603_s14 + $0x434] sm:$0xf0]  ;;  %v10193_v53 = vld [vmem:[%s12603_s14 + $0x60] sm:$0xf] }
 0x608   : > { %v2350_v0 = vpop.f32.mrf.mxu2  ;;  %v1615_v60 = vpop.f32.mrf.mxu0 }
 0x609   : > { %v2351_v34 = vadd.f32 %v2350_v0, %v2022_v27  ;;  %v4142_v1 = vpop.f32.mrf.mxu3  ;;  %v1616_v43 = vadd.f32 %v1615_v60, %v16589_v29  ;;  %v10068_v60 = vor.u32 %v11713_v45, %v10067_v7  ;;  %v16595_v29 = vld [vmem:[#allocation263_spill] sm:$0xff]  ;;  %v16599_v45 = vld [vmem:[#allocation146_spill] sm:$0xff] }
 0x60a   : > { %v4143_v54 = vadd.f32 %v4142_v1, %v3813_v56  ;;  %v3815_v31 = vpop.f32.mrf.mxu1  ;;  %v11712_v56 = vld [vmem:[%s12603_s14 + $0x434] sm:$0xf]  ;;  %v10195_v7 = vld [vmem:[%s12603_s14 + $0x68] sm:$0xf0] }
 0x60b   : > { %v14786_v30 = vadd.f32 %v16587_v63, %v2351_v34  ;;  %9393 = vmatmul.msk.bf16.gmra.mxu0 %vm970_vm1, %v16591_v39  ;;  %v2025_v13 = vadd.f32 %v16592_v10, %v1616_v43  ;;  %v10072_v63 = vor.u32 %v11712_v56, %v10069_v25  ;;  %v16597_v43 = vld [vmem:[#allocation144_spill] sm:$0xff] }
 0x60c   : > { %v14789_v15 = vadd.f32 %v4143_v54, %v2514_v16  ;;  %v2516_v16 = vadd.f32 %v16594_v6, %v16593_v8  ;;  %v16600_v6 = vld [vmem:[#allocation145_spill] sm:$0xff] }
 0x60d   : > { %16588 = vst [vmem:[#allocation41_spill] sm:$0xff] %v14786_v30  ;;  %9509 = vmatmul.msk.bf16.gmra.mxu2 %vm970_vm1, %v14727_v37 }
 0x60e   : > { %16590 = vst [vmem:[#allocation42_spill] sm:$0xff] %v14789_v15 }
 0x610   : > { %v2353_v27 = vpop.f32.mrf.mxu2  ;;  %v1617_v1 = vpop.f32.mrf.mxu0 }
 0x611   : > { %v2354_v0 = vadd.f32 %v2353_v27, %v2025_v13  ;;  %v4144_v34 = vpop.f32.mrf.mxu3  ;;  %v1618_v10 = vadd.f32 %v1617_v1, %v16597_v43  ;;  %v11724_v13 = vld [vmem:[%s12603_s14 + $0x64] sm:$0xf0]  ;;  %v11723_v27 = vld [vmem:[%s12603_s14 + $0x64] sm:$0xf] }
 0x612   : > { %v4145_v54 = vadd.f32 %v4144_v34, %v3815_v31  ;;  %v3818_v37 = vpop.f32.mrf.mxu1  ;;  %v10194_v56 = vor.u32 %v11724_v13, %v10193_v53  ;;  %v10198_v1 = vor.u32 %v11723_v27, %v10195_v7  ;;  %v10823_v53 = vld [vmem:[%s12603_s14 + $0x80] sm:$0xf]  ;;  %v11861_v13 = vld [vmem:[%s12603_s14 + $0x84] sm:$0xf0]  ;;  %v11860_v27 = vld [vmem:[%s12603_s14 + $0x84] sm:$0xf] }
 0x613   : > { %v14803_v39 = vadd.f32 %v16595_v29, %v2354_v0  ;;  %v2027_v8 = vadd.f32 %v16599_v45, %v1618_v10  ;;  %v16606_v45 = vld [vmem:[#allocation150_spill] sm:$0xff]  ;;  %v10825_v7 = vld [vmem:[%s12603_s14 + $0x88] sm:$0xf0] }
 0x614   : > { %v14806_v15 = vadd.f32 %v4145_v54, %v2516_v16 }
 0x615   : > { %16596 = vst [vmem:[#allocation226_spill] sm:$0xff] %v14803_v39  ;;  %3857 = vmatmul.bf16.gmra.mxu1 %v10068_v60  ;;  %v16601_v60 = vld [vmem:[#allocation147_spill] sm:$0xff] }
 0x616   : > { %16598 = vst [vmem:[#allocation43_spill] sm:$0xff] %v14806_v15  ;;  %10172 = vmatmul.msk.bf16.gmra.mxu3 %vm970_vm1, %v10072_v63  ;;  %v2519_v16 = vadd.f32 %v16601_v60, %v16600_v6  ;;  %v16602_v63 = vld [vmem:[#allocation264_spill] sm:$0xff]  ;;  %v16608_v6 = vld [vmem:[#allocation151_spill] sm:$0xff] }
 0x617   : > { %v16604_v15 = vld [vmem:[#allocation148_spill] sm:$0xff] }
 0x618   : > { %v2355_v31 = vpop.f32.mrf.mxu2  ;;  %v1620_v34 = vpop.f32.mrf.mxu0 }
 0x619   : > { %v2356_v25 = vadd.f32 %v2355_v31, %v2027_v8  ;;  %v4147_v0 = vpop.f32.mrf.mxu3  ;;  %v1621_v39 = vadd.f32 %v1620_v34, %v16604_v15  ;;  %v10824_v15 = vor.u32 %v11861_v13, %v10823_v53  ;;  %v16607_v34 = vld [vmem:[#allocation149_spill] sm:$0xff]  ;;  %v16613_v13 = vld [vmem:[#allocation154_spill] sm:$0xff] }
 0x61a   : > { %v4148_v54 = vadd.f32 %v4147_v0, %v3818_v37  ;;  %v3820_v29 = vpop.f32.mrf.mxu1  ;;  %v10203_v53 = vld [vmem:[%s12603_s14 + $0x78] sm:$0xf0] }
 0x61b   : > { %v14817_v43 = vadd.f32 %v16602_v63, %v2356_v25  ;;  %5299 = vmatmul.bf16.vlgmr.msra.gmra.mxu0 %v10194_v56  ;;  %v2030_v8 = vadd.f32 %v16606_v45, %v1621_v39  ;;  %v2521_v56 = vadd.f32 %v16608_v6, %v16607_v34  ;;  %v16611_v39 = vld [vmem:[#allocation152_spill] sm:$0xff]  ;;  %v16614_v6 = vld [vmem:[#allocation153_spill] sm:$0xff] }
 0x61c   : > { %v14820_v10 = vadd.f32 %v4148_v54, %v2519_v16  ;;  %v10828_v16 = vor.u32 %v11860_v27, %v10825_v7  ;;  %v16609_v54 = vld [vmem:[#allocation265_spill] sm:$0xff] }
 0x61d   : > { %16603 = vst [vmem:[#allocation44_spill] sm:$0xff] %v14817_v43  ;;  %10739 = vmatmul.msk.bf16.vlgmr.msra.gmra.mxu2 %vm970_vm1, %v10198_v1  ;;  %v10201_v43 = vld [vmem:[%s12603_s14 + $0x70] sm:$0xf] }
 0x61e   : > { %16605 = vst [vmem:[#allocation45_spill] sm:$0xff] %v14820_v10 }
 0x620   : > { %v2358_v37 = vpop.f32.mrf.mxu2  ;;  %v1622_v0 = vpop.f32.mrf.mxu0 }
 0x621   : > { %v2359_v31 = vadd.f32 %v2358_v37, %v2030_v8  ;;  %v4149_v25 = vpop.f32.mrf.mxu3  ;;  %v1623_v45 = vadd.f32 %v1622_v0, %v16611_v39  ;;  %v11726_v8 = vld [vmem:[%s12603_s14 + $0x74] sm:$0xf0]  ;;  %v11725_v37 = vld [vmem:[%s12603_s14 + $0x74] sm:$0xf] }
 0x622   : > { %v4150_v60 = vadd.f32 %v4149_v25, %v3820_v29  ;;  %v3823_v1 = vpop.f32.mrf.mxu1  ;;  %v10202_v27 = vor.u32 %v11726_v8, %v10201_v43  ;;  %v10206_v0 = vor.u32 %v11725_v37, %v10203_v53  ;;  %v10831_v43 = vld [vmem:[%s12603_s14 + $0x90] sm:$0xf]  ;;  %v11863_v8 = vld [vmem:[%s12603_s14 + $0x94] sm:$0xf0]  ;;  %v11862_v37 = vld [vmem:[%s12603_s14 + $0x94] sm:$0xf] }
 0x623   : > { %v14831_v63 = vadd.f32 %v16609_v54, %v2359_v31  ;;  %v2032_v34 = vadd.f32 %v16613_v13, %v1623_v45  ;;  %v16620_v13 = vld [vmem:[#allocation158_spill] sm:$0xff]  ;;  %v10833_v53 = vld [vmem:[%s12603_s14 + $0x98] sm:$0xf0] }
 0x624   : > { %v14834_v10 = vadd.f32 %v4150_v60, %v2521_v56 }
 0x625   : > { %16610 = vst [vmem:[#allocation227_spill] sm:$0xff] %v14831_v63  ;;  %7056 = vmatmul.bf16.vlgmr.msra.gmra.mxu1 %v10824_v15  ;;  %v16615_v15 = vld [vmem:[#allocation155_spill] sm:$0xff] }
 0x626   : > { %16612 = vst [vmem:[#allocation46_spill] sm:$0xff] %v14834_v10  ;;  %11369 = vmatmul.msk.bf16.vlgmr.msra.gmra.mxu3 %vm970_vm1, %v10828_v16  ;;  %v2524_v56 = vadd.f32 %v16615_v15, %v16614_v6  ;;  %v16616_v16 = vld [vmem:[#allocation266_spill] sm:$0xff]  ;;  %v16618_v10 = vld [vmem:[#allocation156_spill] sm:$0xff]  ;;  %v16622_v6 = vld [vmem:[#allocation159_spill] sm:$0xff] }
 0x628   : > { %v2360_v29 = vpop.f32.mrf.mxu2  ;;  %v1625_v25 = vpop.f32.mrf.mxu0 }
 0x629   : > { %v2361_v7 = vadd.f32 %v2360_v29, %v2032_v34  ;;  %v4152_v31 = vpop.f32.mrf.mxu3  ;;  %v1626_v63 = vadd.f32 %v1625_v25, %v16618_v10  ;;  %v10832_v10 = vor.u32 %v11863_v8, %v10831_v43  ;;  %v16621_v25 = vld [vmem:[#allocation157_spill] sm:$0xff]  ;;  %v10211_v43 = vld [vmem:[%s12603_s14 + $0x88] sm:$0xf0]  ;;  %v16627_v8 = vld [vmem:[#allocation162_spill] sm:$0xff] }
 0x62a   : > { %v4153_v60 = vadd.f32 %v4152_v31, %v3823_v1  ;;  %v3825_v54 = vpop.f32.mrf.mxu1 }
 0x62b   : > { %v14845_v39 = vadd.f32 %v16616_v16, %v2361_v7  ;;  %5304 = vmatmul.bf16.gmra.mxu0 %v10202_v27  ;;  %v2035_v34 = vadd.f32 %v16620_v13, %v1626_v63  ;;  %v2526_v27 = vadd.f32 %v16622_v6, %v16621_v25  ;;  %v16625_v63 = vld [vmem:[#allocation160_spill] sm:$0xff]  ;;  %v16628_v6 = vld [vmem:[#allocation161_spill] sm:$0xff] }
 0x62c   : > { %v14848_v45 = vadd.f32 %v4153_v60, %v2524_v56  ;;  %v10836_v56 = vor.u32 %v11862_v37, %v10833_v53  ;;  %v16623_v60 = vld [vmem:[#allocation267_spill] sm:$0xff] }
 0x62d   : > { %16617 = vst [vmem:[#allocation47_spill] sm:$0xff] %v14845_v39  ;;  %10740 = vmatmul.msk.bf16.gmra.mxu2 %vm970_vm1, %v10206_v0  ;;  %v10209_v39 = vld [vmem:[%s12603_s14 + $0x80] sm:$0xf] }
 0x62e   : > { %16619 = vst [vmem:[#allocation48_spill] sm:$0xff] %v14848_v45 }
 0x630   : > { %v2363_v1 = vpop.f32.mrf.mxu2  ;;  %v1627_v31 = vpop.f32.mrf.mxu0 }
 0x631   : > { %v2364_v29 = vadd.f32 %v2363_v1, %v2035_v34  ;;  %v4154_v7 = vpop.f32.mrf.mxu3  ;;  %v1628_v13 = vadd.f32 %v1627_v31, %v16625_v63  ;;  %v11728_v34 = vld [vmem:[%s12603_s14 + $0x84] sm:$0xf0]  ;;  %v11727_v1 = vld [vmem:[%s12603_s14 + $0x84] sm:$0xf] }
 0x632   : > { %v4155_v15 = vadd.f32 %v4154_v7, %v3825_v54  ;;  %v3828_v0 = vpop.f32.mrf.mxu1  ;;  %v10210_v37 = vor.u32 %v11728_v34, %v10209_v39  ;;  %v10214_v31 = vor.u32 %v11727_v1, %v10211_v43  ;;  %v10839_v39 = vld [vmem:[%s12603_s14 + $0xa0] sm:$0xf]  ;;  %v11865_v34 = vld [vmem:[%s12603_s14 + $0xa4] sm:$0xf0]  ;;  %v11864_v1 = vld [vmem:[%s12603_s14 + $0xa4] sm:$0xf] }
 0x633   : > { %v14859_v16 = vadd.f32 %v16623_v60, %v2364_v29  ;;  %v2037_v25 = vadd.f32 %v16627_v8, %v1628_v13  ;;  %v16634_v8 = vld [vmem:[#allocation166_spill] sm:$0xff]  ;;  %v10841_v43 = vld [vmem:[%s12603_s14 + $0xa8] sm:$0xf0] }
 0x634   : > { %v14862_v45 = vadd.f32 %v4155_v15, %v2526_v27 }
 0x635   : > { %16624 = vst [vmem:[#allocation228_spill] sm:$0xff] %v14859_v16  ;;  %7061 = vmatmul.bf16.gmra.mxu1 %v10832_v10  ;;  %v16629_v10 = vld [vmem:[#allocation163_spill] sm:$0xff] }
 0x636   : > { %16626 = vst [vmem:[#allocation49_spill] sm:$0xff] %v14862_v45  ;;  %11370 = vmatmul.msk.bf16.gmra.mxu3 %vm970_vm1, %v10836_v56  ;;  %v2529_v27 = vadd.f32 %v16629_v10, %v16628_v6  ;;  %v16630_v56 = vld [vmem:[#allocation268_spill] sm:$0xff]  ;;  %v16636_v6 = vld [vmem:[#allocation167_spill] sm:$0xff] }
 0x637   : > { %v16632_v45 = vld [vmem:[#allocation164_spill] sm:$0xff] }
 0x638   : > { %v2365_v54 = vpop.f32.mrf.mxu2  ;;  %v1630_v7 = vpop.f32.mrf.mxu0 }
 0x639   : > { %v2366_v53 = vadd.f32 %v2365_v54, %v2037_v25  ;;  %v4157_v29 = vpop.f32.mrf.mxu3  ;;  %v1631_v16 = vadd.f32 %v1630_v7, %v16632_v45  ;;  %v10840_v45 = vor.u32 %v11865_v34, %v10839_v39  ;;  %v16635_v7 = vld [vmem:[#allocation165_spill] sm:$0xff]  ;;  %v16641_v34 = vld [vmem:[#allocation170_spill] sm:$0xff] }
 0x63a   : > { %v4158_v15 = vadd.f32 %v4157_v29, %v3828_v0  ;;  %v3830_v60 = vpop.f32.mrf.mxu1  ;;  %v10219_v39 = vld [vmem:[%s12603_s14 + $0x98] sm:$0xf0] }
 0x63b   : > { %v14873_v63 = vadd.f32 %v16630_v56, %v2366_v53  ;;  %5309 = vmatmul.bf16.gmra.mxu0 %v10210_v37  ;;  %v2040_v25 = vadd.f32 %v16634_v8, %v1631_v16  ;;  %v2531_v37 = vadd.f32 %v16636_v6, %v16635_v7  ;;  %v16639_v16 = vld [vmem:[#allocation168_spill] sm:$0xff]  ;;  %v16642_v6 = vld [vmem:[#allocation169_spill] sm:$0xff] }
 0x63c   : > { %v14876_v13 = vadd.f32 %v4158_v15, %v2529_v27  ;;  %v10844_v27 = vor.u32 %v11864_v1, %v10841_v43  ;;  %v16637_v15 = vld [vmem:[#allocation269_spill] sm:$0xff] }
 0x63d   : > { %16631 = vst [vmem:[#allocation50_spill] sm:$0xff] %v14873_v63  ;;  %10741 = vmatmul.msk.bf16.gmra.mxu2 %vm970_vm1, %v10214_v31  ;;  %v10217_v63 = vld [vmem:[%s12603_s14 + $0x90] sm:$0xf] }
 0x63e   : > { %16633 = vst [vmem:[#allocation51_spill] sm:$0xff] %v14876_v13 }
 0x640   : > { %v2368_v0 = vpop.f32.mrf.mxu2  ;;  %v1632_v29 = vpop.f32.mrf.mxu0 }
 0x641   : > { %v2369_v54 = vadd.f32 %v2368_v0, %v2040_v25  ;;  %v4159_v53 = vpop.f32.mrf.mxu3  ;;  %v1633_v8 = vadd.f32 %v1632_v29, %v16639_v16  ;;  %v11730_v25 = vld [vmem:[%s12603_s14 + $0x94] sm:$0xf0]  ;;  %v11729_v0 = vld [vmem:[%s12603_s14 + $0x94] sm:$0xf] }
 0x642   : > { %v4160_v10 = vadd.f32 %v4159_v53, %v3830_v60  ;;  %v3833_v31 = vpop.f32.mrf.mxu1  ;;  %v10218_v1 = vor.u32 %v11730_v25, %v10217_v63  ;;  %v10222_v29 = vor.u32 %v11729_v0, %v10219_v39  ;;  %v10847_v63 = vld [vmem:[%s12603_s14 + $0xb0] sm:$0xf]  ;;  %v11867_v25 = vld [vmem:[%s12603_s14 + $0xb4] sm:$0xf0]  ;;  %v11866_v0 = vld [vmem:[%s12603_s14 + $0xb4] sm:$0xf] }
 0x643   : > { %v14887_v56 = vadd.f32 %v16637_v15, %v2369_v54  ;;  %v2042_v7 = vadd.f32 %v16641_v34, %v1633_v8  ;;  %v16648_v34 = vld [vmem:[#allocation174_spill] sm:$0xff]  ;;  %v10849_v39 = vld [vmem:[%s12603_s14 + $0xb8] sm:$0xf0] }
 0x644   : > { %v14890_v13 = vadd.f32 %v4160_v10, %v2531_v37 }
 0x645   : > { %16638 = vst [vmem:[#allocation229_spill] sm:$0xff] %v14887_v56  ;;  %7066 = vmatmul.bf16.gmra.mxu1 %v10840_v45  ;;  %v16643_v45 = vld [vmem:[#allocation171_spill] sm:$0xff] }
 0x646   : > { %16640 = vst [vmem:[#allocation52_spill] sm:$0xff] %v14890_v13  ;;  %11371 = vmatmul.msk.bf16.gmra.mxu3 %vm970_vm1, %v10844_v27  ;;  %v2534_v37 = vadd.f32 %v16643_v45, %v16642_v6  ;;  %v16644_v27 = vld [vmem:[#allocation270_spill] sm:$0xff]  ;;  %v16646_v13 = vld [vmem:[#allocation172_spill] sm:$0xff]  ;;  %v16650_v6 = vld [vmem:[#allocation175_spill] sm:$0xff] }
 0x648   : > { %v2370_v60 = vpop.f32.mrf.mxu2  ;;  %v1635_v53 = vpop.f32.mrf.mxu0 }
 0x649   : > { %v2371_v43 = vadd.f32 %v2370_v60, %v2042_v7  ;;  %v4162_v54 = vpop.f32.mrf.mxu3  ;;  %v1636_v56 = vadd.f32 %v1635_v53, %v16646_v13  ;;  %v10848_v13 = vor.u32 %v11867_v25, %v10847_v63  ;;  %v16649_v53 = vld [vmem:[#allocation173_spill] sm:$0xff]  ;;  %v10227_v63 = vld [vmem:[%s12603_s14 + $0xa8] sm:$0xf0]  ;;  %v16655_v25 = vld [vmem:[#allocation178_spill] sm:$0xff] }
 0x64a   : > { %v4163_v10 = vadd.f32 %v4162_v54, %v3833_v31  ;;  %v3835_v15 = vpop.f32.mrf.mxu1 }
 0x64b   : > { %v14901_v16 = vadd.f32 %v16644_v27, %v2371_v43  ;;  %5314 = vmatmul.bf16.gmra.mxu0 %v10218_v1  ;;  %v2045_v7 = vadd.f32 %v16648_v34, %v1636_v56  ;;  %v2536_v1 = vadd.f32 %v16650_v6, %v16649_v53  ;;  %v16653_v56 = vld [vmem:[#allocation176_spill] sm:$0xff]  ;;  %v16656_v6 = vld [vmem:[#allocation177_spill] sm:$0xff] }
 0x64c   : > { %v14904_v8 = vadd.f32 %v4163_v10, %v2534_v37  ;;  %v10852_v37 = vor.u32 %v11866_v0, %v10849_v39  ;;  %v16651_v10 = vld [vmem:[#allocation271_spill] sm:$0xff] }
 0x64d   : > { %16645 = vst [vmem:[#allocation53_spill] sm:$0xff] %v14901_v16  ;;  %10742 = vmatmul.msk.bf16.gmra.mxu2 %vm970_vm1, %v10222_v29  ;;  %v10225_v16 = vld [vmem:[%s12603_s14 + $0xa0] sm:$0xf] }
 0x64e   : > { %16647 = vst [vmem:[#allocation54_spill] sm:$0xff] %v14904_v8 }
 0x650   : > { %v2373_v31 = vpop.f32.mrf.mxu2  ;;  %v1637_v54 = vpop.f32.mrf.mxu0 }
 0x651   : > { %v2374_v60 = vadd.f32 %v2373_v31, %v2045_v7  ;;  %v4164_v43 = vpop.f32.mrf.mxu3  ;;  %v1638_v34 = vadd.f32 %v1637_v54, %v16653_v56  ;;  %v11732_v7 = vld [vmem:[%s12603_s14 + $0xa4] sm:$0xf0]  ;;  %v11731_v31 = vld [vmem:[%s12603_s14 + $0xa4] sm:$0xf] }
 0x652   : > { %v4165_v45 = vadd.f32 %v4164_v43, %v3835_v15  ;;  %v3838_v29 = vpop.f32.mrf.mxu1  ;;  %v10226_v0 = vor.u32 %v11732_v7, %v10225_v16  ;;  %v10230_v54 = vor.u32 %v11731_v31, %v10227_v63  ;;  %v10855_v16 = vld [vmem:[%s12603_s14 + $0xc0] sm:$0xf]  ;;  %v11869_v7 = vld [vmem:[%s12603_s14 + $0xc4] sm:$0xf0]  ;;  %v11868_v31 = vld [vmem:[%s12603_s14 + $0xc4] sm:$0xf] }
 0x653   : > { %v14915_v27 = vadd.f32 %v16651_v10, %v2374_v60  ;;  %v2047_v53 = vadd.f32 %v16655_v25, %v1638_v34  ;;  %v16662_v25 = vld [vmem:[#allocation182_spill] sm:$0xff]  ;;  %v10857_v63 = vld [vmem:[%s12603_s14 + $0xc8] sm:$0xf0] }
 0x654   : > { %v14918_v8 = vadd.f32 %v4165_v45, %v2536_v1 }
 0x655   : > { %16652 = vst [vmem:[#allocation230_spill] sm:$0xff] %v14915_v27  ;;  %7071 = vmatmul.bf16.gmra.mxu1 %v10848_v13  ;;  %v16657_v13 = vld [vmem:[#allocation179_spill] sm:$0xff] }
 0x656   : > { %16654 = vst [vmem:[#allocation55_spill] sm:$0xff] %v14918_v8  ;;  %11372 = vmatmul.msk.bf16.gmra.mxu3 %vm970_vm1, %v10852_v37  ;;  %v2539_v1 = vadd.f32 %v16657_v13, %v16656_v6  ;;  %v16658_v37 = vld [vmem:[#allocation272_spill] sm:$0xff]  ;;  %v16664_v6 = vld [vmem:[#allocation183_spill] sm:$0xff] }
 0x657   : > { %v16660_v8 = vld [vmem:[#allocation180_spill] sm:$0xff] }
 0x658   : > { %v2375_v15 = vpop.f32.mrf.mxu2  ;;  %v1640_v43 = vpop.f32.mrf.mxu0 }
 0x659   : > { %v2376_v39 = vadd.f32 %v2375_v15, %v2047_v53  ;;  %v4167_v60 = vpop.f32.mrf.mxu3  ;;  %v1641_v27 = vadd.f32 %v1640_v43, %v16660_v8  ;;  %v10856_v8 = vor.u32 %v11869_v7, %v10855_v16  ;;  %v16663_v43 = vld [vmem:[#allocation181_spill] sm:$0xff]  ;;  %v16669_v7 = vld [vmem:[#allocation186_spill] sm:$0xff] }
 0x65a   : > { %v4168_v45 = vadd.f32 %v4167_v60, %v3838_v29  ;;  %v3840_v10 = vpop.f32.mrf.mxu1  ;;  %v10235_v16 = vld [vmem:[%s12603_s14 + $0xb8] sm:$0xf0] }
 0x65b   : > { %v14929_v56 = vadd.f32 %v16658_v37, %v2376_v39  ;;  %5319 = vmatmul.bf16.gmra.mxu0 %v10226_v0  ;;  %v2050_v53 = vadd.f32 %v16662_v25, %v1641_v27  ;;  %v2541_v0 = vadd.f32 %v16664_v6, %v16663_v43  ;;  %v16667_v27 = vld [vmem:[#allocation184_spill] sm:$0xff]  ;;  %v16670_v6 = vld [vmem:[#allocation185_spill] sm:$0xff] }
 0x65c   : > { %v14932_v34 = vadd.f32 %v4168_v45, %v2539_v1  ;;  %v10860_v1 = vor.u32 %v11868_v31, %v10857_v63  ;;  %v16665_v45 = vld [vmem:[#allocation273_spill] sm:$0xff] }
 0x65d   : > { %16659 = vst [vmem:[#allocation56_spill] sm:$0xff] %v14929_v56  ;;  %10743 = vmatmul.msk.bf16.gmra.mxu2 %vm970_vm1, %v10230_v54  ;;  %v10233_v56 = vld [vmem:[%s12603_s14 + $0xb0] sm:$0xf] }
 0x65e   : > { %16661 = vst [vmem:[#allocation57_spill] sm:$0xff] %v14932_v34 }
 0x660   : > { %v2378_v29 = vpop.f32.mrf.mxu2  ;;  %v1642_v60 = vpop.f32.mrf.mxu0 }
 0x661   : > { %v2379_v15 = vadd.f32 %v2378_v29, %v2050_v53  ;;  %v4169_v39 = vpop.f32.mrf.mxu3  ;;  %v1643_v25 = vadd.f32 %v1642_v60, %v16667_v27  ;;  %v11734_v53 = vld [vmem:[%s12603_s14 + $0xb4] sm:$0xf0]  ;;  %v11733_v29 = vld [vmem:[%s12603_s14 + $0xb4] sm:$0xf] }
 0x662   : > { %v4170_v13 = vadd.f32 %v4169_v39, %v3840_v10  ;;  %v3843_v54 = vpop.f32.mrf.mxu1  ;;  %v10234_v31 = vor.u32 %v11734_v53, %v10233_v56  ;;  %v10238_v60 = vor.u32 %v11733_v29, %v10235_v16  ;;  %v10863_v56 = vld [vmem:[%s12603_s14 + $0xd0] sm:$0xf]  ;;  %v11871_v53 = vld [vmem:[%s12603_s14 + $0xd4] sm:$0xf0]  ;;  %v11870_v29 = vld [vmem:[%s12603_s14 + $0xd4] sm:$0xf] }
 0x663   : > { %v14943_v37 = vadd.f32 %v16665_v45, %v2379_v15  ;;  %v2052_v43 = vadd.f32 %v16669_v7, %v1643_v25  ;;  %v16676_v7 = vld [vmem:[#allocation190_spill] sm:$0xff]  ;;  %v10865_v16 = vld [vmem:[%s12603_s14 + $0xd8] sm:$0xf0] }
 0x664   : > { %v14946_v34 = vadd.f32 %v4170_v13, %v2541_v0 }
 0x665   : > { %16666 = vst [vmem:[#allocation231_spill] sm:$0xff] %v14943_v37  ;;  %7076 = vmatmul.bf16.gmra.mxu1 %v10856_v8  ;;  %v16671_v8 = vld [vmem:[#allocation187_spill] sm:$0xff] }
 0x666   : > { %16668 = vst [vmem:[#allocation58_spill] sm:$0xff] %v14946_v34  ;;  %11373 = vmatmul.msk.bf16.gmra.mxu3 %vm970_vm1, %v10860_v1  ;;  %v2544_v0 = vadd.f32 %v16671_v8, %v16670_v6  ;;  %v16672_v1 = vld [vmem:[#allocation274_spill] sm:$0xff]  ;;  %v16674_v34 = vld [vmem:[#allocation188_spill] sm:$0xff]  ;;  %v16678_v6 = vld [vmem:[#allocation191_spill] sm:$0xff] }
 0x668   : > { %v2380_v10 = vpop.f32.mrf.mxu2  ;;  %v1645_v39 = vpop.f32.mrf.mxu0 }
 0x669   : > { %v2381_v63 = vadd.f32 %v2380_v10, %v2052_v43  ;;  %v4172_v15 = vpop.f32.mrf.mxu3  ;;  %v1646_v37 = vadd.f32 %v1645_v39, %v16674_v34  ;;  %v10864_v34 = vor.u32 %v11871_v53, %v10863_v56  ;;  %v16677_v39 = vld [vmem:[#allocation189_spill] sm:$0xff]  ;;  %v10243_v56 = vld [vmem:[%s12603_s14 + $0xc8] sm:$0xf0]  ;;  %v16683_v53 = vld [vmem:[#allocation194_spill] sm:$0xff] }
 0x66a   : > { %v4173_v13 = vadd.f32 %v4172_v15, %v3843_v54  ;;  %v3845_v45 = vpop.f32.mrf.mxu1 }
 0x66b   : > { %v14957_v27 = vadd.f32 %v16672_v1, %v2381_v63  ;;  %5324 = vmatmul.bf16.gmra.mxu0 %v10234_v31  ;;  %v2055_v43 = vadd.f32 %v16676_v7, %v1646_v37  ;;  %v2546_v31 = vadd.f32 %v16678_v6, %v16677_v39  ;;  %v16681_v37 = vld [vmem:[#allocation192_spill] sm:$0xff]  ;;  %v16684_v6 = vld [vmem:[#allocation193_spill] sm:$0xff] }
 0x66c   : > { %v14960_v25 = vadd.f32 %v4173_v13, %v2544_v0  ;;  %v10868_v0 = vor.u32 %v11870_v29, %v10865_v16  ;;  %v16679_v13 = vld [vmem:[#allocation275_spill] sm:$0xff] }
 0x66d   : > { %16673 = vst [vmem:[#allocation59_spill] sm:$0xff] %v14957_v27  ;;  %10744 = vmatmul.msk.bf16.gmra.mxu2 %vm970_vm1, %v10238_v60  ;;  %v10241_v27 = vld [vmem:[%s12603_s14 + $0xc0] sm:$0xf] }
 0x66e   : > { %16675 = vst [vmem:[#allocation60_spill] sm:$0xff] %v14960_v25 }
 0x670   : > { %v2383_v54 = vpop.f32.mrf.mxu2  ;;  %v1647_v15 = vpop.f32.mrf.mxu0 }
 0x671   : > { %v2384_v10 = vadd.f32 %v2383_v54, %v2055_v43  ;;  %v4174_v63 = vpop.f32.mrf.mxu3  ;;  %v1648_v7 = vadd.f32 %v1647_v15, %v16681_v37  ;;  %v11736_v43 = vld [vmem:[%s12603_s14 + $0xc4] sm:$0xf0]  ;;  %v11735_v54 = vld [vmem:[%s12603_s14 + $0xc4] sm:$0xf] }
 0x672   : > { %v4175_v8 = vadd.f32 %v4174_v63, %v3845_v45  ;;  %v3848_v60 = vpop.f32.mrf.mxu1  ;;  %v10242_v29 = vor.u32 %v11736_v43, %v10241_v27  ;;  %v10246_v15 = vor.u32 %v11735_v54, %v10243_v56  ;;  %v10871_v27 = vld [vmem:[%s12603_s14 + $0xe0] sm:$0xf]  ;;  %v11873_v43 = vld [vmem:[%s12603_s14 + $0xe4] sm:$0xf0]  ;;  %v11872_v54 = vld [vmem:[%s12603_s14 + $0xe4] sm:$0xf] }
 0x673   : > { %v14971_v1 = vadd.f32 %v16679_v13, %v2384_v10  ;;  %v2057_v39 = vadd.f32 %v16683_v53, %v1648_v7  ;;  %v16690_v53 = vld [vmem:[#allocation198_spill] sm:$0xff]  ;;  %v10873_v56 = vld [vmem:[%s12603_s14 + $0xe8] sm:$0xf0] }
 0x674   : > { %v14974_v25 = vadd.f32 %v4175_v8, %v2546_v31 }
 0x675   : > { %16680 = vst [vmem:[#allocation232_spill] sm:$0xff] %v14971_v1  ;;  %7081 = vmatmul.bf16.gmra.mxu1 %v10864_v34  ;;  %v16685_v34 = vld [vmem:[#allocation195_spill] sm:$0xff] }
 0x676   : > { %16682 = vst [vmem:[#allocation61_spill] sm:$0xff] %v14974_v25  ;;  %11374 = vmatmul.msk.bf16.gmra.mxu3 %vm970_vm1, %v10868_v0  ;;  %v2549_v31 = vadd.f32 %v16685_v34, %v16684_v6  ;;  %v16686_v0 = vld [vmem:[#allocation276_spill] sm:$0xff]  ;;  %v16692_v6 = vld [vmem:[#allocation199_spill] sm:$0xff] }
 0x677   : > { %v16688_v25 = vld [vmem:[#allocation196_spill] sm:$0xff] }
 0x678   : > { %v2385_v45 = vpop.f32.mrf.mxu2  ;;  %v1650_v63 = vpop.f32.mrf.mxu0 }
 0x679   : > { %v2386_v16 = vadd.f32 %v2385_v45, %v2057_v39  ;;  %v4177_v10 = vpop.f32.mrf.mxu3  ;;  %v1651_v1 = vadd.f32 %v1650_v63, %v16688_v25  ;;  %v10872_v25 = vor.u32 %v11873_v43, %v10871_v27  ;;  %v16691_v63 = vld [vmem:[#allocation197_spill] sm:$0xff]  ;;  %v16697_v43 = vld [vmem:[#allocation202_spill] sm:$0xff] }
 0x67a   : > { %v4178_v8 = vadd.f32 %v4177_v10, %v3848_v60  ;;  %v3850_v13 = vpop.f32.mrf.mxu1  ;;  %v10251_v27 = vld [vmem:[%s12603_s14 + $0xd8] sm:$0xf0] }
 0x67b   : > { %v14985_v37 = vadd.f32 %v16686_v0, %v2386_v16  ;;  %5329 = vmatmul.bf16.gmra.mxu0 %v10242_v29  ;;  %v2060_v39 = vadd.f32 %v16690_v53, %v1651_v1  ;;  %v2551_v29 = vadd.f32 %v16692_v6, %v16691_v63  ;;  %v16695_v1 = vld [vmem:[#allocation200_spill] sm:$0xff]  ;;  %v16698_v6 = vld [vmem:[#allocation201_spill] sm:$0xff] }
 0x67c   : > { %v14988_v7 = vadd.f32 %v4178_v8, %v2549_v31  ;;  %v10876_v31 = vor.u32 %v11872_v54, %v10873_v56  ;;  %v16693_v8 = vld [vmem:[#allocation277_spill] sm:$0xff] }
 0x67d   : > { %16687 = vst [vmem:[#allocation62_spill] sm:$0xff] %v14985_v37  ;;  %10745 = vmatmul.msk.bf16.gmra.mxu2 %vm970_vm1, %v10246_v15  ;;  %v10249_v37 = vld [vmem:[%s12603_s14 + $0xd0] sm:$0xf] }
 0x67e   : > { %16689 = vst [vmem:[#allocation63_spill] sm:$0xff] %v14988_v7 }
 0x680   : > { %v2388_v60 = vpop.f32.mrf.mxu2  ;;  %v1652_v10 = vpop.f32.mrf.mxu0 }
 0x681   : > { %v2389_v45 = vadd.f32 %v2388_v60, %v2060_v39  ;;  %v4179_v16 = vpop.f32.mrf.mxu3  ;;  %v1653_v53 = vadd.f32 %v1652_v10, %v16695_v1  ;;  %v11738_v39 = vld [vmem:[%s12603_s14 + $0xd4] sm:$0xf0]  ;;  %v11737_v60 = vld [vmem:[%s12603_s14 + $0xd4] sm:$0xf] }
 0x682   : > { %v4180_v34 = vadd.f32 %v4179_v16, %v3850_v13  ;;  %v3853_v15 = vpop.f32.mrf.mxu1  ;;  %v10250_v54 = vor.u32 %v11738_v39, %v10249_v37  ;;  %v10254_v10 = vor.u32 %v11737_v60, %v10251_v27  ;;  %v10879_v37 = vld [vmem:[%s12603_s14 + $0xf0] sm:$0xf]  ;;  %v11875_v39 = vld [vmem:[%s12603_s14 + $0xf4] sm:$0xf0]  ;;  %v11874_v60 = vld [vmem:[%s12603_s14 + $0xf4] sm:$0xf] }
 0x683   : > { %v14999_v0 = vadd.f32 %v16693_v8, %v2389_v45  ;;  %v2062_v63 = vadd.f32 %v16697_v43, %v1653_v53  ;;  %v16704_v43 = vld [vmem:[#allocation206_spill] sm:$0xff]  ;;  %v10881_v27 = vld [vmem:[%s12603_s14 + $0xf8] sm:$0xf0] }
 0x684   : > { %v15002_v7 = vadd.f32 %v4180_v34, %v2551_v29 }
 0x685   : > { %16694 = vst [vmem:[#allocation233_spill] sm:$0xff] %v14999_v0  ;;  %7086 = vmatmul.bf16.gmra.mxu1 %v10872_v25  ;;  %v16699_v25 = vld [vmem:[#allocation203_spill] sm:$0xff] }
 0x686   : > { %16696 = vst [vmem:[#allocation64_spill] sm:$0xff] %v15002_v7  ;;  %11375 = vmatmul.msk.bf16.gmra.mxu3 %vm970_vm1, %v10876_v31  ;;  %v2554_v29 = vadd.f32 %v16699_v25, %v16698_v6  ;;  %v16700_v31 = vld [vmem:[#allocation278_spill] sm:$0xff]  ;;  %v16702_v7 = vld [vmem:[#allocation204_spill] sm:$0xff]  ;;  %v16706_v6 = vld [vmem:[#allocation207_spill] sm:$0xff] }
 0x688   : > { %v2390_v13 = vpop.f32.mrf.mxu2  ;;  %v1655_v16 = vpop.f32.mrf.mxu0 }
 0x689   : > { %v2391_v56 = vadd.f32 %v2390_v13, %v2062_v63  ;;  %v4182_v45 = vpop.f32.mrf.mxu3  ;;  %v1656_v0 = vadd.f32 %v1655_v16, %v16702_v7  ;;  %v10880_v7 = vor.u32 %v11875_v39, %v10879_v37  ;;  %v16705_v16 = vld [vmem:[#allocation205_spill] sm:$0xff]  ;;  %v10259_v37 = vld [vmem:[%s12603_s14 + $0xe8] sm:$0xf0]  ;;  %v16711_v39 = vld [vmem:[#allocation210_spill] sm:$0xff] }
 0x68a   : > { %v4183_v34 = vadd.f32 %v4182_v45, %v3853_v15  ;;  %v3855_v8 = vpop.f32.mrf.mxu1 }
 0x68b   : > { %v15013_v1 = vadd.f32 %v16700_v31, %v2391_v56  ;;  %5334 = vmatmul.bf16.gmra.mxu0 %v10250_v54  ;;  %v2065_v63 = vadd.f32 %v16704_v43, %v1656_v0  ;;  %v2556_v54 = vadd.f32 %v16706_v6, %v16705_v16  ;;  %v16709_v0 = vld [vmem:[#allocation208_spill] sm:$0xff] }
 0x68c   : > { %v15016_v53 = vadd.f32 %v4183_v34, %v2554_v29  ;;  %v10884_v29 = vor.u32 %v11874_v60, %v10881_v27  ;;  %v16707_v34 = vld [vmem:[#allocation279_spill] sm:$0xff]  ;;  %v16712_v6 = vld [vmem:[#allocation4_spill] sm:$0xff] }
 0x68d   : > { %16701 = vst [vmem:[#allocation65_spill] sm:$0xff] %v15013_v1  ;;  %10746 = vmatmul.msk.bf16.gmra.mxu2 %vm970_vm1, %v10254_v10  ;;  %v10257_v1 = vld [vmem:[%s12603_s14 + $0xe0] sm:$0xf] }
 0x68e   : > { %16703 = vst [vmem:[#allocation66_spill] sm:$0xff] %v15016_v53 }
 0x690   : > { %v2393_v15 = vpop.f32.mrf.mxu2  ;;  %v1657_v45 = vpop.f32.mrf.mxu0 }
 0x691   : > { %v2394_v13 = vadd.f32 %v2393_v15, %v2065_v63  ;;  %v4184_v56 = vpop.f32.mrf.mxu3  ;;  %v1658_v43 = vadd.f32 %v1657_v45, %v16709_v0  ;;  %v11740_v63 = vld [vmem:[%s12603_s14 + $0xe4] sm:$0xf0]  ;;  %v11739_v15 = vld [vmem:[%s12603_s14 + $0xe4] sm:$0xf] }
 0x692   : > { %v4185_v25 = vadd.f32 %v4184_v56, %v3855_v8  ;;  %v3858_v10 = vpop.f32.mrf.mxu1  ;;  %v10258_v27 = vor.u32 %v11740_v63, %v10257_v1  ;;  %v10262_v45 = vor.u32 %v11739_v15, %v10259_v37  ;;  %v10887_v1 = vld [vmem:[%s12603_s14 + $0x100] sm:$0xf]  ;;  %v11876_v63 = vld [vmem:[%s12603_s14 + $0x104] sm:$0xf]  ;;  %v10889_v15 = vld [vmem:[%s12603_s14 + $0x108] sm:$0xf0] }
 0x693   : > { %v15027_v31 = vadd.f32 %v16707_v34, %v2394_v13  ;;  %v2067_v8 = vadd.f32 %v16711_v39, %v1658_v43  ;;  %v11877_v43 = vld [vmem:[%s12603_s14 + $0x104] sm:$0xf0] }
 0x694   : > { %v15030_v53 = vadd.f32 %v4185_v25, %v2556_v54 }
 0x695   : > { %16708 = vst [vmem:[#allocation234_spill] sm:$0xff] %v15027_v31  ;;  %7091 = vmatmul.bf16.gmra.mxu1 %v10880_v7  ;;  %v16713_v7 = vld [vmem:[#allocation211_spill] sm:$0xff]  ;;  %v11743_v31 = vld [vmem:[%s12603_s14 + $0x104] sm:$0xf] }
 0x696   : > { %16710 = vst [vmem:[#allocation67_spill] sm:$0xff] %v15030_v53  ;;  %11376 = vmatmul.msk.bf16.gmra.mxu3 %vm970_vm1, %v10884_v29  ;;  %v2559_v54 = vadd.f32 %v16713_v7, %v16712_v6  ;;  %v16714_v29 = vld [vmem:[#allocation280_spill] sm:$0xff] }
 0x698   : > { %v2395_v60 = vpop.f32.mrf.mxu2  ;;  %v5300_v16 = vpop.f32.mrf.mxu0 }
 0x699   : > { %v2396_v13 = vadd.f32 %v2395_v60, %v2067_v8  ;;  %v4187_v56 = vpop.f32.mrf.mxu3  ;;  %v16717_v60 = vld [vmem:[#allocation5_spill] sm:$0xff] }
 0x69a   : > { %v4188_v25 = vadd.f32 %v4187_v56, %v3858_v10  ;;  %v3860_v34 = vpop.f32.mrf.mxu1  ;;  %v10888_v10 = vor.u32 %v11877_v43, %v10887_v1 }
 0x69b   : > { %v15041_v0 = vadd.f32 %v16714_v29, %v2396_v13  ;;  %5339 = vmatmul.bf16.gmra.mxu0 %v10258_v27  ;;  %v16718_v13 = vld [vmem:[#allocation214_spill] sm:$0xff]  ;;  %v10892_v27 = vor.u32 %v11876_v63, %v10889_v15 }
 0x69c   : > { %v15043_v53 = vadd.f32 %v4188_v25, %v2559_v54  ;;  %v2561_v56 = vadd.f32 %v16718_v13, %v16717_v60  ;;  %v11742_v25 = vld [vmem:[%s12603_s14 + $0xf4] sm:$0xf0] }
 0x69d   : > { %16715 = vst [vmem:[#allocation68_spill] sm:$0xff] %v15041_v0  ;;  %10747 = vmatmul.msk.bf16.gmra.mxu2 %vm970_vm1, %v10262_v45  ;;  %v10265_v45 = vld [vmem:[%s12603_s14 + $0xf0] sm:$0xf]  ;;  %v10267_v0 = vld [vmem:[%s12603_s14 + $0xf8] sm:$0xf0] }
 0x69e   : > { %16716 = vst [vmem:[#allocation69_spill] sm:$0xff] %v15043_v53  ;;  %v11741_v53 = vld [vmem:[%s12603_s14 + $0xf4] sm:$0xf]  ;;  %v10266_v43 = vor.u32 %v11742_v25, %v10265_v45 }
 0x6a0   : > { %v5629_v37 = vpop.f32.mrf.mxu2  ;;  %v5302_v8 = vpop.f32.mrf.mxu0 }
 0x6a1   : > { %v4189_v39 = vpop.f32.mrf.mxu3  ;;  %v5630_v29 = vadd.f32 %v5629_v37, %v5300_v16  ;;  %v15063_v16 = vld [vmem:[%s16030_s2] ss:$0 sm:$0xff] }
 0x6a2   : > { %v4190_v6 = vadd.f32 %v4189_v39, %v3860_v34  ;;  %v7057_v7 = vpop.f32.mrf.mxu1  ;;  %v10270_v34 = vor.u32 %v11741_v53, %v10267_v0  ;;  %v11878_v53 = vld [vmem:[%s12603_s14 + $0x114] sm:$0xf] }
 0x6a3   : > { %v5949_v63 = vadd.f32 %v5630_v29, %v14108_v58  ;;  %v10897_v58 = vld [vmem:[%s12603_s14 + $0x118] sm:$0xf0] }
 0x6a4   : > { %v15052_v54 = vadd.f32 %v4190_v6, %v2561_v56  ;;  %v10895_v6 = vld [vmem:[%s12603_s14 + $0x110] sm:$0xf] }
 0x6a5   : > { %7096 = vmatmul.bf16.gmra.mxu1 %v10888_v10 }
 0x6a6   : > { %16719 = vst [vmem:[#allocation235_spill] sm:$0xff] %v15052_v54  ;;  %11377 = vmatmul.msk.bf16.gmra.mxu3 %vm970_vm1, %v10892_v27  ;;  %v11879_v27 = vld [vmem:[%s12603_s14 + $0x114] sm:$0xf0] }
 0x6a7   : > { %v10896_v25 = vor.u32 %v11879_v27, %v10895_v6  ;;  %v10275_v6 = vld [vmem:[%s12603_s14 + $0x108] sm:$0xf0] }
 0x6a8   : > { %v5631_v1 = vpop.f32.mrf.mxu2  ;;  %v5305_v39 = vpop.f32.mrf.mxu0 }
 0x6a9   : > { %v7386_v60 = vpop.f32.mrf.mxu3  ;;  %v5632_v13 = vadd.f32 %v5631_v1, %v5302_v8  ;;  %v10900_v1 = vor.u32 %v11878_v53, %v10897_v58 }
 0x6aa   : > { %v7387_v15 = vadd.f32 %v7386_v60, %v7057_v7  ;;  %v7059_v37 = vpop.f32.mrf.mxu1 }
 0x6ab   : > { %5344 = vmatmul.bf16.gmra.mxu0 %v10266_v43  ;;  %v5950_v43 = vadd.f32 %v5632_v13, %v14122_v9 }
 0x6ac   : > { %v7706_v10 = vadd.f32 %v7387_v15, %v5949_v63  ;;  %v10273_v15 = vld [vmem:[%s12603_s14 + $0x100] sm:$0xf] }
 0x6ad   : > { %10748 = vmatmul.msk.bf16.gmra.mxu2 %vm970_vm1, %v10270_v34 }
 0x6ae   : > { %v7838_v56 = vadd.f32 %v15063_v16, %v7706_v10  ;;  %v11744_v10 = vld [vmem:[%s12603_s14 + $0x104] sm:$0xf0] }
 0x6af   : > { %v10274_v9 = vor.u32 %v11744_v10, %v10273_v15  ;;  %v10905_v15 = vld [vmem:[%s12603_s14 + $0x128] sm:$0xf0] }
 0x6b0   : > { %v7966_v0 = vsub.f32 0.0, %v7838_v56  ;;  %v5634_v7 = vpop.f32.mrf.mxu2  ;;  %v5307_v29 = vpop.f32.mrf.mxu0 }
 0x6b1   : > { %v7388_v45 = vpop.f32.mrf.mxu3  ;;  %v5635_v54 = vadd.f32 %v5634_v7, %v5305_v39 }
 0x6b2   : > { %v8094_v60 = vmul.f32 1.442695, %v7966_v0  ;;  %v7389_v34 = vadd.f32 %v7388_v45, %v7059_v37  ;;  %v7062_v8 = vpop.f32.mrf.mxu1  ;;  %v10278_v37 = vor.u32 %v11743_v31, %v10275_v6 }
 0x6b3   : > { %v5951_v0 = vadd.f32 %v5635_v54, %v14139_v50 }
 0x6b4   : > { %12009 = vpow2.f32 %v8094_v60  ;;  %v7707_v63 = vadd.f32 %v7389_v34, %v5950_v43  ;;  %v10903_v34 = vld [vmem:[%s12603_s14 + $0x120] sm:$0xf] }
 0x6b5   : > { %7101 = vmatmul.bf16.gmra.mxu1 %v10896_v25 }
 0x6b6   : > { %v7839_v56 = vadd.f32 %v15063_v16, %v7707_v63  ;;  %11378 = vmatmul.msk.bf16.gmra.mxu3 %vm970_vm1, %v10900_v1  ;;  %v11881_v1 = vld [vmem:[%s12603_s14 + $0x124] sm:$0xf0]  ;;  %v11880_v63 = vld [vmem:[%s12603_s14 + $0x124] sm:$0xf] }
 0x6b7   : > { %v10904_v10 = vor.u32 %v11881_v1, %v10903_v34 }
 0x6b8   : > { %v7967_v27 = vsub.f32 0.0, %v7839_v56  ;;  %v5636_v30 = vpop.f32.mrf.mxu2  ;;  %v5310_v53 = vpop.f32.mrf.mxu0 }
 0x6b9   : > { %v7391_v13 = vpop.f32.mrf.mxu3  ;;  %v5637_v31 = vadd.f32 %v5636_v30, %v5307_v29 }
 0x6ba   : > { %v12010_v58 = vpop.eup %12009  ;;  %v8096_v39 = vmul.f32 1.442695, %v7967_v27  ;;  %v7392_v7 = vadd.f32 %v7391_v13, %v7062_v8  ;;  %v7064_v45 = vpop.f32.mrf.mxu1  ;;  %v10908_v13 = vor.u32 %v11880_v63, %v10905_v15 }
 0x6bb   : > { %v8350_v25 = vadd.f32 1.0, %v12010_v58  ;;  %5349 = vmatmul.bf16.gmra.mxu0 %v10274_v9  ;;  %v5952_v29 = vadd.f32 %v5637_v31, %v14153_v18  ;;  %v11745_v18 = vld [vmem:[%s12603_s14 + $0x114] sm:$0xf] }
 0x6bc   : > { %12011 = vpow2.f32 %v8096_v39  ;;  %v7708_v43 = vadd.f32 %v7392_v7, %v5951_v0  ;;  %v10281_v39 = vld [vmem:[%s12603_s14 + $0x110] sm:$0xf]  ;;  %v11746_v7 = vld [vmem:[%s12603_s14 + $0x114] sm:$0xf0] }
 0x6bd   : > { %12013 = vrcp.f32 %v8350_v25  ;;  %10749 = vmatmul.msk.bf16.gmra.mxu2 %vm970_vm1, %v10278_v37  ;;  %v10282_v34 = vor.u32 %v11746_v7, %v10281_v39 }
 0x6be   : > { %v7840_v60 = vadd.f32 %v15063_v16, %v7708_v43 }
 0x6c0   : > { %v7968_v50 = vsub.f32 0.0, %v7840_v60  ;;  %v5639_v54 = vpop.f32.mrf.mxu2  ;;  %v5312_v56 = vpop.f32.mrf.mxu0 }
 0x6c1   : > { %v7393_v8 = vpop.f32.mrf.mxu3  ;;  %v5640_v25 = vadd.f32 %v5639_v54, %v5310_v53 }
 0x6c2   : > { %v12012_v30 = vpop.eup %12011  ;;  %v8098_v6 = vmul.f32 1.442695, %v7968_v50  ;;  %v7394_v27 = vadd.f32 %v7393_v8, %v7064_v45  ;;  %v7067_v9 = vpop.f32.mrf.mxu1  ;;  %v10283_v45 = vld [vmem:[%s12603_s14 + $0x118] sm:$0xf0] }
 0x6c3   : > { %v12014_v37 = vpop.eup %12013  ;;  %v8351_v58 = vadd.f32 1.0, %v12012_v30  ;;  %v10286_v63 = vor.u32 %v11745_v18, %v10283_v45  ;;  %v5953_v8 = vadd.f32 %v5640_v25, %v14170_v20  ;;  %v11882_v20 = vld [vmem:[%s12603_s14 + $0x134] sm:$0xf] }
 0x6c4   : > { %8606 = vst [vmem:[%s15089_s26] sm:$0xff] %v12014_v37  ;;  %12015 = vpow2.f32 %v8098_v6  ;;  %v7709_v0 = vadd.f32 %v7394_v27, %v5952_v29  ;;  %v10911_v37 = vld [vmem:[%s12603_s14 + $0x130] sm:$0xf] }
 0x6c5   : > { %12017 = vrcp.f32 %v8351_v58  ;;  %7106 = vmatmul.bf16.gmra.mxu1 %v10904_v10  ;;  %v11883_v58 = vld [vmem:[%s12603_s14 + $0x134] sm:$0xf0] }
 0x6c6   : > { %v7841_v43 = vadd.f32 %v15063_v16, %v7709_v0  ;;  %11379 = vmatmul.msk.bf16.gmra.mxu3 %vm970_vm1, %v10908_v13  ;;  %v10913_v0 = vld [vmem:[%s12603_s14 + $0x138] sm:$0xf0]  ;;  %v10912_v25 = vor.u32 %v11883_v58, %v10911_v37 }
 0x6c8   : > { %v7969_v31 = vsub.f32 0.0, %v7841_v43  ;;  %v5641_v60 = vpop.f32.mrf.mxu2  ;;  %v5315_v15 = vpop.f32.mrf.mxu0 }
 0x6c9   : > { %v7396_v1 = vpop.f32.mrf.mxu3  ;;  %v5642_v27 = vadd.f32 %v5641_v60, %v5312_v56 }
 0x6ca   : > { %v12016_v50 = vpop.eup %12015  ;;  %v8100_v53 = vmul.f32 1.442695, %v7969_v31  ;;  %v7397_v54 = vadd.f32 %v7396_v1, %v7067_v9  ;;  %v7069_v10 = vpop.f32.mrf.mxu1 }
 0x6cb   : > { %v12018_v30 = vpop.eup %12017  ;;  %v8352_v29 = vadd.f32 1.0, %v12016_v50  ;;  %5354 = vmatmul.bf16.gmra.mxu0 %v10282_v34  ;;  %v5954_v45 = vadd.f32 %v5642_v27, %v14187_v4  ;;  %v10916_v34 = vor.u32 %v11882_v20, %v10913_v0  ;;  %v11747_v4 = vld [vmem:[%s12603_s14 + $0x124] sm:$0xf] }
 0x6cc   : > { %8607 = vst [vmem:[%s15089_s26 + $0x8] sm:$0xff] %v12018_v30  ;;  %12019 = vpow2.f32 %v8100_v53  ;;  %v7710_v6 = vadd.f32 %v7397_v54, %v5953_v8  ;;  %v10289_v8 = vld [vmem:[%s12603_s14 + $0x120] sm:$0xf]  ;;  %v11748_v53 = vld [vmem:[%s12603_s14 + $0x124] sm:$0xf0] }
 0x6cd   : > { %12021 = vrcp.f32 %v8352_v29  ;;  %10750 = vmatmul.msk.bf16.gmra.mxu2 %vm970_vm1, %v10286_v63  ;;  %v10290_v27 = vor.u32 %v11748_v53, %v10289_v8 }
 0x6ce   : > { %v7842_v13 = vadd.f32 %v15063_v16, %v7710_v6 }
 0x6d0   : > { %v7970_v39 = vsub.f32 0.0, %v7842_v13  ;;  %v5644_v9 = vpop.f32.mrf.mxu2  ;;  %v5317_v43 = vpop.f32.mrf.mxu0 }
 0x6d1   : > { %v7398_v7 = vpop.f32.mrf.mxu3  ;;  %v5645_v54 = vadd.f32 %v5644_v9, %v5315_v15 }
 0x6d2   : > { %v12020_v18 = vpop.eup %12019  ;;  %v8102_v31 = vmul.f32 1.442695, %v7970_v39  ;;  %v7399_v56 = vadd.f32 %v7398_v7, %v7069_v10  ;;  %v7072_v60 = vpop.f32.mrf.mxu1  ;;  %v10291_v10 = vld [vmem:[%s12603_s14 + $0x128] sm:$0xf0] }
 0x6d3   : > { %v12022_v1 = vpop.eup %12021  ;;  %v8353_v63 = vadd.f32 1.0, %v12020_v18  ;;  %v10294_v37 = vor.u32 %v11747_v4, %v10291_v10  ;;  %v5955_v0 = vadd.f32 %v5645_v54, %v14204_v48  ;;  %v11884_v48 = vld [vmem:[%s12603_s14 + $0x144] sm:$0xf] }
 0x6d4   : > { %8608 = vst [vmem:[%s15089_s26 + $0x10] sm:$0xff] %v12022_v1  ;;  %12023 = vpow2.f32 %v8102_v31  ;;  %v7711_v50 = vadd.f32 %v7399_v56, %v5954_v45  ;;  %v10919_v56 = vld [vmem:[%s12603_s14 + $0x140] sm:$0xf]  ;;  %v10921_v1 = vld [vmem:[%s12603_s14 + $0x148] sm:$0xf0] }
 0x6d5   : > { %12025 = vrcp.f32 %v8353_v63  ;;  %7111 = vmatmul.bf16.gmra.mxu1 %v10912_v25 }
 0x6d6   : > { %v7843_v30 = vadd.f32 %v15063_v16, %v7711_v50  ;;  %11380 = vmatmul.msk.bf16.gmra.mxu3 %vm970_vm1, %v10916_v34  ;;  %v11885_v34 = vld [vmem:[%s12603_s14 + $0x144] sm:$0xf0] }
 0x6d7   : > { %v10920_v8 = vor.u32 %v11885_v34, %v10919_v56 }
 0x6d8   : > { %v7971_v29 = vsub.f32 0.0, %v7843_v30  ;;  %v5646_v6 = vpop.f32.mrf.mxu2  ;;  %v5320_v58 = vpop.f32.mrf.mxu0 }
 0x6d9   : > { %v7401_v13 = vpop.f32.mrf.mxu3  ;;  %v5647_v45 = vadd.f32 %v5646_v6, %v5317_v43 }
 0x6da   : > { %v12024_v20 = vpop.eup %12023  ;;  %v8104_v15 = vmul.f32 1.442695, %v7971_v29  ;;  %v7402_v39 = vadd.f32 %v7401_v13, %v7072_v60  ;;  %v7074_v9 = vpop.f32.mrf.mxu1  ;;  %v10924_v29 = vor.u32 %v11884_v48, %v10921_v1 }
 0x6db   : > { %v12026_v7 = vpop.eup %12025  ;;  %v8354_v25 = vadd.f32 1.0, %v12024_v20  ;;  %5359 = vmatmul.bf16.gmra.mxu0 %v10290_v27  ;;  %v5956_v30 = vadd.f32 %v5647_v45, %v14218_v35  ;;  %v11750_v20 = vld [vmem:[%s12603_s14 + $0x134] sm:$0xf0]  ;;  %v11749_v35 = vld [vmem:[%s12603_s14 + $0x134] sm:$0xf] }
 0x6dc   : > { %8609 = vst [vmem:[%s15089_s26 + $0x18] sm:$0xff] %v12026_v7  ;;  %12027 = vpow2.f32 %v8104_v15  ;;  %v7712_v18 = vadd.f32 %v7402_v39, %v5955_v0  ;;  %v10299_v39 = vld [vmem:[%s12603_s14 + $0x138] sm:$0xf0] }
 0x6dd   : > { %12029 = vrcp.f32 %v8354_v25  ;;  %10751 = vmatmul.msk.bf16.gmra.mxu2 %vm970_vm1, %v10294_v37  ;;  %v10297_v37 = vld [vmem:[%s12603_s14 + $0x130] sm:$0xf]  ;;  %v10302_v45 = vor.u32 %v11749_v35, %v10299_v39 }
 0x6de   : > { %v7844_v31 = vadd.f32 %v15063_v16, %v7712_v18  ;;  %v10298_v25 = vor.u32 %v11750_v20, %v10297_v37 }
 0x6e0   : > { %v7972_v63 = vsub.f32 0.0, %v7844_v31  ;;  %v5649_v60 = vpop.f32.mrf.mxu2  ;;  %v5322_v53 = vpop.f32.mrf.mxu0 }
 0x6e1   : > { %v7403_v50 = vpop.f32.mrf.mxu3  ;;  %v5650_v0 = vadd.f32 %v5649_v60, %v5320_v58 }
 0x6e2   : > { %v12028_v54 = vpop.eup %12027  ;;  %v8106_v4 = vmul.f32 1.442695, %v7972_v63  ;;  %v7404_v43 = vadd.f32 %v7403_v50, %v7074_v9  ;;  %v7077_v10 = vpop.f32.mrf.mxu1 }
 0x6e3   : > { %v12030_v6 = vpop.eup %12029  ;;  %v8355_v27 = vadd.f32 1.0, %v12028_v54  ;;  %v5957_v34 = vadd.f32 %v5650_v0, %v14235_v19  ;;  %v11886_v19 = vld [vmem:[%s12603_s14 + $0x154] sm:$0xf] }
 0x6e4   : > { %8610 = vst [vmem:[%s15089_s26 + $0x20] sm:$0xff] %v12030_v6  ;;  %12031 = vpow2.f32 %v8106_v4  ;;  %v7713_v13 = vadd.f32 %v7404_v43, %v5956_v30  ;;  %v10927_v30 = vld [vmem:[%s12603_s14 + $0x150] sm:$0xf]  ;;  %v11887_v4 = vld [vmem:[%s12603_s14 + $0x154] sm:$0xf0] }
 0x6e5   : > { %12033 = vrcp.f32 %v8355_v27  ;;  %7116 = vmatmul.bf16.gmra.mxu1 %v10920_v8  ;;  %v10929_v43 = vld [vmem:[%s12603_s14 + $0x158] sm:$0xf0]  ;;  %v10928_v27 = vor.u32 %v11887_v4, %v10927_v30 }
 0x6e6   : > { %v7845_v15 = vadd.f32 %v15063_v16, %v7713_v13  ;;  %11381 = vmatmul.msk.bf16.gmra.mxu3 %vm970_vm1, %v10924_v29  ;;  %v10932_v35 = vor.u32 %v11886_v19, %v10929_v43 }
 0x6e8   : > { %v7973_v9 = vsub.f32 0.0, %v7845_v15  ;;  %v5651_v7 = vpop.f32.mrf.mxu2  ;;  %v5325_v31 = vpop.f32.mrf.mxu0 }
 0x6e9   : > { %v7406_v18 = vpop.f32.mrf.mxu3  ;;  %v5652_v8 = vadd.f32 %v5651_v7, %v5322_v53 }
 0x6ea   : > { %v12032_v56 = vpop.eup %12031  ;;  %v8108_v58 = vmul.f32 1.442695, %v7973_v9  ;;  %v7407_v48 = vadd.f32 %v7406_v18, %v7077_v10  ;;  %v7079_v1 = vpop.f32.mrf.mxu1  ;;  %v11752_v18 = vld [vmem:[%s12603_s14 + $0x144] sm:$0xf0] }
 0x6eb   : > { %v12034_v63 = vpop.eup %12033  ;;  %v8356_v60 = vadd.f32 1.0, %v12032_v56  ;;  %5364 = vmatmul.bf16.gmra.mxu0 %v10298_v25  ;;  %v5958_v20 = vadd.f32 %v5652_v8, %v14249_v40  ;;  %v10305_v25 = vld [vmem:[%s12603_s14 + $0x140] sm:$0xf]  ;;  %v11751_v40 = vld [vmem:[%s12603_s14 + $0x144] sm:$0xf] }
 0x6ec   : > { %8611 = vst [vmem:[%s15089_s26 + $0x28] sm:$0xff] %v12034_v63  ;;  %12035 = vpow2.f32 %v8108_v58  ;;  %v7714_v50 = vadd.f32 %v7407_v48, %v5957_v34  ;;  %v10307_v34 = vld [vmem:[%s12603_s14 + $0x148] sm:$0xf0] }
 0x6ed   : > { %12037 = vrcp.f32 %v8356_v60  ;;  %10752 = vmatmul.msk.bf16.gmra.mxu2 %vm970_vm1, %v10302_v45  ;;  %v10310_v60 = vor.u32 %v11751_v40, %v10307_v34 }
 0x6ee   : > { %v7846_v54 = vadd.f32 %v15063_v16, %v7714_v50 }
 0x6f0   : > { %v7974_v29 = vsub.f32 0.0, %v7846_v54  ;;  %v5654_v10 = vpop.f32.mrf.mxu2  ;;  %v5327_v13 = vpop.f32.mrf.mxu0 }
 0x6f1   : > { %v7408_v6 = vpop.f32.mrf.mxu3  ;;  %v5655_v45 = vadd.f32 %v5654_v10, %v5325_v31 }
 0x6f2   : > { %v12036_v37 = vpop.eup %12035  ;;  %v8110_v0 = vmul.f32 1.442695, %v7974_v29  ;;  %v7409_v53 = vadd.f32 %v7408_v6, %v7079_v1  ;;  %v7082_v15 = vpop.f32.mrf.mxu1  ;;  %v10306_v1 = vor.u32 %v11752_v18, %v10305_v25 }
 0x6f3   : > { %v12038_v39 = vpop.eup %12037  ;;  %v8357_v9 = vadd.f32 1.0, %v12036_v37  ;;  %v5959_v54 = vadd.f32 %v5655_v45, %v14266_v59  ;;  %v11889_v37 = vld [vmem:[%s12603_s14 + $0x164] sm:$0xf0]  ;;  %v11888_v59 = vld [vmem:[%s12603_s14 + $0x164] sm:$0xf] }
 0x6f4   : > { %8612 = vst [vmem:[%s15089_s26 + $0x30] sm:$0xff] %v12038_v39  ;;  %12039 = vpow2.f32 %v8110_v0  ;;  %v7715_v7 = vadd.f32 %v7409_v53, %v5958_v20  ;;  %v10937_v20 = vld [vmem:[%s12603_s14 + $0x168] sm:$0xf0] }
 0x6f5   : > { %12041 = vrcp.f32 %v8357_v9  ;;  %7121 = vmatmul.bf16.gmra.mxu1 %v10928_v27  ;;  %v10935_v27 = vld [vmem:[%s12603_s14 + $0x160] sm:$0xf]  ;;  %v10940_v45 = vor.u32 %v11888_v59, %v10937_v20 }
 0x6f6   : > { %v7847_v56 = vadd.f32 %v15063_v16, %v7715_v7  ;;  %11382 = vmatmul.msk.bf16.gmra.mxu3 %vm970_vm1, %v10932_v35  ;;  %v10936_v35 = vor.u32 %v11889_v37, %v10935_v27 }
 0x6f8   : > { %v7975_v58 = vsub.f32 0.0, %v7847_v56  ;;  %v5656_v48 = vpop.f32.mrf.mxu2  ;;  %v5330_v50 = vpop.f32.mrf.mxu0 }
 0x6f9   : > { %v7411_v63 = vpop.f32.mrf.mxu3  ;;  %v5657_v10 = vadd.f32 %v5656_v48, %v5327_v13  ;;  %v11754_v48 = vld [vmem:[%s12603_s14 + $0x154] sm:$0xf0] }
 0x6fa   : > { %v12040_v8 = vpop.eup %12039  ;;  %v8112_v31 = vmul.f32 1.442695, %v7975_v58  ;;  %v7412_v30 = vadd.f32 %v7411_v63, %v7082_v15  ;;  %v7084_v4 = vpop.f32.mrf.mxu1  ;;  %v10313_v58 = vld [vmem:[%s12603_s14 + $0x150] sm:$0xf] }
 0x6fb   : > { %v12042_v19 = vpop.eup %12041  ;;  %v8358_v43 = vadd.f32 1.0, %v12040_v8  ;;  %5369 = vmatmul.bf16.gmra.mxu0 %v10306_v1  ;;  %v5960_v7 = vadd.f32 %v5657_v10, %v14280_v24  ;;  %v11753_v24 = vld [vmem:[%s12603_s14 + $0x154] sm:$0xf] }
 0x6fc   : > { %8613 = vst [vmem:[%s15089_s26 + $0x38] sm:$0xff] %v12042_v19  ;;  %12043 = vpow2.f32 %v8112_v31  ;;  %v7716_v29 = vadd.f32 %v7412_v30, %v5959_v54  ;;  %v10314_v31 = vor.u32 %v11754_v48, %v10313_v58 }
 0x6fd   : > { %12045 = vrcp.f32 %v8358_v43  ;;  %10753 = vmatmul.msk.bf16.gmra.mxu2 %vm970_vm1, %v10310_v60  ;;  %v10315_v60 = vld [vmem:[%s12603_s14 + $0x158] sm:$0xf0] }
 0x6fe   : > { %v7848_v6 = vadd.f32 %v15063_v16, %v7716_v29 }
 0x700   : > { %v7976_v0 = vsub.f32 0.0, %v7848_v6  ;;  %v5659_v53 = vpop.f32.mrf.mxu2  ;;  %v5332_v39 = vpop.f32.mrf.mxu0 }
 0x701   : > { %v7413_v15 = vpop.f32.mrf.mxu3  ;;  %v5660_v1 = vadd.f32 %v5659_v53, %v5330_v50  ;;  %v10943_v53 = vld [vmem:[%s12603_s14 + $0x170] sm:$0xf] }
 0x702   : > { %v12044_v9 = vpop.eup %12043  ;;  %v8114_v25 = vmul.f32 1.442695, %v7976_v0  ;;  %v7414_v13 = vadd.f32 %v7413_v15, %v7084_v4  ;;  %v7087_v18 = vpop.f32.mrf.mxu1  ;;  %v10318_v4 = vor.u32 %v11753_v24, %v10315_v60  ;;  %v11891_v15 = vld [vmem:[%s12603_s14 + $0x174] sm:$0xf0]  ;;  %v10321_v24 = vld [vmem:[%s12603_s14 + $0x160] sm:$0xf] }
 0x703   : > { %v12046_v56 = vpop.eup %12045  ;;  %v8359_v40 = vadd.f32 1.0, %v12044_v9  ;;  %v5961_v29 = vadd.f32 %v5660_v1, %v14300_v47  ;;  %v11890_v47 = vld [vmem:[%s12603_s14 + $0x174] sm:$0xf]  ;;  %v11756_v60 = vld [vmem:[%s12603_s14 + $0x164] sm:$0xf0] }
 0x704   : > { %8614 = vst [vmem:[%s15089_s26 + $0x40] sm:$0xff] %v12046_v56  ;;  %12047 = vpow2.f32 %v8114_v25  ;;  %v7717_v34 = vadd.f32 %v7414_v13, %v5960_v7  ;;  %v10944_v13 = vor.u32 %v11891_v15, %v10943_v53 }
 0x705   : > { %12049 = vrcp.f32 %v8359_v40  ;;  %7126 = vmatmul.bf16.gmra.mxu1 %v10936_v35  ;;  %v10945_v35 = vld [vmem:[%s12603_s14 + $0x178] sm:$0xf0] }
 0x706   : > { %v7849_v63 = vadd.f32 %v15063_v16, %v7717_v34  ;;  %11383 = vmatmul.msk.bf16.gmra.mxu3 %vm970_vm1, %v10940_v45  ;;  %v10948_v58 = vor.u32 %v11890_v47, %v10945_v35  ;;  %v10951_v35 = vld [vmem:[%s12603_s14 + $0x180] sm:$0xf] }
 0x708   : > { %v7977_v8 = vsub.f32 0.0, %v7849_v63  ;;  %v5661_v54 = vpop.f32.mrf.mxu2  ;;  %v5335_v19 = vpop.f32.mrf.mxu0 }
 0x709   : > { %v7416_v30 = vpop.f32.mrf.mxu3  ;;  %v5662_v20 = vadd.f32 %v5661_v54, %v5332_v39 }
 0x70a   : > { %v12048_v43 = vpop.eup %12047  ;;  %v8116_v50 = vmul.f32 1.442695, %v7977_v8  ;;  %v7417_v10 = vadd.f32 %v7416_v30, %v7087_v18  ;;  %v7089_v6 = vpop.f32.mrf.mxu1 }
 0x70b   : > { %v12050_v27 = vpop.eup %12049  ;;  %v8360_v37 = vadd.f32 1.0, %v12048_v43  ;;  %5374 = vmatmul.bf16.gmra.mxu0 %v10314_v31  ;;  %v5962_v56 = vadd.f32 %v5662_v20, %v14317_v28  ;;  %v11755_v28 = vld [vmem:[%s12603_s14 + $0x164] sm:$0xf]  ;;  %v10323_v31 = vld [vmem:[%s12603_s14 + $0x168] sm:$0xf0]  ;;  %v10322_v43 = vor.u32 %v11756_v60, %v10321_v24 }
 0x70c   : > { %8615 = vst [vmem:[%s15089_s26 + $0x48] sm:$0xff] %v12050_v27  ;;  %12051 = vpow2.f32 %v8116_v50  ;;  %v7718_v59 = vadd.f32 %v7417_v10, %v5961_v29  ;;  %v10326_v50 = vor.u32 %v11755_v28, %v10323_v31 }
 0x70d   : > { %12053 = vrcp.f32 %v8360_v37  ;;  %10754 = vmatmul.msk.bf16.gmra.mxu2 %vm970_vm1, %v10318_v4 }
 0x70e   : > { %v7850_v0 = vadd.f32 %v15063_v16, %v7718_v59 }
 0x710   : > { %v7978_v9 = vsub.f32 0.0, %v7850_v0  ;;  %v5664_v7 = vpop.f32.mrf.mxu2  ;;  %v5337_v18 = vpop.f32.mrf.mxu0 }
 0x711   : > { %v7418_v25 = vpop.f32.mrf.mxu3  ;;  %v5665_v8 = vadd.f32 %v5664_v7, %v5335_v19  ;;  %v10953_v7 = vld [vmem:[%s12603_s14 + $0x188] sm:$0xf0] }
 0x712   : > { %v12052_v45 = vpop.eup %12051  ;;  %v8118_v40 = vmul.f32 1.442695, %v7978_v9  ;;  %v7419_v39 = vadd.f32 %v7418_v25, %v7089_v6  ;;  %v7092_v34 = vpop.f32.mrf.mxu1  ;;  %v11893_v9 = vld [vmem:[%s12603_s14 + $0x184] sm:$0xf0] }
 0x713   : > { %v12054_v48 = vpop.eup %12053  ;;  %v8361_v1 = vadd.f32 1.0, %v12052_v45  ;;  %v5963_v27 = vadd.f32 %v5665_v8, %v14334_v36  ;;  %v11892_v36 = vld [vmem:[%s12603_s14 + $0x184] sm:$0xf]  ;;  %v10329_v8 = vld [vmem:[%s12603_s14 + $0x170] sm:$0xf] }
 0x714   : > { %8616 = vst [vmem:[%s15089_s26 + $0x50] sm:$0xff] %v12054_v48  ;;  %12055 = vpow2.f32 %v8118_v40  ;;  %v7719_v63 = vadd.f32 %v7419_v39, %v5962_v56  ;;  %v10952_v56 = vor.u32 %v11893_v9, %v10951_v35  ;;  %v10959_v9 = vld [vmem:[%s12603_s14 + $0x190] sm:$0xf] }
 0x715   : > { %12057 = vrcp.f32 %v8361_v1  ;;  %7131 = vmatmul.bf16.gmra.mxu1 %v10944_v13  ;;  %v10956_v1 = vor.u32 %v11892_v36, %v10953_v7  ;;  %v11895_v36 = vld [vmem:[%s12603_s14 + $0x194] sm:$0xf0]  ;;  %v10961_v7 = vld [vmem:[%s12603_s14 + $0x198] sm:$0xf0] }
 0x716   : > { %v7851_v54 = vadd.f32 %v15063_v16, %v7719_v63  ;;  %11384 = vmatmul.msk.bf16.gmra.mxu3 %vm970_vm1, %v10948_v58 }
 0x718   : > { %v7979_v30 = vsub.f32 0.0, %v7851_v54  ;;  %v5666_v4 = vpop.f32.mrf.mxu2  ;;  %v5340_v10 = vpop.f32.mrf.mxu0  ;;  %v11758_v54 = vld [vmem:[%s12603_s14 + $0x174] sm:$0xf0] }
 0x719   : > { %v7421_v29 = vpop.f32.mrf.mxu3  ;;  %v5667_v15 = vadd.f32 %v5666_v4, %v5337_v18 }
 0x71a   : > { %v12056_v6 = vpop.eup %12055  ;;  %v8120_v19 = vmul.f32 1.442695, %v7979_v30  ;;  %v7422_v37 = vadd.f32 %v7421_v29, %v7092_v34  ;;  %v7094_v59 = vpop.f32.mrf.mxu1  ;;  %v10331_v30 = vld [vmem:[%s12603_s14 + $0x178] sm:$0xf0]  ;;  %v10330_v29 = vor.u32 %v11758_v54, %v10329_v8  ;;  %v10337_v8 = vld [vmem:[%s12603_s14 + $0x180] sm:$0xf] }
 0x71b   : > { %v12058_v20 = vpop.eup %12057  ;;  %v8362_v0 = vadd.f32 1.0, %v12056_v6  ;;  %5379 = vmatmul.bf16.gmra.mxu0 %v10322_v43  ;;  %v5964_v34 = vadd.f32 %v5667_v15, %v14348_v51  ;;  %v11757_v51 = vld [vmem:[%s12603_s14 + $0x174] sm:$0xf]  ;;  %v11760_v54 = vld [vmem:[%s12603_s14 + $0x184] sm:$0xf0] }
 0x71c   : > { %8617 = vst [vmem:[%s15089_s26 + $0x58] sm:$0xff] %v12058_v20  ;;  %12059 = vpow2.f32 %v8120_v19  ;;  %v7720_v53 = vadd.f32 %v7422_v37, %v5963_v27  ;;  %v10334_v6 = vor.u32 %v11757_v51, %v10331_v30  ;;  %v10339_v51 = vld [vmem:[%s12603_s14 + $0x188] sm:$0xf0] }
 0x71d   : > { %12061 = vrcp.f32 %v8362_v0  ;;  %10755 = vmatmul.msk.bf16.gmra.mxu2 %vm970_vm1, %v10326_v50 }
 0x71e   : > { %v7852_v47 = vadd.f32 %v15063_v16, %v7720_v53 }
 0x720   : > { %v7980_v25 = vsub.f32 0.0, %v7852_v47  ;;  %v5669_v13 = vpop.f32.mrf.mxu2  ;;  %v5342_v40 = vpop.f32.mrf.mxu0 }
 0x721   : > { %v7423_v45 = vpop.f32.mrf.mxu3  ;;  %v5670_v28 = vadd.f32 %v5669_v13, %v5340_v10 }
 0x722   : > { %v12060_v39 = vpop.eup %12059  ;;  %v8122_v58 = vmul.f32 1.442695, %v7980_v25  ;;  %v7424_v18 = vadd.f32 %v7423_v45, %v7094_v59  ;;  %v7097_v48 = vpop.f32.mrf.mxu1 }
 0x723   : > { %v12062_v63 = vpop.eup %12061  ;;  %v8363_v24 = vadd.f32 1.0, %v12060_v39  ;;  %v5965_v37 = vadd.f32 %v5670_v28, %v14365_v14  ;;  %v11894_v14 = vld [vmem:[%s12603_s14 + $0x194] sm:$0xf] }
 0x724   : > { %8618 = vst [vmem:[%s15089_s26 + $0x60] sm:$0xff] %v12062_v63  ;;  %12063 = vpow2.f32 %v8122_v58  ;;  %v7721_v60 = vadd.f32 %v7424_v18, %v5964_v34 }
 0x725   : > { %12065 = vrcp.f32 %v8363_v24  ;;  %7136 = vmatmul.bf16.gmra.mxu1 %v10952_v56  ;;  %v10960_v56 = vor.u32 %v11895_v36, %v10959_v9  ;;  %v11897_v9 = vld [vmem:[%s12603_s14 + $0x1a4] sm:$0xf0]  ;;  %v10969_v36 = vld [vmem:[%s12603_s14 + $0x1a8] sm:$0xf0] }
 0x726   : > { %v7853_v31 = vadd.f32 %v15063_v16, %v7721_v60  ;;  %11385 = vmatmul.msk.bf16.gmra.mxu3 %vm970_vm1, %v10956_v1  ;;  %v10964_v1 = vor.u32 %v11894_v14, %v10961_v7 }
 0x728   : > { %v7981_v4 = vsub.f32 0.0, %v7853_v31  ;;  %v5671_v43 = vpop.f32.mrf.mxu2  ;;  %v5345_v27 = vpop.f32.mrf.mxu0 }
 0x729   : > { %v7426_v50 = vpop.f32.mrf.mxu3  ;;  %v5672_v47 = vadd.f32 %v5671_v43, %v5342_v40  ;;  %v10338_v43 = vor.u32 %v11760_v54, %v10337_v8 }
 0x72a   : > { %v12064_v19 = vpop.eup %12063  ;;  %v8124_v10 = vmul.f32 1.442695, %v7981_v4  ;;  %v7427_v59 = vadd.f32 %v7426_v50, %v7097_v48  ;;  %v7099_v20 = vpop.f32.mrf.mxu1 }
 0x72b   : > { %v12066_v0 = vpop.eup %12065  ;;  %v8364_v53 = vadd.f32 1.0, %v12064_v19  ;;  %5384 = vmatmul.bf16.gmra.mxu0 %v10330_v29  ;;  %v5966_v58 = vadd.f32 %v5672_v47, %v14379_v2  ;;  %v11759_v2 = vld [vmem:[%s12603_s14 + $0x184] sm:$0xf] }
 0x72c   : > { %8619 = vst [vmem:[%s15089_s26 + $0x68] sm:$0xff] %v12066_v0  ;;  %12067 = vpow2.f32 %v8124_v10  ;;  %v7722_v15 = vadd.f32 %v7427_v59, %v5965_v37  ;;  %v10342_v50 = vor.u32 %v11759_v2, %v10339_v51 }
 0x72d   : > { %12069 = vrcp.f32 %v8364_v53  ;;  %10756 = vmatmul.msk.bf16.gmra.mxu2 %vm970_vm1, %v10334_v6 }
 0x72e   : > { %v7854_v35 = vadd.f32 %v15063_v16, %v7722_v15 }
 0x730   : > { %v7982_v25 = vsub.f32 0.0, %v7854_v35  ;;  %v5674_v13 = vpop.f32.mrf.mxu2  ;;  %v5347_v39 = vpop.f32.mrf.mxu0  ;;  %v10967_v35 = vld [vmem:[%s12603_s14 + $0x1a0] sm:$0xf] }
 0x731   : > { %v7428_v45 = vpop.f32.mrf.mxu3  ;;  %v5675_v28 = vadd.f32 %v5674_v13, %v5345_v27  ;;  %v10968_v13 = vor.u32 %v11897_v9, %v10967_v35 }
 0x732   : > { %v12068_v34 = vpop.eup %12067  ;;  %v8126_v18 = vmul.f32 1.442695, %v7982_v25  ;;  %v7429_v40 = vadd.f32 %v7428_v45, %v7099_v20  ;;  %v7102_v48 = vpop.f32.mrf.mxu1 }
 0x733   : > { %v12070_v63 = vpop.eup %12069  ;;  %v8365_v24 = vadd.f32 1.0, %v12068_v34  ;;  %v5967_v37 = vadd.f32 %v5675_v28, %v14396_v23  ;;  %v11896_v23 = vld [vmem:[%s12603_s14 + $0x1a4] sm:$0xf]  ;;  %v10347_v28 = vld [vmem:[%s12603_s14 + $0x198] sm:$0xf0] }
 0x734   : > { %8620 = vst [vmem:[%s15089_s26 + $0x70] sm:$0xff] %v12070_v63  ;;  %12071 = vpow2.f32 %v8126_v18  ;;  %v7723_v60 = vadd.f32 %v7429_v40, %v5966_v58  ;;  %v10972_v40 = vor.u32 %v11896_v23, %v10969_v36 }
 0x735   : > { %12073 = vrcp.f32 %v8365_v24  ;;  %7141 = vmatmul.bf16.gmra.mxu1 %v10960_v56  ;;  %v10345_v24 = vld [vmem:[%s12603_s14 + $0x190] sm:$0xf] }
 0x736   : > { %v7855_v31 = vadd.f32 %v15063_v16, %v7723_v60  ;;  %11386 = vmatmul.msk.bf16.gmra.mxu3 %vm970_vm1, %v10964_v1  ;;  %v11762_v60 = vld [vmem:[%s12603_s14 + $0x194] sm:$0xf0] }
 0x737   : > { %v10346_v51 = vor.u32 %v11762_v60, %v10345_v24  ;;  %v10355_v24 = vld [vmem:[%s12603_s14 + $0x1a8] sm:$0xf0] }
 0x738   : > { %v7983_v30 = vsub.f32 0.0, %v7855_v31  ;;  %v5676_v4 = vpop.f32.mrf.mxu2  ;;  %v5350_v6 = vpop.f32.mrf.mxu0 }
 0x739   : > { %v7431_v29 = vpop.f32.mrf.mxu3  ;;  %v5677_v15 = vadd.f32 %v5676_v4, %v5347_v39 }
 0x73a   : > { %v12072_v19 = vpop.eup %12071  ;;  %v8128_v27 = vmul.f32 1.442695, %v7983_v30  ;;  %v7432_v10 = vadd.f32 %v7431_v29, %v7102_v48  ;;  %v7104_v59 = vpop.f32.mrf.mxu1 }
 0x73b   : > { %v12074_v20 = vpop.eup %12073  ;;  %v8366_v0 = vadd.f32 1.0, %v12072_v19  ;;  %5389 = vmatmul.bf16.gmra.mxu0 %v10338_v43  ;;  %v5968_v34 = vadd.f32 %v5677_v15, %v14410_v62  ;;  %v11761_v62 = vld [vmem:[%s12603_s14 + $0x194] sm:$0xf]  ;;  %v11899_v15 = vld [vmem:[%s12603_s14 + $0x1b4] sm:$0xf0] }
 0x73c   : > { %8621 = vst [vmem:[%s15089_s26 + $0x78] sm:$0xff] %v12074_v20  ;;  %12075 = vpow2.f32 %v8128_v27  ;;  %v7724_v53 = vadd.f32 %v7432_v10, %v5967_v37  ;;  %v10350_v4 = vor.u32 %v11761_v62, %v10347_v28 }
 0x73d   : > { %12077 = vrcp.f32 %v8366_v0  ;;  %10757 = vmatmul.msk.bf16.gmra.mxu2 %vm970_vm1, %v10342_v50 }
 0x73e   : > { %v7856_v47 = vadd.f32 %v15063_v16, %v7724_v53  ;;  %v10975_v53 = vld [vmem:[%s12603_s14 + $0x1b0] sm:$0xf] }
 0x73f   : > { %v10976_v36 = vor.u32 %v11899_v15, %v10975_v53 }
 0x740   : > { %v7984_v14 = vsub.f32 0.0, %v7856_v47  ;;  %v5679_v7 = vpop.f32.mrf.mxu2  ;;  %v5352_v45 = vpop.f32.mrf.mxu0  ;;  %v10977_v47 = vld [vmem:[%s12603_s14 + $0x1b8] sm:$0xf0] }
 0x741   : > { %v7433_v25 = vpop.f32.mrf.mxu3  ;;  %v5680_v8 = vadd.f32 %v5679_v7, %v5350_v6 }
 0x742   : > { %v12076_v56 = vpop.eup %12075  ;;  %v8130_v58 = vmul.f32 1.442695, %v7984_v14  ;;  %v7434_v39 = vadd.f32 %v7433_v25, %v7104_v59  ;;  %v7107_v18 = vpop.f32.mrf.mxu1 }
 0x743   : > { %v12078_v48 = vpop.eup %12077  ;;  %v8367_v1 = vadd.f32 1.0, %v12076_v56  ;;  %v5969_v50 = vadd.f32 %v5680_v8, %v14430_v38  ;;  %v11898_v38 = vld [vmem:[%s12603_s14 + $0x1b4] sm:$0xf] }
 0x744   : > { %8622 = vst [vmem:[%s15089_s26 + $0x80] sm:$0xff] %v12078_v48  ;;  %12079 = vpow2.f32 %v8130_v58  ;;  %v7725_v63 = vadd.f32 %v7434_v39, %v5968_v34 }
 0x745   : > { %12081 = vrcp.f32 %v8367_v1  ;;  %7146 = vmatmul.bf16.gmra.mxu1 %v10968_v13 }
 0x746   : > { %v7857_v54 = vadd.f32 %v15063_v16, %v7725_v63  ;;  %11387 = vmatmul.msk.bf16.gmra.mxu3 %vm970_vm1, %v10972_v40  ;;  %v11764_v40 = vld [vmem:[%s12603_s14 + $0x1a4] sm:$0xf0]  ;;  %v11763_v63 = vld [vmem:[%s12603_s14 + $0x1a4] sm:$0xf] }
 0x747   : > { %v10358_v28 = vor.u32 %v11763_v63, %v10355_v24 }
 0x748   : > { %v7985_v31 = vsub.f32 0.0, %v7857_v54  ;;  %v5681_v2 = vpop.f32.mrf.mxu2  ;;  %v5355_v43 = vpop.f32.mrf.mxu0 }
 0x749   : > { %v7436_v30 = vpop.f32.mrf.mxu3  ;;  %v5682_v20 = vadd.f32 %v5681_v2, %v5352_v45 }
 0x74a   : > { %v12080_v29 = vpop.eup %12079  ;;  %v8132_v6 = vmul.f32 1.442695, %v7985_v31  ;;  %v7437_v19 = vadd.f32 %v7436_v30, %v7107_v18  ;;  %v7109_v37 = vpop.f32.mrf.mxu1  ;;  %v10353_v18 = vld [vmem:[%s12603_s14 + $0x1a0] sm:$0xf] }
 0x74b   : > { %v12082_v27 = vpop.eup %12081  ;;  %v8368_v10 = vadd.f32 1.0, %v12080_v29  ;;  %5394 = vmatmul.bf16.gmra.mxu0 %v10346_v51  ;;  %v5970_v25 = vadd.f32 %v5682_v20, %v14444_v42  ;;  %v15242_v42 = vld [vmem:[%s16030_s2] ss:$0 sm:$0xff]  ;;  %v10354_v54 = vor.u32 %v11764_v40, %v10353_v18 }
 0x74c   : > { %8623 = vst [vmem:[%s15089_s26 + $0x88] sm:$0xff] %v12082_v27  ;;  %12083 = vpow2.f32 %v8132_v6  ;;  %v7726_v59 = vadd.f32 %v7437_v19, %v5969_v50  ;;  %v10983_v27 = vld [vmem:[%s12603_s14 + $0x1c0] sm:$0xf] }
 0x74d   : > { %12085 = vrcp.f32 %v8368_v10  ;;  %10758 = vmatmul.msk.bf16.gmra.mxu2 %vm970_vm1, %v10350_v4  ;;  %v11901_v10 = vld [vmem:[%s12603_s14 + $0x1c4] sm:$0xf0] }
 0x74e   : > { %v7858_v0 = vadd.f32 %v15063_v16, %v7726_v59  ;;  %v10980_v16 = vor.u32 %v11898_v38, %v10977_v47  ;;  %v10985_v59 = vld [vmem:[%s12603_s14 + $0x1c8] sm:$0xf0]  ;;  %v10984_v15 = vor.u32 %v11901_v10, %v10983_v27 }
 0x750   : > { %v7986_v35 = vsub.f32 0.0, %v7858_v0  ;;  %v5684_v9 = vpop.f32.mrf.mxu2  ;;  %v5357_v14 = vpop.f32.mrf.mxu0 }
 0x751   : > { %v7438_v23 = vpop.f32.mrf.mxu3  ;;  %v5685_v48 = vadd.f32 %v5684_v9, %v5355_v43 }
 0x752   : > { %v12084_v7 = vpop.eup %12083  ;;  %v8134_v13 = vmul.f32 1.442695, %v7986_v35  ;;  %v7439_v56 = vadd.f32 %v7438_v23, %v7109_v37  ;;  %v7112_v45 = vpop.f32.mrf.mxu1 }
 0x753   : > { %v12086_v34 = vpop.eup %12085  ;;  %v8369_v58 = vadd.f32 1.0, %v12084_v7  ;;  %v5971_v51 = vadd.f32 %v5685_v48, %v14461_v3  ;;  %v11900_v3 = vld [vmem:[%s12603_s14 + $0x1c4] sm:$0xf] }
 0x754   : > { %8624 = vst [vmem:[%s15089_s26 + $0x90] sm:$0xff] %v12086_v34  ;;  %12087 = vpow2.f32 %v8134_v13  ;;  %v7727_v39 = vadd.f32 %v7439_v56, %v5970_v25  ;;  %v10361_v56 = vld [vmem:[%s12603_s14 + $0x1b0] sm:$0xf] }
 0x755   : > { %12089 = vrcp.f32 %v8369_v58  ;;  %7151 = vmatmul.bf16.gmra.mxu1 %v10976_v36  ;;  %v10363_v58 = vld [vmem:[%s12603_s14 + $0x1b8] sm:$0xf0] }
 0x756   : > { %v7859_v1 = vadd.f32 %v15242_v42, %v7727_v39  ;;  %11388 = vmatmul.msk.bf16.gmra.mxu3 %vm970_vm1, %v10980_v16 }
 0x758   : > { %v7987_v60 = vsub.f32 0.0, %v7859_v1  ;;  %v5686_v8 = vpop.f32.mrf.mxu2  ;;  %v5360_v31 = vpop.f32.mrf.mxu0 }
 0x759   : > { %v7441_v62 = vpop.f32.mrf.mxu3  ;;  %v5687_v19 = vadd.f32 %v5686_v8, %v5357_v14  ;;  %v10988_v14 = vor.u32 %v11900_v3, %v10985_v59 }
 0x75a   : > { %v12088_v2 = vpop.eup %12087  ;;  %v8136_v30 = vmul.f32 1.442695, %v7987_v60  ;;  %v7442_v4 = vadd.f32 %v7441_v62, %v7112_v45  ;;  %v7114_v43 = vpop.f32.mrf.mxu1  ;;  %v11766_v45 = vld [vmem:[%s12603_s14 + $0x1b4] sm:$0xf0] }
 0x75b   : > { %v12090_v29 = vpop.eup %12089  ;;  %v8370_v50 = vadd.f32 1.0, %v12088_v2  ;;  %5399 = vmatmul.bf16.gmra.mxu0 %v10354_v54  ;;  %v5972_v35 = vadd.f32 %v5687_v19, %v14475_v22  ;;  %v11765_v22 = vld [vmem:[%s12603_s14 + $0x1b4] sm:$0xf]  ;;  %v10362_v40 = vor.u32 %v11766_v45, %v10361_v56 }
 0x75c   : > { %8625 = vst [vmem:[%s15089_s26 + $0x98] sm:$0xff] %v12090_v29  ;;  %12091 = vpow2.f32 %v8136_v30  ;;  %v7728_v6 = vadd.f32 %v7442_v4, %v5971_v51  ;;  %v10366_v1 = vor.u32 %v11765_v22, %v10363_v58  ;;  %v10991_v4 = vld [vmem:[%s12603_s14 + $0x1d0] sm:$0xf]  ;;  %v10993_v29 = vld [vmem:[%s12603_s14 + $0x1d8] sm:$0xf0] }
 0x75d   : > { %12093 = vrcp.f32 %v8370_v50  ;;  %10759 = vmatmul.msk.bf16.gmra.mxu2 %vm970_vm1, %v10358_v28 }
 0x75e   : > { %v7860_v37 = vadd.f32 %v15242_v42, %v7728_v6 }
 0x760   : > { %v7988_v20 = vsub.f32 0.0, %v7860_v37  ;;  %v5689_v0 = vpop.f32.mrf.mxu2  ;;  %v5362_v38 = vpop.f32.mrf.mxu0 }
 0x761   : > { %v7443_v53 = vpop.f32.mrf.mxu3  ;;  %v5690_v16 = vadd.f32 %v5689_v0, %v5360_v31 }
 0x762   : > { %v12092_v47 = vpop.eup %12091  ;;  %v8138_v9 = vmul.f32 1.442695, %v7988_v20  ;;  %v7444_v23 = vadd.f32 %v7443_v53, %v7114_v43  ;;  %v7117_v36 = vpop.f32.mrf.mxu1  ;;  %v11903_v43 = vld [vmem:[%s12603_s14 + $0x1d4] sm:$0xf0] }
 0x763   : > { %v12094_v7 = vpop.eup %12093  ;;  %v8371_v25 = vadd.f32 1.0, %v12092_v47  ;;  %v5973_v60 = vadd.f32 %v5690_v16, %v14492_v57  ;;  %v11902_v57 = vld [vmem:[%s12603_s14 + $0x1d4] sm:$0xf]  ;;  %v10992_v37 = vor.u32 %v11903_v43, %v10991_v4 }
 0x764   : > { %8626 = vst [vmem:[%s15089_s26 + $0xa0] sm:$0xff] %v12094_v7  ;;  %12095 = vpow2.f32 %v8138_v9  ;;  %v7729_v13 = vadd.f32 %v7444_v23, %v5972_v35  ;;  %v10996_v53 = vor.u32 %v11902_v57, %v10993_v29  ;;  %v10369_v35 = vld [vmem:[%s12603_s14 + $0x1c0] sm:$0xf]  ;;  %v11768_v9 = vld [vmem:[%s12603_s14 + $0x1c4] sm:$0xf0] }
 0x765   : > { %12097 = vrcp.f32 %v8371_v25  ;;  %7156 = vmatmul.bf16.gmra.mxu1 %v10984_v15 }
 0x766   : > { %v7861_v34 = vadd.f32 %v15242_v42, %v7729_v13  ;;  %11389 = vmatmul.msk.bf16.gmra.mxu3 %vm970_vm1, %v10988_v14  ;;  %v10371_v14 = vld [vmem:[%s12603_s14 + $0x1c8] sm:$0xf0]  ;;  %v10370_v13 = vor.u32 %v11768_v9, %v10369_v35 }
 0x768   : > { %v7989_v39 = vsub.f32 0.0, %v7861_v34  ;;  %v5691_v18 = vpop.f32.mrf.mxu2  ;;  %v5365_v63 = vpop.f32.mrf.mxu0 }
 0x769   : > { %v7446_v48 = vpop.f32.mrf.mxu3  ;;  %v5692_v51 = vadd.f32 %v5691_v18, %v5362_v38 }
 0x76a   : > { %v12096_v24 = vpop.eup %12095  ;;  %v8140_v8 = vmul.f32 1.442695, %v7989_v39  ;;  %v7447_v54 = vadd.f32 %v7446_v48, %v7117_v36  ;;  %v7119_v62 = vpop.f32.mrf.mxu1 }
 0x76b   : > { %v12098_v28 = vpop.eup %12097  ;;  %v8372_v31 = vadd.f32 1.0, %v12096_v24  ;;  %5404 = vmatmul.bf16.gmra.mxu0 %v10362_v40  ;;  %v5974_v3 = vadd.f32 %v5692_v51, %v14506_v26  ;;  %v11767_v26 = vld [vmem:[%s12603_s14 + $0x1c4] sm:$0xf] }
 0x76c   : > { %8627 = vst [vmem:[%s15089_s26 + $0xa8] sm:$0xff] %v12098_v28  ;;  %12099 = vpow2.f32 %v8140_v8  ;;  %v7730_v2 = vadd.f32 %v7447_v54, %v5973_v60  ;;  %v10374_v45 = vor.u32 %v11767_v26, %v10371_v14  ;;  %v10999_v60 = vld [vmem:[%s12603_s14 + $0x1e0] sm:$0xf]  ;;  %v11905_v8 = vld [vmem:[%s12603_s14 + $0x1e4] sm:$0xf0] }
 0x76d   : > { %12101 = vrcp.f32 %v8372_v31  ;;  %10760 = vmatmul.msk.bf16.gmra.mxu2 %vm970_vm1, %v10366_v1  ;;  %v11001_v54 = vld [vmem:[%s12603_s14 + $0x1e8] sm:$0xf0] }
 0x76e   : > { %v7862_v30 = vadd.f32 %v15242_v42, %v7730_v2  ;;  %v11000_v2 = vor.u32 %v11905_v8, %v10999_v60 }
 0x770   : > { %v7990_v50 = vsub.f32 0.0, %v7862_v30  ;;  %v5694_v6 = vpop.f32.mrf.mxu2  ;;  %v5367_v27 = vpop.f32.mrf.mxu0 }
 0x771   : > { %v7448_v19 = vpop.f32.mrf.mxu3  ;;  %v5695_v23 = vadd.f32 %v5694_v6, %v5365_v63 }
 0x772   : > { %v12100_v10 = vpop.eup %12099  ;;  %v8142_v59 = vmul.f32 1.442695, %v7990_v50  ;;  %v7449_v20 = vadd.f32 %v7448_v19, %v7119_v62  ;;  %v7122_v0 = vpop.f32.mrf.mxu1 }
 0x773   : > { %v12102_v15 = vpop.eup %12101  ;;  %v8373_v38 = vadd.f32 1.0, %v12100_v10  ;;  %v5975_v22 = vadd.f32 %v5695_v23, %v14523_v44  ;;  %v11904_v44 = vld [vmem:[%s12603_s14 + $0x1e4] sm:$0xf]  ;;  %v11770_v10 = vld [vmem:[%s12603_s14 + $0x1d4] sm:$0xf0] }
 0x774   : > { %8628 = vst [vmem:[%s15089_s26 + $0xb0] sm:$0xff] %v12102_v15  ;;  %12103 = vpow2.f32 %v8142_v59  ;;  %v7731_v47 = vadd.f32 %v7449_v20, %v5974_v3  ;;  %v11004_v50 = vor.u32 %v11904_v44, %v11001_v54  ;;  %v10379_v20 = vld [vmem:[%s12603_s14 + $0x1d8] sm:$0xf0] }
 0x775   : > { %12105 = vrcp.f32 %v8373_v38  ;;  %7161 = vmatmul.bf16.gmra.mxu1 %v10992_v37 }
 0x776   : > { %v7863_v36 = vadd.f32 %v15242_v42, %v7731_v47  ;;  %11390 = vmatmul.msk.bf16.gmra.mxu3 %vm970_vm1, %v10996_v53 }
 0x778   : > { %v7991_v7 = vsub.f32 0.0, %v7863_v36  ;;  %v5696_v25 = vpop.f32.mrf.mxu2  ;;  %v5370_v16 = vpop.f32.mrf.mxu0 }
 0x779   : > { %v7451_v56 = vpop.f32.mrf.mxu3  ;;  %v5697_v63 = vadd.f32 %v5696_v25, %v5367_v27  ;;  %v10377_v27 = vld [vmem:[%s12603_s14 + $0x1d0] sm:$0xf] }
 0x77a   : > { %v12104_v34 = vpop.eup %12103  ;;  %v8144_v58 = vmul.f32 1.442695, %v7991_v7  ;;  %v7452_v39 = vadd.f32 %v7451_v56, %v7122_v0  ;;  %v7124_v18 = vpop.f32.mrf.mxu1  ;;  %v10378_v15 = vor.u32 %v11770_v10, %v10377_v27 }
 0x77b   : > { %v12106_v40 = vpop.eup %12105  ;;  %v8374_v48 = vadd.f32 1.0, %v12104_v34  ;;  %5409 = vmatmul.bf16.gmra.mxu0 %v10370_v13  ;;  %v5976_v4 = vadd.f32 %v5697_v63, %v14537_v49  ;;  %v11769_v49 = vld [vmem:[%s12603_s14 + $0x1d4] sm:$0xf]  ;;  %v11907_v34 = vld [vmem:[%s12603_s14 + $0x1f4] sm:$0xf0] }
 0x77c   : > { %8629 = vst [vmem:[%s15089_s26 + $0xb8] sm:$0xff] %v12106_v40  ;;  %12107 = vpow2.f32 %v8144_v58  ;;  %v7732_v1 = vadd.f32 %v7452_v39, %v5975_v22  ;;  %v10382_v47 = vor.u32 %v11769_v49, %v10379_v20  ;;  %v11009_v22 = vld [vmem:[%s12603_s14 + $0x1f8] sm:$0xf0] }
 0x77d   : > { %12109 = vrcp.f32 %v8374_v48  ;;  %10761 = vmatmul.msk.bf16.gmra.mxu2 %vm970_vm1, %v10374_v45 }
 0x77e   : > { %v7864_v24 = vadd.f32 %v15242_v42, %v7732_v1 }
 0x780   : > { %v7992_v62 = vsub.f32 0.0, %v7864_v24  ;;  %v5699_v28 = vpop.f32.mrf.mxu2  ;;  %v5372_v51 = vpop.f32.mrf.mxu0 }
 0x781   : > { %v7453_v31 = vpop.f32.mrf.mxu3  ;;  %v5700_v3 = vadd.f32 %v5699_v28, %v5370_v16  ;;  %v11007_v16 = vld [vmem:[%s12603_s14 + $0x1f0] sm:$0xf] }
 0x782   : > { %v12108_v30 = vpop.eup %12107  ;;  %v8146_v43 = vmul.f32 1.442695, %v7992_v62  ;;  %v7454_v57 = vadd.f32 %v7453_v31, %v7124_v18  ;;  %v7127_v29 = vpop.f32.mrf.mxu1  ;;  %v11008_v40 = vor.u32 %v11907_v34, %v11007_v16  ;;  %v10385_v31 = vld [vmem:[%s12603_s14 + $0x1e0] sm:$0xf] }
 0x783   : > { %v12110_v6 = vpop.eup %12109  ;;  %v8375_v19 = vadd.f32 1.0, %v12108_v30  ;;  %v5977_v23 = vadd.f32 %v5700_v3, %v14560_v32  ;;  %v11906_v32 = vld [vmem:[%s12603_s14 + $0x1f4] sm:$0xf] }
 0x784   : > { %8630 = vst [vmem:[%s15089_s26 + $0xc0] sm:$0xff] %v12110_v6  ;;  %12111 = vpow2.f32 %v8146_v43  ;;  %v7733_v37 = vadd.f32 %v7454_v57, %v5976_v4  ;;  %v11012_v44 = vor.u32 %v11906_v32, %v11009_v22  ;;  %v10387_v4 = vld [vmem:[%s12603_s14 + $0x1e8] sm:$0xf0] }
 0x785   : > { %12113 = vrcp.f32 %v8375_v19  ;;  %7166 = vmatmul.bf16.gmra.mxu1 %v11000_v2  ;;  %v11772_v2 = vld [vmem:[%s12603_s14 + $0x1e4] sm:$0xf0] }
 0x786   : > { %v7865_v59 = vadd.f32 %v15242_v42, %v7733_v37  ;;  %11391 = vmatmul.msk.bf16.gmra.mxu3 %vm970_vm1, %v11004_v50 }
 0x788   : > { %v7993_v0 = vsub.f32 0.0, %v7865_v59  ;;  %v5701_v53 = vpop.f32.mrf.mxu2  ;;  %v5375_v35 = vpop.f32.mrf.mxu0 }
 0x789   : > { %v7456_v38 = vpop.f32.mrf.mxu3  ;;  %v5702_v56 = vadd.f32 %v5701_v53, %v5372_v51 }
 0x78a   : > { %v12112_v9 = vpop.eup %12111  ;;  %v8148_v36 = vmul.f32 1.442695, %v7993_v0  ;;  %v7457_v26 = vadd.f32 %v7456_v38, %v7127_v29  ;;  %v7129_v14 = vpop.f32.mrf.mxu1  ;;  %v10386_v29 = vor.u32 %v11772_v2, %v10385_v31  ;;  %v11015_v38 = vld [vmem:[%s12603_s14 + $0x200] sm:$0xf] }
 0x78b   : > { %v12114_v7 = vpop.eup %12113  ;;  %v8376_v25 = vadd.f32 1.0, %v12112_v9  ;;  %5414 = vmatmul.bf16.gmra.mxu0 %v10378_v15  ;;  %v5978_v63 = vadd.f32 %v5702_v56, %v14574_v33  ;;  %v11771_v33 = vld [vmem:[%s12603_s14 + $0x1e4] sm:$0xf] }
 0x78c   : > { %8631 = vst [vmem:[%s15089_s26 + $0xc8] sm:$0xff] %v12114_v7  ;;  %12115 = vpow2.f32 %v8148_v36  ;;  %v7734_v13 = vadd.f32 %v7457_v26, %v5977_v23  ;;  %v10390_v6 = vor.u32 %v11771_v33, %v10387_v4 }
 0x78d   : > { %12117 = vrcp.f32 %v8376_v25  ;;  %10762 = vmatmul.msk.bf16.gmra.mxu2 %vm970_vm1, %v10382_v47  ;;  %v11909_v47 = vld [vmem:[%s12603_s14 + $0x204] sm:$0xf0] }
 0x78e   : > { %v7866_v45 = vadd.f32 %v15242_v42, %v7734_v13  ;;  %v11016_v26 = vor.u32 %v11909_v47, %v11015_v38 }
 0x790   : > { %v7994_v58 = vsub.f32 0.0, %v7866_v45  ;;  %v5704_v39 = vpop.f32.mrf.mxu2  ;;  %v5377_v48 = vpop.f32.mrf.mxu0 }
 0x791   : > { %v7458_v18 = vpop.f32.mrf.mxu3  ;;  %v5705_v51 = vadd.f32 %v5704_v39, %v5375_v35  ;;  %v11017_v35 = vld [vmem:[%s12603_s14 + $0x208] sm:$0xf0]  ;;  %v11774_v39 = vld [vmem:[%s12603_s14 + $0x1f4] sm:$0xf0] }
 0x792   : > { %v12116_v1 = vpop.eup %12115  ;;  %v8150_v24 = vmul.f32 1.442695, %v7994_v58  ;;  %v7459_v60 = vadd.f32 %v7458_v18, %v7129_v14  ;;  %v7132_v8 = vpop.f32.mrf.mxu1  ;;  %v10393_v58 = vld [vmem:[%s12603_s14 + $0x1f0] sm:$0xf] }
 0x793   : > { %v12118_v54 = vpop.eup %12117  ;;  %v8377_v62 = vadd.f32 1.0, %v12116_v1  ;;  %v5979_v27 = vadd.f32 %v5705_v51, %v14591_v17  ;;  %v11908_v17 = vld [vmem:[%s12603_s14 + $0x204] sm:$0xf] }
 0x794   : > { %8632 = vst [vmem:[%s15089_s26 + $0xd0] sm:$0xff] %v12118_v54  ;;  %12119 = vpow2.f32 %v8150_v24  ;;  %v7735_v28 = vadd.f32 %v7459_v60, %v5978_v63  ;;  %v11020_v16 = vor.u32 %v11908_v17, %v11017_v35  ;;  %v10394_v24 = vor.u32 %v11774_v39, %v10393_v58  ;;  %v10401_v17 = vld [vmem:[%s12603_s14 + $0x200] sm:$0xf]  ;;  %v11776_v35 = vld [vmem:[%s12603_s14 + $0x204] sm:$0xf0] }
 0x795   : > { %12121 = vrcp.f32 %v8377_v62  ;;  %7171 = vmatmul.bf16.gmra.mxu1 %v11008_v40 }
 0x796   : > { %v7867_v30 = vadd.f32 %v15242_v42, %v7735_v28  ;;  %11392 = vmatmul.msk.bf16.gmra.mxu3 %vm970_vm1, %v11012_v44 }
 0x798   : > { %v7995_v43 = vsub.f32 0.0, %v7867_v30  ;;  %v5706_v57 = vpop.f32.mrf.mxu2  ;;  %v5380_v19 = vpop.f32.mrf.mxu0 }
 0x799   : > { %v7461_v50 = vpop.f32.mrf.mxu3  ;;  %v5707_v53 = vadd.f32 %v5706_v57, %v5377_v48  ;;  %v10395_v48 = vld [vmem:[%s12603_s14 + $0x1f8] sm:$0xf0]  ;;  %v11023_v57 = vld [vmem:[%s12603_s14 + $0x210] sm:$0xf] }
 0x79a   : > { %v12120_v37 = vpop.eup %12119  ;;  %v8152_v10 = vmul.f32 1.442695, %v7995_v43  ;;  %v7462_v3 = vadd.f32 %v7461_v50, %v7132_v8  ;;  %v7134_v59 = vpop.f32.mrf.mxu1  ;;  %v11025_v50 = vld [vmem:[%s12603_s14 + $0x218] sm:$0xf0] }
 0x79b   : > { %v12122_v49 = vpop.eup %12121  ;;  %v8378_v20 = vadd.f32 1.0, %v12120_v37  ;;  %5419 = vmatmul.bf16.gmra.mxu0 %v10386_v29  ;;  %v5980_v25 = vadd.f32 %v5707_v53, %v14605_v52  ;;  %v11773_v52 = vld [vmem:[%s12603_s14 + $0x1f4] sm:$0xf]  ;;  %v11911_v29 = vld [vmem:[%s12603_s14 + $0x214] sm:$0xf0] }
 0x79c   : > { %8633 = vst [vmem:[%s15089_s26 + $0xd8] sm:$0xff] %v12122_v49  ;;  %12123 = vpow2.f32 %v8152_v10  ;;  %v7736_v0 = vadd.f32 %v7462_v3, %v5979_v27  ;;  %v10398_v8 = vor.u32 %v11773_v52, %v10395_v48  ;;  %v11024_v27 = vor.u32 %v11911_v29, %v11023_v57  ;;  %v11031_v48 = vld [vmem:[%s12603_s14 + $0x220] sm:$0xf]  ;;  %v10409_v57 = vld [vmem:[%s12603_s14 + $0x210] sm:$0xf] }
 0x79d   : > { %12125 = vrcp.f32 %v8378_v20  ;;  %10763 = vmatmul.msk.bf16.gmra.mxu2 %vm970_vm1, %v10390_v6  ;;  %v11778_v29 = vld [vmem:[%s12603_s14 + $0x214] sm:$0xf0] }
 0x79e   : > { %v7868_v15 = vadd.f32 %v15242_v42, %v7736_v0 }
 0x7a0   : > { %v7996_v9 = vsub.f32 0.0, %v7868_v15  ;;  %v5709_v23 = vpop.f32.mrf.mxu2  ;;  %v5382_v14 = vpop.f32.mrf.mxu0 }
 0x7a1   : > { %v7463_v36 = vpop.f32.mrf.mxu3  ;;  %v5710_v18 = vadd.f32 %v5709_v23, %v5380_v19 }
 0x7a2   : > { %v12124_v7 = vpop.eup %12123  ;;  %v8154_v13 = vmul.f32 1.442695, %v7996_v9  ;;  %v7464_v56 = vadd.f32 %v7463_v36, %v7134_v59  ;;  %v7137_v45 = vpop.f32.mrf.mxu1  ;;  %v10403_v36 = vld [vmem:[%s12603_s14 + $0x208] sm:$0xf0] }
 0x7a3   : > { %v12126_v34 = vpop.eup %12125  ;;  %v8379_v32 = vadd.f32 1.0, %v12124_v7  ;;  %v5981_v62 = vadd.f32 %v5710_v18, %v14622_v11  ;;  %v11910_v11 = vld [vmem:[%s12603_s14 + $0x214] sm:$0xf]  ;;  %v10402_v7 = vor.u32 %v11776_v35, %v10401_v17 }
 0x7a4   : > { %8634 = vst [vmem:[%s15089_s26 + $0xe0] sm:$0xff] %v12126_v34  ;;  %12127 = vpow2.f32 %v8154_v13  ;;  %v7737_v22 = vadd.f32 %v7464_v56, %v5980_v25  ;;  %v11028_v53 = vor.u32 %v11910_v11, %v11025_v50 }
 0x7a5   : > { %12129 = vrcp.f32 %v8379_v32  ;;  %7176 = vmatmul.bf16.gmra.mxu1 %v11016_v26 }
 0x7a6   : > { %v7869_v40 = vadd.f32 %v15242_v42, %v7737_v22  ;;  %11393 = vmatmul.msk.bf16.gmra.mxu3 %vm970_vm1, %v11020_v16 }
 0x7a8   : > { %v7997_v1 = vsub.f32 0.0, %v7869_v40  ;;  %v5711_v63 = vpop.f32.mrf.mxu2  ;;  %v5385_v44 = vpop.f32.mrf.mxu0 }
 0x7a9   : > { %v7466_v60 = vpop.f32.mrf.mxu3  ;;  %v5712_v4 = vadd.f32 %v5711_v63, %v5382_v14  ;;  %v11033_v63 = vld [vmem:[%s12603_s14 + $0x228] sm:$0xf0] }
 0x7aa   : > { %v12128_v54 = vpop.eup %12127  ;;  %v8156_v28 = vmul.f32 1.442695, %v7997_v1  ;;  %v7467_v31 = vadd.f32 %v7466_v60, %v7137_v45  ;;  %v7139_v2 = vpop.f32.mrf.mxu1  ;;  %v11913_v1 = vld [vmem:[%s12603_s14 + $0x224] sm:$0xf0] }
 0x7ab   : > { %v12130_v51 = vpop.eup %12129  ;;  %v8380_v30 = vadd.f32 1.0, %v12128_v54  ;;  %5424 = vmatmul.bf16.gmra.mxu0 %v10394_v24  ;;  %v5982_v59 = vadd.f32 %v5712_v4, %v14636_v41  ;;  %v11775_v41 = vld [vmem:[%s12603_s14 + $0x204] sm:$0xf] }
 0x7ac   : > { %8635 = vst [vmem:[%s15089_s26 + $0xe8] sm:$0xff] %v12130_v51  ;;  %12131 = vpow2.f32 %v8156_v28  ;;  %v7738_v33 = vadd.f32 %v7467_v31, %v5981_v62  ;;  %v10406_v13 = vor.u32 %v11775_v41, %v10403_v36  ;;  %v11915_v41 = vld [vmem:[%s12603_s14 + $0x234] sm:$0xf0]  ;;  %v11041_v36 = vld [vmem:[%s12603_s14 + $0x238] sm:$0xf0] }
 0x7ad   : > { %12133 = vrcp.f32 %v8380_v30  ;;  %10764 = vmatmul.msk.bf16.gmra.mxu2 %vm970_vm1, %v10398_v8 }
 0x7ae   : > { %v7870_v43 = vadd.f32 %v15242_v42, %v7738_v33 }
 0x7b0   : > { %v7998_v6 = vsub.f32 0.0, %v7870_v43  ;;  %v5714_v19 = vpop.f32.mrf.mxu2  ;;  %v5387_v10 = vpop.f32.mrf.mxu0 }
 0x7b1   : > { %v7468_v37 = vpop.f32.mrf.mxu3  ;;  %v5715_v9 = vadd.f32 %v5714_v19, %v5385_v44  ;;  %v11032_v44 = vor.u32 %v11913_v1, %v11031_v48 }
 0x7b2   : > { %v12132_v3 = vpop.eup %12131  ;;  %v8158_v49 = vmul.f32 1.442695, %v7998_v6  ;;  %v7469_v20 = vadd.f32 %v7468_v37, %v7139_v2  ;;  %v7142_v0 = vpop.f32.mrf.mxu1  ;;  %v10411_v6 = vld [vmem:[%s12603_s14 + $0x218] sm:$0xf0] }
 0x7b3   : > { %v12134_v15 = vpop.eup %12133  ;;  %v8381_v38 = vadd.f32 1.0, %v12132_v3  ;;  %v5983_v16 = vadd.f32 %v5715_v9, %v14653_v12  ;;  %v11912_v12 = vld [vmem:[%s12603_s14 + $0x224] sm:$0xf] }
 0x7b4   : > { %8636 = vst [vmem:[%s15089_s26 + $0xf0] sm:$0xff] %v12134_v15  ;;  %12135 = vpow2.f32 %v8158_v49  ;;  %v7739_v47 = vadd.f32 %v7469_v20, %v5982_v59  ;;  %v11036_v30 = vor.u32 %v11912_v12, %v11033_v63  ;;  %v10419_v12 = vld [vmem:[%s12603_s14 + $0x228] sm:$0xf0] }
 0x7b5   : > { %12137 = vrcp.f32 %v8381_v38  ;;  %7181 = vmatmul.bf16.gmra.mxu1 %v11024_v27  ;;  %v10410_v27 = vor.u32 %v11778_v29, %v10409_v57 }
 0x7b6   : > { %v7871_v23 = vadd.f32 %v15242_v42, %v7739_v47  ;;  %11394 = vmatmul.msk.bf16.gmra.mxu3 %vm970_vm1, %v11028_v53 }
 0x7b8   : > { %v7999_v26 = vsub.f32 0.0, %v7871_v23  ;;  %v5716_v14 = vpop.f32.mrf.mxu2  ;;  %v5390_v56 = vpop.f32.mrf.mxu0  ;;  %v11039_v23 = vld [vmem:[%s12603_s14 + $0x230] sm:$0xf] }
 0x7b9   : > { %v7471_v25 = vpop.f32.mrf.mxu3  ;;  %v5717_v40 = vadd.f32 %v5716_v14, %v5387_v10 }
 0x7ba   : > { %v12136_v45 = vpop.eup %12135  ;;  %v8160_v34 = vmul.f32 1.442695, %v7999_v26  ;;  %v7472_v32 = vadd.f32 %v7471_v25, %v7142_v0  ;;  %v7144_v22 = vpop.f32.mrf.mxu1  ;;  %v11040_v25 = vor.u32 %v11915_v41, %v11039_v23  ;;  %v11782_v23 = vld [vmem:[%s12603_s14 + $0x234] sm:$0xf0] }
 0x7bb   : > { %v12138_v58 = vpop.eup %12137  ;;  %v8382_v39 = vadd.f32 1.0, %v12136_v45  ;;  %5429 = vmatmul.bf16.gmra.mxu0 %v10402_v7  ;;  %v5984_v28 = vadd.f32 %v5717_v40, %v14667_v46  ;;  %v11777_v46 = vld [vmem:[%s12603_s14 + $0x214] sm:$0xf]  ;;  %v10417_v40 = vld [vmem:[%s12603_s14 + $0x220] sm:$0xf] }
 0x7bc   : > { %8637 = vst [vmem:[%s15089_s26 + $0xf8] sm:$0xff] %v12138_v58  ;;  %12139 = vpow2.f32 %v8160_v34  ;;  %v7740_v18 = vadd.f32 %v7472_v32, %v5983_v16  ;;  %v10414_v3 = vor.u32 %v11777_v46, %v10411_v6  ;;  %v11916_v46 = vld [vmem:[%s12603_s14 + $0x244] sm:$0xf]  ;;  %v11049_v6 = vld [vmem:[%s12603_s14 + $0x248] sm:$0xf0] }
 0x7bd   : > { %12141 = vrcp.f32 %v8382_v39  ;;  %10765 = vmatmul.msk.bf16.gmra.mxu2 %vm970_vm1, %v10406_v13 }
 0x7be   : > { %v7872_v52 = vadd.f32 %v15242_v42, %v7740_v18 }
 0x7c0   : > { %v8000_v24 = vsub.f32 0.0, %v7872_v52  ;;  %v5719_v60 = vpop.f32.mrf.mxu2  ;;  %v5392_v54 = vpop.f32.mrf.mxu0  ;;  %v11780_v52 = vld [vmem:[%s12603_s14 + $0x224] sm:$0xf0] }
 0x7c1   : > { %v7473_v8 = vpop.f32.mrf.mxu3  ;;  %v5720_v11 = vadd.f32 %v5719_v60, %v5390_v56  ;;  %v10418_v60 = vor.u32 %v11780_v52, %v10417_v40 }
 0x7c2   : > { %v12140_v62 = vpop.eup %12139  ;;  %v8162_v31 = vmul.f32 1.442695, %v8000_v24  ;;  %v7474_v2 = vadd.f32 %v7473_v8, %v7144_v22  ;;  %v7147_v51 = vpop.f32.mrf.mxu1 }
 0x7c3   : > { %v12142_v33 = vpop.eup %12141  ;;  %v8383_v4 = vadd.f32 1.0, %v12140_v62  ;;  %v5985_v20 = vadd.f32 %v5720_v11, %v14687_v61  ;;  %v11914_v61 = vld [vmem:[%s12603_s14 + $0x234] sm:$0xf]  ;;  %v11047_v11 = vld [vmem:[%s12603_s14 + $0x240] sm:$0xf] }
 0x7c4   : > { %8638 = vst [vmem:[%s15089_s26 + $0x100] sm:$0xff] %v12142_v33  ;;  %12143 = vpow2.f32 %v8162_v31  ;;  %v7741_v43 = vadd.f32 %v7474_v2, %v5984_v28  ;;  %v11044_v22 = vor.u32 %v11914_v61, %v11041_v36  ;;  %v16720_v28 = vld [vmem:[#allocation35_spill] sm:$0xff]  ;;  %v11781_v36 = vld [vmem:[%s12603_s14 + $0x234] sm:$0xf] }
 0x7c5   : > { %12145 = vrcp.f32 %v8383_v4  ;;  %7186 = vmatmul.bf16.gmra.mxu1 %v11032_v44 }
 0x7c6   : > { %v7873_v50 = vadd.f32 %v15242_v42, %v7741_v43  ;;  %11395 = vmatmul.msk.bf16.gmra.mxu3 %vm970_vm1, %v11036_v30 }
 0x7c8   : > { %v8001_v19 = vsub.f32 0.0, %v7873_v50  ;;  %v5721_v37 = vpop.f32.mrf.mxu2  ;;  %v5395_v59 = vpop.f32.mrf.mxu0  ;;  %v11917_v50 = vld [vmem:[%s12603_s14 + $0x244] sm:$0xf0] }
 0x7c9   : > { %v7476_v10 = vpop.f32.mrf.mxu3  ;;  %v5722_v35 = vadd.f32 %v5721_v37, %v5392_v54 }
 0x7ca   : > { %v12144_v49 = vpop.eup %12143  ;;  %v8164_v0 = vmul.f32 1.442695, %v8001_v19  ;;  %v7477_v53 = vadd.f32 %v7476_v10, %v7147_v51  ;;  %v7149_v15 = vpop.f32.mrf.mxu1  ;;  %v11048_v10 = vor.u32 %v11917_v50, %v11047_v11 }
 0x7cb   : > { %v12146_v38 = vpop.eup %12145  ;;  %v8384_v47 = vadd.f32 1.0, %v12144_v49  ;;  %5434 = vmatmul.bf16.gmra.mxu0 %v10410_v27  ;;  %v5986_v45 = vadd.f32 %v5722_v35, %v14701_v21  ;;  %v11779_v21 = vld [vmem:[%s12603_s14 + $0x224] sm:$0xf]  ;;  %v16721_v49 = vld [vmem:[#allocation224_spill] sm:$0xff] }
 0x7cc   : > { %8639 = vst [vmem:[%s15089_s26 + $0x108] sm:$0xff] %v12146_v38  ;;  %12147 = vpow2.f32 %v8164_v0  ;;  %v7742_v17 = vadd.f32 %v7477_v53, %v5985_v20  ;;  %v10422_v44 = vor.u32 %v11779_v21, %v10419_v12  ;;  %v11052_v38 = vor.u32 %v11916_v46, %v11049_v6  ;;  %v11919_v21 = vld [vmem:[%s12603_s14 + $0x254] sm:$0xf0]  ;;  %v11057_v12 = vld [vmem:[%s12603_s14 + $0x258] sm:$0xf0] }
 0x7cd   : > { %12149 = vrcp.f32 %v8384_v47  ;;  %10766 = vmatmul.msk.bf16.gmra.mxu2 %vm970_vm1, %v10414_v3  ;;  %v11783_v46 = vld [vmem:[%s12603_s14 + $0x244] sm:$0xf]  ;;  %v10435_v6 = vld [vmem:[%s12603_s14 + $0x248] sm:$0xf0] }
 0x7ce   : > { %v7874_v9 = vadd.f32 %v15242_v42, %v7742_v17 }
 0x7d0   : > { %v8002_v26 = vsub.f32 0.0, %v7874_v9  ;;  %v5724_v14 = vpop.f32.mrf.mxu2  ;;  %v5397_v13 = vpop.f32.mrf.mxu0  ;;  %v10425_v9 = vld [vmem:[%s12603_s14 + $0x230] sm:$0xf] }
 0x7d1   : > { %v7478_v7 = vpop.f32.mrf.mxu3  ;;  %v5725_v48 = vadd.f32 %v5724_v14, %v5395_v59 }
 0x7d2   : > { %v12148_v56 = vpop.eup %12147  ;;  %v8166_v16 = vmul.f32 1.442695, %v8002_v26  ;;  %v7479_v34 = vadd.f32 %v7478_v7, %v7149_v15  ;;  %v7152_v32 = vpop.f32.mrf.mxu1  ;;  %v10427_v26 = vld [vmem:[%s12603_s14 + $0x238] sm:$0xf0] }
 0x7d3   : > { %v12150_v58 = vpop.eup %12149  ;;  %v8385_v39 = vadd.f32 1.0, %v12148_v56  ;;  %v5987_v31 = vadd.f32 %v5725_v48, %v16720_v28  ;;  %v10430_v56 = vor.u32 %v11781_v36, %v10427_v26 }
 0x7d4   : > { %8640 = vst [vmem:[%s15089_s26 + $0x110] sm:$0xff] %v12150_v58  ;;  %12151 = vpow2.f32 %v8166_v16  ;;  %v7743_v18 = vadd.f32 %v7479_v34, %v5986_v45 }
 0x7d5   : > { %12153 = vrcp.f32 %v8385_v39  ;;  %7191 = vmatmul.bf16.gmra.mxu1 %v11040_v25  ;;  %v10426_v25 = vor.u32 %v11782_v23, %v10425_v9  ;;  %v11063_v9 = vld [vmem:[%s12603_s14 + $0x260] sm:$0xf]  ;;  %v11921_v23 = vld [vmem:[%s12603_s14 + $0x264] sm:$0xf0] }
 0x7d6   : > { %v7875_v1 = vadd.f32 %v15242_v42, %v7743_v18  ;;  %11396 = vmatmul.msk.bf16.gmra.mxu3 %vm970_vm1, %v11044_v22 }
 0x7d8   : > { %v8003_v63 = vsub.f32 0.0, %v7875_v1  ;;  %v5726_v24 = vpop.f32.mrf.mxu2  ;;  %v5400_v54 = vpop.f32.mrf.mxu0  ;;  %v11055_v1 = vld [vmem:[%s12603_s14 + $0x250] sm:$0xf] }
 0x7d9   : > { %v7481_v8 = vpop.f32.mrf.mxu3  ;;  %v5727_v57 = vadd.f32 %v5726_v24, %v5397_v13 }
 0x7da   : > { %v12152_v62 = vpop.eup %12151  ;;  %v8168_v2 = vmul.f32 1.442695, %v8003_v63  ;;  %v7482_v51 = vadd.f32 %v7481_v8, %v7152_v32  ;;  %v7154_v30 = vpop.f32.mrf.mxu1  ;;  %v11056_v8 = vor.u32 %v11919_v21, %v11055_v1  ;;  %v11785_v21 = vld [vmem:[%s12603_s14 + $0x254] sm:$0xf] }
 0x7db   : > { %v12154_v33 = vpop.eup %12153  ;;  %v8386_v4 = vadd.f32 1.0, %v12152_v62  ;;  %5439 = vmatmul.bf16.gmra.mxu0 %v10418_v60  ;;  %v5988_v20 = vadd.f32 %v5727_v57, %v16721_v49  ;;  %v16722_v62 = vld [vmem:[#allocation39_spill] sm:$0xff]  ;;  %v10433_v57 = vld [vmem:[%s12603_s14 + $0x240] sm:$0xf] }
 0x7dc   : > { %8641 = vst [vmem:[%s15089_s26 + $0x118] sm:$0xff] %v12154_v33  ;;  %12155 = vpow2.f32 %v8168_v2  ;;  %v7744_v43 = vadd.f32 %v7482_v51, %v5987_v31 }
 0x7dd   : > { %12157 = vrcp.f32 %v8386_v4  ;;  %10767 = vmatmul.msk.bf16.gmra.mxu2 %vm970_vm1, %v10422_v44 }
 0x7de   : > { %v7876_v29 = vadd.f32 %v15242_v42, %v7744_v43 }
 0x7e0   : > { %v8004_v19 = vsub.f32 0.0, %v7876_v29  ;;  %v5729_v37 = vpop.f32.mrf.mxu2  ;;  %v5402_v3 = vpop.f32.mrf.mxu0  ;;  %v11784_v29 = vld [vmem:[%s12603_s14 + $0x244] sm:$0xf0] }
 0x7e1   : > { %v7483_v27 = vpop.f32.mrf.mxu3  ;;  %v5730_v41 = vadd.f32 %v5729_v37, %v5400_v54 }
 0x7e2   : > { %v12156_v59 = vpop.eup %12155  ;;  %v8170_v0 = vmul.f32 1.442695, %v8004_v19  ;;  %v7484_v53 = vadd.f32 %v7483_v27, %v7154_v30  ;;  %v7157_v15 = vpop.f32.mrf.mxu1  ;;  %v10434_v27 = vor.u32 %v11784_v29, %v10433_v57  ;;  %v11071_v29 = vld [vmem:[%s12603_s14 + $0x270] sm:$0xf] }
 0x7e3   : > { %v12158_v47 = vpop.eup %12157  ;;  %v8387_v17 = vadd.f32 1.0, %v12156_v59  ;;  %v5989_v34 = vadd.f32 %v5730_v41, %v14749_v55  ;;  %v11918_v55 = vld [vmem:[%s12603_s14 + $0x254] sm:$0xf]  ;;  %v11920_v41 = vld [vmem:[%s12603_s14 + $0x264] sm:$0xf] }
 0x7e4   : > { %8642 = vst [vmem:[%s15089_s26 + $0x120] sm:$0xff] %v12158_v47  ;;  %12159 = vpow2.f32 %v8170_v0  ;;  %v7745_v35 = vadd.f32 %v7484_v53, %v5988_v20  ;;  %v11060_v30 = vor.u32 %v11918_v55, %v11057_v12  ;;  %v10443_v55 = vld [vmem:[%s12603_s14 + $0x258] sm:$0xf0] }
 0x7e5   : > { %12161 = vrcp.f32 %v8387_v17  ;;  %7196 = vmatmul.bf16.gmra.mxu1 %v11048_v10 }
 0x7e6   : > { %v7877_v61 = vadd.f32 %v15242_v42, %v7745_v35  ;;  %11397 = vmatmul.msk.bf16.gmra.mxu3 %vm970_vm1, %v11052_v38 }
 0x7e8   : > { %v8005_v14 = vsub.f32 0.0, %v7877_v61  ;;  %v5731_v7 = vpop.f32.mrf.mxu2  ;;  %v5405_v45 = vpop.f32.mrf.mxu0  ;;  %v11065_v61 = vld [vmem:[%s12603_s14 + $0x268] sm:$0xf0] }
 0x7e9   : > { %v7486_v13 = vpop.f32.mrf.mxu3  ;;  %v5732_v52 = vadd.f32 %v5731_v7, %v5402_v3  ;;  %v10438_v3 = vor.u32 %v11783_v46, %v10435_v6  ;;  %v11064_v7 = vor.u32 %v11921_v23, %v11063_v9  ;;  %v11073_v46 = vld [vmem:[%s12603_s14 + $0x278] sm:$0xf0] }
 0x7ea   : > { %v12160_v16 = vpop.eup %12159  ;;  %v8172_v32 = vmul.f32 1.442695, %v8005_v14  ;;  %v7487_v22 = vadd.f32 %v7486_v13, %v7157_v15  ;;  %v7159_v58 = vpop.f32.mrf.mxu1 }
 0x7eb   : > { %v12162_v39 = vpop.eup %12161  ;;  %v8388_v18 = vadd.f32 1.0, %v12160_v16  ;;  %5444 = vmatmul.bf16.gmra.mxu0 %v10426_v25  ;;  %v5990_v28 = vadd.f32 %v5732_v52, %v16722_v62  ;;  %v11786_v52 = vld [vmem:[%s12603_s14 + $0x254] sm:$0xf0]  ;;  %v16724_v62 = vld [vmem:[#allocation226_spill] sm:$0xff] }
 0x7ec   : > { %8643 = vst [vmem:[%s15089_s26 + $0x128] sm:$0xff] %v12162_v39  ;;  %12163 = vpow2.f32 %v8172_v32  ;;  %v7746_v40 = vadd.f32 %v7487_v22, %v5989_v34  ;;  %v11068_v22 = vor.u32 %v11920_v41, %v11065_v61  ;;  %v11787_v41 = vld [vmem:[%s12603_s14 + $0x264] sm:$0xf]  ;;  %v10451_v61 = vld [vmem:[%s12603_s14 + $0x268] sm:$0xf0] }
 0x7ed   : > { %12165 = vrcp.f32 %v8388_v18  ;;  %10768 = vmatmul.msk.bf16.gmra.mxu2 %vm970_vm1, %v10430_v56  ;;  %v16723_v56 = vld [vmem:[#allocation41_spill] sm:$0xff] }
 0x7ee   : > { %v7878_v48 = vadd.f32 %v15242_v42, %v7746_v40  ;;  %v10441_v40 = vld [vmem:[%s12603_s14 + $0x250] sm:$0xf] }
 0x7f0   : > { %v8006_v63 = vsub.f32 0.0, %v7878_v48  ;;  %v5734_v24 = vpop.f32.mrf.mxu2  ;;  %v5407_v44 = vpop.f32.mrf.mxu0 }
 0x7f1   : > { %v7488_v60 = vpop.f32.mrf.mxu3  ;;  %v5735_v11 = vadd.f32 %v5734_v24, %v5405_v45  ;;  %v10442_v24 = vor.u32 %v11786_v52, %v10441_v40 }
 0x7f2   : > { %v12164_v54 = vpop.eup %12163  ;;  %v8174_v31 = vmul.f32 1.442695, %v8006_v63  ;;  %v7489_v2 = vadd.f32 %v7488_v60, %v7159_v58  ;;  %v7162_v51 = vpop.f32.mrf.mxu1 }
 0x7f3   : > { %v12166_v33 = vpop.eup %12165  ;;  %v8389_v4 = vadd.f32 1.0, %v12164_v54  ;;  %v5991_v20 = vadd.f32 %v5735_v11, %v14776_v5  ;;  %v15414_v5 = vld [vmem:[%s16030_s2] ss:$0 sm:$0xff]  ;;  %v11923_v11 = vld [vmem:[%s12603_s14 + $0x274] sm:$0xf0] }
 0x7f4   : > { %8644 = vst [vmem:[%s15089_s26 + $0x130] sm:$0xff] %v12166_v33  ;;  %12167 = vpow2.f32 %v8174_v31  ;;  %v7747_v43 = vadd.f32 %v7489_v2, %v5990_v28 }
 0x7f5   : > { %12169 = vrcp.f32 %v8389_v4  ;;  %7201 = vmatmul.bf16.gmra.mxu1 %v11056_v8  ;;  %v10446_v8 = vor.u32 %v11785_v21, %v10443_v55  ;;  %v11924_v21 = vld [vmem:[%s12603_s14 + $0x284] sm:$0xf]  ;;  %v11081_v55 = vld [vmem:[%s12603_s14 + $0x288] sm:$0xf0] }
 0x7f6   : > { %v7879_v50 = vadd.f32 %v15242_v42, %v7747_v43  ;;  %11398 = vmatmul.msk.bf16.gmra.mxu3 %vm970_vm1, %v11060_v30 }
 0x7f8   : > { %v8007_v19 = vsub.f32 0.0, %v7879_v50  ;;  %v5736_v37 = vpop.f32.mrf.mxu2  ;;  %v5410_v59 = vpop.f32.mrf.mxu0  ;;  %v11922_v50 = vld [vmem:[%s12603_s14 + $0x274] sm:$0xf] }
 0x7f9   : > { %v7491_v10 = vpop.f32.mrf.mxu3  ;;  %v5737_v17 = vadd.f32 %v5736_v37, %v5407_v44 }
 0x7fa   : > { %v12168_v49 = vpop.eup %12167  ;;  %v8176_v0 = vmul.f32 1.442695, %v8007_v19  ;;  %v7492_v53 = vadd.f32 %v7491_v10, %v7162_v51  ;;  %v7164_v42 = vpop.f32.mrf.mxu1 }
 0x7fb   : > { %v12170_v15 = vpop.eup %12169  ;;  %v8390_v38 = vadd.f32 1.0, %v12168_v49  ;;  %5449 = vmatmul.bf16.gmra.mxu0 %v10434_v27  ;;  %v5992_v45 = vadd.f32 %v5737_v17, %v16723_v56  ;;  %v11072_v27 = vor.u32 %v11923_v11, %v11071_v29  ;;  %v10449_v17 = vld [vmem:[%s12603_s14 + $0x260] sm:$0xf] }
 0x7fc   : > { %8645 = vst [vmem:[%s15089_s26 + $0x138] sm:$0xff] %v12170_v15  ;;  %12171 = vpow2.f32 %v8176_v0  ;;  %v7748_v47 = vadd.f32 %v7492_v53, %v5991_v20 }
 0x7fd   : > { %12173 = vrcp.f32 %v8390_v38  ;;  %10769 = vmatmul.msk.bf16.gmra.mxu2 %vm970_vm1, %v10438_v3 }
 0x7fe   : > { %v7880_v35 = vadd.f32 %v15414_v5, %v7748_v47 }
 0x800   : > { %v8008_v36 = vsub.f32 0.0, %v7880_v35  ;;  %v5739_v26 = vpop.f32.mrf.mxu2  ;;  %v5412_v25 = vpop.f32.mrf.mxu0  ;;  %v11788_v35 = vld [vmem:[%s12603_s14 + $0x264] sm:$0xf0] }
 0x801   : > { %v7493_v14 = vpop.f32.mrf.mxu3  ;;  %v5740_v48 = vadd.f32 %v5739_v26, %v5410_v59  ;;  %v16725_v59 = vld [vmem:[#allocation44_spill] sm:$0xff] }
 0x802   : > { %v12172_v13 = vpop.eup %12171  ;;  %v8178_v16 = vmul.f32 1.442695, %v8008_v36  ;;  %v7494_v34 = vadd.f32 %v7493_v14, %v7164_v42  ;;  %v7167_v32 = vpop.f32.mrf.mxu1  ;;  %v11076_v42 = vor.u32 %v11922_v50, %v11073_v46  ;;  %v10450_v14 = vor.u32 %v11788_v35, %v10449_v17  ;;  %v11789_v50 = vld [vmem:[%s12603_s14 + $0x274] sm:$0xf]  ;;  %v10459_v46 = vld [vmem:[%s12603_s14 + $0x278] sm:$0xf0] }
 0x803   : > { %v12174_v58 = vpop.eup %12173  ;;  %v8391_v39 = vadd.f32 1.0, %v12172_v13  ;;  %v5993_v28 = vadd.f32 %v5740_v48, %v16724_v62  ;;  %v11079_v48 = vld [vmem:[%s12603_s14 + $0x280] sm:$0xf] }
 0x804   : > { %8646 = vst [vmem:[%s15089_s26 + $0x140] sm:$0xff] %v12174_v58  ;;  %12175 = vpow2.f32 %v8178_v16  ;;  %v7749_v18 = vadd.f32 %v7494_v34, %v5992_v45  ;;  %v16726_v45 = vld [vmem:[#allocation227_spill] sm:$0xff] }
 0x805   : > { %12177 = vrcp.f32 %v8391_v39  ;;  %7206 = vmatmul.bf16.gmra.mxu1 %v11064_v7 }
 0x806   : > { %v7881_v1 = vadd.f32 %v15414_v5, %v7749_v18  ;;  %11399 = vmatmul.msk.bf16.gmra.mxu3 %vm970_vm1, %v11068_v22 }
 0x808   : > { %v8009_v12 = vsub.f32 0.0, %v7881_v1  ;;  %v5741_v63 = vpop.f32.mrf.mxu2  ;;  %v5415_v44 = vpop.f32.mrf.mxu0  ;;  %v11925_v1 = vld [vmem:[%s12603_s14 + $0x284] sm:$0xf0] }
 0x809   : > { %v7496_v60 = vpop.f32.mrf.mxu3  ;;  %v5742_v43 = vadd.f32 %v5741_v63, %v5412_v25  ;;  %v10454_v25 = vor.u32 %v11787_v41, %v10451_v61  ;;  %v11926_v41 = vld [vmem:[%s12603_s14 + $0x294] sm:$0xf]  ;;  %v11089_v61 = vld [vmem:[%s12603_s14 + $0x298] sm:$0xf0] }
 0x80a   : > { %v12176_v54 = vpop.eup %12175  ;;  %v8180_v31 = vmul.f32 1.442695, %v8009_v12  ;;  %v7497_v2 = vadd.f32 %v7496_v60, %v7167_v32  ;;  %v7169_v51 = vpop.f32.mrf.mxu1  ;;  %v11080_v60 = vor.u32 %v11925_v1, %v11079_v48 }
 0x80b   : > { %v12178_v30 = vpop.eup %12177  ;;  %v8392_v33 = vadd.f32 1.0, %v12176_v54  ;;  %5454 = vmatmul.bf16.gmra.mxu0 %v10442_v24  ;;  %v5994_v49 = vadd.f32 %v5742_v43, %v16725_v59  ;;  %v16727_v54 = vld [vmem:[#allocation47_spill] sm:$0xff]  ;;  %v10457_v43 = vld [vmem:[%s12603_s14 + $0x270] sm:$0xf] }
 0x80c   : > { %8647 = vst [vmem:[%s15089_s26 + $0x148] sm:$0xff] %v12178_v30  ;;  %12179 = vpow2.f32 %v8180_v31  ;;  %v7750_v4 = vadd.f32 %v7497_v2, %v5993_v28 }
 0x80d   : > { %12181 = vrcp.f32 %v8392_v33  ;;  %10770 = vmatmul.msk.bf16.gmra.mxu2 %vm970_vm1, %v10446_v8 }
 0x80e   : > { %v7882_v57 = vadd.f32 %v15414_v5, %v7750_v4 }
 0x810   : > { %v8010_v6 = vsub.f32 0.0, %v7882_v57  ;;  %v5744_v19 = vpop.f32.mrf.mxu2  ;;  %v5417_v10 = vpop.f32.mrf.mxu0  ;;  %v11790_v57 = vld [vmem:[%s12603_s14 + $0x274] sm:$0xf0] }
 0x811   : > { %v7498_v37 = vpop.f32.mrf.mxu3  ;;  %v5745_v9 = vadd.f32 %v5744_v19, %v5415_v44 }
 0x812   : > { %v12180_v3 = vpop.eup %12179  ;;  %v8182_v20 = vmul.f32 1.442695, %v8010_v6  ;;  %v7499_v0 = vadd.f32 %v7498_v37, %v7169_v51  ;;  %v7172_v53 = vpop.f32.mrf.mxu1  ;;  %v11084_v51 = vor.u32 %v11924_v21, %v11081_v55  ;;  %v10458_v37 = vor.u32 %v11790_v57, %v10457_v43  ;;  %v11791_v21 = vld [vmem:[%s12603_s14 + $0x284] sm:$0xf]  ;;  %v10467_v55 = vld [vmem:[%s12603_s14 + $0x288] sm:$0xf0] }
 0x813   : > { %v12182_v15 = vpop.eup %12181  ;;  %v8393_v38 = vadd.f32 1.0, %v12180_v3  ;;  %v5995_v16 = vadd.f32 %v5745_v9, %v16726_v45  ;;  %v11087_v9 = vld [vmem:[%s12603_s14 + $0x290] sm:$0xf] }
 0x814   : > { %8648 = vst [vmem:[%s15089_s26 + $0x150] sm:$0xff] %v12182_v15  ;;  %12183 = vpow2.f32 %v8182_v20  ;;  %v7751_v47 = vadd.f32 %v7499_v0, %v5994_v49  ;;  %v16728_v49 = vld [vmem:[#allocation228_spill] sm:$0xff] }
 0x815   : > { %12185 = vrcp.f32 %v8393_v38  ;;  %7211 = vmatmul.bf16.gmra.mxu1 %v11072_v27 }
 0x816   : > { %v7883_v23 = vadd.f32 %v15414_v5, %v7751_v47  ;;  %11400 = vmatmul.msk.bf16.gmra.mxu3 %vm970_vm1, %v11076_v42 }
 0x818   : > { %v8011_v36 = vsub.f32 0.0, %v7883_v23  ;;  %v5746_v26 = vpop.f32.mrf.mxu2  ;;  %v5420_v13 = vpop.f32.mrf.mxu0  ;;  %v11927_v23 = vld [vmem:[%s12603_s14 + $0x294] sm:$0xf0] }
 0x819   : > { %v7501_v7 = vpop.f32.mrf.mxu3  ;;  %v5747_v40 = vadd.f32 %v5746_v26, %v5417_v10  ;;  %v10462_v10 = vor.u32 %v11789_v50, %v10459_v46  ;;  %v11928_v50 = vld [vmem:[%s12603_s14 + $0x2a4] sm:$0xf]  ;;  %v11097_v46 = vld [vmem:[%s12603_s14 + $0x2a8] sm:$0xf0] }
 0x81a   : > { %v12184_v56 = vpop.eup %12183  ;;  %v8184_v34 = vmul.f32 1.442695, %v8011_v36  ;;  %v7502_v32 = vadd.f32 %v7501_v7, %v7172_v53  ;;  %v7174_v22 = vpop.f32.mrf.mxu1  ;;  %v11088_v7 = vor.u32 %v11927_v23, %v11087_v9 }
 0x81b   : > { %v12186_v58 = vpop.eup %12185  ;;  %v8394_v39 = vadd.f32 1.0, %v12184_v56  ;;  %5459 = vmatmul.bf16.gmra.mxu0 %v10450_v14  ;;  %v5996_v62 = vadd.f32 %v5747_v40, %v16727_v54  ;;  %v16729_v56 = vld [vmem:[#allocation50_spill] sm:$0xff] }
 0x81c   : > { %8649 = vst [vmem:[%s15089_s26 + $0x158] sm:$0xff] %v12186_v58  ;;  %12187 = vpow2.f32 %v8184_v34  ;;  %v7752_v18 = vadd.f32 %v7502_v32, %v5995_v16  ;;  %v10465_v40 = vld [vmem:[%s12603_s14 + $0x280] sm:$0xf] }
 0x81d   : > { %12189 = vrcp.f32 %v8394_v39  ;;  %10771 = vmatmul.msk.bf16.gmra.mxu2 %vm970_vm1, %v10454_v25 }
 0x81e   : > { %v7884_v52 = vadd.f32 %v15414_v5, %v7752_v18 }
 0x820   : > { %v8012_v12 = vsub.f32 0.0, %v7884_v52  ;;  %v5749_v63 = vpop.f32.mrf.mxu2  ;;  %v5422_v8 = vpop.f32.mrf.mxu0  ;;  %v11792_v52 = vld [vmem:[%s12603_s14 + $0x284] sm:$0xf0] }
 0x821   : > { %v7503_v24 = vpop.f32.mrf.mxu3  ;;  %v5750_v29 = vadd.f32 %v5749_v63, %v5420_v13 }
 0x822   : > { %v12188_v44 = vpop.eup %12187  ;;  %v8186_v28 = vmul.f32 1.442695, %v8012_v12  ;;  %v7504_v31 = vadd.f32 %v7503_v24, %v7174_v22  ;;  %v7177_v2 = vpop.f32.mrf.mxu1  ;;  %v11092_v22 = vor.u32 %v11926_v41, %v11089_v61  ;;  %v10466_v24 = vor.u32 %v11792_v52, %v10465_v40  ;;  %v11793_v41 = vld [vmem:[%s12603_s14 + $0x294] sm:$0xf]  ;;  %v10475_v61 = vld [vmem:[%s12603_s14 + $0x298] sm:$0xf0] }
 0x823   : > { %v12190_v30 = vpop.eup %12189  ;;  %v8395_v33 = vadd.f32 1.0, %v12188_v44  ;;  %v5997_v20 = vadd.f32 %v5750_v29, %v16728_v49  ;;  %v11095_v29 = vld [vmem:[%s12603_s14 + $0x2a0] sm:$0xf] }
 0x824   : > { %8650 = vst [vmem:[%s15089_s26 + $0x160] sm:$0xff] %v12190_v30  ;;  %12191 = vpow2.f32 %v8186_v28  ;;  %v7753_v4 = vadd.f32 %v7504_v31, %v5996_v62  ;;  %v16730_v62 = vld [vmem:[#allocation229_spill] sm:$0xff] }
 0x825   : > { %12193 = vrcp.f32 %v8395_v33  ;;  %7216 = vmatmul.bf16.gmra.mxu1 %v11080_v60 }
 0x826   : > { %v7885_v11 = vadd.f32 %v15414_v5, %v7753_v4  ;;  %11401 = vmatmul.msk.bf16.gmra.mxu3 %vm970_vm1, %v11084_v51 }
 0x828   : > { %v8013_v6 = vsub.f32 0.0, %v7885_v11  ;;  %v5751_v19 = vpop.f32.mrf.mxu2  ;;  %v5425_v3 = vpop.f32.mrf.mxu0  ;;  %v11929_v11 = vld [vmem:[%s12603_s14 + $0x2a4] sm:$0xf0] }
 0x829   : > { %v7506_v27 = vpop.f32.mrf.mxu3  ;;  %v5752_v17 = vadd.f32 %v5751_v19, %v5422_v8  ;;  %v10470_v8 = vor.u32 %v11791_v21, %v10467_v55  ;;  %v11930_v21 = vld [vmem:[%s12603_s14 + $0x2b4] sm:$0xf]  ;;  %v11105_v55 = vld [vmem:[%s12603_s14 + $0x2b8] sm:$0xf0] }
 0x82a   : > { %v12192_v59 = vpop.eup %12191  ;;  %v8188_v0 = vmul.f32 1.442695, %v8013_v6  ;;  %v7507_v53 = vadd.f32 %v7506_v27, %v7177_v2  ;;  %v7179_v42 = vpop.f32.mrf.mxu1  ;;  %v11096_v27 = vor.u32 %v11929_v11, %v11095_v29 }
 0x82b   : > { %v12194_v15 = vpop.eup %12193  ;;  %v8396_v38 = vadd.f32 1.0, %v12192_v59  ;;  %5464 = vmatmul.bf16.gmra.mxu0 %v10458_v37  ;;  %v5998_v45 = vadd.f32 %v5752_v17, %v16729_v56  ;;  %v16731_v59 = vld [vmem:[#allocation53_spill] sm:$0xff]  ;;  %v10473_v17 = vld [vmem:[%s12603_s14 + $0x290] sm:$0xf] }
 0x82c   : > { %8651 = vst [vmem:[%s15089_s26 + $0x168] sm:$0xff] %v12194_v15  ;;  %12195 = vpow2.f32 %v8188_v0  ;;  %v7754_v47 = vadd.f32 %v7507_v53, %v5997_v20 }
 0x82d   : > { %12197 = vrcp.f32 %v8396_v38  ;;  %10772 = vmatmul.msk.bf16.gmra.mxu2 %vm970_vm1, %v10462_v10 }
 0x82e   : > { %v7886_v35 = vadd.f32 %v15414_v5, %v7754_v47 }
 0x830   : > { %v8014_v36 = vsub.f32 0.0, %v7886_v35  ;;  %v5754_v26 = vpop.f32.mrf.mxu2  ;;  %v5427_v25 = vpop.f32.mrf.mxu0  ;;  %v11794_v35 = vld [vmem:[%s12603_s14 + $0x294] sm:$0xf0] }
 0x831   : > { %v7508_v14 = vpop.f32.mrf.mxu3  ;;  %v5755_v48 = vadd.f32 %v5754_v26, %v5425_v3 }
 0x832   : > { %v12196_v13 = vpop.eup %12195  ;;  %v8190_v16 = vmul.f32 1.442695, %v8014_v36  ;;  %v7509_v34 = vadd.f32 %v7508_v14, %v7179_v42  ;;  %v7182_v32 = vpop.f32.mrf.mxu1  ;;  %v11100_v42 = vor.u32 %v11928_v50, %v11097_v46  ;;  %v10474_v14 = vor.u32 %v11794_v35, %v10473_v17  ;;  %v11795_v50 = vld [vmem:[%s12603_s14 + $0x2a4] sm:$0xf]  ;;  %v10483_v46 = vld [vmem:[%s12603_s14 + $0x2a8] sm:$0xf0] }
 0x833   : > { %v12198_v58 = vpop.eup %12197  ;;  %v8397_v39 = vadd.f32 1.0, %v12196_v13  ;;  %v5999_v28 = vadd.f32 %v5755_v48, %v16730_v62  ;;  %v11103_v48 = vld [vmem:[%s12603_s14 + $0x2b0] sm:$0xf] }
 0x834   : > { %8652 = vst [vmem:[%s15089_s26 + $0x170] sm:$0xff] %v12198_v58  ;;  %12199 = vpow2.f32 %v8190_v16  ;;  %v7755_v18 = vadd.f32 %v7509_v34, %v5998_v45  ;;  %v16732_v45 = vld [vmem:[#allocation230_spill] sm:$0xff] }
 0x835   : > { %12201 = vrcp.f32 %v8397_v39  ;;  %7221 = vmatmul.bf16.gmra.mxu1 %v11088_v7 }
 0x836   : > { %v7887_v1 = vadd.f32 %v15414_v5, %v7755_v18  ;;  %11402 = vmatmul.msk.bf16.gmra.mxu3 %vm970_vm1, %v11092_v22 }
 0x838   : > { %v8015_v12 = vsub.f32 0.0, %v7887_v1  ;;  %v5756_v63 = vpop.f32.mrf.mxu2  ;;  %v5430_v44 = vpop.f32.mrf.mxu0  ;;  %v11931_v1 = vld [vmem:[%s12603_s14 + $0x2b4] sm:$0xf0] }
 0x839   : > { %v7511_v60 = vpop.f32.mrf.mxu3  ;;  %v5757_v43 = vadd.f32 %v5756_v63, %v5427_v25  ;;  %v10478_v25 = vor.u32 %v11793_v41, %v10475_v61  ;;  %v11932_v41 = vld [vmem:[%s12603_s14 + $0x2c4] sm:$0xf]  ;;  %v11113_v61 = vld [vmem:[%s12603_s14 + $0x2c8] sm:$0xf0] }
 0x83a   : > { %v12200_v54 = vpop.eup %12199  ;;  %v8192_v31 = vmul.f32 1.442695, %v8015_v12  ;;  %v7512_v2 = vadd.f32 %v7511_v60, %v7182_v32  ;;  %v7184_v51 = vpop.f32.mrf.mxu1  ;;  %v11104_v60 = vor.u32 %v11931_v1, %v11103_v48 }
 0x83b   : > { %v12202_v30 = vpop.eup %12201  ;;  %v8398_v33 = vadd.f32 1.0, %v12200_v54  ;;  %5469 = vmatmul.bf16.gmra.mxu0 %v10466_v24  ;;  %v6000_v49 = vadd.f32 %v5757_v43, %v16731_v59  ;;  %v16733_v54 = vld [vmem:[#allocation56_spill] sm:$0xff]  ;;  %v10481_v43 = vld [vmem:[%s12603_s14 + $0x2a0] sm:$0xf] }
 0x83c   : > { %8653 = vst [vmem:[%s15089_s26 + $0x178] sm:$0xff] %v12202_v30  ;;  %12203 = vpow2.f32 %v8192_v31  ;;  %v7756_v4 = vadd.f32 %v7512_v2, %v5999_v28 }
 0x83d   : > { %12205 = vrcp.f32 %v8398_v33  ;;  %10773 = vmatmul.msk.bf16.gmra.mxu2 %vm970_vm1, %v10470_v8 }
 0x83e   : > { %v7888_v57 = vadd.f32 %v15414_v5, %v7756_v4 }
 0x840   : > { %v8016_v6 = vsub.f32 0.0, %v7888_v57  ;;  %v5759_v19 = vpop.f32.mrf.mxu2  ;;  %v5432_v10 = vpop.f32.mrf.mxu0  ;;  %v11796_v57 = vld [vmem:[%s12603_s14 + $0x2a4] sm:$0xf0] }
 0x841   : > { %v7513_v37 = vpop.f32.mrf.mxu3  ;;  %v5760_v9 = vadd.f32 %v5759_v19, %v5430_v44 }
 0x842   : > { %v12204_v3 = vpop.eup %12203  ;;  %v8194_v20 = vmul.f32 1.442695, %v8016_v6  ;;  %v7514_v0 = vadd.f32 %v7513_v37, %v7184_v51  ;;  %v7187_v53 = vpop.f32.mrf.mxu1  ;;  %v11108_v51 = vor.u32 %v11930_v21, %v11105_v55  ;;  %v10482_v37 = vor.u32 %v11796_v57, %v10481_v43  ;;  %v11797_v21 = vld [vmem:[%s12603_s14 + $0x2b4] sm:$0xf]  ;;  %v10491_v55 = vld [vmem:[%s12603_s14 + $0x2b8] sm:$0xf0] }
 0x843   : > { %v12206_v15 = vpop.eup %12205  ;;  %v8399_v38 = vadd.f32 1.0, %v12204_v3  ;;  %v6001_v16 = vadd.f32 %v5760_v9, %v16732_v45  ;;  %v11111_v9 = vld [vmem:[%s12603_s14 + $0x2c0] sm:$0xf] }
 0x844   : > { %8654 = vst [vmem:[%s15089_s26 + $0x180] sm:$0xff] %v12206_v15  ;;  %12207 = vpow2.f32 %v8194_v20  ;;  %v7757_v47 = vadd.f32 %v7514_v0, %v6000_v49  ;;  %v16734_v49 = vld [vmem:[#allocation231_spill] sm:$0xff] }
 0x845   : > { %12209 = vrcp.f32 %v8399_v38  ;;  %7226 = vmatmul.bf16.gmra.mxu1 %v11096_v27 }
 0x846   : > { %v7889_v23 = vadd.f32 %v15414_v5, %v7757_v47  ;;  %11403 = vmatmul.msk.bf16.gmra.mxu3 %vm970_vm1, %v11100_v42 }
 0x848   : > { %v8017_v36 = vsub.f32 0.0, %v7889_v23  ;;  %v5761_v26 = vpop.f32.mrf.mxu2  ;;  %v5435_v13 = vpop.f32.mrf.mxu0  ;;  %v11933_v23 = vld [vmem:[%s12603_s14 + $0x2c4] sm:$0xf0] }
 0x849   : > { %v7516_v7 = vpop.f32.mrf.mxu3  ;;  %v5762_v40 = vadd.f32 %v5761_v26, %v5432_v10  ;;  %v10486_v10 = vor.u32 %v11795_v50, %v10483_v46  ;;  %v11934_v50 = vld [vmem:[%s12603_s14 + $0x2d4] sm:$0xf]  ;;  %v11121_v46 = vld [vmem:[%s12603_s14 + $0x2d8] sm:$0xf0] }
 0x84a   : > { %v12208_v56 = vpop.eup %12207  ;;  %v8196_v34 = vmul.f32 1.442695, %v8017_v36  ;;  %v7517_v32 = vadd.f32 %v7516_v7, %v7187_v53  ;;  %v7189_v22 = vpop.f32.mrf.mxu1  ;;  %v11112_v7 = vor.u32 %v11933_v23, %v11111_v9 }
 0x84b   : > { %v12210_v58 = vpop.eup %12209  ;;  %v8400_v39 = vadd.f32 1.0, %v12208_v56  ;;  %5474 = vmatmul.bf16.gmra.mxu0 %v10474_v14  ;;  %v6002_v62 = vadd.f32 %v5762_v40, %v16733_v54  ;;  %v16735_v56 = vld [vmem:[#allocation59_spill] sm:$0xff]  ;;  %v10489_v40 = vld [vmem:[%s12603_s14 + $0x2b0] sm:$0xf] }
 0x84c   : > { %8655 = vst [vmem:[%s15089_s26 + $0x188] sm:$0xff] %v12210_v58  ;;  %12211 = vpow2.f32 %v8196_v34  ;;  %v7758_v18 = vadd.f32 %v7517_v32, %v6001_v16 }
 0x84d   : > { %12213 = vrcp.f32 %v8400_v39  ;;  %10774 = vmatmul.msk.bf16.gmra.mxu2 %vm970_vm1, %v10478_v25 }
 0x84e   : > { %v7890_v52 = vadd.f32 %v15414_v5, %v7758_v18 }
 0x850   : > { %v8018_v12 = vsub.f32 0.0, %v7890_v52  ;;  %v5764_v63 = vpop.f32.mrf.mxu2  ;;  %v5437_v8 = vpop.f32.mrf.mxu0  ;;  %v11798_v52 = vld [vmem:[%s12603_s14 + $0x2b4] sm:$0xf0] }
 0x851   : > { %v7518_v24 = vpop.f32.mrf.mxu3  ;;  %v5765_v29 = vadd.f32 %v5764_v63, %v5435_v13 }
 0x852   : > { %v12212_v44 = vpop.eup %12211  ;;  %v8198_v28 = vmul.f32 1.442695, %v8018_v12  ;;  %v7519_v31 = vadd.f32 %v7518_v24, %v7189_v22  ;;  %v7192_v2 = vpop.f32.mrf.mxu1  ;;  %v11116_v22 = vor.u32 %v11932_v41, %v11113_v61  ;;  %v10490_v24 = vor.u32 %v11798_v52, %v10489_v40  ;;  %v11799_v41 = vld [vmem:[%s12603_s14 + $0x2c4] sm:$0xf]  ;;  %v10499_v61 = vld [vmem:[%s12603_s14 + $0x2c8] sm:$0xf0] }
 0x853   : > { %v12214_v30 = vpop.eup %12213  ;;  %v8401_v33 = vadd.f32 1.0, %v12212_v44  ;;  %v6003_v20 = vadd.f32 %v5765_v29, %v16734_v49  ;;  %v11119_v29 = vld [vmem:[%s12603_s14 + $0x2d0] sm:$0xf] }
 0x854   : > { %8656 = vst [vmem:[%s15089_s26 + $0x190] sm:$0xff] %v12214_v30  ;;  %12215 = vpow2.f32 %v8198_v28  ;;  %v7759_v4 = vadd.f32 %v7519_v31, %v6002_v62  ;;  %v16736_v62 = vld [vmem:[#allocation232_spill] sm:$0xff] }
 0x855   : > { %12217 = vrcp.f32 %v8401_v33  ;;  %7231 = vmatmul.bf16.gmra.mxu1 %v11104_v60 }
 0x856   : > { %v7891_v11 = vadd.f32 %v15414_v5, %v7759_v4  ;;  %11404 = vmatmul.msk.bf16.gmra.mxu3 %vm970_vm1, %v11108_v51 }
 0x858   : > { %v8019_v6 = vsub.f32 0.0, %v7891_v11  ;;  %v5766_v19 = vpop.f32.mrf.mxu2  ;;  %v5440_v3 = vpop.f32.mrf.mxu0  ;;  %v11935_v11 = vld [vmem:[%s12603_s14 + $0x2d4] sm:$0xf0] }
 0x859   : > { %v7521_v27 = vpop.f32.mrf.mxu3  ;;  %v5767_v17 = vadd.f32 %v5766_v19, %v5437_v8  ;;  %v10494_v8 = vor.u32 %v11797_v21, %v10491_v55  ;;  %v11936_v21 = vld [vmem:[%s12603_s14 + $0x2e4] sm:$0xf]  ;;  %v11129_v55 = vld [vmem:[%s12603_s14 + $0x2e8] sm:$0xf0] }
 0x85a   : > { %v12216_v59 = vpop.eup %12215  ;;  %v8200_v0 = vmul.f32 1.442695, %v8019_v6  ;;  %v7522_v53 = vadd.f32 %v7521_v27, %v7192_v2  ;;  %v7194_v42 = vpop.f32.mrf.mxu1  ;;  %v11120_v27 = vor.u32 %v11935_v11, %v11119_v29 }
 0x85b   : > { %v12218_v15 = vpop.eup %12217  ;;  %v8402_v38 = vadd.f32 1.0, %v12216_v59  ;;  %5479 = vmatmul.bf16.gmra.mxu0 %v10482_v37  ;;  %v6004_v45 = vadd.f32 %v5767_v17, %v16735_v56  ;;  %v16737_v59 = vld [vmem:[#allocation62_spill] sm:$0xff] }
 0x85c   : > { %8657 = vst [vmem:[%s15089_s26 + $0x198] sm:$0xff] %v12218_v15  ;;  %12219 = vpow2.f32 %v8200_v0  ;;  %v7760_v47 = vadd.f32 %v7522_v53, %v6003_v20  ;;  %v10497_v17 = vld [vmem:[%s12603_s14 + $0x2c0] sm:$0xf] }
 0x85d   : > { %12221 = vrcp.f32 %v8402_v38  ;;  %10775 = vmatmul.msk.bf16.gmra.mxu2 %vm970_vm1, %v10486_v10 }
 0x85e   : > { %v7892_v35 = vadd.f32 %v15414_v5, %v7760_v47 }
 0x860   : > { %v8020_v36 = vsub.f32 0.0, %v7892_v35  ;;  %v5769_v26 = vpop.f32.mrf.mxu2  ;;  %v5442_v25 = vpop.f32.mrf.mxu0  ;;  %v11800_v35 = vld [vmem:[%s12603_s14 + $0x2c4] sm:$0xf0] }
 0x861   : > { %v7523_v14 = vpop.f32.mrf.mxu3  ;;  %v5770_v48 = vadd.f32 %v5769_v26, %v5440_v3 }
 0x862   : > { %v12220_v13 = vpop.eup %12219  ;;  %v8202_v16 = vmul.f32 1.442695, %v8020_v36  ;;  %v7524_v34 = vadd.f32 %v7523_v14, %v7194_v42  ;;  %v7197_v32 = vpop.f32.mrf.mxu1  ;;  %v11124_v42 = vor.u32 %v11934_v50, %v11121_v46  ;;  %v10498_v14 = vor.u32 %v11800_v35, %v10497_v17  ;;  %v11801_v50 = vld [vmem:[%s12603_s14 + $0x2d4] sm:$0xf]  ;;  %v10507_v46 = vld [vmem:[%s12603_s14 + $0x2d8] sm:$0xf0] }
 0x863   : > { %v12222_v58 = vpop.eup %12221  ;;  %v8403_v39 = vadd.f32 1.0, %v12220_v13  ;;  %v6005_v28 = vadd.f32 %v5770_v48, %v16736_v62  ;;  %v11127_v48 = vld [vmem:[%s12603_s14 + $0x2e0] sm:$0xf] }
 0x864   : > { %8658 = vst [vmem:[%s15089_s26 + $0x1a0] sm:$0xff] %v12222_v58  ;;  %12223 = vpow2.f32 %v8202_v16  ;;  %v7761_v18 = vadd.f32 %v7524_v34, %v6004_v45  ;;  %v16738_v45 = vld [vmem:[#allocation233_spill] sm:$0xff] }
 0x865   : > { %12225 = vrcp.f32 %v8403_v39  ;;  %7236 = vmatmul.bf16.gmra.mxu1 %v11112_v7 }
 0x866   : > { %v7893_v1 = vadd.f32 %v15414_v5, %v7761_v18  ;;  %11405 = vmatmul.msk.bf16.gmra.mxu3 %vm970_vm1, %v11116_v22 }
 0x868   : > { %v8021_v12 = vsub.f32 0.0, %v7893_v1  ;;  %v5771_v63 = vpop.f32.mrf.mxu2  ;;  %v5445_v44 = vpop.f32.mrf.mxu0  ;;  %v11937_v1 = vld [vmem:[%s12603_s14 + $0x2e4] sm:$0xf0] }
 0x869   : > { %v7526_v60 = vpop.f32.mrf.mxu3  ;;  %v5772_v43 = vadd.f32 %v5771_v63, %v5442_v25  ;;  %v10502_v25 = vor.u32 %v11799_v41, %v10499_v61  ;;  %v11938_v41 = vld [vmem:[%s12603_s14 + $0x2f4] sm:$0xf]  ;;  %v11137_v61 = vld [vmem:[%s12603_s14 + $0x2f8] sm:$0xf0] }
 0x86a   : > { %v12224_v54 = vpop.eup %12223  ;;  %v8204_v31 = vmul.f32 1.442695, %v8021_v12  ;;  %v7527_v2 = vadd.f32 %v7526_v60, %v7197_v32  ;;  %v7199_v51 = vpop.f32.mrf.mxu1  ;;  %v11128_v60 = vor.u32 %v11937_v1, %v11127_v48 }
 0x86b   : > { %v12226_v30 = vpop.eup %12225  ;;  %v8404_v33 = vadd.f32 1.0, %v12224_v54  ;;  %5484 = vmatmul.bf16.gmra.mxu0 %v10490_v24  ;;  %v6006_v49 = vadd.f32 %v5772_v43, %v16737_v59  ;;  %v16739_v54 = vld [vmem:[#allocation65_spill] sm:$0xff]  ;;  %v10505_v43 = vld [vmem:[%s12603_s14 + $0x2d0] sm:$0xf] }
 0x86c   : > { %8659 = vst [vmem:[%s15089_s26 + $0x1a8] sm:$0xff] %v12226_v30  ;;  %12227 = vpow2.f32 %v8204_v31  ;;  %v7762_v4 = vadd.f32 %v7527_v2, %v6005_v28 }
 0x86d   : > { %12229 = vrcp.f32 %v8404_v33  ;;  %10776 = vmatmul.msk.bf16.gmra.mxu2 %vm970_vm1, %v10494_v8 }
 0x86e   : > { %v7894_v57 = vadd.f32 %v15414_v5, %v7762_v4 }
 0x870   : > { %v8022_v6 = vsub.f32 0.0, %v7894_v57  ;;  %v5774_v19 = vpop.f32.mrf.mxu2  ;;  %v5447_v10 = vpop.f32.mrf.mxu0  ;;  %v11802_v57 = vld [vmem:[%s12603_s14 + $0x2d4] sm:$0xf0] }
 0x871   : > { %v7528_v37 = vpop.f32.mrf.mxu3  ;;  %v5775_v9 = vadd.f32 %v5774_v19, %v5445_v44 }
 0x872   : > { %v12228_v3 = vpop.eup %12227  ;;  %v8206_v20 = vmul.f32 1.442695, %v8022_v6  ;;  %v7529_v0 = vadd.f32 %v7528_v37, %v7199_v51  ;;  %v7202_v53 = vpop.f32.mrf.mxu1  ;;  %v11132_v51 = vor.u32 %v11936_v21, %v11129_v55  ;;  %v10506_v37 = vor.u32 %v11802_v57, %v10505_v43  ;;  %v11803_v21 = vld [vmem:[%s12603_s14 + $0x2e4] sm:$0xf]  ;;  %v10515_v55 = vld [vmem:[%s12603_s14 + $0x2e8] sm:$0xf0] }
 0x873   : > { %v12230_v15 = vpop.eup %12229  ;;  %v8405_v38 = vadd.f32 1.0, %v12228_v3  ;;  %v6007_v16 = vadd.f32 %v5775_v9, %v16738_v45  ;;  %v11135_v9 = vld [vmem:[%s12603_s14 + $0x2f0] sm:$0xf] }
 0x874   : > { %8660 = vst [vmem:[%s15089_s26 + $0x1b0] sm:$0xff] %v12230_v15  ;;  %12231 = vpow2.f32 %v8206_v20  ;;  %v7763_v47 = vadd.f32 %v7529_v0, %v6006_v49  ;;  %v16740_v49 = vld [vmem:[#allocation234_spill] sm:$0xff] }
 0x875   : > { %12233 = vrcp.f32 %v8405_v38  ;;  %7241 = vmatmul.bf16.gmra.mxu1 %v11120_v27 }
 0x876   : > { %v7895_v23 = vadd.f32 %v15414_v5, %v7763_v47  ;;  %11406 = vmatmul.msk.bf16.gmra.mxu3 %vm970_vm1, %v11124_v42 }
 0x878   : > { %v8023_v36 = vsub.f32 0.0, %v7895_v23  ;;  %v5776_v26 = vpop.f32.mrf.mxu2  ;;  %v5450_v13 = vpop.f32.mrf.mxu0  ;;  %v11939_v23 = vld [vmem:[%s12603_s14 + $0x2f4] sm:$0xf0] }
 0x879   : > { %v7531_v7 = vpop.f32.mrf.mxu3  ;;  %v5777_v40 = vadd.f32 %v5776_v26, %v5447_v10  ;;  %v10510_v10 = vor.u32 %v11801_v50, %v10507_v46  ;;  %v11940_v50 = vld [vmem:[%s12603_s14 + $0x304] sm:$0xf]  ;;  %v11145_v46 = vld [vmem:[%s12603_s14 + $0x308] sm:$0xf0] }
 0x87a   : > { %v12232_v56 = vpop.eup %12231  ;;  %v8208_v34 = vmul.f32 1.442695, %v8023_v36  ;;  %v7532_v32 = vadd.f32 %v7531_v7, %v7202_v53  ;;  %v7204_v22 = vpop.f32.mrf.mxu1  ;;  %v11136_v7 = vor.u32 %v11939_v23, %v11135_v9  ;;  %v15588_v9 = vld [vmem:[%s16030_s2] ss:$0 sm:$0xff] }
 0x87b   : > { %v12234_v58 = vpop.eup %12233  ;;  %v8406_v39 = vadd.f32 1.0, %v12232_v56  ;;  %5489 = vmatmul.bf16.gmra.mxu0 %v10498_v14  ;;  %v6008_v62 = vadd.f32 %v5777_v40, %v16739_v54  ;;  %v16741_v56 = vld [vmem:[#allocation68_spill] sm:$0xff]  ;;  %v10513_v40 = vld [vmem:[%s12603_s14 + $0x2e0] sm:$0xf] }
 0x87c   : > { %8661 = vst [vmem:[%s15089_s26 + $0x1b8] sm:$0xff] %v12234_v58  ;;  %12235 = vpow2.f32 %v8208_v34  ;;  %v7764_v18 = vadd.f32 %v7532_v32, %v6007_v16 }
 0x87d   : > { %12237 = vrcp.f32 %v8406_v39  ;;  %10777 = vmatmul.msk.bf16.gmra.mxu2 %vm970_vm1, %v10502_v25 }
 0x87e   : > { %v7896_v52 = vadd.f32 %v15414_v5, %v7764_v18 }
 0x880   : > { %v8024_v12 = vsub.f32 0.0, %v7896_v52  ;;  %v5779_v63 = vpop.f32.mrf.mxu2  ;;  %v5452_v8 = vpop.f32.mrf.mxu0  ;;  %v11804_v52 = vld [vmem:[%s12603_s14 + $0x2e4] sm:$0xf0] }
 0x881   : > { %v7533_v24 = vpop.f32.mrf.mxu3  ;;  %v5780_v29 = vadd.f32 %v5779_v63, %v5450_v13 }
 0x882   : > { %v12236_v44 = vpop.eup %12235  ;;  %v8210_v28 = vmul.f32 1.442695, %v8024_v12  ;;  %v7534_v31 = vadd.f32 %v7533_v24, %v7204_v22  ;;  %v7207_v2 = vpop.f32.mrf.mxu1  ;;  %v11140_v22 = vor.u32 %v11938_v41, %v11137_v61  ;;  %v10514_v24 = vor.u32 %v11804_v52, %v10513_v40  ;;  %v11805_v41 = vld [vmem:[%s12603_s14 + $0x2f4] sm:$0xf]  ;;  %v10523_v61 = vld [vmem:[%s12603_s14 + $0x2f8] sm:$0xf0] }
 0x883   : > { %v12238_v30 = vpop.eup %12237  ;;  %v8407_v33 = vadd.f32 1.0, %v12236_v44  ;;  %v6009_v20 = vadd.f32 %v5780_v29, %v16740_v49  ;;  %v11143_v29 = vld [vmem:[%s12603_s14 + $0x300] sm:$0xf] }
 0x884   : > { %8662 = vst [vmem:[%s15089_s26 + $0x1c0] sm:$0xff] %v12238_v30  ;;  %12239 = vpow2.f32 %v8210_v28  ;;  %v7765_v4 = vadd.f32 %v7534_v31, %v6008_v62  ;;  %v16742_v62 = vld [vmem:[#allocation213_spill] sm:$0xff] }
 0x885   : > { %12241 = vrcp.f32 %v8407_v33  ;;  %7246 = vmatmul.bf16.gmra.mxu1 %v11128_v60 }
 0x886   : > { %v7897_v11 = vadd.f32 %v15414_v5, %v7765_v4  ;;  %11407 = vmatmul.msk.bf16.gmra.mxu3 %vm970_vm1, %v11132_v51 }
 0x888   : > { %v8025_v6 = vsub.f32 0.0, %v7897_v11  ;;  %v5781_v19 = vpop.f32.mrf.mxu2  ;;  %v5455_v3 = vpop.f32.mrf.mxu0  ;;  %v11941_v11 = vld [vmem:[%s12603_s14 + $0x304] sm:$0xf0] }
 0x889   : > { %v7536_v27 = vpop.f32.mrf.mxu3  ;;  %v5782_v17 = vadd.f32 %v5781_v19, %v5452_v8  ;;  %v10518_v8 = vor.u32 %v11803_v21, %v10515_v55  ;;  %v11942_v21 = vld [vmem:[%s12603_s14 + $0x314] sm:$0xf]  ;;  %v11153_v55 = vld [vmem:[%s12603_s14 + $0x318] sm:$0xf0] }
 0x88a   : > { %v12240_v59 = vpop.eup %12239  ;;  %v8212_v0 = vmul.f32 1.442695, %v8025_v6  ;;  %v7537_v53 = vadd.f32 %v7536_v27, %v7207_v2  ;;  %v7209_v42 = vpop.f32.mrf.mxu1  ;;  %v11144_v27 = vor.u32 %v11941_v11, %v11143_v29 }
 0x88b   : > { %v12242_v15 = vpop.eup %12241  ;;  %v8408_v38 = vadd.f32 1.0, %v12240_v59  ;;  %5494 = vmatmul.bf16.gmra.mxu0 %v10506_v37  ;;  %v6010_v45 = vadd.f32 %v5782_v17, %v16741_v56  ;;  %v16743_v59 = vld [vmem:[#allocation209_spill] sm:$0xff] }
 0x88c   : > { %8663 = vst [vmem:[%s15089_s26 + $0x1c8] sm:$0xff] %v12242_v15  ;;  %12243 = vpow2.f32 %v8212_v0  ;;  %v7766_v47 = vadd.f32 %v7537_v53, %v6009_v20  ;;  %v11806_v17 = vld [vmem:[%s12603_s14 + $0x2f4] sm:$0xf0] }
 0x88d   : > { %12245 = vrcp.f32 %v8408_v38  ;;  %10778 = vmatmul.msk.bf16.gmra.mxu2 %vm970_vm1, %v10510_v10 }
 0x88e   : > { %v7898_v35 = vadd.f32 %v15414_v5, %v7766_v47  ;;  %v10521_v47 = vld [vmem:[%s12603_s14 + $0x2f0] sm:$0xf] }
 0x890   : > { %v8026_v36 = vsub.f32 0.0, %v7898_v35  ;;  %v5784_v26 = vpop.f32.mrf.mxu2  ;;  %v5457_v25 = vpop.f32.mrf.mxu0 }
 0x891   : > { %v7538_v14 = vpop.f32.mrf.mxu3  ;;  %v5785_v48 = vadd.f32 %v5784_v26, %v5455_v3 }
 0x892   : > { %v12244_v13 = vpop.eup %12243  ;;  %v8214_v16 = vmul.f32 1.442695, %v8026_v36  ;;  %v7539_v34 = vadd.f32 %v7538_v14, %v7209_v42  ;;  %v7212_v32 = vpop.f32.mrf.mxu1  ;;  %v10522_v14 = vor.u32 %v11806_v17, %v10521_v47 }
 0x893   : > { %v12246_v58 = vpop.eup %12245  ;;  %v8409_v39 = vadd.f32 1.0, %v12244_v13  ;;  %v6011_v28 = vadd.f32 %v5785_v48, %v16742_v62  ;;  %v11151_v48 = vld [vmem:[%s12603_s14 + $0x310] sm:$0xf] }
 0x894   : > { %8664 = vst [vmem:[%s15089_s26 + $0x1d0] sm:$0xff] %v12246_v58  ;;  %12247 = vpow2.f32 %v8214_v16  ;;  %v7767_v18 = vadd.f32 %v7539_v34, %v6010_v45  ;;  %v16744_v45 = vld [vmem:[#allocation212_spill] sm:$0xff] }
 0x895   : > { %12249 = vrcp.f32 %v8409_v39  ;;  %7251 = vmatmul.bf16.gmra.mxu1 %v11136_v7 }
 0x896   : > { %v7899_v1 = vadd.f32 %v15414_v5, %v7767_v18  ;;  %11408 = vmatmul.msk.bf16.gmra.mxu3 %vm970_vm1, %v11140_v22 }
 0x898   : > { %v8027_v12 = vsub.f32 0.0, %v7899_v1  ;;  %v5786_v63 = vpop.f32.mrf.mxu2  ;;  %v5460_v44 = vpop.f32.mrf.mxu0  ;;  %v11943_v1 = vld [vmem:[%s12603_s14 + $0x314] sm:$0xf0] }
 0x899   : > { %v7541_v60 = vpop.f32.mrf.mxu3  ;;  %v5787_v43 = vadd.f32 %v5786_v63, %v5457_v25  ;;  %v10526_v25 = vor.u32 %v11805_v41, %v10523_v61  ;;  %v11944_v41 = vld [vmem:[%s12603_s14 + $0x324] sm:$0xf]  ;;  %v11161_v61 = vld [vmem:[%s12603_s14 + $0x328] sm:$0xf0] }
 0x89a   : > { %v12248_v54 = vpop.eup %12247  ;;  %v8216_v31 = vmul.f32 1.442695, %v8027_v12  ;;  %v7542_v2 = vadd.f32 %v7541_v60, %v7212_v32  ;;  %v7214_v51 = vpop.f32.mrf.mxu1  ;;  %v11152_v60 = vor.u32 %v11943_v1, %v11151_v48 }
 0x89b   : > { %v12250_v30 = vpop.eup %12249  ;;  %v8410_v33 = vadd.f32 1.0, %v12248_v54  ;;  %5499 = vmatmul.bf16.gmra.mxu0 %v10514_v24  ;;  %v6012_v49 = vadd.f32 %v5787_v43, %v16743_v59  ;;  %v16745_v54 = vld [vmem:[#allocation6_spill] sm:$0xff] }
 0x89c   : > { %8665 = vst [vmem:[%s15089_s26 + $0x1d8] sm:$0xff] %v12250_v30  ;;  %12251 = vpow2.f32 %v8216_v31  ;;  %v7768_v4 = vadd.f32 %v7542_v2, %v6011_v28  ;;  %v10529_v43 = vld [vmem:[%s12603_s14 + $0x300] sm:$0xf] }
 0x89d   : > { %12253 = vrcp.f32 %v8410_v33  ;;  %10779 = vmatmul.msk.bf16.gmra.mxu2 %vm970_vm1, %v10518_v8 }
 0x89e   : > { %v7900_v57 = vadd.f32 %v15414_v5, %v7768_v4  ;;  %v11148_v5 = vor.u32 %v11940_v50, %v11145_v46  ;;  %v11807_v50 = vld [vmem:[%s12603_s14 + $0x304] sm:$0xf]  ;;  %v10531_v46 = vld [vmem:[%s12603_s14 + $0x308] sm:$0xf0] }
 0x8a0   : > { %v8028_v6 = vsub.f32 0.0, %v7900_v57  ;;  %v5789_v19 = vpop.f32.mrf.mxu2  ;;  %v5462_v10 = vpop.f32.mrf.mxu0  ;;  %v11808_v57 = vld [vmem:[%s12603_s14 + $0x304] sm:$0xf0] }
 0x8a1   : > { %v7543_v37 = vpop.f32.mrf.mxu3  ;;  %v5790_v35 = vadd.f32 %v5789_v19, %v5460_v44 }
 0x8a2   : > { %v12252_v3 = vpop.eup %12251  ;;  %v8218_v20 = vmul.f32 1.442695, %v8028_v6  ;;  %v7544_v0 = vadd.f32 %v7543_v37, %v7214_v51  ;;  %v7217_v53 = vpop.f32.mrf.mxu1  ;;  %v11156_v51 = vor.u32 %v11942_v21, %v11153_v55  ;;  %v10530_v37 = vor.u32 %v11808_v57, %v10529_v43  ;;  %v11809_v21 = vld [vmem:[%s12603_s14 + $0x314] sm:$0xf]  ;;  %v10539_v55 = vld [vmem:[%s12603_s14 + $0x318] sm:$0xf0] }
 0x8a3   : > { %v12254_v42 = vpop.eup %12253  ;;  %v8411_v15 = vadd.f32 1.0, %v12252_v3  ;;  %v6013_v16 = vadd.f32 %v5790_v35, %v16744_v45  ;;  %v11159_v35 = vld [vmem:[%s12603_s14 + $0x320] sm:$0xf] }
 0x8a4   : > { %8666 = vst [vmem:[%s15089_s26 + $0x1e0] sm:$0xff] %v12254_v42  ;;  %12255 = vpow2.f32 %v8218_v20  ;;  %v7769_v38 = vadd.f32 %v7544_v0, %v6012_v49  ;;  %v16746_v49 = vld [vmem:[#allocation7_spill] sm:$0xff] }
 0x8a5   : > { %12257 = vrcp.f32 %v8411_v15  ;;  %7256 = vmatmul.bf16.gmra.mxu1 %v11144_v27 }
 0x8a6   : > { %v7901_v23 = vadd.f32 %v15588_v9, %v7769_v38  ;;  %11409 = vmatmul.msk.bf16.gmra.mxu3 %vm970_vm1, %v11148_v5 }
 0x8a8   : > { %v8029_v36 = vsub.f32 0.0, %v7901_v23  ;;  %v5791_v26 = vpop.f32.mrf.mxu2  ;;  %v5465_v13 = vpop.f32.mrf.mxu0  ;;  %v11945_v23 = vld [vmem:[%s12603_s14 + $0x324] sm:$0xf0] }
 0x8a9   : > { %v7546_v7 = vpop.f32.mrf.mxu3  ;;  %v5792_v40 = vadd.f32 %v5791_v26, %v5462_v10  ;;  %v10534_v10 = vor.u32 %v11807_v50, %v10531_v46  ;;  %v11946_v50 = vld [vmem:[%s12603_s14 + $0x334] sm:$0xf]  ;;  %v11169_v46 = vld [vmem:[%s12603_s14 + $0x338] sm:$0xf0] }
 0x8aa   : > { %v12256_v56 = vpop.eup %12255  ;;  %v8220_v34 = vmul.f32 1.442695, %v8029_v36  ;;  %v7547_v32 = vadd.f32 %v7546_v7, %v7217_v53  ;;  %v7219_v22 = vpop.f32.mrf.mxu1  ;;  %v11160_v7 = vor.u32 %v11945_v23, %v11159_v35 }
 0x8ab   : > { %v12258_v58 = vpop.eup %12257  ;;  %v8412_v39 = vadd.f32 1.0, %v12256_v56  ;;  %5504 = vmatmul.bf16.gmra.mxu0 %v10522_v14  ;;  %v6014_v62 = vadd.f32 %v5792_v40, %v16745_v54  ;;  %v16747_v56 = vld [vmem:[#allocation8_spill] sm:$0xff] }
 0x8ac   : > { %8667 = vst [vmem:[%s15089_s26 + $0x1e8] sm:$0xff] %v12258_v58  ;;  %12259 = vpow2.f32 %v8220_v34  ;;  %v7770_v18 = vadd.f32 %v7547_v32, %v6013_v16  ;;  %v10537_v40 = vld [vmem:[%s12603_s14 + $0x310] sm:$0xf] }
 0x8ad   : > { %12261 = vrcp.f32 %v8412_v39  ;;  %10780 = vmatmul.msk.bf16.gmra.mxu2 %vm970_vm1, %v10526_v25 }
 0x8ae   : > { %v7902_v52 = vadd.f32 %v15588_v9, %v7770_v18 }
 0x8b0   : > { %v8030_v12 = vsub.f32 0.0, %v7902_v52  ;;  %v5794_v63 = vpop.f32.mrf.mxu2  ;;  %v5467_v8 = vpop.f32.mrf.mxu0  ;;  %v11810_v52 = vld [vmem:[%s12603_s14 + $0x314] sm:$0xf0] }
 0x8b1   : > { %v7548_v24 = vpop.f32.mrf.mxu3  ;;  %v5795_v29 = vadd.f32 %v5794_v63, %v5465_v13 }
 0x8b2   : > { %v12260_v44 = vpop.eup %12259  ;;  %v8222_v28 = vmul.f32 1.442695, %v8030_v12  ;;  %v7549_v31 = vadd.f32 %v7548_v24, %v7219_v22  ;;  %v7222_v2 = vpop.f32.mrf.mxu1  ;;  %v11164_v22 = vor.u32 %v11944_v41, %v11161_v61  ;;  %v10538_v24 = vor.u32 %v11810_v52, %v10537_v40  ;;  %v11811_v41 = vld [vmem:[%s12603_s14 + $0x324] sm:$0xf]  ;;  %v10547_v61 = vld [vmem:[%s12603_s14 + $0x328] sm:$0xf0] }
 0x8b3   : > { %v12262_v30 = vpop.eup %12261  ;;  %v8413_v33 = vadd.f32 1.0, %v12260_v44  ;;  %v6015_v20 = vadd.f32 %v5795_v29, %v16746_v49  ;;  %v11167_v29 = vld [vmem:[%s12603_s14 + $0x330] sm:$0xf] }
 0x8b4   : > { %8668 = vst [vmem:[%s15089_s26 + $0x1f0] sm:$0xff] %v12262_v30  ;;  %12263 = vpow2.f32 %v8222_v28  ;;  %v7771_v4 = vadd.f32 %v7549_v31, %v6014_v62  ;;  %v16748_v62 = vld [vmem:[#allocation9_spill] sm:$0xff] }
 0x8b5   : > { %12265 = vrcp.f32 %v8413_v33  ;;  %7261 = vmatmul.bf16.gmra.mxu1 %v11152_v60 }
 0x8b6   : > { %v7903_v11 = vadd.f32 %v15588_v9, %v7771_v4  ;;  %11410 = vmatmul.msk.bf16.gmra.mxu3 %vm970_vm1, %v11156_v51 }
 0x8b8   : > { %v8031_v6 = vsub.f32 0.0, %v7903_v11  ;;  %v5796_v19 = vpop.f32.mrf.mxu2  ;;  %v5470_v3 = vpop.f32.mrf.mxu0  ;;  %v11947_v11 = vld [vmem:[%s12603_s14 + $0x334] sm:$0xf0] }
 0x8b9   : > { %v7551_v27 = vpop.f32.mrf.mxu3  ;;  %v5797_v47 = vadd.f32 %v5796_v19, %v5467_v8  ;;  %v10542_v8 = vor.u32 %v11809_v21, %v10539_v55  ;;  %v11948_v21 = vld [vmem:[%s12603_s14 + $0x344] sm:$0xf]  ;;  %v11177_v55 = vld [vmem:[%s12603_s14 + $0x348] sm:$0xf0] }
 0x8ba   : > { %v12264_v59 = vpop.eup %12263  ;;  %v8224_v0 = vmul.f32 1.442695, %v8031_v6  ;;  %v7552_v53 = vadd.f32 %v7551_v27, %v7222_v2  ;;  %v7224_v5 = vpop.f32.mrf.mxu1  ;;  %v11168_v27 = vor.u32 %v11947_v11, %v11167_v29 }
 0x8bb   : > { %v12266_v42 = vpop.eup %12265  ;;  %v8414_v15 = vadd.f32 1.0, %v12264_v59  ;;  %5509 = vmatmul.bf16.gmra.mxu0 %v10530_v37  ;;  %v6016_v45 = vadd.f32 %v5797_v47, %v16747_v56  ;;  %v16749_v59 = vld [vmem:[#allocation215_spill] sm:$0xff]  ;;  %v10545_v47 = vld [vmem:[%s12603_s14 + $0x320] sm:$0xf] }
 0x8bc   : > { %8669 = vst [vmem:[%s15089_s26 + $0x1f8] sm:$0xff] %v12266_v42  ;;  %12267 = vpow2.f32 %v8224_v0  ;;  %v7772_v38 = vadd.f32 %v7552_v53, %v6015_v20 }
 0x8bd   : > { %12269 = vrcp.f32 %v8414_v15  ;;  %10781 = vmatmul.msk.bf16.gmra.mxu2 %vm970_vm1, %v10534_v10 }
 0x8be   : > { %v7904_v17 = vadd.f32 %v15588_v9, %v7772_v38 }
 0x8c0   : > { %v8032_v36 = vsub.f32 0.0, %v7904_v17  ;;  %v5799_v26 = vpop.f32.mrf.mxu2  ;;  %v5472_v25 = vpop.f32.mrf.mxu0  ;;  %v11812_v17 = vld [vmem:[%s12603_s14 + $0x324] sm:$0xf0] }
 0x8c1   : > { %v7553_v14 = vpop.f32.mrf.mxu3  ;;  %v5800_v48 = vadd.f32 %v5799_v26, %v5470_v3 }
 0x8c2   : > { %v12268_v13 = vpop.eup %12267  ;;  %v8226_v16 = vmul.f32 1.442695, %v8032_v36  ;;  %v7554_v34 = vadd.f32 %v7553_v14, %v7224_v5  ;;  %v7227_v32 = vpop.f32.mrf.mxu1  ;;  %v11172_v5 = vor.u32 %v11946_v50, %v11169_v46  ;;  %v10546_v14 = vor.u32 %v11812_v17, %v10545_v47  ;;  %v11813_v50 = vld [vmem:[%s12603_s14 + $0x334] sm:$0xf]  ;;  %v10555_v46 = vld [vmem:[%s12603_s14 + $0x338] sm:$0xf0] }
 0x8c3   : > { %v12270_v58 = vpop.eup %12269  ;;  %v8415_v39 = vadd.f32 1.0, %v12268_v13  ;;  %v6017_v28 = vadd.f32 %v5800_v48, %v16748_v62  ;;  %v11175_v48 = vld [vmem:[%s12603_s14 + $0x340] sm:$0xf] }
 0x8c4   : > { %8670 = vst [vmem:[%s15089_s26 + $0x200] sm:$0xff] %v12270_v58  ;;  %12271 = vpow2.f32 %v8226_v16  ;;  %v7773_v18 = vadd.f32 %v7554_v34, %v6016_v45  ;;  %v16750_v45 = vld [vmem:[#allocation10_spill] sm:$0xff] }
 0x8c5   : > { %12273 = vrcp.f32 %v8415_v39  ;;  %7266 = vmatmul.bf16.gmra.mxu1 %v11160_v7 }
 0x8c6   : > { %v7905_v1 = vadd.f32 %v15588_v9, %v7773_v18  ;;  %11411 = vmatmul.msk.bf16.gmra.mxu3 %vm970_vm1, %v11164_v22 }
 0x8c8   : > { %v8033_v12 = vsub.f32 0.0, %v7905_v1  ;;  %v5801_v63 = vpop.f32.mrf.mxu2  ;;  %v5475_v44 = vpop.f32.mrf.mxu0  ;;  %v11949_v1 = vld [vmem:[%s12603_s14 + $0x344] sm:$0xf0] }
 0x8c9   : > { %v7556_v60 = vpop.f32.mrf.mxu3  ;;  %v5802_v43 = vadd.f32 %v5801_v63, %v5472_v25  ;;  %v10550_v25 = vor.u32 %v11811_v41, %v10547_v61  ;;  %v11950_v41 = vld [vmem:[%s12603_s14 + $0x354] sm:$0xf]  ;;  %v11185_v61 = vld [vmem:[%s12603_s14 + $0x358] sm:$0xf0] }
 0x8ca   : > { %v12272_v54 = vpop.eup %12271  ;;  %v8228_v31 = vmul.f32 1.442695, %v8033_v12  ;;  %v7557_v2 = vadd.f32 %v7556_v60, %v7227_v32  ;;  %v7229_v51 = vpop.f32.mrf.mxu1  ;;  %v11176_v60 = vor.u32 %v11949_v1, %v11175_v48 }
 0x8cb   : > { %v12274_v30 = vpop.eup %12273  ;;  %v8416_v33 = vadd.f32 1.0, %v12272_v54  ;;  %5514 = vmatmul.bf16.gmra.mxu0 %v10538_v24  ;;  %v6018_v49 = vadd.f32 %v5802_v43, %v16749_v59  ;;  %v16751_v54 = vld [vmem:[#allocation11_spill] sm:$0xff]  ;;  %v10553_v43 = vld [vmem:[%s12603_s14 + $0x330] sm:$0xf] }
 0x8cc   : > { %8671 = vst [vmem:[%s15089_s26 + $0x208] sm:$0xff] %v12274_v30  ;;  %12275 = vpow2.f32 %v8228_v31  ;;  %v7774_v4 = vadd.f32 %v7557_v2, %v6017_v28 }
 0x8cd   : > { %12277 = vrcp.f32 %v8416_v33  ;;  %10782 = vmatmul.msk.bf16.gmra.mxu2 %vm970_vm1, %v10542_v8 }
 0x8ce   : > { %v7906_v57 = vadd.f32 %v15588_v9, %v7774_v4 }
 0x8d0   : > { %v8034_v6 = vsub.f32 0.0, %v7906_v57  ;;  %v5804_v19 = vpop.f32.mrf.mxu2  ;;  %v5477_v10 = vpop.f32.mrf.mxu0  ;;  %v11814_v57 = vld [vmem:[%s12603_s14 + $0x334] sm:$0xf0] }
 0x8d1   : > { %v7558_v37 = vpop.f32.mrf.mxu3  ;;  %v5805_v35 = vadd.f32 %v5804_v19, %v5475_v44 }
 0x8d2   : > { %v12276_v3 = vpop.eup %12275  ;;  %v8230_v20 = vmul.f32 1.442695, %v8034_v6  ;;  %v7559_v0 = vadd.f32 %v7558_v37, %v7229_v51  ;;  %v7232_v53 = vpop.f32.mrf.mxu1  ;;  %v11180_v51 = vor.u32 %v11948_v21, %v11177_v55  ;;  %v10554_v37 = vor.u32 %v11814_v57, %v10553_v43  ;;  %v11815_v21 = vld [vmem:[%s12603_s14 + $0x344] sm:$0xf]  ;;  %v10563_v55 = vld [vmem:[%s12603_s14 + $0x348] sm:$0xf0] }
 0x8d3   : > { %v12278_v42 = vpop.eup %12277  ;;  %v8417_v15 = vadd.f32 1.0, %v12276_v3  ;;  %v6019_v16 = vadd.f32 %v5805_v35, %v16750_v45  ;;  %v11183_v35 = vld [vmem:[%s12603_s14 + $0x350] sm:$0xf] }
 0x8d4   : > { %8672 = vst [vmem:[%s15089_s26 + $0x210] sm:$0xff] %v12278_v42  ;;  %12279 = vpow2.f32 %v8230_v20  ;;  %v7775_v38 = vadd.f32 %v7559_v0, %v6018_v49  ;;  %v16752_v49 = vld [vmem:[#allocation12_spill] sm:$0xff] }
 0x8d5   : > { %12281 = vrcp.f32 %v8417_v15  ;;  %7271 = vmatmul.bf16.gmra.mxu1 %v11168_v27 }
 0x8d6   : > { %v7907_v23 = vadd.f32 %v15588_v9, %v7775_v38  ;;  %11412 = vmatmul.msk.bf16.gmra.mxu3 %vm970_vm1, %v11172_v5 }
 0x8d8   : > { %v8035_v36 = vsub.f32 0.0, %v7907_v23  ;;  %v5806_v26 = vpop.f32.mrf.mxu2  ;;  %v5480_v13 = vpop.f32.mrf.mxu0  ;;  %v11951_v23 = vld [vmem:[%s12603_s14 + $0x354] sm:$0xf0] }
 0x8d9   : > { %v7561_v7 = vpop.f32.mrf.mxu3  ;;  %v5807_v40 = vadd.f32 %v5806_v26, %v5477_v10  ;;  %v10558_v10 = vor.u32 %v11813_v50, %v10555_v46  ;;  %v11952_v50 = vld [vmem:[%s12603_s14 + $0x364] sm:$0xf]  ;;  %v11193_v46 = vld [vmem:[%s12603_s14 + $0x368] sm:$0xf0] }
 0x8da   : > { %v12280_v56 = vpop.eup %12279  ;;  %v8232_v34 = vmul.f32 1.442695, %v8035_v36  ;;  %v7562_v32 = vadd.f32 %v7561_v7, %v7232_v53  ;;  %v7234_v22 = vpop.f32.mrf.mxu1  ;;  %v11184_v7 = vor.u32 %v11951_v23, %v11183_v35 }
 0x8db   : > { %v12282_v58 = vpop.eup %12281  ;;  %v8418_v39 = vadd.f32 1.0, %v12280_v56  ;;  %5519 = vmatmul.bf16.gmra.mxu0 %v10546_v14  ;;  %v6020_v62 = vadd.f32 %v5807_v40, %v16751_v54  ;;  %v16753_v56 = vld [vmem:[#allocation216_spill] sm:$0xff]  ;;  %v10561_v40 = vld [vmem:[%s12603_s14 + $0x340] sm:$0xf] }
 0x8dc   : > { %8673 = vst [vmem:[%s15089_s26 + $0x218] sm:$0xff] %v12282_v58  ;;  %12283 = vpow2.f32 %v8232_v34  ;;  %v7776_v18 = vadd.f32 %v7562_v32, %v6019_v16 }
 0x8dd   : > { %12285 = vrcp.f32 %v8418_v39  ;;  %10783 = vmatmul.msk.bf16.gmra.mxu2 %vm970_vm1, %v10550_v25 }
 0x8de   : > { %v7908_v52 = vadd.f32 %v15588_v9, %v7776_v18 }
 0x8e0   : > { %v8036_v12 = vsub.f32 0.0, %v7908_v52  ;;  %v5809_v63 = vpop.f32.mrf.mxu2  ;;  %v5482_v8 = vpop.f32.mrf.mxu0  ;;  %v11816_v52 = vld [vmem:[%s12603_s14 + $0x344] sm:$0xf0] }
 0x8e1   : > { %v7563_v24 = vpop.f32.mrf.mxu3  ;;  %v5810_v29 = vadd.f32 %v5809_v63, %v5480_v13 }
 0x8e2   : > { %v12284_v44 = vpop.eup %12283  ;;  %v8234_v28 = vmul.f32 1.442695, %v8036_v12  ;;  %v7564_v31 = vadd.f32 %v7563_v24, %v7234_v22  ;;  %v7237_v2 = vpop.f32.mrf.mxu1  ;;  %v11188_v22 = vor.u32 %v11950_v41, %v11185_v61  ;;  %v10562_v24 = vor.u32 %v11816_v52, %v10561_v40  ;;  %v11817_v41 = vld [vmem:[%s12603_s14 + $0x354] sm:$0xf]  ;;  %v10571_v61 = vld [vmem:[%s12603_s14 + $0x358] sm:$0xf0] }
 0x8e3   : > { %v12286_v30 = vpop.eup %12285  ;;  %v8419_v33 = vadd.f32 1.0, %v12284_v44  ;;  %v6021_v20 = vadd.f32 %v5810_v29, %v16752_v49  ;;  %v11191_v29 = vld [vmem:[%s12603_s14 + $0x360] sm:$0xf] }
 0x8e4   : > { %8674 = vst [vmem:[%s15089_s26 + $0x220] sm:$0xff] %v12286_v30  ;;  %12287 = vpow2.f32 %v8234_v28  ;;  %v7777_v4 = vadd.f32 %v7564_v31, %v6020_v62  ;;  %v16754_v62 = vld [vmem:[#allocation13_spill] sm:$0xff] }
 0x8e5   : > { %12289 = vrcp.f32 %v8419_v33  ;;  %7276 = vmatmul.bf16.gmra.mxu1 %v11176_v60 }
 0x8e6   : > { %v7909_v11 = vadd.f32 %v15588_v9, %v7777_v4  ;;  %11413 = vmatmul.msk.bf16.gmra.mxu3 %vm970_vm1, %v11180_v51 }
 0x8e8   : > { %v8037_v6 = vsub.f32 0.0, %v7909_v11  ;;  %v5811_v19 = vpop.f32.mrf.mxu2  ;;  %v5485_v3 = vpop.f32.mrf.mxu0  ;;  %v11953_v11 = vld [vmem:[%s12603_s14 + $0x364] sm:$0xf0] }
 0x8e9   : > { %v7566_v27 = vpop.f32.mrf.mxu3  ;;  %v5812_v47 = vadd.f32 %v5811_v19, %v5482_v8  ;;  %v10566_v8 = vor.u32 %v11815_v21, %v10563_v55  ;;  %v11954_v21 = vld [vmem:[%s12603_s14 + $0x374] sm:$0xf]  ;;  %v11201_v55 = vld [vmem:[%s12603_s14 + $0x378] sm:$0xf0] }
 0x8ea   : > { %v12288_v59 = vpop.eup %12287  ;;  %v8236_v0 = vmul.f32 1.442695, %v8037_v6  ;;  %v7567_v53 = vadd.f32 %v7566_v27, %v7237_v2  ;;  %v7239_v5 = vpop.f32.mrf.mxu1  ;;  %v11192_v27 = vor.u32 %v11953_v11, %v11191_v29 }
 0x8eb   : > { %v12290_v42 = vpop.eup %12289  ;;  %v8420_v15 = vadd.f32 1.0, %v12288_v59  ;;  %5524 = vmatmul.bf16.gmra.mxu0 %v10554_v37  ;;  %v6022_v45 = vadd.f32 %v5812_v47, %v16753_v56  ;;  %v16755_v59 = vld [vmem:[#allocation14_spill] sm:$0xff]  ;;  %v10569_v47 = vld [vmem:[%s12603_s14 + $0x350] sm:$0xf] }
 0x8ec   : > { %8675 = vst [vmem:[%s15089_s26 + $0x228] sm:$0xff] %v12290_v42  ;;  %12291 = vpow2.f32 %v8236_v0  ;;  %v7778_v38 = vadd.f32 %v7567_v53, %v6021_v20 }
 0x8ed   : > { %12293 = vrcp.f32 %v8420_v15  ;;  %10784 = vmatmul.msk.bf16.gmra.mxu2 %vm970_vm1, %v10558_v10 }
 0x8ee   : > { %v7910_v17 = vadd.f32 %v15588_v9, %v7778_v38 }
 0x8f0   : > { %v8038_v36 = vsub.f32 0.0, %v7910_v17  ;;  %v5814_v26 = vpop.f32.mrf.mxu2  ;;  %v5487_v25 = vpop.f32.mrf.mxu0  ;;  %v11818_v17 = vld [vmem:[%s12603_s14 + $0x354] sm:$0xf0] }
 0x8f1   : > { %v7568_v14 = vpop.f32.mrf.mxu3  ;;  %v5815_v48 = vadd.f32 %v5814_v26, %v5485_v3 }
 0x8f2   : > { %v12292_v13 = vpop.eup %12291  ;;  %v8238_v16 = vmul.f32 1.442695, %v8038_v36  ;;  %v7569_v34 = vadd.f32 %v7568_v14, %v7239_v5  ;;  %v7242_v32 = vpop.f32.mrf.mxu1  ;;  %v11196_v5 = vor.u32 %v11952_v50, %v11193_v46  ;;  %v10570_v14 = vor.u32 %v11818_v17, %v10569_v47  ;;  %v11819_v50 = vld [vmem:[%s12603_s14 + $0x364] sm:$0xf]  ;;  %v10579_v46 = vld [vmem:[%s12603_s14 + $0x368] sm:$0xf0] }
 0x8f3   : > { %v12294_v58 = vpop.eup %12293  ;;  %v8421_v39 = vadd.f32 1.0, %v12292_v13  ;;  %v6023_v28 = vadd.f32 %v5815_v48, %v16754_v62  ;;  %v11199_v48 = vld [vmem:[%s12603_s14 + $0x370] sm:$0xf] }
 0x8f4   : > { %8676 = vst [vmem:[%s15089_s26 + $0x230] sm:$0xff] %v12294_v58  ;;  %12295 = vpow2.f32 %v8238_v16  ;;  %v7779_v18 = vadd.f32 %v7569_v34, %v6022_v45  ;;  %v16756_v45 = vld [vmem:[#allocation15_spill] sm:$0xff] }
 0x8f5   : > { %12297 = vrcp.f32 %v8421_v39  ;;  %7281 = vmatmul.bf16.gmra.mxu1 %v11184_v7 }
 0x8f6   : > { %v7911_v1 = vadd.f32 %v15588_v9, %v7779_v18  ;;  %11414 = vmatmul.msk.bf16.gmra.mxu3 %vm970_vm1, %v11188_v22 }
 0x8f8   : > { %v8039_v12 = vsub.f32 0.0, %v7911_v1  ;;  %v5816_v63 = vpop.f32.mrf.mxu2  ;;  %v5490_v44 = vpop.f32.mrf.mxu0  ;;  %v11955_v1 = vld [vmem:[%s12603_s14 + $0x374] sm:$0xf0] }
 0x8f9   : > { %v7571_v60 = vpop.f32.mrf.mxu3  ;;  %v5817_v43 = vadd.f32 %v5816_v63, %v5487_v25  ;;  %v10574_v25 = vor.u32 %v11817_v41, %v10571_v61  ;;  %v11956_v41 = vld [vmem:[%s12603_s14 + $0x384] sm:$0xf]  ;;  %v11209_v61 = vld [vmem:[%s12603_s14 + $0x388] sm:$0xf0] }
 0x8fa   : > { %v12296_v54 = vpop.eup %12295  ;;  %v8240_v31 = vmul.f32 1.442695, %v8039_v12  ;;  %v7572_v2 = vadd.f32 %v7571_v60, %v7242_v32  ;;  %v7244_v51 = vpop.f32.mrf.mxu1  ;;  %v11200_v60 = vor.u32 %v11955_v1, %v11199_v48 }
 0x8fb   : > { %v12298_v30 = vpop.eup %12297  ;;  %v8422_v33 = vadd.f32 1.0, %v12296_v54  ;;  %5529 = vmatmul.bf16.gmra.mxu0 %v10562_v24  ;;  %v6024_v49 = vadd.f32 %v5817_v43, %v16755_v59  ;;  %v16757_v54 = vld [vmem:[#allocation217_spill] sm:$0xff]  ;;  %v10577_v43 = vld [vmem:[%s12603_s14 + $0x360] sm:$0xf] }
 0x8fc   : > { %8677 = vst [vmem:[%s15089_s26 + $0x238] sm:$0xff] %v12298_v30  ;;  %12299 = vpow2.f32 %v8240_v31  ;;  %v7780_v4 = vadd.f32 %v7572_v2, %v6023_v28 }
 0x8fd   : > { %12301 = vrcp.f32 %v8422_v33  ;;  %10785 = vmatmul.msk.bf16.gmra.mxu2 %vm970_vm1, %v10566_v8 }
 0x8fe   : > { %v7912_v57 = vadd.f32 %v15588_v9, %v7780_v4 }
 0x900   : > { %v8040_v6 = vsub.f32 0.0, %v7912_v57  ;;  %v5819_v19 = vpop.f32.mrf.mxu2  ;;  %v5492_v10 = vpop.f32.mrf.mxu0  ;;  %v11820_v57 = vld [vmem:[%s12603_s14 + $0x364] sm:$0xf0] }
 0x901   : > { %v7573_v37 = vpop.f32.mrf.mxu3  ;;  %v5820_v35 = vadd.f32 %v5819_v19, %v5490_v44 }
 0x902   : > { %v12300_v3 = vpop.eup %12299  ;;  %v8242_v20 = vmul.f32 1.442695, %v8040_v6  ;;  %v7574_v0 = vadd.f32 %v7573_v37, %v7244_v51  ;;  %v7247_v53 = vpop.f32.mrf.mxu1  ;;  %v11204_v51 = vor.u32 %v11954_v21, %v11201_v55  ;;  %v10578_v37 = vor.u32 %v11820_v57, %v10577_v43  ;;  %v11821_v21 = vld [vmem:[%s12603_s14 + $0x374] sm:$0xf]  ;;  %v10587_v55 = vld [vmem:[%s12603_s14 + $0x378] sm:$0xf0] }
 0x903   : > { %v12302_v42 = vpop.eup %12301  ;;  %v8423_v15 = vadd.f32 1.0, %v12300_v3  ;;  %v6025_v16 = vadd.f32 %v5820_v35, %v16756_v45  ;;  %v11207_v35 = vld [vmem:[%s12603_s14 + $0x380] sm:$0xf] }
 0x904   : > { %8678 = vst [vmem:[%s15089_s26 + $0x240] sm:$0xff] %v12302_v42  ;;  %12303 = vpow2.f32 %v8242_v20  ;;  %v7781_v38 = vadd.f32 %v7574_v0, %v6024_v49  ;;  %v16758_v49 = vld [vmem:[#allocation16_spill] sm:$0xff] }
 0x905   : > { %12305 = vrcp.f32 %v8423_v15  ;;  %7286 = vmatmul.bf16.gmra.mxu1 %v11192_v27 }
 0x906   : > { %v7913_v23 = vadd.f32 %v15588_v9, %v7781_v38  ;;  %11415 = vmatmul.msk.bf16.gmra.mxu3 %vm970_vm1, %v11196_v5 }
 0x908   : > { %v8041_v36 = vsub.f32 0.0, %v7913_v23  ;;  %v5821_v26 = vpop.f32.mrf.mxu2  ;;  %v5495_v13 = vpop.f32.mrf.mxu0  ;;  %v11957_v23 = vld [vmem:[%s12603_s14 + $0x384] sm:$0xf0] }
 0x909   : > { %v7576_v7 = vpop.f32.mrf.mxu3  ;;  %v5822_v40 = vadd.f32 %v5821_v26, %v5492_v10  ;;  %v10582_v10 = vor.u32 %v11819_v50, %v10579_v46  ;;  %v11958_v50 = vld [vmem:[%s12603_s14 + $0x394] sm:$0xf]  ;;  %v11217_v46 = vld [vmem:[%s12603_s14 + $0x398] sm:$0xf0] }
 0x90a   : > { %v12304_v56 = vpop.eup %12303  ;;  %v8244_v34 = vmul.f32 1.442695, %v8041_v36  ;;  %v7577_v32 = vadd.f32 %v7576_v7, %v7247_v53  ;;  %v7249_v22 = vpop.f32.mrf.mxu1  ;;  %v11208_v7 = vor.u32 %v11957_v23, %v11207_v35 }
 0x90b   : > { %v12306_v58 = vpop.eup %12305  ;;  %v8424_v39 = vadd.f32 1.0, %v12304_v56  ;;  %5534 = vmatmul.bf16.gmra.mxu0 %v10570_v14  ;;  %v6026_v62 = vadd.f32 %v5822_v40, %v16757_v54  ;;  %v16759_v56 = vld [vmem:[#allocation17_spill] sm:$0xff]  ;;  %v10585_v40 = vld [vmem:[%s12603_s14 + $0x370] sm:$0xf] }
 0x90c   : > { %8679 = vst [vmem:[%s15089_s26 + $0x248] sm:$0xff] %v12306_v58  ;;  %12307 = vpow2.f32 %v8244_v34  ;;  %v7782_v18 = vadd.f32 %v7577_v32, %v6025_v16 }
 0x90d   : > { %12309 = vrcp.f32 %v8424_v39  ;;  %10786 = vmatmul.msk.bf16.gmra.mxu2 %vm970_vm1, %v10574_v25 }
 0x90e   : > { %v7914_v52 = vadd.f32 %v15588_v9, %v7782_v18 }
 0x910   : > { %v8042_v12 = vsub.f32 0.0, %v7914_v52  ;;  %v5824_v63 = vpop.f32.mrf.mxu2  ;;  %v5497_v8 = vpop.f32.mrf.mxu0  ;;  %v11822_v52 = vld [vmem:[%s12603_s14 + $0x374] sm:$0xf0] }
 0x911   : > { %v7578_v24 = vpop.f32.mrf.mxu3  ;;  %v5825_v29 = vadd.f32 %v5824_v63, %v5495_v13 }
 0x912   : > { %v12308_v44 = vpop.eup %12307  ;;  %v8246_v28 = vmul.f32 1.442695, %v8042_v12  ;;  %v7579_v31 = vadd.f32 %v7578_v24, %v7249_v22  ;;  %v7252_v2 = vpop.f32.mrf.mxu1  ;;  %v11212_v22 = vor.u32 %v11956_v41, %v11209_v61  ;;  %v10586_v24 = vor.u32 %v11822_v52, %v10585_v40  ;;  %v11823_v41 = vld [vmem:[%s12603_s14 + $0x384] sm:$0xf]  ;;  %v10595_v61 = vld [vmem:[%s12603_s14 + $0x388] sm:$0xf0] }
 0x913   : > { %v12310_v30 = vpop.eup %12309  ;;  %v8425_v33 = vadd.f32 1.0, %v12308_v44  ;;  %v6027_v20 = vadd.f32 %v5825_v29, %v16758_v49  ;;  %v11215_v29 = vld [vmem:[%s12603_s14 + $0x390] sm:$0xf] }
 0x914   : > { %8680 = vst [vmem:[%s15089_s26 + $0x250] sm:$0xff] %v12310_v30  ;;  %12311 = vpow2.f32 %v8246_v28  ;;  %v7783_v4 = vadd.f32 %v7579_v31, %v6026_v62  ;;  %v16760_v62 = vld [vmem:[#allocation18_spill] sm:$0xff] }
 0x915   : > { %12313 = vrcp.f32 %v8425_v33  ;;  %7291 = vmatmul.bf16.gmra.mxu1 %v11200_v60 }
 0x916   : > { %v7915_v11 = vadd.f32 %v15588_v9, %v7783_v4  ;;  %11416 = vmatmul.msk.bf16.gmra.mxu3 %vm970_vm1, %v11204_v51 }
 0x918   : > { %v8043_v6 = vsub.f32 0.0, %v7915_v11  ;;  %v5826_v19 = vpop.f32.mrf.mxu2  ;;  %v5500_v3 = vpop.f32.mrf.mxu0  ;;  %v11959_v11 = vld [vmem:[%s12603_s14 + $0x394] sm:$0xf0] }
 0x919   : > { %v7581_v27 = vpop.f32.mrf.mxu3  ;;  %v5827_v47 = vadd.f32 %v5826_v19, %v5497_v8  ;;  %v10590_v8 = vor.u32 %v11821_v21, %v10587_v55  ;;  %v11960_v21 = vld [vmem:[%s12603_s14 + $0x3a4] sm:$0xf]  ;;  %v11225_v55 = vld [vmem:[%s12603_s14 + $0x3a8] sm:$0xf0] }
 0x91a   : > { %v12312_v59 = vpop.eup %12311  ;;  %v8248_v0 = vmul.f32 1.442695, %v8043_v6  ;;  %v7582_v53 = vadd.f32 %v7581_v27, %v7252_v2  ;;  %v7254_v5 = vpop.f32.mrf.mxu1  ;;  %v11216_v27 = vor.u32 %v11959_v11, %v11215_v29 }
 0x91b   : > { %v12314_v42 = vpop.eup %12313  ;;  %v8426_v15 = vadd.f32 1.0, %v12312_v59  ;;  %5539 = vmatmul.bf16.gmra.mxu0 %v10578_v37  ;;  %v6028_v45 = vadd.f32 %v5827_v47, %v16759_v56  ;;  %v16761_v59 = vld [vmem:[#allocation218_spill] sm:$0xff] }
 0x91c   : > { %8681 = vst [vmem:[%s15089_s26 + $0x258] sm:$0xff] %v12314_v42  ;;  %12315 = vpow2.f32 %v8248_v0  ;;  %v7784_v38 = vadd.f32 %v7582_v53, %v6027_v20  ;;  %v10593_v47 = vld [vmem:[%s12603_s14 + $0x380] sm:$0xf] }
 0x91d   : > { %12317 = vrcp.f32 %v8426_v15  ;;  %10787 = vmatmul.msk.bf16.gmra.mxu2 %vm970_vm1, %v10582_v10 }
 0x91e   : > { %v7916_v17 = vadd.f32 %v15588_v9, %v7784_v38 }
 0x920   : > { %v8044_v36 = vsub.f32 0.0, %v7916_v17  ;;  %v5829_v26 = vpop.f32.mrf.mxu2  ;;  %v5502_v25 = vpop.f32.mrf.mxu0  ;;  %v11824_v17 = vld [vmem:[%s12603_s14 + $0x384] sm:$0xf0] }
 0x921   : > { %v7583_v14 = vpop.f32.mrf.mxu3  ;;  %v5830_v48 = vadd.f32 %v5829_v26, %v5500_v3 }
 0x922   : > { %v12316_v13 = vpop.eup %12315  ;;  %v8250_v16 = vmul.f32 1.442695, %v8044_v36  ;;  %v7584_v34 = vadd.f32 %v7583_v14, %v7254_v5  ;;  %v7257_v32 = vpop.f32.mrf.mxu1  ;;  %v11220_v5 = vor.u32 %v11958_v50, %v11217_v46  ;;  %v10594_v14 = vor.u32 %v11824_v17, %v10593_v47  ;;  %v11825_v50 = vld [vmem:[%s12603_s14 + $0x394] sm:$0xf]  ;;  %v10603_v46 = vld [vmem:[%s12603_s14 + $0x398] sm:$0xf0] }
 0x923   : > { %v12318_v58 = vpop.eup %12317  ;;  %v8427_v39 = vadd.f32 1.0, %v12316_v13  ;;  %v6029_v28 = vadd.f32 %v5830_v48, %v16760_v62  ;;  %v11223_v48 = vld [vmem:[%s12603_s14 + $0x3a0] sm:$0xf] }
 0x924   : > { %8682 = vst [vmem:[%s15089_s26 + $0x260] sm:$0xff] %v12318_v58  ;;  %12319 = vpow2.f32 %v8250_v16  ;;  %v7785_v18 = vadd.f32 %v7584_v34, %v6028_v45  ;;  %v16762_v45 = vld [vmem:[#allocation19_spill] sm:$0xff]  ;;  %v15760_v47 = vld [vmem:[%s16030_s2] ss:$0 sm:$0xff] }
 0x925   : > { %12321 = vrcp.f32 %v8427_v39  ;;  %7296 = vmatmul.bf16.gmra.mxu1 %v11208_v7 }
 0x926   : > { %v7917_v1 = vadd.f32 %v15588_v9, %v7785_v18  ;;  %11417 = vmatmul.msk.bf16.gmra.mxu3 %vm970_vm1, %v11212_v22 }
 0x928   : > { %v8045_v12 = vsub.f32 0.0, %v7917_v1  ;;  %v5831_v63 = vpop.f32.mrf.mxu2  ;;  %v5505_v44 = vpop.f32.mrf.mxu0  ;;  %v11961_v1 = vld [vmem:[%s12603_s14 + $0x3a4] sm:$0xf0] }
 0x929   : > { %v7586_v60 = vpop.f32.mrf.mxu3  ;;  %v5832_v43 = vadd.f32 %v5831_v63, %v5502_v25  ;;  %v10598_v25 = vor.u32 %v11823_v41, %v10595_v61  ;;  %v11962_v41 = vld [vmem:[%s12603_s14 + $0x3b4] sm:$0xf]  ;;  %v11233_v61 = vld [vmem:[%s12603_s14 + $0x3b8] sm:$0xf0] }
 0x92a   : > { %v12320_v54 = vpop.eup %12319  ;;  %v8252_v31 = vmul.f32 1.442695, %v8045_v12  ;;  %v7587_v2 = vadd.f32 %v7586_v60, %v7257_v32  ;;  %v7259_v51 = vpop.f32.mrf.mxu1  ;;  %v11224_v60 = vor.u32 %v11961_v1, %v11223_v48 }
 0x92b   : > { %v12322_v30 = vpop.eup %12321  ;;  %v8428_v33 = vadd.f32 1.0, %v12320_v54  ;;  %5544 = vmatmul.bf16.gmra.mxu0 %v10586_v24  ;;  %v6030_v49 = vadd.f32 %v5832_v43, %v16761_v59  ;;  %v16763_v54 = vld [vmem:[#allocation20_spill] sm:$0xff] }
 0x92c   : > { %8683 = vst [vmem:[%s15089_s26 + $0x268] sm:$0xff] %v12322_v30  ;;  %12323 = vpow2.f32 %v8252_v31  ;;  %v7786_v4 = vadd.f32 %v7587_v2, %v6029_v28  ;;  %v10601_v43 = vld [vmem:[%s12603_s14 + $0x390] sm:$0xf] }
 0x92d   : > { %12325 = vrcp.f32 %v8428_v33  ;;  %10788 = vmatmul.msk.bf16.gmra.mxu2 %vm970_vm1, %v10590_v8 }
 0x92e   : > { %v7918_v57 = vadd.f32 %v15588_v9, %v7786_v4 }
 0x930   : > { %v8046_v6 = vsub.f32 0.0, %v7918_v57  ;;  %v5834_v19 = vpop.f32.mrf.mxu2  ;;  %v5507_v10 = vpop.f32.mrf.mxu0  ;;  %v11826_v57 = vld [vmem:[%s12603_s14 + $0x394] sm:$0xf0] }
 0x931   : > { %v7588_v37 = vpop.f32.mrf.mxu3  ;;  %v5835_v35 = vadd.f32 %v5834_v19, %v5505_v44 }
 0x932   : > { %v12324_v3 = vpop.eup %12323  ;;  %v8254_v20 = vmul.f32 1.442695, %v8046_v6  ;;  %v7589_v0 = vadd.f32 %v7588_v37, %v7259_v51  ;;  %v7262_v53 = vpop.f32.mrf.mxu1  ;;  %v11228_v51 = vor.u32 %v11960_v21, %v11225_v55  ;;  %v10602_v37 = vor.u32 %v11826_v57, %v10601_v43  ;;  %v11827_v21 = vld [vmem:[%s12603_s14 + $0x3a4] sm:$0xf]  ;;  %v10611_v55 = vld [vmem:[%s12603_s14 + $0x3a8] sm:$0xf0] }
 0x933   : > { %v12326_v42 = vpop.eup %12325  ;;  %v8429_v15 = vadd.f32 1.0, %v12324_v3  ;;  %v6031_v16 = vadd.f32 %v5835_v35, %v16762_v45  ;;  %v11231_v35 = vld [vmem:[%s12603_s14 + $0x3b0] sm:$0xf] }
 0x934   : > { %8684 = vst [vmem:[%s15089_s26 + $0x270] sm:$0xff] %v12326_v42  ;;  %12327 = vpow2.f32 %v8254_v20  ;;  %v7787_v38 = vadd.f32 %v7589_v0, %v6030_v49  ;;  %v16764_v49 = vld [vmem:[#allocation21_spill] sm:$0xff] }
 0x935   : > { %12329 = vrcp.f32 %v8429_v15  ;;  %7301 = vmatmul.bf16.gmra.mxu1 %v11216_v27 }
 0x936   : > { %v7919_v23 = vadd.f32 %v15588_v9, %v7787_v38  ;;  %11418 = vmatmul.msk.bf16.gmra.mxu3 %vm970_vm1, %v11220_v5 }
 0x938   : > { %v8047_v36 = vsub.f32 0.0, %v7919_v23  ;;  %v5836_v26 = vpop.f32.mrf.mxu2  ;;  %v5510_v13 = vpop.f32.mrf.mxu0  ;;  %v11963_v23 = vld [vmem:[%s12603_s14 + $0x3b4] sm:$0xf0] }
 0x939   : > { %v7591_v7 = vpop.f32.mrf.mxu3  ;;  %v5837_v40 = vadd.f32 %v5836_v26, %v5507_v10  ;;  %v10606_v10 = vor.u32 %v11825_v50, %v10603_v46  ;;  %v11964_v50 = vld [vmem:[%s12603_s14 + $0x3c4] sm:$0xf]  ;;  %v11241_v46 = vld [vmem:[%s12603_s14 + $0x3c8] sm:$0xf0] }
 0x93a   : > { %v12328_v56 = vpop.eup %12327  ;;  %v8256_v34 = vmul.f32 1.442695, %v8047_v36  ;;  %v7592_v32 = vadd.f32 %v7591_v7, %v7262_v53  ;;  %v7264_v22 = vpop.f32.mrf.mxu1  ;;  %v11232_v7 = vor.u32 %v11963_v23, %v11231_v35 }
 0x93b   : > { %v12330_v58 = vpop.eup %12329  ;;  %v8430_v39 = vadd.f32 1.0, %v12328_v56  ;;  %5549 = vmatmul.bf16.gmra.mxu0 %v10594_v14  ;;  %v6032_v62 = vadd.f32 %v5837_v40, %v16763_v54  ;;  %v16765_v56 = vld [vmem:[#allocation219_spill] sm:$0xff]  ;;  %v10609_v40 = vld [vmem:[%s12603_s14 + $0x3a0] sm:$0xf] }
 0x93c   : > { %8685 = vst [vmem:[%s15089_s26 + $0x278] sm:$0xff] %v12330_v58  ;;  %12331 = vpow2.f32 %v8256_v34  ;;  %v7788_v18 = vadd.f32 %v7592_v32, %v6031_v16 }
 0x93d   : > { %12333 = vrcp.f32 %v8430_v39  ;;  %10789 = vmatmul.msk.bf16.gmra.mxu2 %vm970_vm1, %v10598_v25 }
 0x93e   : > { %v7920_v52 = vadd.f32 %v15588_v9, %v7788_v18 }
 0x940   : > { %v8048_v12 = vsub.f32 0.0, %v7920_v52  ;;  %v5839_v63 = vpop.f32.mrf.mxu2  ;;  %v5512_v8 = vpop.f32.mrf.mxu0  ;;  %v11828_v52 = vld [vmem:[%s12603_s14 + $0x3a4] sm:$0xf0] }
 0x941   : > { %v7593_v24 = vpop.f32.mrf.mxu3  ;;  %v5840_v29 = vadd.f32 %v5839_v63, %v5510_v13 }
 0x942   : > { %v12332_v44 = vpop.eup %12331  ;;  %v8258_v28 = vmul.f32 1.442695, %v8048_v12  ;;  %v7594_v31 = vadd.f32 %v7593_v24, %v7264_v22  ;;  %v7267_v2 = vpop.f32.mrf.mxu1  ;;  %v11236_v22 = vor.u32 %v11962_v41, %v11233_v61  ;;  %v10610_v24 = vor.u32 %v11828_v52, %v10609_v40  ;;  %v11829_v41 = vld [vmem:[%s12603_s14 + $0x3b4] sm:$0xf]  ;;  %v10619_v61 = vld [vmem:[%s12603_s14 + $0x3b8] sm:$0xf0] }
 0x943   : > { %v12334_v30 = vpop.eup %12333  ;;  %v8431_v33 = vadd.f32 1.0, %v12332_v44  ;;  %v6033_v20 = vadd.f32 %v5840_v29, %v16764_v49  ;;  %v11239_v29 = vld [vmem:[%s12603_s14 + $0x3c0] sm:$0xf] }
 0x944   : > { %8686 = vst [vmem:[%s15089_s26 + $0x280] sm:$0xff] %v12334_v30  ;;  %12335 = vpow2.f32 %v8258_v28  ;;  %v7789_v4 = vadd.f32 %v7594_v31, %v6032_v62  ;;  %v16766_v62 = vld [vmem:[#allocation22_spill] sm:$0xff] }
 0x945   : > { %12337 = vrcp.f32 %v8431_v33  ;;  %7306 = vmatmul.bf16.gmra.mxu1 %v11224_v60 }
 0x946   : > { %v7921_v11 = vadd.f32 %v15588_v9, %v7789_v4  ;;  %11419 = vmatmul.msk.bf16.gmra.mxu3 %vm970_vm1, %v11228_v51 }
 0x948   : > { %v8049_v6 = vsub.f32 0.0, %v7921_v11  ;;  %v5841_v19 = vpop.f32.mrf.mxu2  ;;  %v5515_v3 = vpop.f32.mrf.mxu0  ;;  %v11965_v11 = vld [vmem:[%s12603_s14 + $0x3c4] sm:$0xf0] }
 0x949   : > { %v7596_v27 = vpop.f32.mrf.mxu3  ;;  %v5842_v38 = vadd.f32 %v5841_v19, %v5512_v8  ;;  %v10614_v8 = vor.u32 %v11827_v21, %v10611_v55  ;;  %v11966_v21 = vld [vmem:[%s12603_s14 + $0x3d4] sm:$0xf]  ;;  %v11249_v55 = vld [vmem:[%s12603_s14 + $0x3d8] sm:$0xf0] }
 0x94a   : > { %v12336_v59 = vpop.eup %12335  ;;  %v8260_v0 = vmul.f32 1.442695, %v8049_v6  ;;  %v7597_v53 = vadd.f32 %v7596_v27, %v7267_v2  ;;  %v7269_v9 = vpop.f32.mrf.mxu1  ;;  %v11240_v27 = vor.u32 %v11965_v11, %v11239_v29 }
 0x94b   : > { %v12338_v5 = vpop.eup %12337  ;;  %v8432_v42 = vadd.f32 1.0, %v12336_v59  ;;  %5554 = vmatmul.bf16.gmra.mxu0 %v10602_v37  ;;  %v6034_v45 = vadd.f32 %v5842_v38, %v16765_v56  ;;  %v16767_v59 = vld [vmem:[#allocation23_spill] sm:$0xff]  ;;  %v10617_v38 = vld [vmem:[%s12603_s14 + $0x3b0] sm:$0xf] }
 0x94c   : > { %8687 = vst [vmem:[%s15089_s26 + $0x288] sm:$0xff] %v12338_v5  ;;  %12339 = vpow2.f32 %v8260_v0  ;;  %v7790_v15 = vadd.f32 %v7597_v53, %v6033_v20 }
 0x94d   : > { %12341 = vrcp.f32 %v8432_v42  ;;  %10790 = vmatmul.msk.bf16.gmra.mxu2 %vm970_vm1, %v10606_v10 }
 0x94e   : > { %v7922_v17 = vadd.f32 %v15760_v47, %v7790_v15 }
 0x950   : > { %v8050_v36 = vsub.f32 0.0, %v7922_v17  ;;  %v5844_v26 = vpop.f32.mrf.mxu2  ;;  %v5517_v25 = vpop.f32.mrf.mxu0  ;;  %v11830_v17 = vld [vmem:[%s12603_s14 + $0x3b4] sm:$0xf0] }
 0x951   : > { %v7598_v14 = vpop.f32.mrf.mxu3  ;;  %v5845_v48 = vadd.f32 %v5844_v26, %v5515_v3 }
 0x952   : > { %v12340_v13 = vpop.eup %12339  ;;  %v8262_v16 = vmul.f32 1.442695, %v8050_v36  ;;  %v7599_v34 = vadd.f32 %v7598_v14, %v7269_v9  ;;  %v7272_v32 = vpop.f32.mrf.mxu1  ;;  %v11244_v9 = vor.u32 %v11964_v50, %v11241_v46  ;;  %v10618_v14 = vor.u32 %v11830_v17, %v10617_v38  ;;  %v11831_v50 = vld [vmem:[%s12603_s14 + $0x3c4] sm:$0xf]  ;;  %v10627_v46 = vld [vmem:[%s12603_s14 + $0x3c8] sm:$0xf0] }
 0x953   : > { %v12342_v58 = vpop.eup %12341  ;;  %v8433_v39 = vadd.f32 1.0, %v12340_v13  ;;  %v6035_v28 = vadd.f32 %v5845_v48, %v16766_v62  ;;  %v11247_v48 = vld [vmem:[%s12603_s14 + $0x3d0] sm:$0xf] }
 0x954   : > { %8688 = vst [vmem:[%s15089_s26 + $0x290] sm:$0xff] %v12342_v58  ;;  %12343 = vpow2.f32 %v8262_v16  ;;  %v7791_v18 = vadd.f32 %v7599_v34, %v6034_v45  ;;  %v16768_v45 = vld [vmem:[#allocation24_spill] sm:$0xff] }
 0x955   : > { %12345 = vrcp.f32 %v8433_v39  ;;  %7311 = vmatmul.bf16.gmra.mxu1 %v11232_v7 }
 0x956   : > { %v7923_v1 = vadd.f32 %v15760_v47, %v7791_v18  ;;  %11420 = vmatmul.msk.bf16.gmra.mxu3 %vm970_vm1, %v11236_v22 }
 0x958   : > { %v8051_v12 = vsub.f32 0.0, %v7923_v1  ;;  %v5846_v63 = vpop.f32.mrf.mxu2  ;;  %v5520_v44 = vpop.f32.mrf.mxu0  ;;  %v11967_v1 = vld [vmem:[%s12603_s14 + $0x3d4] sm:$0xf0] }
 0x959   : > { %v7601_v60 = vpop.f32.mrf.mxu3  ;;  %v5847_v43 = vadd.f32 %v5846_v63, %v5517_v25  ;;  %v10622_v25 = vor.u32 %v11829_v41, %v10619_v61  ;;  %v11968_v41 = vld [vmem:[%s12603_s14 + $0x3e4] sm:$0xf]  ;;  %v11257_v61 = vld [vmem:[%s12603_s14 + $0x3e8] sm:$0xf0] }
 0x95a   : > { %v12344_v54 = vpop.eup %12343  ;;  %v8264_v31 = vmul.f32 1.442695, %v8051_v12  ;;  %v7602_v2 = vadd.f32 %v7601_v60, %v7272_v32  ;;  %v7274_v51 = vpop.f32.mrf.mxu1  ;;  %v11248_v60 = vor.u32 %v11967_v1, %v11247_v48 }
 0x95b   : > { %v12346_v30 = vpop.eup %12345  ;;  %v8434_v33 = vadd.f32 1.0, %v12344_v54  ;;  %5559 = vmatmul.bf16.gmra.mxu0 %v10610_v24  ;;  %v6036_v49 = vadd.f32 %v5847_v43, %v16767_v59  ;;  %v16769_v54 = vld [vmem:[#allocation220_spill] sm:$0xff]  ;;  %v10625_v43 = vld [vmem:[%s12603_s14 + $0x3c0] sm:$0xf] }
 0x95c   : > { %8689 = vst [vmem:[%s15089_s26 + $0x298] sm:$0xff] %v12346_v30  ;;  %12347 = vpow2.f32 %v8264_v31  ;;  %v7792_v4 = vadd.f32 %v7602_v2, %v6035_v28 }
 0x95d   : > { %12349 = vrcp.f32 %v8434_v33  ;;  %10791 = vmatmul.msk.bf16.gmra.mxu2 %vm970_vm1, %v10614_v8 }
 0x95e   : > { %v7924_v57 = vadd.f32 %v15760_v47, %v7792_v4 }
 0x960   : > { %v8052_v6 = vsub.f32 0.0, %v7924_v57  ;;  %v5849_v19 = vpop.f32.mrf.mxu2  ;;  %v5522_v10 = vpop.f32.mrf.mxu0  ;;  %v11832_v57 = vld [vmem:[%s12603_s14 + $0x3c4] sm:$0xf0] }
 0x961   : > { %v7603_v37 = vpop.f32.mrf.mxu3  ;;  %v5850_v35 = vadd.f32 %v5849_v19, %v5520_v44 }
 0x962   : > { %v12348_v3 = vpop.eup %12347  ;;  %v8266_v20 = vmul.f32 1.442695, %v8052_v6  ;;  %v7604_v0 = vadd.f32 %v7603_v37, %v7274_v51  ;;  %v7277_v53 = vpop.f32.mrf.mxu1  ;;  %v11252_v51 = vor.u32 %v11966_v21, %v11249_v55  ;;  %v10626_v37 = vor.u32 %v11832_v57, %v10625_v43  ;;  %v11833_v21 = vld [vmem:[%s12603_s14 + $0x3d4] sm:$0xf]  ;;  %v10635_v55 = vld [vmem:[%s12603_s14 + $0x3d8] sm:$0xf0] }
 0x963   : > { %v12350_v5 = vpop.eup %12349  ;;  %v8435_v42 = vadd.f32 1.0, %v12348_v3  ;;  %v6037_v16 = vadd.f32 %v5850_v35, %v16768_v45  ;;  %v11255_v35 = vld [vmem:[%s12603_s14 + $0x3e0] sm:$0xf] }
 0x964   : > { %8690 = vst [vmem:[%s15089_s26 + $0x2a0] sm:$0xff] %v12350_v5  ;;  %12351 = vpow2.f32 %v8266_v20  ;;  %v7793_v15 = vadd.f32 %v7604_v0, %v6036_v49  ;;  %v16770_v49 = vld [vmem:[#allocation25_spill] sm:$0xff] }
 0x965   : > { %12353 = vrcp.f32 %v8435_v42  ;;  %7316 = vmatmul.bf16.gmra.mxu1 %v11240_v27 }
 0x966   : > { %v7925_v23 = vadd.f32 %v15760_v47, %v7793_v15  ;;  %11421 = vmatmul.msk.bf16.gmra.mxu3 %vm970_vm1, %v11244_v9 }
 0x968   : > { %v8053_v36 = vsub.f32 0.0, %v7925_v23  ;;  %v5851_v26 = vpop.f32.mrf.mxu2  ;;  %v5525_v13 = vpop.f32.mrf.mxu0  ;;  %v11969_v23 = vld [vmem:[%s12603_s14 + $0x3e4] sm:$0xf0] }
 0x969   : > { %v7606_v7 = vpop.f32.mrf.mxu3  ;;  %v5852_v40 = vadd.f32 %v5851_v26, %v5522_v10  ;;  %v10630_v10 = vor.u32 %v11831_v50, %v10627_v46  ;;  %v11970_v50 = vld [vmem:[%s12603_s14 + $0x3f4] sm:$0xf]  ;;  %v11265_v46 = vld [vmem:[%s12603_s14 + $0x3f8] sm:$0xf0] }
 0x96a   : > { %v12352_v56 = vpop.eup %12351  ;;  %v8268_v34 = vmul.f32 1.442695, %v8053_v36  ;;  %v7607_v32 = vadd.f32 %v7606_v7, %v7277_v53  ;;  %v7279_v22 = vpop.f32.mrf.mxu1  ;;  %v11256_v7 = vor.u32 %v11969_v23, %v11255_v35 }
 0x96b   : > { %v12354_v58 = vpop.eup %12353  ;;  %v8436_v39 = vadd.f32 1.0, %v12352_v56  ;;  %5564 = vmatmul.bf16.gmra.mxu0 %v10618_v14  ;;  %v6038_v62 = vadd.f32 %v5852_v40, %v16769_v54  ;;  %v16771_v56 = vld [vmem:[#allocation26_spill] sm:$0xff]  ;;  %v10633_v40 = vld [vmem:[%s12603_s14 + $0x3d0] sm:$0xf] }
 0x96c   : > { %8691 = vst [vmem:[%s15089_s26 + $0x2a8] sm:$0xff] %v12354_v58  ;;  %12355 = vpow2.f32 %v8268_v34  ;;  %v7794_v18 = vadd.f32 %v7607_v32, %v6037_v16 }
 0x96d   : > { %12357 = vrcp.f32 %v8436_v39  ;;  %10792 = vmatmul.msk.bf16.gmra.mxu2 %vm970_vm1, %v10622_v25 }
 0x96e   : > { %v7926_v52 = vadd.f32 %v15760_v47, %v7794_v18 }
 0x970   : > { %v8054_v12 = vsub.f32 0.0, %v7926_v52  ;;  %v5854_v63 = vpop.f32.mrf.mxu2  ;;  %v5527_v8 = vpop.f32.mrf.mxu0  ;;  %v11834_v52 = vld [vmem:[%s12603_s14 + $0x3d4] sm:$0xf0] }
 0x971   : > { %v7608_v24 = vpop.f32.mrf.mxu3  ;;  %v5855_v29 = vadd.f32 %v5854_v63, %v5525_v13 }
 0x972   : > { %v12356_v44 = vpop.eup %12355  ;;  %v8270_v28 = vmul.f32 1.442695, %v8054_v12  ;;  %v7609_v31 = vadd.f32 %v7608_v24, %v7279_v22  ;;  %v7282_v2 = vpop.f32.mrf.mxu1  ;;  %v11260_v22 = vor.u32 %v11968_v41, %v11257_v61  ;;  %v10634_v24 = vor.u32 %v11834_v52, %v10633_v40  ;;  %v11835_v41 = vld [vmem:[%s12603_s14 + $0x3e4] sm:$0xf]  ;;  %v10643_v61 = vld [vmem:[%s12603_s14 + $0x3e8] sm:$0xf0] }
 0x973   : > { %v12358_v30 = vpop.eup %12357  ;;  %v8437_v33 = vadd.f32 1.0, %v12356_v44  ;;  %v6039_v20 = vadd.f32 %v5855_v29, %v16770_v49  ;;  %v11263_v29 = vld [vmem:[%s12603_s14 + $0x3f0] sm:$0xf] }
 0x974   : > { %8692 = vst [vmem:[%s15089_s26 + $0x2b0] sm:$0xff] %v12358_v30  ;;  %12359 = vpow2.f32 %v8270_v28  ;;  %v7795_v4 = vadd.f32 %v7609_v31, %v6038_v62  ;;  %v16772_v62 = vld [vmem:[#allocation27_spill] sm:$0xff] }
 0x975   : > { %12361 = vrcp.f32 %v8437_v33  ;;  %7321 = vmatmul.bf16.gmra.mxu1 %v11248_v60 }
 0x976   : > { %v7927_v11 = vadd.f32 %v15760_v47, %v7795_v4  ;;  %11422 = vmatmul.msk.bf16.gmra.mxu3 %vm970_vm1, %v11252_v51 }
 0x978   : > { %v8055_v6 = vsub.f32 0.0, %v7927_v11  ;;  %v5856_v19 = vpop.f32.mrf.mxu2  ;;  %v5530_v3 = vpop.f32.mrf.mxu0  ;;  %v11971_v11 = vld [vmem:[%s12603_s14 + $0x3f4] sm:$0xf0] }
 0x979   : > { %v7611_v27 = vpop.f32.mrf.mxu3  ;;  %v5857_v38 = vadd.f32 %v5856_v19, %v5527_v8  ;;  %v10638_v8 = vor.u32 %v11833_v21, %v10635_v55  ;;  %v11972_v21 = vld [vmem:[%s12603_s14 + $0x404] sm:$0xf]  ;;  %v11273_v55 = vld [vmem:[%s12603_s14 + $0x408] sm:$0xf0] }
 0x97a   : > { %v12360_v59 = vpop.eup %12359  ;;  %v8272_v0 = vmul.f32 1.442695, %v8055_v6  ;;  %v7612_v53 = vadd.f32 %v7611_v27, %v7282_v2  ;;  %v7284_v9 = vpop.f32.mrf.mxu1  ;;  %v11264_v27 = vor.u32 %v11971_v11, %v11263_v29 }
 0x97b   : > { %v12362_v5 = vpop.eup %12361  ;;  %v8438_v42 = vadd.f32 1.0, %v12360_v59  ;;  %5569 = vmatmul.bf16.gmra.mxu0 %v10626_v37  ;;  %v6040_v45 = vadd.f32 %v5857_v38, %v16771_v56  ;;  %v16773_v59 = vld [vmem:[#allocation221_spill] sm:$0xff]  ;;  %v10641_v38 = vld [vmem:[%s12603_s14 + $0x3e0] sm:$0xf] }
 0x97c   : > { %8693 = vst [vmem:[%s15089_s26 + $0x2b8] sm:$0xff] %v12362_v5  ;;  %12363 = vpow2.f32 %v8272_v0  ;;  %v7796_v15 = vadd.f32 %v7612_v53, %v6039_v20 }
 0x97d   : > { %12365 = vrcp.f32 %v8438_v42  ;;  %10793 = vmatmul.msk.bf16.gmra.mxu2 %vm970_vm1, %v10630_v10 }
 0x97e   : > { %v7928_v17 = vadd.f32 %v15760_v47, %v7796_v15 }
 0x980   : > { %v8056_v36 = vsub.f32 0.0, %v7928_v17  ;;  %v5859_v26 = vpop.f32.mrf.mxu2  ;;  %v5532_v25 = vpop.f32.mrf.mxu0  ;;  %v11836_v17 = vld [vmem:[%s12603_s14 + $0x3e4] sm:$0xf0] }
 0x981   : > { %v7613_v14 = vpop.f32.mrf.mxu3  ;;  %v5860_v48 = vadd.f32 %v5859_v26, %v5530_v3 }
 0x982   : > { %v12364_v13 = vpop.eup %12363  ;;  %v8274_v16 = vmul.f32 1.442695, %v8056_v36  ;;  %v7614_v34 = vadd.f32 %v7613_v14, %v7284_v9  ;;  %v7287_v32 = vpop.f32.mrf.mxu1  ;;  %v11268_v9 = vor.u32 %v11970_v50, %v11265_v46  ;;  %v10642_v14 = vor.u32 %v11836_v17, %v10641_v38  ;;  %v11837_v50 = vld [vmem:[%s12603_s14 + $0x3f4] sm:$0xf]  ;;  %v10651_v46 = vld [vmem:[%s12603_s14 + $0x3f8] sm:$0xf0] }
 0x983   : > { %v12366_v58 = vpop.eup %12365  ;;  %v8439_v39 = vadd.f32 1.0, %v12364_v13  ;;  %v6041_v28 = vadd.f32 %v5860_v48, %v16772_v62  ;;  %v11271_v48 = vld [vmem:[%s12603_s14 + $0x400] sm:$0xf] }
 0x984   : > { %8694 = vst [vmem:[%s15089_s26 + $0x2c0] sm:$0xff] %v12366_v58  ;;  %12367 = vpow2.f32 %v8274_v16  ;;  %v7797_v18 = vadd.f32 %v7614_v34, %v6040_v45  ;;  %v16774_v45 = vld [vmem:[#allocation28_spill] sm:$0xff] }
 0x985   : > { %12369 = vrcp.f32 %v8439_v39  ;;  %7326 = vmatmul.bf16.gmra.mxu1 %v11256_v7 }
 0x986   : > { %v7929_v1 = vadd.f32 %v15760_v47, %v7797_v18  ;;  %11423 = vmatmul.msk.bf16.gmra.mxu3 %vm970_vm1, %v11260_v22 }
 0x988   : > { %v8057_v12 = vsub.f32 0.0, %v7929_v1  ;;  %v5861_v63 = vpop.f32.mrf.mxu2  ;;  %v5535_v44 = vpop.f32.mrf.mxu0  ;;  %v11973_v1 = vld [vmem:[%s12603_s14 + $0x404] sm:$0xf0] }
 0x989   : > { %v7616_v60 = vpop.f32.mrf.mxu3  ;;  %v5862_v43 = vadd.f32 %v5861_v63, %v5532_v25  ;;  %v10646_v25 = vor.u32 %v11835_v41, %v10643_v61  ;;  %v11974_v41 = vld [vmem:[%s12603_s14 + $0x414] sm:$0xf]  ;;  %v11281_v61 = vld [vmem:[%s12603_s14 + $0x418] sm:$0xf0] }
 0x98a   : > { %v12368_v54 = vpop.eup %12367  ;;  %v8276_v31 = vmul.f32 1.442695, %v8057_v12  ;;  %v7617_v2 = vadd.f32 %v7616_v60, %v7287_v32  ;;  %v7289_v51 = vpop.f32.mrf.mxu1  ;;  %v11272_v60 = vor.u32 %v11973_v1, %v11271_v48 }
 0x98b   : > { %v12370_v30 = vpop.eup %12369  ;;  %v8440_v33 = vadd.f32 1.0, %v12368_v54  ;;  %5574 = vmatmul.bf16.gmra.mxu0 %v10634_v24  ;;  %v6042_v49 = vadd.f32 %v5862_v43, %v16773_v59  ;;  %v16775_v54 = vld [vmem:[#allocation29_spill] sm:$0xff]  ;;  %v10649_v43 = vld [vmem:[%s12603_s14 + $0x3f0] sm:$0xf] }
 0x98c   : > { %8695 = vst [vmem:[%s15089_s26 + $0x2c8] sm:$0xff] %v12370_v30  ;;  %12371 = vpow2.f32 %v8276_v31  ;;  %v7798_v4 = vadd.f32 %v7617_v2, %v6041_v28 }
 0x98d   : > { %12373 = vrcp.f32 %v8440_v33  ;;  %10794 = vmatmul.msk.bf16.gmra.mxu2 %vm970_vm1, %v10638_v8 }
 0x98e   : > { %v7930_v57 = vadd.f32 %v15760_v47, %v7798_v4 }
 0x990   : > { %v8058_v6 = vsub.f32 0.0, %v7930_v57  ;;  %v5864_v19 = vpop.f32.mrf.mxu2  ;;  %v5537_v10 = vpop.f32.mrf.mxu0  ;;  %v11838_v57 = vld [vmem:[%s12603_s14 + $0x3f4] sm:$0xf0] }
 0x991   : > { %v7618_v37 = vpop.f32.mrf.mxu3  ;;  %v5865_v35 = vadd.f32 %v5864_v19, %v5535_v44 }
 0x992   : > { %v12372_v3 = vpop.eup %12371  ;;  %v8278_v20 = vmul.f32 1.442695, %v8058_v6  ;;  %v7619_v0 = vadd.f32 %v7618_v37, %v7289_v51  ;;  %v7292_v53 = vpop.f32.mrf.mxu1  ;;  %v11276_v51 = vor.u32 %v11972_v21, %v11273_v55  ;;  %v10650_v37 = vor.u32 %v11838_v57, %v10649_v43  ;;  %v11839_v21 = vld [vmem:[%s12603_s14 + $0x404] sm:$0xf]  ;;  %v10659_v55 = vld [vmem:[%s12603_s14 + $0x408] sm:$0xf0] }
 0x993   : > { %v12374_v5 = vpop.eup %12373  ;;  %v8441_v42 = vadd.f32 1.0, %v12372_v3  ;;  %v6043_v16 = vadd.f32 %v5865_v35, %v16774_v45  ;;  %v11279_v35 = vld [vmem:[%s12603_s14 + $0x410] sm:$0xf] }
 0x994   : > { %8696 = vst [vmem:[%s15089_s26 + $0x2d0] sm:$0xff] %v12374_v5  ;;  %12375 = vpow2.f32 %v8278_v20  ;;  %v7799_v15 = vadd.f32 %v7619_v0, %v6042_v49  ;;  %v16776_v49 = vld [vmem:[#allocation30_spill] sm:$0xff] }
 0x995   : > { %12377 = vrcp.f32 %v8441_v42  ;;  %7331 = vmatmul.bf16.gmra.mxu1 %v11264_v27 }
 0x996   : > { %v7931_v23 = vadd.f32 %v15760_v47, %v7799_v15  ;;  %11424 = vmatmul.msk.bf16.gmra.mxu3 %vm970_vm1, %v11268_v9 }
 0x998   : > { %v8059_v36 = vsub.f32 0.0, %v7931_v23  ;;  %v5866_v26 = vpop.f32.mrf.mxu2  ;;  %v5540_v13 = vpop.f32.mrf.mxu0  ;;  %v11975_v23 = vld [vmem:[%s12603_s14 + $0x414] sm:$0xf0] }
 0x999   : > { %v7621_v7 = vpop.f32.mrf.mxu3  ;;  %v5867_v40 = vadd.f32 %v5866_v26, %v5537_v10  ;;  %v10654_v10 = vor.u32 %v11837_v50, %v10651_v46  ;;  %v11976_v50 = vld [vmem:[%s12603_s14 + $0x424] sm:$0xf]  ;;  %v11289_v46 = vld [vmem:[%s12603_s14 + $0x428] sm:$0xf0] }
 0x99a   : > { %v12376_v56 = vpop.eup %12375  ;;  %v8280_v34 = vmul.f32 1.442695, %v8059_v36  ;;  %v7622_v32 = vadd.f32 %v7621_v7, %v7292_v53  ;;  %v7294_v22 = vpop.f32.mrf.mxu1  ;;  %v11280_v7 = vor.u32 %v11975_v23, %v11279_v35 }
 0x99b   : > { %v12378_v58 = vpop.eup %12377  ;;  %v8442_v39 = vadd.f32 1.0, %v12376_v56  ;;  %5579 = vmatmul.bf16.gmra.mxu0 %v10642_v14  ;;  %v6044_v62 = vadd.f32 %v5867_v40, %v16775_v54  ;;  %v16777_v56 = vld [vmem:[#allocation222_spill] sm:$0xff] }
 0x99c   : > { %8697 = vst [vmem:[%s15089_s26 + $0x2d8] sm:$0xff] %v12378_v58  ;;  %12379 = vpow2.f32 %v8280_v34  ;;  %v7800_v18 = vadd.f32 %v7622_v32, %v6043_v16  ;;  %v10657_v40 = vld [vmem:[%s12603_s14 + $0x400] sm:$0xf] }
 0x99d   : > { %12381 = vrcp.f32 %v8442_v39  ;;  %10795 = vmatmul.msk.bf16.gmra.mxu2 %vm970_vm1, %v10646_v25 }
 0x99e   : > { %v7932_v52 = vadd.f32 %v15760_v47, %v7800_v18 }
 0x9a0   : > { %v8060_v12 = vsub.f32 0.0, %v7932_v52  ;;  %v5869_v63 = vpop.f32.mrf.mxu2  ;;  %v5542_v8 = vpop.f32.mrf.mxu0  ;;  %v11840_v52 = vld [vmem:[%s12603_s14 + $0x404] sm:$0xf0] }
 0x9a1   : > { %v7623_v24 = vpop.f32.mrf.mxu3  ;;  %v5870_v29 = vadd.f32 %v5869_v63, %v5540_v13 }
 0x9a2   : > { %v12380_v44 = vpop.eup %12379  ;;  %v8282_v28 = vmul.f32 1.442695, %v8060_v12  ;;  %v7624_v31 = vadd.f32 %v7623_v24, %v7294_v22  ;;  %v7297_v2 = vpop.f32.mrf.mxu1  ;;  %v11284_v22 = vor.u32 %v11974_v41, %v11281_v61  ;;  %v10658_v24 = vor.u32 %v11840_v52, %v10657_v40  ;;  %v11841_v41 = vld [vmem:[%s12603_s14 + $0x414] sm:$0xf]  ;;  %v10667_v61 = vld [vmem:[%s12603_s14 + $0x418] sm:$0xf0] }
 0x9a3   : > { %v12382_v30 = vpop.eup %12381  ;;  %v8443_v33 = vadd.f32 1.0, %v12380_v44  ;;  %v6045_v20 = vadd.f32 %v5870_v29, %v16776_v49  ;;  %v11287_v29 = vld [vmem:[%s12603_s14 + $0x420] sm:$0xf] }
 0x9a4   : > { %8698 = vst [vmem:[%s15089_s26 + $0x2e0] sm:$0xff] %v12382_v30  ;;  %12383 = vpow2.f32 %v8282_v28  ;;  %v7801_v4 = vadd.f32 %v7624_v31, %v6044_v62  ;;  %v16778_v62 = vld [vmem:[#allocation31_spill] sm:$0xff] }
 0x9a5   : > { %12385 = vrcp.f32 %v8443_v33  ;;  %7336 = vmatmul.bf16.gmra.mxu1 %v11272_v60 }
 0x9a6   : > { %v7933_v11 = vadd.f32 %v15760_v47, %v7801_v4  ;;  %11425 = vmatmul.msk.bf16.gmra.mxu3 %vm970_vm1, %v11276_v51 }
 0x9a8   : > { %v8061_v6 = vsub.f32 0.0, %v7933_v11  ;;  %v5871_v19 = vpop.f32.mrf.mxu2  ;;  %v5545_v3 = vpop.f32.mrf.mxu0  ;;  %v11977_v11 = vld [vmem:[%s12603_s14 + $0x424] sm:$0xf0] }
 0x9a9   : > { %v7626_v27 = vpop.f32.mrf.mxu3  ;;  %v5872_v38 = vadd.f32 %v5871_v19, %v5542_v8  ;;  %v10662_v8 = vor.u32 %v11839_v21, %v10659_v55  ;;  %v11978_v21 = vld [vmem:[%s12603_s14 + $0x434] sm:$0xf]  ;;  %v11297_v55 = vld [vmem:[%s12603_s14 + $0x438] sm:$0xf0] }
 0x9aa   : > { %v12384_v59 = vpop.eup %12383  ;;  %v8284_v0 = vmul.f32 1.442695, %v8061_v6  ;;  %v7627_v53 = vadd.f32 %v7626_v27, %v7297_v2  ;;  %v7299_v9 = vpop.f32.mrf.mxu1  ;;  %v11288_v27 = vor.u32 %v11977_v11, %v11287_v29 }
 0x9ab   : > { %v12386_v5 = vpop.eup %12385  ;;  %v8444_v42 = vadd.f32 1.0, %v12384_v59  ;;  %5584 = vmatmul.bf16.gmra.mxu0 %v10650_v37  ;;  %v6046_v45 = vadd.f32 %v5872_v38, %v16777_v56  ;;  %v16779_v59 = vld [vmem:[#allocation32_spill] sm:$0xff] }
 0x9ac   : > { %8699 = vst [vmem:[%s15089_s26 + $0x2e8] sm:$0xff] %v12386_v5  ;;  %12387 = vpow2.f32 %v8284_v0  ;;  %v7802_v15 = vadd.f32 %v7627_v53, %v6045_v20  ;;  %v10665_v38 = vld [vmem:[%s12603_s14 + $0x410] sm:$0xf] }
 0x9ad   : > { %12389 = vrcp.f32 %v8444_v42  ;;  %10796 = vmatmul.msk.bf16.gmra.mxu2 %vm970_vm1, %v10654_v10 }
 0x9ae   : > { %v7934_v17 = vadd.f32 %v15760_v47, %v7802_v15 }
 0x9b0   : > { %v8062_v36 = vsub.f32 0.0, %v7934_v17  ;;  %v5874_v26 = vpop.f32.mrf.mxu2  ;;  %v5547_v25 = vpop.f32.mrf.mxu0  ;;  %v11842_v17 = vld [vmem:[%s12603_s14 + $0x414] sm:$0xf0] }
 0x9b1   : > { %v7628_v14 = vpop.f32.mrf.mxu3  ;;  %v5875_v48 = vadd.f32 %v5874_v26, %v5545_v3 }
 0x9b2   : > { %v12388_v13 = vpop.eup %12387  ;;  %v8286_v16 = vmul.f32 1.442695, %v8062_v36  ;;  %v7629_v34 = vadd.f32 %v7628_v14, %v7299_v9  ;;  %v7302_v32 = vpop.f32.mrf.mxu1  ;;  %v11292_v9 = vor.u32 %v11976_v50, %v11289_v46  ;;  %v10666_v14 = vor.u32 %v11842_v17, %v10665_v38  ;;  %v11843_v50 = vld [vmem:[%s12603_s14 + $0x424] sm:$0xf]  ;;  %v10675_v46 = vld [vmem:[%s12603_s14 + $0x428] sm:$0xf0] }
 0x9b3   : > { %v12390_v58 = vpop.eup %12389  ;;  %v8445_v39 = vadd.f32 1.0, %v12388_v13  ;;  %v6047_v28 = vadd.f32 %v5875_v48, %v16778_v62  ;;  %v11295_v48 = vld [vmem:[%s12603_s14 + $0x430] sm:$0xf] }
 0x9b4   : > { %8700 = vst [vmem:[%s15089_s26 + $0x2f0] sm:$0xff] %v12390_v58  ;;  %12391 = vpow2.f32 %v8286_v16  ;;  %v7803_v18 = vadd.f32 %v7629_v34, %v6046_v45  ;;  %v16780_v45 = vld [vmem:[#allocation33_spill] sm:$0xff] }
 0x9b5   : > { %12393 = vrcp.f32 %v8445_v39  ;;  %7341 = vmatmul.bf16.gmra.mxu1 %v11280_v7 }
 0x9b6   : > { %v7935_v1 = vadd.f32 %v15760_v47, %v7803_v18  ;;  %11426 = vmatmul.msk.bf16.gmra.mxu3 %vm970_vm1, %v11284_v22 }
 0x9b8   : > { %v8063_v12 = vsub.f32 0.0, %v7935_v1  ;;  %v5876_v63 = vpop.f32.mrf.mxu2  ;;  %v5550_v44 = vpop.f32.mrf.mxu0  ;;  %v11979_v1 = vld [vmem:[%s12603_s14 + $0x434] sm:$0xf0] }
 0x9b9   : > { %v7631_v60 = vpop.f32.mrf.mxu3  ;;  %v5877_v43 = vadd.f32 %v5876_v63, %v5547_v25  ;;  %v10670_v25 = vor.u32 %v11841_v41, %v10667_v61  ;;  %v11980_v41 = vld [vmem:[%s12603_s14 + $0x444] sm:$0xf]  ;;  %v11305_v61 = vld [vmem:[%s12603_s14 + $0x448] sm:$0xf0] }
 0x9ba   : > { %v12392_v54 = vpop.eup %12391  ;;  %v8288_v31 = vmul.f32 1.442695, %v8063_v12  ;;  %v7632_v2 = vadd.f32 %v7631_v60, %v7302_v32  ;;  %v7304_v51 = vpop.f32.mrf.mxu1  ;;  %v11296_v60 = vor.u32 %v11979_v1, %v11295_v48 }
 0x9bb   : > { %v12394_v30 = vpop.eup %12393  ;;  %v8446_v33 = vadd.f32 1.0, %v12392_v54  ;;  %5589 = vmatmul.bf16.gmra.mxu0 %v10658_v24  ;;  %v6048_v49 = vadd.f32 %v5877_v43, %v16779_v59  ;;  %v16781_v54 = vld [vmem:[#allocation223_spill] sm:$0xff]  ;;  %v10673_v43 = vld [vmem:[%s12603_s14 + $0x420] sm:$0xf] }
 0x9bc   : > { %8701 = vst [vmem:[%s15089_s26 + $0x2f8] sm:$0xff] %v12394_v30  ;;  %12395 = vpow2.f32 %v8288_v31  ;;  %v7804_v4 = vadd.f32 %v7632_v2, %v6047_v28 }
 0x9bd   : > { %12397 = vrcp.f32 %v8446_v33  ;;  %10797 = vmatmul.msk.bf16.gmra.mxu2 %vm970_vm1, %v10662_v8 }
 0x9be   : > { %v7936_v57 = vadd.f32 %v15760_v47, %v7804_v4 }
 0x9c0   : > { %v8064_v6 = vsub.f32 0.0, %v7936_v57  ;;  %v5879_v19 = vpop.f32.mrf.mxu2  ;;  %v5552_v10 = vpop.f32.mrf.mxu0  ;;  %v11844_v57 = vld [vmem:[%s12603_s14 + $0x424] sm:$0xf0] }
 0x9c1   : > { %v7633_v37 = vpop.f32.mrf.mxu3  ;;  %v5880_v35 = vadd.f32 %v5879_v19, %v5550_v44 }
 0x9c2   : > { %v12396_v3 = vpop.eup %12395  ;;  %v8290_v20 = vmul.f32 1.442695, %v8064_v6  ;;  %v7634_v0 = vadd.f32 %v7633_v37, %v7304_v51  ;;  %v7307_v53 = vpop.f32.mrf.mxu1  ;;  %v11300_v51 = vor.u32 %v11978_v21, %v11297_v55  ;;  %v10674_v37 = vor.u32 %v11844_v57, %v10673_v43  ;;  %v11845_v21 = vld [vmem:[%s12603_s14 + $0x434] sm:$0xf]  ;;  %v10683_v55 = vld [vmem:[%s12603_s14 + $0x438] sm:$0xf0] }
 0x9c3   : > { %v12398_v5 = vpop.eup %12397  ;;  %v8447_v42 = vadd.f32 1.0, %v12396_v3  ;;  %v6049_v16 = vadd.f32 %v5880_v35, %v16780_v45  ;;  %v11303_v35 = vld [vmem:[%s12603_s14 + $0x440] sm:$0xf] }
 0x9c4   : > { %8702 = vst [vmem:[%s15089_s26 + $0x300] sm:$0xff] %v12398_v5  ;;  %12399 = vpow2.f32 %v8290_v20  ;;  %v7805_v15 = vadd.f32 %v7634_v0, %v6048_v49  ;;  %v16782_v49 = vld [vmem:[#allocation34_spill] sm:$0xff] }
 0x9c5   : > { %12401 = vrcp.f32 %v8447_v42  ;;  %7346 = vmatmul.bf16.gmra.mxu1 %v11288_v27 }
 0x9c6   : > { %v7937_v23 = vadd.f32 %v15760_v47, %v7805_v15  ;;  %11427 = vmatmul.msk.bf16.gmra.mxu3 %vm970_vm1, %v11292_v9 }
 0x9c8   : > { %v8065_v36 = vsub.f32 0.0, %v7937_v23  ;;  %v5881_v26 = vpop.f32.mrf.mxu2  ;;  %v5555_v13 = vpop.f32.mrf.mxu0  ;;  %v11981_v23 = vld [vmem:[%s12603_s14 + $0x444] sm:$0xf0] }
 0x9c9   : > { %v7636_v7 = vpop.f32.mrf.mxu3  ;;  %v5882_v40 = vadd.f32 %v5881_v26, %v5552_v10  ;;  %v10678_v10 = vor.u32 %v11843_v50, %v10675_v46  ;;  %v11982_v50 = vld [vmem:[%s12603_s14 + $0x454] sm:$0xf]  ;;  %v11313_v46 = vld [vmem:[%s12603_s14 + $0x458] sm:$0xf0] }
 0x9ca   : > { %v12400_v56 = vpop.eup %12399  ;;  %v8292_v34 = vmul.f32 1.442695, %v8065_v36  ;;  %v7637_v32 = vadd.f32 %v7636_v7, %v7307_v53  ;;  %v7309_v22 = vpop.f32.mrf.mxu1  ;;  %v11304_v7 = vor.u32 %v11981_v23, %v11303_v35  ;;  %v15934_v35 = vld [vmem:[%s16030_s2] ss:$0 sm:$0xff] }
 0x9cb   : > { %v12402_v58 = vpop.eup %12401  ;;  %v8448_v39 = vadd.f32 1.0, %v12400_v56  ;;  %5594 = vmatmul.bf16.gmra.mxu0 %v10666_v14  ;;  %v6050_v62 = vadd.f32 %v5882_v40, %v16781_v54  ;;  %v16783_v56 = vld [vmem:[#allocation36_spill] sm:$0xff] }
 0x9cc   : > { %8703 = vst [vmem:[%s15089_s26 + $0x308] sm:$0xff] %v12402_v58  ;;  %12403 = vpow2.f32 %v8292_v34  ;;  %v7806_v18 = vadd.f32 %v7637_v32, %v6049_v16  ;;  %v10681_v40 = vld [vmem:[%s12603_s14 + $0x430] sm:$0xf] }
 0x9cd   : > { %12405 = vrcp.f32 %v8448_v39  ;;  %10798 = vmatmul.msk.bf16.gmra.mxu2 %vm970_vm1, %v10670_v25 }
 0x9ce   : > { %v7938_v52 = vadd.f32 %v15760_v47, %v7806_v18 }
 0x9d0   : > { %v8066_v12 = vsub.f32 0.0, %v7938_v52  ;;  %v5884_v63 = vpop.f32.mrf.mxu2  ;;  %v5557_v8 = vpop.f32.mrf.mxu0  ;;  %v11846_v52 = vld [vmem:[%s12603_s14 + $0x434] sm:$0xf0] }
 0x9d1   : > { %v7638_v24 = vpop.f32.mrf.mxu3  ;;  %v5885_v29 = vadd.f32 %v5884_v63, %v5555_v13 }
 0x9d2   : > { %v12404_v44 = vpop.eup %12403  ;;  %v8294_v28 = vmul.f32 1.442695, %v8066_v12  ;;  %v7639_v31 = vadd.f32 %v7638_v24, %v7309_v22  ;;  %v7312_v2 = vpop.f32.mrf.mxu1  ;;  %v11308_v22 = vor.u32 %v11980_v41, %v11305_v61  ;;  %v10682_v24 = vor.u32 %v11846_v52, %v10681_v40  ;;  %v11847_v41 = vld [vmem:[%s12603_s14 + $0x444] sm:$0xf]  ;;  %v10691_v61 = vld [vmem:[%s12603_s14 + $0x448] sm:$0xf0] }
 0x9d3   : > { %v12406_v30 = vpop.eup %12405  ;;  %v8449_v33 = vadd.f32 1.0, %v12404_v44  ;;  %v6051_v20 = vadd.f32 %v5885_v29, %v16782_v49  ;;  %v11311_v29 = vld [vmem:[%s12603_s14 + $0x450] sm:$0xf] }
 0x9d4   : > { %8704 = vst [vmem:[%s15089_s26 + $0x310] sm:$0xff] %v12406_v30  ;;  %12407 = vpow2.f32 %v8294_v28  ;;  %v7807_v4 = vadd.f32 %v7639_v31, %v6050_v62  ;;  %v16784_v62 = vld [vmem:[#allocation37_spill] sm:$0xff] }
 0x9d5   : > { %12409 = vrcp.f32 %v8449_v33  ;;  %7351 = vmatmul.bf16.gmra.mxu1 %v11296_v60 }
 0x9d6   : > { %v7939_v11 = vadd.f32 %v15760_v47, %v7807_v4  ;;  %11428 = vmatmul.msk.bf16.gmra.mxu3 %vm970_vm1, %v11300_v51 }
 0x9d8   : > { %v8067_v6 = vsub.f32 0.0, %v7939_v11  ;;  %v5886_v19 = vpop.f32.mrf.mxu2  ;;  %v5560_v3 = vpop.f32.mrf.mxu0  ;;  %v11983_v11 = vld [vmem:[%s12603_s14 + $0x454] sm:$0xf0] }
 0x9d9   : > { %v7641_v27 = vpop.f32.mrf.mxu3  ;;  %v5887_v38 = vadd.f32 %v5886_v19, %v5557_v8  ;;  %v10686_v8 = vor.u32 %v11845_v21, %v10683_v55  ;;  %v11984_v21 = vld [vmem:[%s12603_s14 + $0x464] sm:$0xf]  ;;  %v11321_v55 = vld [vmem:[%s12603_s14 + $0x468] sm:$0xf0] }
 0x9da   : > { %v12408_v59 = vpop.eup %12407  ;;  %v8296_v0 = vmul.f32 1.442695, %v8067_v6  ;;  %v7642_v53 = vadd.f32 %v7641_v27, %v7312_v2  ;;  %v7314_v9 = vpop.f32.mrf.mxu1  ;;  %v11312_v27 = vor.u32 %v11983_v11, %v11311_v29 }
 0x9db   : > { %v12410_v5 = vpop.eup %12409  ;;  %v8450_v42 = vadd.f32 1.0, %v12408_v59  ;;  %5599 = vmatmul.bf16.gmra.mxu0 %v10674_v37  ;;  %v6052_v45 = vadd.f32 %v5887_v38, %v16783_v56  ;;  %v16785_v59 = vld [vmem:[#allocation38_spill] sm:$0xff]  ;;  %v11848_v38 = vld [vmem:[%s12603_s14 + $0x444] sm:$0xf0] }
 0x9dc   : > { %8705 = vst [vmem:[%s15089_s26 + $0x318] sm:$0xff] %v12410_v5  ;;  %12411 = vpow2.f32 %v8296_v0  ;;  %v7808_v15 = vadd.f32 %v7642_v53, %v6051_v20 }
 0x9dd   : > { %12413 = vrcp.f32 %v8450_v42  ;;  %10799 = vmatmul.msk.bf16.gmra.mxu2 %vm970_vm1, %v10678_v10 }
 0x9de   : > { %v7940_v17 = vadd.f32 %v15760_v47, %v7808_v15  ;;  %v10689_v15 = vld [vmem:[%s12603_s14 + $0x440] sm:$0xf] }
 0x9e0   : > { %v8068_v36 = vsub.f32 0.0, %v7940_v17  ;;  %v5889_v26 = vpop.f32.mrf.mxu2  ;;  %v5562_v25 = vpop.f32.mrf.mxu0 }
 0x9e1   : > { %v7643_v14 = vpop.f32.mrf.mxu3  ;;  %v5890_v48 = vadd.f32 %v5889_v26, %v5560_v3 }
 0x9e2   : > { %v12412_v13 = vpop.eup %12411  ;;  %v8298_v16 = vmul.f32 1.442695, %v8068_v36  ;;  %v7644_v34 = vadd.f32 %v7643_v14, %v7314_v9  ;;  %v7317_v32 = vpop.f32.mrf.mxu1  ;;  %v10690_v14 = vor.u32 %v11848_v38, %v10689_v15 }
 0x9e3   : > { %v12414_v58 = vpop.eup %12413  ;;  %v8451_v39 = vadd.f32 1.0, %v12412_v13  ;;  %v6053_v28 = vadd.f32 %v5890_v48, %v16784_v62  ;;  %v11319_v48 = vld [vmem:[%s12603_s14 + $0x460] sm:$0xf] }
 0x9e4   : > { %8706 = vst [vmem:[%s15089_s26 + $0x320] sm:$0xff] %v12414_v58  ;;  %12415 = vpow2.f32 %v8298_v16  ;;  %v7809_v18 = vadd.f32 %v7644_v34, %v6052_v45  ;;  %v16786_v45 = vld [vmem:[#allocation225_spill] sm:$0xff] }
 0x9e5   : > { %12417 = vrcp.f32 %v8451_v39  ;;  %7356 = vmatmul.bf16.gmra.mxu1 %v11304_v7 }
 0x9e6   : > { %v7941_v1 = vadd.f32 %v15760_v47, %v7809_v18  ;;  %11429 = vmatmul.msk.bf16.gmra.mxu3 %vm970_vm1, %v11308_v22 }
 0x9e8   : > { %v8069_v12 = vsub.f32 0.0, %v7941_v1  ;;  %v5891_v63 = vpop.f32.mrf.mxu2  ;;  %v5565_v44 = vpop.f32.mrf.mxu0  ;;  %v11985_v1 = vld [vmem:[%s12603_s14 + $0x464] sm:$0xf0] }
 0x9e9   : > { %v7646_v60 = vpop.f32.mrf.mxu3  ;;  %v5892_v43 = vadd.f32 %v5891_v63, %v5562_v25  ;;  %v10694_v25 = vor.u32 %v11847_v41, %v10691_v61  ;;  %v11986_v41 = vld [vmem:[%s12603_s14 + $0x474] sm:$0xf]  ;;  %v11329_v61 = vld [vmem:[%s12603_s14 + $0x478] sm:$0xf0] }
 0x9ea   : > { %v12416_v54 = vpop.eup %12415  ;;  %v8300_v31 = vmul.f32 1.442695, %v8069_v12  ;;  %v7647_v2 = vadd.f32 %v7646_v60, %v7317_v32  ;;  %v7319_v51 = vpop.f32.mrf.mxu1  ;;  %v11320_v60 = vor.u32 %v11985_v1, %v11319_v48 }
 0x9eb   : > { %v12418_v30 = vpop.eup %12417  ;;  %v8452_v33 = vadd.f32 1.0, %v12416_v54  ;;  %5604 = vmatmul.bf16.gmra.mxu0 %v10682_v24  ;;  %v6054_v49 = vadd.f32 %v5892_v43, %v16785_v59  ;;  %v16787_v54 = vld [vmem:[#allocation40_spill] sm:$0xff] }
 0x9ec   : > { %8707 = vst [vmem:[%s15089_s26 + $0x328] sm:$0xff] %v12418_v30  ;;  %12419 = vpow2.f32 %v8300_v31  ;;  %v7810_v4 = vadd.f32 %v7647_v2, %v6053_v28  ;;  %v10697_v43 = vld [vmem:[%s12603_s14 + $0x450] sm:$0xf] }
 0x9ed   : > { %12421 = vrcp.f32 %v8452_v33  ;;  %10800 = vmatmul.msk.bf16.gmra.mxu2 %vm970_vm1, %v10686_v8 }
 0x9ee   : > { %v7942_v57 = vadd.f32 %v15760_v47, %v7810_v4  ;;  %v11316_v47 = vor.u32 %v11982_v50, %v11313_v46  ;;  %v11849_v50 = vld [vmem:[%s12603_s14 + $0x454] sm:$0xf]  ;;  %v10699_v46 = vld [vmem:[%s12603_s14 + $0x458] sm:$0xf0] }
 0x9f0   : > { %v8070_v6 = vsub.f32 0.0, %v7942_v57  ;;  %v5894_v19 = vpop.f32.mrf.mxu2  ;;  %v5567_v10 = vpop.f32.mrf.mxu0  ;;  %v11850_v57 = vld [vmem:[%s12603_s14 + $0x454] sm:$0xf0] }
 0x9f1   : > { %v7648_v37 = vpop.f32.mrf.mxu3  ;;  %v5895_v17 = vadd.f32 %v5894_v19, %v5565_v44 }
 0x9f2   : > { %v12420_v3 = vpop.eup %12419  ;;  %v8302_v20 = vmul.f32 1.442695, %v8070_v6  ;;  %v7649_v0 = vadd.f32 %v7648_v37, %v7319_v51  ;;  %v7322_v53 = vpop.f32.mrf.mxu1  ;;  %v11324_v51 = vor.u32 %v11984_v21, %v11321_v55  ;;  %v10698_v37 = vor.u32 %v11850_v57, %v10697_v43  ;;  %v16791_v57 = vld [vmem:[#allocation46_spill] sm:$0xff] }
 0x9f3   : > { %v12422_v9 = vpop.eup %12421  ;;  %v8453_v5 = vadd.f32 1.0, %v12420_v3  ;;  %v6055_v16 = vadd.f32 %v5895_v17, %v16786_v45  ;;  %v11327_v17 = vld [vmem:[%s12603_s14 + $0x470] sm:$0xf] }
 0x9f4   : > { %8708 = vst [vmem:[%s15089_s26 + $0x330] sm:$0xff] %v12422_v9  ;;  %12423 = vpow2.f32 %v8302_v20  ;;  %v7811_v42 = vadd.f32 %v7649_v0, %v6054_v49  ;;  %v16788_v49 = vld [vmem:[#allocation42_spill] sm:$0xff] }
 0x9f5   : > { %12425 = vrcp.f32 %v8453_v5  ;;  %7361 = vmatmul.bf16.gmra.mxu1 %v11312_v27 }
 0x9f6   : > { %v7943_v23 = vadd.f32 %v15934_v35, %v7811_v42  ;;  %11430 = vmatmul.msk.bf16.gmra.mxu3 %vm970_vm1, %v11316_v47 }
 0x9f8   : > { %v8071_v36 = vsub.f32 0.0, %v7943_v23  ;;  %v5896_v26 = vpop.f32.mrf.mxu2  ;;  %v5570_v13 = vpop.f32.mrf.mxu0  ;;  %v11987_v23 = vld [vmem:[%s12603_s14 + $0x474] sm:$0xf0] }
 0x9f9   : > { %v7651_v7 = vpop.f32.mrf.mxu3  ;;  %v5897_v40 = vadd.f32 %v5896_v26, %v5567_v10  ;;  %v10702_v10 = vor.u32 %v11849_v50, %v10699_v46 }
 0x9fa   : > { %v12424_v56 = vpop.eup %12423  ;;  %v8304_v34 = vmul.f32 1.442695, %v8071_v36  ;;  %v7652_v32 = vadd.f32 %v7651_v7, %v7322_v53  ;;  %v7324_v22 = vpop.f32.mrf.mxu1  ;;  %v11328_v7 = vor.u32 %v11987_v23, %v11327_v17 }
 0x9fb   : > { %v12426_v58 = vpop.eup %12425  ;;  %v8454_v39 = vadd.f32 1.0, %v12424_v56  ;;  %5609 = vmatmul.bf16.gmra.mxu0 %v10690_v14  ;;  %v6056_v62 = vadd.f32 %v5897_v40, %v16787_v54  ;;  %v16789_v56 = vld [vmem:[#allocation43_spill] sm:$0xff] }
 0x9fc   : > { %8709 = vst [vmem:[%s15089_s26 + $0x338] sm:$0xff] %v12426_v58  ;;  %12427 = vpow2.f32 %v8304_v34  ;;  %v7812_v18 = vadd.f32 %v7652_v32, %v6055_v16 }
 0x9fd   : > { %12429 = vrcp.f32 %v8454_v39  ;;  %10801 = vmatmul.msk.bf16.gmra.mxu2 %vm970_vm1, %v10694_v25 }
 0x9fe   : > { %v7944_v52 = vadd.f32 %v15934_v35, %v7812_v18 }
 0xa00   : > { %v8072_v12 = vsub.f32 0.0, %v7944_v52  ;;  %v5899_v63 = vpop.f32.mrf.mxu2  ;;  %v5572_v8 = vpop.f32.mrf.mxu0 }
 0xa01   : > { %v7653_v24 = vpop.f32.mrf.mxu3  ;;  %v5900_v29 = vadd.f32 %v5899_v63, %v5570_v13  ;;  %v16790_v63 = vld [vmem:[#allocation45_spill] sm:$0xff] }
 0xa02   : > { %v12428_v44 = vpop.eup %12427  ;;  %v8306_v28 = vmul.f32 1.442695, %v8072_v12  ;;  %v7654_v31 = vadd.f32 %v7653_v24, %v7324_v22  ;;  %v7327_v2 = vpop.f32.mrf.mxu1  ;;  %v11332_v22 = vor.u32 %v11986_v41, %v11329_v61 }
 0xa03   : > { %v12430_v30 = vpop.eup %12429  ;;  %v8455_v33 = vadd.f32 1.0, %v12428_v44  ;;  %v6057_v20 = vadd.f32 %v5900_v29, %v16788_v49 }
 0xa04   : > { %8710 = vst [vmem:[%s15089_s26 + $0x340] sm:$0xff] %v12430_v30  ;;  %12431 = vpow2.f32 %v8306_v28  ;;  %v7813_v4 = vadd.f32 %v7654_v31, %v6056_v62 }
 0xa05   : > { %12433 = vrcp.f32 %v8455_v33  ;;  %7366 = vmatmul.bf16.gmra.mxu1 %v11320_v60 }
 0xa06   : > { %v7945_v11 = vadd.f32 %v15934_v35, %v7813_v4  ;;  %11431 = vmatmul.msk.bf16.gmra.mxu3 %vm970_vm1, %v11324_v51 }
 0xa08   : > { %v8073_v6 = vsub.f32 0.0, %v7945_v11  ;;  %v5901_v19 = vpop.f32.mrf.mxu2  ;;  %v5575_v3 = vpop.f32.mrf.mxu0 }
 0xa09   : > { %v7656_v27 = vpop.f32.mrf.mxu3  ;;  %v5902_v15 = vadd.f32 %v5901_v19, %v5572_v8 }
 0xa0a   : > { %v12432_v59 = vpop.eup %12431  ;;  %v8308_v0 = vmul.f32 1.442695, %v8073_v6  ;;  %v7657_v53 = vadd.f32 %v7656_v27, %v7327_v2  ;;  %v7329_v47 = vpop.f32.mrf.mxu1 }
 0xa0b   : > { %v12434_v9 = vpop.eup %12433  ;;  %v8456_v5 = vadd.f32 1.0, %v12432_v59  ;;  %5614 = vmatmul.bf16.gmra.mxu0 %v10698_v37  ;;  %v6058_v45 = vadd.f32 %v5902_v15, %v16789_v56 }
 0xa0c   : > { %8711 = vst [vmem:[%s15089_s26 + $0x348] sm:$0xff] %v12434_v9  ;;  %12435 = vpow2.f32 %v8308_v0  ;;  %v7814_v42 = vadd.f32 %v7657_v53, %v6057_v20  ;;  %v16792_v53 = vld [vmem:[#allocation48_spill] sm:$0xff] }
 0xa0d   : > { %12437 = vrcp.f32 %v8456_v5  ;;  %10802 = vmatmul.msk.bf16.gmra.mxu2 %vm970_vm1, %v10702_v10 }
 0xa0e   : > { %v7946_v38 = vadd.f32 %v15934_v35, %v7814_v42 }
 0xa10   : > { %v8074_v36 = vsub.f32 0.0, %v7946_v38  ;;  %v5904_v26 = vpop.f32.mrf.mxu2  ;;  %v5577_v25 = vpop.f32.mrf.mxu0 }
 0xa11   : > { %v7658_v14 = vpop.f32.mrf.mxu3  ;;  %v5905_v40 = vadd.f32 %v5904_v26, %v5575_v3 }
 0xa12   : > { %v12436_v13 = vpop.eup %12435  ;;  %v8310_v16 = vmul.f32 1.442695, %v8074_v36  ;;  %v7659_v34 = vadd.f32 %v7658_v14, %v7329_v47  ;;  %v7332_v32 = vpop.f32.mrf.mxu1 }
 0xa13   : > { %v12438_v58 = vpop.eup %12437  ;;  %v8457_v39 = vadd.f32 1.0, %v12436_v13  ;;  %v6059_v24 = vadd.f32 %v5905_v40, %v16790_v63 }
 0xa14   : > { %8712 = vst [vmem:[%s15089_s26 + $0x350] sm:$0xff] %v12438_v58  ;;  %12439 = vpow2.f32 %v8310_v16  ;;  %v7815_v18 = vadd.f32 %v7659_v34, %v6058_v45 }
 0xa15   : > { %12441 = vrcp.f32 %v8457_v39  ;;  %7371 = vmatmul.bf16.gmra.mxu1 %v11328_v7 }
 0xa16   : > { %v7947_v52 = vadd.f32 %v15934_v35, %v7815_v18  ;;  %11432 = vmatmul.msk.bf16.gmra.mxu3 %vm970_vm1, %v11332_v22 }
 0xa18   : > { %v8075_v48 = vsub.f32 0.0, %v7947_v52  ;;  %v5906_v1 = vpop.f32.mrf.mxu2  ;;  %v5580_v55 = vpop.f32.mrf.mxu0 }
 0xa19   : > { %v7661_v21 = vpop.f32.mrf.mxu3  ;;  %v5907_v31 = vadd.f32 %v5906_v1, %v5577_v25  ;;  %v16793_v25 = vld [vmem:[#allocation49_spill] sm:$0xff] }
 0xa1a   : > { %v12440_v12 = vpop.eup %12439  ;;  %v8312_v60 = vmul.f32 1.442695, %v8075_v48  ;;  %v7662_v8 = vadd.f32 %v7661_v21, %v7332_v32  ;;  %v7334_v44 = vpop.f32.mrf.mxu1  ;;  %v16794_v21 = vld [vmem:[#allocation51_spill] sm:$0xff] }
 0xa1b   : > { %v12442_v54 = vpop.eup %12441  ;;  %v8458_v62 = vadd.f32 1.0, %v12440_v12  ;;  %v6060_v29 = vadd.f32 %v5907_v31, %v16791_v57 }
 0xa1c   : > { %8713 = vst [vmem:[%s15089_s26 + $0x358] sm:$0xff] %v12442_v54  ;;  %12443 = vpow2.f32 %v8312_v60  ;;  %v7816_v28 = vadd.f32 %v7662_v8, %v6059_v24 }
 0xa1d   : > { %12445 = vrcp.f32 %v8458_v62 }
 0xa1e   : > { %v7948_v2 = vadd.f32 %v15934_v35, %v7816_v28 }
 0xa20   : > { %v8076_v51 = vsub.f32 0.0, %v7948_v2  ;;  %v5909_v30 = vpop.f32.mrf.mxu2  ;;  %v5582_v4 = vpop.f32.mrf.mxu0 }
 0xa21   : > { %v7663_v33 = vpop.f32.mrf.mxu3  ;;  %v5910_v27 = vadd.f32 %v5909_v30, %v5580_v55 }
 0xa22   : > { %v12444_v43 = vpop.eup %12443  ;;  %v8314_v11 = vmul.f32 1.442695, %v8076_v51  ;;  %v7664_v50 = vadd.f32 %v7663_v33, %v7334_v44  ;;  %v7337_v46 = vpop.f32.mrf.mxu1  ;;  %v16795_v33 = vld [vmem:[#allocation52_spill] sm:$0xff] }
 0xa23   : > { %v12446_v6 = vpop.eup %12445  ;;  %v8459_v19 = vadd.f32 1.0, %v12444_v43  ;;  %v6061_v47 = vadd.f32 %v5910_v27, %v16792_v53 }
 0xa24   : > { %8714 = vst [vmem:[%s15089_s26 + $0x360] sm:$0xff] %v12446_v6  ;;  %12447 = vpow2.f32 %v8314_v11  ;;  %v7817_v37 = vadd.f32 %v7664_v50, %v6060_v29 }
 0xa25   : > { %12449 = vrcp.f32 %v8459_v19 }
 0xa26   : > { %v7949_v10 = vadd.f32 %v15934_v35, %v7817_v37 }
 0xa28   : > { %v8077_v3 = vsub.f32 0.0, %v7949_v10  ;;  %v5911_v59 = vpop.f32.mrf.mxu2  ;;  %v5585_v20 = vpop.f32.mrf.mxu0 }
 0xa29   : > { %v7666_v49 = vpop.f32.mrf.mxu3  ;;  %v5912_v23 = vadd.f32 %v5911_v59, %v5582_v4 }
 0xa2a   : > { %v12448_v0 = vpop.eup %12447  ;;  %v8316_v9 = vmul.f32 1.442695, %v8077_v3  ;;  %v7667_v5 = vadd.f32 %v7666_v49, %v7337_v46  ;;  %v7339_v42 = vpop.f32.mrf.mxu1  ;;  %v16796_v49 = vld [vmem:[#allocation54_spill] sm:$0xff] }
 0xa2b   : > { %v12450_v15 = vpop.eup %12449  ;;  %v8460_v38 = vadd.f32 1.0, %v12448_v0  ;;  %v6062_v13 = vadd.f32 %v5912_v23, %v16793_v25 }
 0xa2c   : > { %8715 = vst [vmem:[%s15089_s26 + $0x368] sm:$0xff] %v12450_v15  ;;  %12451 = vpow2.f32 %v8316_v9  ;;  %v7818_v17 = vadd.f32 %v7667_v5, %v6061_v47 }
 0xa2d   : > { %12453 = vrcp.f32 %v8460_v38 }
 0xa2e   : > { %v7950_v41 = vadd.f32 %v15934_v35, %v7818_v17 }
 0xa30   : > { %v8078_v61 = vsub.f32 0.0, %v7950_v41  ;;  %v5914_v36 = vpop.f32.mrf.mxu2  ;;  %v5587_v14 = vpop.f32.mrf.mxu0 }
 0xa31   : > { %v7668_v26 = vpop.f32.mrf.mxu3  ;;  %v5915_v58 = vadd.f32 %v5914_v36, %v5585_v20 }
 0xa32   : > { %v12452_v7 = vpop.eup %12451  ;;  %v8318_v56 = vmul.f32 1.442695, %v8078_v61  ;;  %v7669_v45 = vadd.f32 %v7668_v26, %v7339_v42  ;;  %v7342_v16 = vpop.f32.mrf.mxu1  ;;  %v16797_v26 = vld [vmem:[#allocation55_spill] sm:$0xff] }
 0xa33   : > { %v12454_v34 = vpop.eup %12453  ;;  %v8461_v32 = vadd.f32 1.0, %v12452_v7  ;;  %v6063_v55 = vadd.f32 %v5915_v58, %v16794_v21 }
 0xa34   : > { %8716 = vst [vmem:[%s15089_s26 + $0x370] sm:$0xff] %v12454_v34  ;;  %12455 = vpow2.f32 %v8318_v56  ;;  %v7819_v22 = vadd.f32 %v7669_v45, %v6062_v13 }
 0xa35   : > { %12457 = vrcp.f32 %v8461_v32 }
 0xa36   : > { %v7951_v39 = vadd.f32 %v15934_v35, %v7819_v22 }
 0xa38   : > { %v8079_v18 = vsub.f32 0.0, %v7951_v39  ;;  %v5916_v40 = vpop.f32.mrf.mxu2  ;;  %v5590_v48 = vpop.f32.mrf.mxu0 }
 0xa39   : > { %v7671_v52 = vpop.f32.mrf.mxu3  ;;  %v5917_v54 = vadd.f32 %v5916_v40, %v5587_v14 }
 0xa3a   : > { %v12456_v1 = vpop.eup %12455  ;;  %v8320_v12 = vmul.f32 1.442695, %v8079_v18  ;;  %v7672_v63 = vadd.f32 %v7671_v52, %v7342_v16  ;;  %v7344_v24 = vpop.f32.mrf.mxu1  ;;  %v16798_v52 = vld [vmem:[#allocation57_spill] sm:$0xff] }
 0xa3b   : > { %v12458_v60 = vpop.eup %12457  ;;  %v8462_v8 = vadd.f32 1.0, %v12456_v1  ;;  %v6064_v4 = vadd.f32 %v5917_v54, %v16795_v33 }
 0xa3c   : > { %8717 = vst [vmem:[%s15089_s26 + $0x378] sm:$0xff] %v12458_v60  ;;  %12459 = vpow2.f32 %v8320_v12  ;;  %v7820_v44 = vadd.f32 %v7672_v63, %v6063_v55 }
 0xa3d   : > { %12461 = vrcp.f32 %v8462_v8 }
 0xa3e   : > { %v7952_v62 = vadd.f32 %v15934_v35, %v7820_v44 }
 0xa40   : > { %v8080_v28 = vsub.f32 0.0, %v7952_v62  ;;  %v5919_v31 = vpop.f32.mrf.mxu2  ;;  %v5592_v51 = vpop.f32.mrf.mxu0 }
 0xa41   : > { %v7673_v2 = vpop.f32.mrf.mxu3  ;;  %v5920_v6 = vadd.f32 %v5919_v31, %v5590_v48 }
 0xa42   : > { %v12460_v30 = vpop.eup %12459  ;;  %v8322_v43 = vmul.f32 1.442695, %v8080_v28  ;;  %v7674_v57 = vadd.f32 %v7673_v2, %v7344_v24  ;;  %v7347_v29 = vpop.f32.mrf.mxu1  ;;  %v16799_v2 = vld [vmem:[#allocation58_spill] sm:$0xff] }
 0xa43   : > { %v12462_v11 = vpop.eup %12461  ;;  %v8463_v50 = vadd.f32 1.0, %v12460_v30  ;;  %v6065_v20 = vadd.f32 %v5920_v6, %v16796_v49 }
 0xa44   : > { %8718 = vst [vmem:[%s15089_s26 + $0x380] sm:$0xff] %v12462_v11  ;;  %12463 = vpow2.f32 %v8322_v43  ;;  %v7821_v46 = vadd.f32 %v7674_v57, %v6064_v4 }
 0xa45   : > { %12465 = vrcp.f32 %v8463_v50 }
 0xa46   : > { %v7953_v19 = vadd.f32 %v15934_v35, %v7821_v46 }
 0xa48   : > { %v8081_v37 = vsub.f32 0.0, %v7953_v19  ;;  %v5921_v27 = vpop.f32.mrf.mxu2  ;;  %v5595_v3 = vpop.f32.mrf.mxu0 }
 0xa49   : > { %v7676_v10 = vpop.f32.mrf.mxu3  ;;  %v5922_v15 = vadd.f32 %v5921_v27, %v5592_v51 }
 0xa4a   : > { %v12464_v59 = vpop.eup %12463  ;;  %v8324_v0 = vmul.f32 1.442695, %v8081_v37  ;;  %v7677_v53 = vadd.f32 %v7676_v10, %v7347_v29  ;;  %v7349_v47 = vpop.f32.mrf.mxu1  ;;  %v16800_v10 = vld [vmem:[#allocation60_spill] sm:$0xff] }
 0xa4b   : > { %v12466_v9 = vpop.eup %12465  ;;  %v8464_v5 = vadd.f32 1.0, %v12464_v59  ;;  %v6066_v14 = vadd.f32 %v5922_v15, %v16797_v26 }
 0xa4c   : > { %8719 = vst [vmem:[%s15089_s26 + $0x388] sm:$0xff] %v12466_v9  ;;  %12467 = vpow2.f32 %v8324_v0  ;;  %v7822_v42 = vadd.f32 %v7677_v53, %v6065_v20 }
 0xa4d   : > { %12469 = vrcp.f32 %v8464_v5 }
 0xa4e   : > { %v7954_v38 = vadd.f32 %v15934_v35, %v7822_v42 }
 0xa50   : > { %v8082_v17 = vsub.f32 0.0, %v7954_v38  ;;  %v5924_v23 = vpop.f32.mrf.mxu2  ;;  %v5597_v61 = vpop.f32.mrf.mxu0 }
 0xa51   : > { %v7678_v41 = vpop.f32.mrf.mxu3  ;;  %v5925_v34 = vadd.f32 %v5924_v23, %v5595_v3  ;;  %v16801_v23 = vld [vmem:[#allocation61_spill] sm:$0xff] }
 0xa52   : > { %v12468_v36 = vpop.eup %12467  ;;  %v8326_v7 = vmul.f32 1.442695, %v8082_v17  ;;  %v7679_v25 = vadd.f32 %v7678_v41, %v7349_v47  ;;  %v7352_v13 = vpop.f32.mrf.mxu1 }
 0xa53   : > { %v12470_v56 = vpop.eup %12469  ;;  %v8465_v45 = vadd.f32 1.0, %v12468_v36  ;;  %v6067_v48 = vadd.f32 %v5925_v34, %v16798_v52 }
 0xa54   : > { %8720 = vst [vmem:[%s15089_s26 + $0x390] sm:$0xff] %v12470_v56  ;;  %12471 = vpow2.f32 %v8326_v7  ;;  %v7823_v16 = vadd.f32 %v7679_v25, %v6066_v14 }
 0xa55   : > { %12473 = vrcp.f32 %v8465_v45 }
 0xa56   : > { %v7955_v32 = vadd.f32 %v15934_v35, %v7823_v16 }
 0xa58   : > { %v8083_v22 = vsub.f32 0.0, %v7955_v32  ;;  %v5926_v58 = vpop.f32.mrf.mxu2  ;;  %v5600_v18 = vpop.f32.mrf.mxu0 }
 0xa59   : > { %v7681_v39 = vpop.f32.mrf.mxu3  ;;  %v5927_v60 = vadd.f32 %v5926_v58, %v5597_v61  ;;  %v16802_v58 = vld [vmem:[#allocation63_spill] sm:$0xff] }
 0xa5a   : > { %v12472_v40 = vpop.eup %12471  ;;  %v8328_v1 = vmul.f32 1.442695, %v8083_v22  ;;  %v7682_v21 = vadd.f32 %v7681_v39, %v7352_v13  ;;  %v7354_v55 = vpop.f32.mrf.mxu1 }
 0xa5b   : > { %v12474_v12 = vpop.eup %12473  ;;  %v8466_v63 = vadd.f32 1.0, %v12472_v40  ;;  %v6068_v51 = vadd.f32 %v5927_v60, %v16799_v2 }
 0xa5c   : > { %8721 = vst [vmem:[%s15089_s26 + $0x398] sm:$0xff] %v12474_v12  ;;  %12475 = vpow2.f32 %v8328_v1  ;;  %v7824_v24 = vadd.f32 %v7682_v21, %v6067_v48 }
 0xa5d   : > { %12477 = vrcp.f32 %v8466_v63 }
 0xa5e   : > { %v7956_v8 = vadd.f32 %v15934_v35, %v7824_v24 }
 0xa60   : > { %v8084_v44 = vsub.f32 0.0, %v7956_v8  ;;  %v5929_v54 = vpop.f32.mrf.mxu2  ;;  %v5602_v28 = vpop.f32.mrf.mxu0 }
 0xa61   : > { %v7683_v62 = vpop.f32.mrf.mxu3  ;;  %v5930_v11 = vadd.f32 %v5929_v54, %v5600_v18  ;;  %v16803_v54 = vld [vmem:[#allocation64_spill] sm:$0xff] }
 0xa62   : > { %v12476_v31 = vpop.eup %12475  ;;  %v8330_v30 = vmul.f32 1.442695, %v8084_v44  ;;  %v7684_v33 = vadd.f32 %v7683_v62, %v7354_v55  ;;  %v7357_v4 = vpop.f32.mrf.mxu1 }
 0xa63   : > { %v12478_v43 = vpop.eup %12477  ;;  %v8467_v57 = vadd.f32 1.0, %v12476_v31  ;;  %v6069_v3 = vadd.f32 %v5930_v11, %v16800_v10 }
 0xa64   : > { %8722 = vst [vmem:[%s15089_s26 + $0x3a0] sm:$0xff] %v12478_v43  ;;  %12479 = vpow2.f32 %v8330_v30  ;;  %v7825_v29 = vadd.f32 %v7684_v33, %v6068_v51 }
 0xa65   : > { %12481 = vrcp.f32 %v8467_v57 }
 0xa66   : > { %v7957_v50 = vadd.f32 %v15934_v35, %v7825_v29 }
 0xa68   : > { %v8085_v46 = vsub.f32 0.0, %v7957_v50  ;;  %v5931_v6 = vpop.f32.mrf.mxu2  ;;  %v5605_v37 = vpop.f32.mrf.mxu0 }
 0xa69   : > { %v7686_v19 = vpop.f32.mrf.mxu3  ;;  %v5932_v9 = vadd.f32 %v5931_v6, %v5602_v28  ;;  %v16804_v6 = vld [vmem:[#allocation66_spill] sm:$0xff] }
 0xa6a   : > { %v12480_v27 = vpop.eup %12479  ;;  %v8332_v59 = vmul.f32 1.442695, %v8085_v46  ;;  %v7687_v49 = vadd.f32 %v7686_v19, %v7357_v4  ;;  %v7359_v20 = vpop.f32.mrf.mxu1 }
 0xa6b   : > { %v12482_v0 = vpop.eup %12481  ;;  %v8468_v53 = vadd.f32 1.0, %v12480_v27  ;;  %v6070_v41 = vadd.f32 %v5932_v9, %v16801_v23 }
 0xa6c   : > { %8723 = vst [vmem:[%s15089_s26 + $0x3a8] sm:$0xff] %v12482_v0  ;;  %12483 = vpow2.f32 %v8332_v59  ;;  %v7826_v47 = vadd.f32 %v7687_v49, %v6069_v3 }
 0xa6d   : > { %12485 = vrcp.f32 %v8468_v53 }
 0xa6e   : > { %v7958_v5 = vadd.f32 %v15934_v35, %v7826_v47 }
 0xa70   : > { %v8086_v42 = vsub.f32 0.0, %v7958_v5  ;;  %v5934_v15 = vpop.f32.mrf.mxu2  ;;  %v5607_v14 = vpop.f32.mrf.mxu0 }
 0xa71   : > { %v7688_v38 = vpop.f32.mrf.mxu3  ;;  %v5935_v56 = vadd.f32 %v5934_v15, %v5605_v37  ;;  %v16805_v15 = vld [vmem:[#allocation67_spill] sm:$0xff] }
 0xa72   : > { %v12484_v17 = vpop.eup %12483  ;;  %v8334_v61 = vmul.f32 1.442695, %v8086_v42  ;;  %v7689_v36 = vadd.f32 %v7688_v38, %v7359_v20  ;;  %v7362_v26 = vpop.f32.mrf.mxu1 }
 0xa73   : > { %v12486_v7 = vpop.eup %12485  ;;  %v8469_v25 = vadd.f32 1.0, %v12484_v17  ;;  %v6071_v39 = vadd.f32 %v5935_v56, %v16802_v58 }
 0xa74   : > { %8724 = vst [vmem:[%s15089_s26 + $0x3b0] sm:$0xff] %v12486_v7  ;;  %12487 = vpow2.f32 %v8334_v61  ;;  %v7827_v13 = vadd.f32 %v7689_v36, %v6070_v41 }
 0xa75   : > { %12489 = vrcp.f32 %v8469_v25 }
 0xa76   : > { %v7959_v45 = vadd.f32 %v15934_v35, %v7827_v13 }
 0xa78   : > { %v8087_v16 = vsub.f32 0.0, %v7959_v45  ;;  %v5936_v34 = vpop.f32.mrf.mxu2  ;;  %v5610_v55 = vpop.f32.mrf.mxu0  ;;  %v16806_v45 = vld [vmem:[#allocation69_spill] sm:$0xff] }
 0xa79   : > { %v7691_v32 = vpop.f32.mrf.mxu3  ;;  %v5937_v12 = vadd.f32 %v5936_v34, %v5607_v14 }
 0xa7a   : > { %v12488_v22 = vpop.eup %12487  ;;  %v8336_v18 = vmul.f32 1.442695, %v8087_v16  ;;  %v7692_v40 = vadd.f32 %v7691_v32, %v7362_v26  ;;  %v7364_v52 = vpop.f32.mrf.mxu1 }
 0xa7b   : > { %v12490_v48 = vpop.eup %12489  ;;  %v8470_v1 = vadd.f32 1.0, %v12488_v22  ;;  %v6072_v62 = vadd.f32 %v5937_v12, %v16803_v54 }
 0xa7c   : > { %8725 = vst [vmem:[%s15089_s26 + $0x3b8] sm:$0xff] %v12490_v48  ;;  %12491 = vpow2.f32 %v8336_v18  ;;  %v7828_v21 = vadd.f32 %v7692_v40, %v6071_v39 }
 0xa7d   : > { %12493 = vrcp.f32 %v8470_v1 }
 0xa7e   : > { %v7960_v63 = vadd.f32 %v15934_v35, %v7828_v21 }
 0xa80   : > { %v8088_v24 = vsub.f32 0.0, %v7960_v63  ;;  %v5939_v60 = vpop.f32.mrf.mxu2  ;;  %v5612_v57 = vpop.f32.mrf.mxu0  ;;  %v16807_v63 = vld [vmem:[#allocation235_spill] sm:$0xff] }
 0xa81   : > { %v7693_v8 = vpop.f32.mrf.mxu3  ;;  %v5940_v4 = vadd.f32 %v5939_v60, %v5610_v55 }
 0xa82   : > { %v12492_v44 = vpop.eup %12491  ;;  %v8338_v28 = vmul.f32 1.442695, %v8088_v24  ;;  %v7694_v31 = vadd.f32 %v7693_v8, %v7364_v52  ;;  %v7367_v30 = vpop.f32.mrf.mxu1 }
 0xa83   : > { %v12494_v2 = vpop.eup %12493  ;;  %v8471_v51 = vadd.f32 1.0, %v12492_v44  ;;  %v6073_v19 = vadd.f32 %v5940_v4, %v16804_v6 }
 0xa84   : > { %8726 = vst [vmem:[%s15089_s26 + $0x3c0] sm:$0xff] %v12494_v2  ;;  %12495 = vpow2.f32 %v8338_v28  ;;  %v7829_v33 = vadd.f32 %v7694_v31, %v6072_v62 }
 0xa85   : > { %12497 = vrcp.f32 %v8471_v51 }
 0xa86   : > { %v7961_v43 = vadd.f32 %v15934_v35, %v7829_v33 }
 0xa88   : > { %v8089_v29 = vsub.f32 0.0, %v7961_v43  ;;  %v5941_v11 = vpop.f32.mrf.mxu2  ;;  %v5615_v47 = vpop.f32.mrf.mxu0 }
 0xa89   : > { %v7696_v50 = vpop.f32.mrf.mxu3  ;;  %v5942_v20 = vadd.f32 %v5941_v11, %v5612_v57 }
 0xa8a   : > { %v12496_v46 = vpop.eup %12495  ;;  %v8340_v37 = vmul.f32 1.442695, %v8089_v29  ;;  %v7697_v27 = vadd.f32 %v7696_v50, %v7367_v30  ;;  %v7369_v49 = vpop.f32.mrf.mxu1 }
 0xa8b   : > { %v12498_v10 = vpop.eup %12497  ;;  %v8472_v3 = vadd.f32 1.0, %v12496_v46  ;;  %v6074_v38 = vadd.f32 %v5942_v20, %v16805_v15 }
 0xa8c   : > { %8727 = vst [vmem:[%s15089_s26 + $0x3c8] sm:$0xff] %v12498_v10  ;;  %12499 = vpow2.f32 %v8340_v37  ;;  %v7830_v59 = vadd.f32 %v7697_v27, %v6073_v19 }
 0xa8d   : > { %12501 = vrcp.f32 %v8472_v3 }
 0xa8e   : > { %v7962_v0 = vadd.f32 %v15934_v35, %v7830_v59 }
 0xa90   : > { %v8090_v53 = vsub.f32 0.0, %v7962_v0  ;;  %v5944_v9 = vpop.f32.mrf.mxu2  ;;  %v5617_v39 = vpop.f32.mrf.mxu0 }
 0xa91   : > { %v7698_v5 = vpop.f32.mrf.mxu3  ;;  %v5945_v26 = vadd.f32 %v5944_v9, %v5615_v47 }
 0xa92   : > { %v12500_v42 = vpop.eup %12499  ;;  %v8342_v17 = vmul.f32 1.442695, %v8090_v53  ;;  %v7699_v23 = vadd.f32 %v7698_v5, %v7369_v49  ;;  %v7372_v7 = vpop.f32.mrf.mxu1 }
 0xa93   : > { %v12502_v41 = vpop.eup %12501  ;;  %v8473_v61 = vadd.f32 1.0, %v12500_v42  ;;  %v6075_v16 = vadd.f32 %v5945_v26, %v16806_v45 }
 0xa94   : > { %8728 = vst [vmem:[%s15089_s26 + $0x3d0] sm:$0xff] %v12502_v41  ;;  %12503 = vpow2.f32 %v8342_v17  ;;  %v7831_v36 = vadd.f32 %v7699_v23, %v6074_v38 }
 0xa95   : > { %12505 = vrcp.f32 %v8473_v61 }
 0xa96   : > { %v7963_v14 = vadd.f32 %v15934_v35, %v7831_v36 }
 0xa98   : > { %v8091_v25 = vsub.f32 0.0, %v7963_v14  ;;  %v5946_v18 = vpop.f32.mrf.mxu2 }
 0xa99   : > { %v7701_v13 = vpop.f32.mrf.mxu3  ;;  %v5947_v52 = vadd.f32 %v5946_v18, %v5617_v39 }
 0xa9a   : > { %v12504_v56 = vpop.eup %12503  ;;  %v8344_v34 = vmul.f32 1.442695, %v8091_v25  ;;  %v7702_v32 = vadd.f32 %v7701_v13, %v7372_v7  ;;  %v7374_v21 = vpop.f32.mrf.mxu1 }
 0xa9b   : > { %v12506_v22 = vpop.eup %12505  ;;  %v8474_v58 = vadd.f32 1.0, %v12504_v56  ;;  %v6076_v24 = vadd.f32 %v5947_v52, %v16807_v63 }
 0xa9c   : > { %8729 = vst [vmem:[%s15089_s26 + $0x3d8] sm:$0xff] %v12506_v22  ;;  %12507 = vpow2.f32 %v8344_v34  ;;  %v7832_v40 = vadd.f32 %v7702_v32, %v6075_v16 }
 0xa9d   : > { %12509 = vrcp.f32 %v8474_v58 }
 0xa9e   : > { %v7964_v48 = vadd.f32 %v15934_v35, %v7832_v40 }
 0xaa0   : > { %v8092_v1 = vsub.f32 0.0, %v7964_v48 }
 0xaa1   : > { %v7703_v55 = vpop.f32.mrf.mxu3 }
 0xaa2   : > { %v12508_v12 = vpop.eup %12507  ;;  %v8346_v60 = vmul.f32 1.442695, %v8092_v1  ;;  %v7704_v8 = vadd.f32 %v7703_v55, %v7374_v21 }
 0xaa3   : > { %v12510_v44 = vpop.eup %12509  ;;  %v8475_v54 = vadd.f32 1.0, %v12508_v12 }
 0xaa4   : > { %8730 = vst [vmem:[%s15089_s26 + $0x3e0] sm:$0xff] %v12510_v44  ;;  %12511 = vpow2.f32 %v8346_v60  ;;  %v7833_v62 = vadd.f32 %v7704_v8, %v6076_v24 }
 0xaa5   : > { %12513 = vrcp.f32 %v8475_v54 }
 0xaa6   : > { %v7965_v28 = vadd.f32 %v15934_v35, %v7833_v62 }
 0xaa8   : > { %v8093_v31 = vsub.f32 0.0, %v7965_v28 }
 0xaaa   : > { %v12512_v2 = vpop.eup %12511  ;;  %v8348_v51 = vmul.f32 1.442695, %v8093_v31 }
 0xaab   : > { %v12514_v30 = vpop.eup %12513  ;;  %v8476_v33 = vadd.f32 1.0, %v12512_v2 }
 0xaac   : > { %8731 = vst [vmem:[%s15089_s26 + $0x3e8] sm:$0xff] %v12514_v30  ;;  %12515 = vpow2.f32 %v8348_v51 }
 0xaad   : > { %12517 = vrcp.f32 %v8476_v33 }
 0xab2   : > { %v12516_v4 = vpop.eup %12515 }
 0xab3   : > { %v12518_v43 = vpop.eup %12517  ;;  %v8477_v57 = vadd.f32 1.0, %v12516_v4 }
 0xab4   : > { %8732 = vst [vmem:[%s15089_s26 + $0x3f0] sm:$0xff] %v12518_v43 }
 0xab5   : > { %12519 = vrcp.f32 %v8477_v57 }
 0xabb   : > { %v12520_v29 = vpop.eup %12519 }
 0xabc   : > { %8733 = vst [vmem:[%s15089_s26 + $0x3f8] sm:$0xff] %v12520_v29 }
 0xabd PF: > { %s13_s12 = sadd.s32 1, %s12532_s12  }
 0xabe   : > { %p10_p4 = scmp.ge.s32.totalorder %s13_s12, 6  }
 0xac0   :  { %12 = sbr.rel (!%p10_p4) target bundleno = 1 (0x1), region = 66 }

</bundles_post_ra>
